<compile_context>
chip_gen: v5e
topology: v5e:2x2
jax: 0.10.0
libtpu: 0.0.40
codegen_flags: <defaults>
</compile_context>

<pallas_src>
import jax
import jax.numpy as jnp
from jax.experimental import pallas as pl
from jax.experimental.pallas import tpu as pltpu

E = 100          # embedding dim (LSTM input_size)
EP = 128         # lane-aligned padded embedding dim
H = 200          # LSTM hidden_size (PyTorch)
HP = 256         # lane-aligned padded hidden size
GH = 4 * HP      # packed gate width (i, f, g, o), each HP wide
HID = 30         # hidden Linear out
HIDP = 128       # padded hidden Linear out
NCLS = 4         # classifier out
CP = 128         # padded classifier out


# --------------------------------------------------------------------------- #
# Fused kernel: per (batch tile, time chunk)
#   1) xp = x_chunk @ W_ih + b       (one big MXU matmul into VMEM scratch)
#   2) recurrence: g = xp_t + h @ W_hh  -> gates -> (h, c)
#   3) on the last time chunk: MLP head on h_n
#   grid = (batch tiles [parallel], time chunks [arbitrary])
# --------------------------------------------------------------------------- #
def _lstm_head_kernel(x_ref,     # (t_chunk*Bt, EP) f32  embedded input chunk (time-major in tile)
                      wih_ref,   # (EP, GH)  bf16
                      b_ref,     # (1, GH)   f32  (b_ih + b_hh, gate-padded)
                      whh_ref,   # (HP, GH)  bf16
                      w1_ref,    # (HP, HIDP) bf16
                      b1_ref,    # (1, HIDP)  f32
                      w2_ref,    # (HIDP, CP) bf16
                      b2_ref,    # (1, CP)    f32
                      out_ref,   # (Bt, CP)   f32
                      xp_ref,    # scratch (t_chunk*Bt, GH) f32
                      h_ref,     # scratch (Bt, HP) f32
                      c_ref):    # scratch (Bt, HP) f32
    tc = pl.program_id(1)
    Bt = h_ref.shape[0]
    rows = x_ref.shape[0]
    Tt = rows // Bt

    @pl.when(tc == 0)
    def _():
        h_ref[...] = jnp.zeros_like(h_ref)
        c_ref[...] = jnp.zeros_like(c_ref)

    # (1) hoisted input projection for the whole chunk, bias folded in once.
    xp_ref[...] = (
        jnp.dot(x_ref[...].astype(jnp.bfloat16), wih_ref[...],
                preferred_element_type=jnp.float32)
        + b_ref[...]
    )

    whh = whh_ref[...]   # loaded once per chunk, reused every step

    def step(i, carry):
        h, c = carry
        row0 = pl.multiple_of(i * Bt, 8)          # Bt % 8 == 0 -> sublane-aligned slice
        g = xp_ref[pl.ds(row0, Bt), :] + jnp.dot(
            h.astype(jnp.bfloat16), whh, preferred_element_type=jnp.float32)
        # lane-aligned gate slices (multiples of 256). Padded lanes stay inert:
        # bias/weight padding is zero and c starts at 0, so c_pad = 0.5*c_pad + 0.5*0 = 0.
        i_g = jax.nn.sigmoid(g[:, 0 * HP:1 * HP])
        f_g = jax.nn.sigmoid(g[:, 1 * HP:2 * HP])
        g_g = jnp.tanh(g[:, 2 * HP:3 * HP])
        o_g = jax.nn.sigmoid(g[:, 3 * HP:4 * HP])
        c = f_g * c + i_g * g_g
        h = o_g * jnp.tanh(c)
        return h, c

    # Keep unroll modest at large batch tiles: each unrolled step holds a (Bt, 1024)
    # f32 'g' plus gate slices live -> spills past the 64x4KiB vreg file at unroll=8.
    if Tt * Bt <= 256:
        unroll = True
    elif Bt <= 32:
        unroll = 4
    else:
        unroll = 2

    h, c = jax.lax.fori_loop(0, Tt, step, (h_ref[...], c_ref[...]), unroll=unroll)
    h_ref[...] = h
    c_ref[...] = c

    @pl.when(tc == pl.num_programs(1) - 1)
    def _():
        # meaning = h_n  ->  Linear(200,30) -> ReLU -> Linear(30,4)   (lane-padded)
        hid = jnp.dot(h.astype(jnp.bfloat16), w1_ref[...],
                      preferred_element_type=jnp.float32) + b1_ref[...]
        hid = jnp.maximum(hid, 0.0)
        out_ref[...] = jnp.dot(hid.astype(jnp.bfloat16), w2_ref[...],
                               preferred_element_type=jnp.float32) + b2_ref[...]


# --------------------------------------------------------------------------- #
# Parameter packing: pad E->128, gates to HP=256 lanes, head dims to 128; bf16 weights.
# Padded rows/cols are zero so padded lanes are inert (see kernel comment).
# --------------------------------------------------------------------------- #
def _pack_params(p):
    V = p["embedding"].shape[0]
    emb_p = jnp.zeros((V, EP), jnp.float32).at[:, :E].set(p["embedding"])
    wih_p = jnp.zeros((EP, GH), jnp.float32)
    whh_p = jnp.zeros((HP, GH), jnp.float32)
    b_p = jnp.zeros((1, GH), jnp.float32)
    for k in range(4):  # PyTorch gate order [i, f, g, o]
        wih_p = wih_p.at[:E, k * HP:k * HP + H].set(p["w_ih"][:, k * H:(k + 1) * H])
        whh_p = whh_p.at[:H, k * HP:k * HP + H].set(p["w_hh"][:, k * H:(k + 1) * H])
        b_p = b_p.at[:, k * HP:k * HP + H].set(p["b_gates"][:, k * H:(k + 1) * H])
    w1_p = jnp.zeros((HP, HIDP), jnp.float32).at[:H, :HID].set(p["w1"])
    b1_p = jnp.zeros((1, HIDP), jnp.float32).at[:, :HID].set(p["b1"])
    w2_p = jnp.zeros((HIDP, CP), jnp.float32).at[:HID, :NCLS].set(p["w2"])
    b2_p = jnp.zeros((1, CP), jnp.float32).at[:, :NCLS].set(p["b2"])
    return {
        "embedding": emb_p,
        "w_ih": wih_p.astype(jnp.bfloat16),
        "w_hh": whh_p.astype(jnp.bfloat16),
        "b_gates": b_p,
        "w1": w1_p.astype(jnp.bfloat16),
        "b1": b1_p,
        "w2": w2_p.astype(jnp.bfloat16),
        "b2": b2_p,
    }


def _round_up(x, m):
    return ((x + m - 1) // m) * m


def _largest_divisor_leq(n, cap):
    for d in range(min(n, cap), 0, -1):
        if n % d == 0:
            return d
    return 1


def _choose_batch_tiling(B, cap=128):
    """Pick (block_b, B_pad): MXU-friendly tiles, >=2 tiles when batch allows (megacore)."""
    b8 = _round_up(B, 8)
    if b8 <= 8:
        return b8, b8                       # single tiny tile (toy batches)
    if b8 <= 2 * cap:
        bb = _round_up(-(-b8 // 2), 8)      # split into two tiles for the 2 v7x TCs
        return bb, 2 * bb
    return cap, _round_up(b8, cap)


# --------------------------------------------------------------------------- #
# Forward wrapper
# --------------------------------------------------------------------------- #
def classification_forward(token_ids, params):
    """token_ids: (B, T) int32. Returns logits (B, NCLS) float32."""
    B, T = token_ids.shape
    kp = _pack_params(params)

    block_b, B_pad = _choose_batch_tiling(B)
    n_bt = B_pad // block_b

    # Cap the per-chunk xp scratch at 2048 rows (= 8 MiB f32) -> v7x 64 MiB friendly.
    t_cap = max(1, min(T, 2048 // block_b))
    t_chunk = _largest_divisor_leq(T, t_cap)
    n_tc = T // t_chunk
    rows = t_chunk * block_b

    # Pad batch (padded rows use token 0; they are independent and sliced off).
    ids = jnp.zeros((B_pad, T), token_ids.dtype).at[:B].set(token_ids)

    # Gather in (batch_tile, time, row-in-tile) order so each kernel invocation
    # reads one contiguous (t_chunk*block_b, EP) slab (no in-kernel reshape).
    flat_ids = jnp.transpose(ids.reshape(n_bt, block_b, T), (0, 2, 1)).reshape(-1)
    x = jnp.take(kp["embedding"], flat_ids, axis=0).reshape(n_bt, T * block_b, EP)

    # Explicit VMEM budget with headroom (lifts v5e 16 MiB / v6e-v7x 32 MiB scoped defaults).
    est = (2 * rows * EP * 4            # x chunk, double-buffered
           + rows * GH * 4              # xp scratch
           + 2 * block_b * HP * 4       # h, c
           + 2 * block_b * CP * 4       # out, double-buffered
           + 2 * 2 * (EP * GH + HP * GH + HP * HIDP + HIDP * CP)   # bf16 weights x2 buf
           + 2 * 4 * (GH + HIDP + CP))  # biases
    vmem_limit = int(min(64 * 1024 * 1024, max(32 * 1024 * 1024, 1.5 * est)))

    out = pl.pallas_call(
        _lstm_head_kernel,
        out_shape=jax.ShapeDtypeStruct((B_pad, CP), jnp.float32),
        grid=(n_bt, n_tc),
        in_specs=[
            pl.BlockSpec((None, rows, EP), lambda b, tc: (b, tc, 0)),   # x chunk
            pl.BlockSpec((EP, GH), lambda b, tc: (0, 0)),               # W_ih
            pl.BlockSpec((1, GH), lambda b, tc: (0, 0)),                # b (gates)
            pl.BlockSpec((HP, GH), lambda b, tc: (0, 0)),               # W_hh
            pl.BlockSpec((HP, HIDP), lambda b, tc: (0, 0)),             # W1
            pl.BlockSpec((1, HIDP), lambda b, tc: (0, 0)),              # b1
            pl.BlockSpec((HIDP, CP), lambda b, tc: (0, 0)),             # W2
            pl.BlockSpec((1, CP), lambda b, tc: (0, 0)),                # b2
        ],
        out_specs=pl.BlockSpec((block_b, CP), lambda b, tc: (b, 0)),
        scratch_shapes=[
            pltpu.VMEM((rows, GH), jnp.float32),      # xp (fused input projection)
            pltpu.VMEM((block_b, HP), jnp.float32),   # h
            pltpu.VMEM((block_b, HP), jnp.float32),   # c
        ],
        compiler_params=pltpu.CompilerParams(
            dimension_semantics=("parallel", "arbitrary"),
            vmem_limit_bytes=vmem_limit),
    )(x, kp["w_ih"], kp["b_gates"], kp["w_hh"], kp["w1"], kp["b1"], kp["w2"], kp["b2"])

    return out[:B, :NCLS]


# --------------------------------------------------------------------------- #
# Parameters + pure-JAX reference (same bf16-matmul precision choice)
# --------------------------------------------------------------------------- #
def init_params(key, vocab_size):
    ks = jax.random.split(key, 8)
    s = 0.1
    return {
        "embedding": jax.random.normal(ks[0], (vocab_size, E), jnp.float32) * s,
        # stored pre-transposed relative to PyTorch ((4H,E)/(4H,H) -> (E,4H)/(H,4H))
        "w_ih": jax.random.normal(ks[1], (E, 4 * H), jnp.float32) * s,
        "w_hh": jax.random.normal(ks[2], (H, 4 * H), jnp.float32) * s,
        "b_gates": jax.random.normal(ks[3], (1, 4 * H), jnp.float32) * s,  # b_ih + b_hh
        "w1": jax.random.normal(ks[4], (H, HID), jnp.float32) * s,
        "b1": jax.random.normal(ks[5], (1, HID), jnp.float32) * s,
        "w2": jax.random.normal(ks[6], (NCLS * 0 + HID, NCLS), jnp.float32) * s,
        "b2": jax.random.normal(ks[7], (1, NCLS), jnp.float32) * s,
    }


def reference_forward(token_ids, params):
    """lax.scan LSTM reference using the same bf16-input / f32-accumulate matmuls."""
    bf = jnp.bfloat16
    x = jnp.take(params["embedding"], token_ids, axis=0)   # (B, T, E)
    B = x.shape[0]
    wih = params["w_ih"].astype(bf)
    whh = params["w_hh"].astype(bf)

    def step(carry, x_t):
        h, c = carry
        gates = (jnp.dot(x_t.astype(bf), wih, preferred_element_type=jnp.float32)
                 + jnp.dot(h.astype(bf), whh, preferred_element_type=jnp.float32)
                 + params["b_gates"])
        i_g = jax.nn.sigmoid(gates[:, 0:H])
        f_g = jax.nn.sigmoid(gates[:, H:2 * H])
        g_g = jnp.tanh(gates[:, 2 * H:3 * H])
        o_g = jax.nn.sigmoid(gates[:, 3 * H:4 * H])
        c = f_g * c + i_g * g_g
        h = o_g * jnp.tanh(c)
        return (h, c), None

    h0 = jnp.zeros((B, H), jnp.float32)
    c0 = jnp.zeros((B, H), jnp.float32)
    (h_n, _), _ = jax.lax.scan(step, (h0, c0), jnp.transpose(x, (1, 0, 2)))
    hid = jnp.maximum(
        jnp.dot(h_n.astype(bf), params["w1"].astype(bf),
                preferred_element_type=jnp.float32) + params["b1"], 0.0)
    return (jnp.dot(hid.astype(bf), params["w2"].astype(bf),
                    preferred_element_type=jnp.float32) + params["b2"])


if __name__ == "__main__":
    key = jax.random.PRNGKey(0)
    k_par, k_tok = jax.random.split(key)

    VOCAB = 50
    B, T = 2, 8
    params = init_params(k_par, VOCAB)
    token_ids = jax.random.randint(k_tok, (B, T), 0, VOCAB, dtype=jnp.int32)

    logits = classification_forward(token_ids, params)
    logits = jax.block_until_ready(logits)

    ref = jax.block_until_ready(reference_forward(token_ids, params))
    assert logits.shape == (B, NCLS)
    assert jnp.allclose(logits, ref, atol=2e-2, rtol=2e-2), (
        f"max abs diff {jnp.max(jnp.abs(logits - ref))}")

    print("KERNEL_OK")
</pallas_src>

<mosaic_0001>
module attributes {stable_mosaic.version = 11 : i64} {
  func.func @_lstm_head_kernel(%arg0: i32, %arg1: i32, %arg2: memref<1x64x128xf32, #tpu.memory_space<vmem>>, %arg3: memref<128x1024xbf16, #tpu.memory_space<vmem>>, %arg4: memref<1x1024xf32, #tpu.memory_space<vmem>>, %arg5: memref<256x1024xbf16, #tpu.memory_space<vmem>>, %arg6: memref<256x128xbf16, #tpu.memory_space<vmem>>, %arg7: memref<1x128xf32, #tpu.memory_space<vmem>>, %arg8: memref<128x128xbf16, #tpu.memory_space<vmem>>, %arg9: memref<1x128xf32, #tpu.memory_space<vmem>>, %arg10: memref<8x128xf32, #tpu.memory_space<vmem>>, %arg11: memref<64x1024xf32, #tpu.memory_space<vmem>>, %arg12: memref<8x256xf32, #tpu.memory_space<vmem>>, %arg13: memref<8x256xf32, #tpu.memory_space<vmem>>) attributes {dimension_semantics = [#tpu.dimension_semantics<parallel>, #tpu.dimension_semantics<arbitrary>], iteration_bounds = array<i64: 1, 1>, scalar_prefetch = 0 : i64, scratch_operands = 3 : i64, tpu.core_type = #tpu.core_type<tc>, window_params = [{transform_indices = @transform_0, window_bounds = array<i64: 1, 64, 128>}, {pipeline_mode = #tpu.pipeline_mode<synchronous>, transform_indices = @transform_1, window_bounds = array<i64: 128, 1024>}, {pipeline_mode = #tpu.pipeline_mode<synchronous>, transform_indices = @transform_2, window_bounds = array<i64: 1, 1024>}, {pipeline_mode = #tpu.pipeline_mode<synchronous>, transform_indices = @transform_3, window_bounds = array<i64: 256, 1024>}, {pipeline_mode = #tpu.pipeline_mode<synchronous>, transform_indices = @transform_4, window_bounds = array<i64: 256, 128>}, {pipeline_mode = #tpu.pipeline_mode<synchronous>, transform_indices = @transform_5, window_bounds = array<i64: 1, 128>}, {pipeline_mode = #tpu.pipeline_mode<synchronous>, transform_indices = @transform_6, window_bounds = array<i64: 128, 128>}, {pipeline_mode = #tpu.pipeline_mode<synchronous>, transform_indices = @transform_7, window_bounds = array<i64: 1, 128>}, {transform_indices = @transform_8, window_bounds = array<i64: 8, 128>}]} {
    %c0_i32 = arith.constant 0 : i32
    %0 = arith.cmpi eq, %arg1, %c0_i32 : i32
    %1 = arith.extui %0 : i1 to i32
    %c0_i32_0 = arith.constant 0 : i32
    %2 = arith.cmpi ne, %1, %c0_i32_0 : i32
    scf.if %2 {
      %cst_70 = arith.constant 0.000000e+00 : f32
      %276 = vector.broadcast %cst_70 : f32 to vector<8x256xf32>
      %c0_71 = arith.constant 0 : index
      %c0_72 = arith.constant 0 : index
      %277 = vector.load %arg12[%c0_71, %c0_72] : memref<8x256xf32, #tpu.memory_space<vmem>>, vector<8x256xf32>
      tpu.vector_store %arg12[%c0_71, %c0_72], %276 {strides = array<i32>} : memref<8x256xf32, #tpu.memory_space<vmem>>, vector<8x256xf32>,
      %cst_73 = arith.constant 0.000000e+00 : f32
      %278 = vector.broadcast %cst_73 : f32 to vector<8x256xf32>
      %c0_74 = arith.constant 0 : index
      %c0_75 = arith.constant 0 : index
      %279 = vector.load %arg13[%c0_74, %c0_75] : memref<8x256xf32, #tpu.memory_space<vmem>>, vector<8x256xf32>
      tpu.vector_store %arg13[%c0_74, %c0_75], %278 {strides = array<i32>} : memref<8x256xf32, #tpu.memory_space<vmem>>, vector<8x256xf32>,
    } else {
    }
    %c0 = arith.constant 0 : index
    %c0_1 = arith.constant 0 : index
    %c0_2 = arith.constant 0 : index
    %3 = vector.load %arg2[%c0, %c0_1, %c0_2] : memref<1x64x128xf32, #tpu.memory_space<vmem>>, vector<1x64x128xf32>
    %4 = vector.shape_cast %3 : vector<1x64x128xf32> to vector<64x128xf32>
    %5 = arith.truncf %4 : vector<64x128xf32> to vector<64x128xbf16>
    %c0_3 = arith.constant 0 : index
    %c0_4 = arith.constant 0 : index
    %6 = vector.load %arg3[%c0_3, %c0_4] : memref<128x1024xbf16, #tpu.memory_space<vmem>>, vector<128x1024xbf16>
    %cst = arith.constant dense<0.000000e+00> : vector<64x1024xf32>
    %7 = tpu.matmul %5, %6, %cst {dimension_numbers = #tpu.dot_dimension_numbers<[1], [0], [0], [1], [0, 0, 1, 1], [], []>} : vector<64x128xbf16>, vector<128x1024xbf16>, vector<64x1024xf32> -> vector<64x1024xf32>
    %c0_5 = arith.constant 0 : index
    %c0_6 = arith.constant 0 : index
    %8 = vector.load %arg4[%c0_5, %c0_6] : memref<1x1024xf32, #tpu.memory_space<vmem>>, vector<1x1024xf32>
    %9 = vector.broadcast %8 : vector<1x1024xf32> to vector<64x1024xf32>
    %10 = arith.addf %7, %9 : vector<64x1024xf32>
    %c0_7 = arith.constant 0 : index
    %c0_8 = arith.constant 0 : index
    %11 = vector.load %arg11[%c0_7, %c0_8] : memref<64x1024xf32, #tpu.memory_space<vmem>>, vector<64x1024xf32>
    tpu.vector_store %arg11[%c0_7, %c0_8], %10 {strides = array<i32>} : memref<64x1024xf32, #tpu.memory_space<vmem>>, vector<64x1024xf32>,
    %c0_9 = arith.constant 0 : index
    %c0_10 = arith.constant 0 : index
    %12 = vector.load %arg5[%c0_9, %c0_10] : memref<256x1024xbf16, #tpu.memory_space<vmem>>, vector<256x1024xbf16>
    %c0_11 = arith.constant 0 : index
    %c0_12 = arith.constant 0 : index
    %13 = vector.load %arg12[%c0_11, %c0_12] : memref<8x256xf32, #tpu.memory_space<vmem>>, vector<8x256xf32>
    %c0_13 = arith.constant 0 : index
    %c0_14 = arith.constant 0 : index
    %14 = vector.load %arg13[%c0_13, %c0_14] : memref<8x256xf32, #tpu.memory_space<vmem>>, vector<8x256xf32>
    %c0_i32_15 = arith.constant 0 : i32
    %c8_i32 = arith.constant 8 : i32
    %15 = arith.muli %c0_i32_15, %c8_i32 : i32
    %16 = tpu.assume_multiple %15, 8 : i32
    %17 = arith.index_cast %16 : i32 to index
    %c0_16 = arith.constant 0 : index
    %18 = vector.load %arg11[%17, %c0_16] : memref<64x1024xf32, #tpu.memory_space<vmem>>, vector<8x1024xf32>
    %19 = arith.truncf %13 : vector<8x256xf32> to vector<8x256xbf16>
    %cst_17 = arith.constant dense<0.000000e+00> : vector<8x1024xf32>
    %20 = tpu.matmul %19, %12, %cst_17 {dimension_numbers = #tpu.dot_dimension_numbers<[1], [0], [0], [1], [0, 0, 1, 1], [], []>} : vector<8x256xbf16>, vector<256x1024xbf16>, vector<8x1024xf32> -> vector<8x1024xf32>
    %21 = arith.addf %18, %20 : vector<8x1024xf32>
    %22 = vector.extract_strided_slice %21 {offsets = [0, 0], sizes = [8, 256], strides = [1, 1]} : vector<8x1024xf32> to vector<8x256xf32>
    %23 = arith.negf %22 : vector<8x256xf32>
    %24 = math.exp %23 : vector<8x256xf32>
    %cst_18 = arith.constant 1.000000e+00 : f32
    %25 = vector.broadcast %cst_18 : f32 to vector<8x256xf32>
    %26 = arith.addf %25, %24 : vector<8x256xf32>
    %27 = arith.divf %25, %26 : vector<8x256xf32>
    %28 = vector.extract_strided_slice %21 {offsets = [0, 256], sizes = [8, 256], strides = [1, 1]} : vector<8x1024xf32> to vector<8x256xf32>
    %29 = arith.negf %28 : vector<8x256xf32>
    %30 = math.exp %29 : vector<8x256xf32>
    %cst_19 = arith.constant 1.000000e+00 : f32
    %31 = vector.broadcast %cst_19 : f32 to vector<8x256xf32>
    %32 = arith.addf %31, %30 : vector<8x256xf32>
    %33 = arith.divf %31, %32 : vector<8x256xf32>
    %34 = vector.extract_strided_slice %21 {offsets = [0, 512], sizes = [8, 256], strides = [1, 1]} : vector<8x1024xf32> to vector<8x256xf32>
    %35 = math.tanh %34 : vector<8x256xf32>
    %36 = vector.extract_strided_slice %21 {offsets = [0, 768], sizes = [8, 256], strides = [1, 1]} : vector<8x1024xf32> to vector<8x256xf32>
    %37 = arith.negf %36 : vector<8x256xf32>
    %38 = math.exp %37 : vector<8x256xf32>
    %cst_20 = arith.constant 1.000000e+00 : f32
    %39 = vector.broadcast %cst_20 : f32 to vector<8x256xf32>
    %40 = arith.addf %39, %38 : vector<8x256xf32>
    %41 = arith.divf %39, %40 : vector<8x256xf32>
    %42 = arith.mulf %33, %14 : vector<8x256xf32>
    %43 = arith.mulf %27, %35 : vector<8x256xf32>
    %44 = arith.addf %42, %43 : vector<8x256xf32>
    %45 = math.tanh %44 : vector<8x256xf32>
    %46 = arith.mulf %41, %45 : vector<8x256xf32>
    %c1_i32 = arith.constant 1 : i32
    %c8_i32_21 = arith.constant 8 : i32
    %47 = arith.muli %c1_i32, %c8_i32_21 : i32
    %48 = tpu.assume_multiple %47, 8 : i32
    %49 = arith.index_cast %48 : i32 to index
    %c0_22 = arith.constant 0 : index
    %50 = vector.load %arg11[%49, %c0_22] : memref<64x1024xf32, #tpu.memory_space<vmem>>, vector<8x1024xf32>
    %51 = arith.truncf %46 : vector<8x256xf32> to vector<8x256xbf16>
    %cst_23 = arith.constant dense<0.000000e+00> : vector<8x1024xf32>
    %52 = tpu.matmul %51, %12, %cst_23 {dimension_numbers = #tpu.dot_dimension_numbers<[1], [0], [0], [1], [0, 0, 1, 1], [], []>} : vector<8x256xbf16>, vector<256x1024xbf16>, vector<8x1024xf32> -> vector<8x1024xf32>
    %53 = arith.addf %50, %52 : vector<8x1024xf32>
    %54 = vector.extract_strided_slice %53 {offsets = [0, 0], sizes = [8, 256], strides = [1, 1]} : vector<8x1024xf32> to vector<8x256xf32>
    %55 = arith.negf %54 : vector<8x256xf32>
    %56 = math.exp %55 : vector<8x256xf32>
    %cst_24 = arith.constant 1.000000e+00 : f32
    %57 = vector.broadcast %cst_24 : f32 to vector<8x256xf32>
    %58 = arith.addf %57, %56 : vector<8x256xf32>
    %59 = arith.divf %57, %58 : vector<8x256xf32>
    %60 = vector.extract_strided_slice %53 {offsets = [0, 256], sizes = [8, 256], strides = [1, 1]} : vector<8x1024xf32> to vector<8x256xf32>
    %61 = arith.negf %60 : vector<8x256xf32>
    %62 = math.exp %61 : vector<8x256xf32>
    %cst_25 = arith.constant 1.000000e+00 : f32
    %63 = vector.broadcast %cst_25 : f32 to vector<8x256xf32>
    %64 = arith.addf %63, %62 : vector<8x256xf32>
    %65 = arith.divf %63, %64 : vector<8x256xf32>
    %66 = vector.extract_strided_slice %53 {offsets = [0, 512], sizes = [8, 256], strides = [1, 1]} : vector<8x1024xf32> to vector<8x256xf32>
    %67 = math.tanh %66 : vector<8x256xf32>
    %68 = vector.extract_strided_slice %53 {offsets = [0, 768], sizes = [8, 256], strides = [1, 1]} : vector<8x1024xf32> to vector<8x256xf32>
    %69 = arith.negf %68 : vector<8x256xf32>
    %70 = math.exp %69 : vector<8x256xf32>
    %cst_26 = arith.constant 1.000000e+00 : f32
    %71 = vector.broadcast %cst_26 : f32 to vector<8x256xf32>
    %72 = arith.addf %71, %70 : vector<8x256xf32>
    %73 = arith.divf %71, %72 : vector<8x256xf32>
    %74 = arith.mulf %65, %44 : vector<8x256xf32>
    %75 = arith.mulf %59, %67 : vector<8x256xf32>
    %76 = arith.addf %74, %75 : vector<8x256xf32>
    %77 = math.tanh %76 : vector<8x256xf32>
    %78 = arith.mulf %73, %77 : vector<8x256xf32>
    %c2_i32 = arith.constant 2 : i32
    %c8_i32_27 = arith.constant 8 : i32
    %79 = arith.muli %c2_i32, %c8_i32_27 : i32
    %80 = tpu.assume_multiple %79, 8 : i32
    %81 = arith.index_cast %80 : i32 to index
    %c0_28 = arith.constant 0 : index
    %82 = vector.load %arg11[%81, %c0_28] : memref<64x1024xf32, #tpu.memory_space<vmem>>, vector<8x1024xf32>
    %83 = arith.truncf %78 : vector<8x256xf32> to vector<8x256xbf16>
    %cst_29 = arith.constant dense<0.000000e+00> : vector<8x1024xf32>
    %84 = tpu.matmul %83, %12, %cst_29 {dimension_numbers = #tpu.dot_dimension_numbers<[1], [0], [0], [1], [0, 0, 1, 1], [], []>} : vector<8x256xbf16>, vector<256x1024xbf16>, vector<8x1024xf32> -> vector<8x1024xf32>
    %85 = arith.addf %82, %84 : vector<8x1024xf32>
    %86 = vector.extract_strided_slice %85 {offsets = [0, 0], sizes = [8, 256], strides = [1, 1]} : vector<8x1024xf32> to vector<8x256xf32>
    %87 = arith.negf %86 : vector<8x256xf32>
    %88 = math.exp %87 : vector<8x256xf32>
    %cst_30 = arith.constant 1.000000e+00 : f32
    %89 = vector.broadcast %cst_30 : f32 to vector<8x256xf32>
    %90 = arith.addf %89, %88 : vector<8x256xf32>
    %91 = arith.divf %89, %90 : vector<8x256xf32>
    %92 = vector.extract_strided_slice %85 {offsets = [0, 256], sizes = [8, 256], strides = [1, 1]} : vector<8x1024xf32> to vector<8x256xf32>
    %93 = arith.negf %92 : vector<8x256xf32>
    %94 = math.exp %93 : vector<8x256xf32>
    %cst_31 = arith.constant 1.000000e+00 : f32
    %95 = vector.broadcast %cst_31 : f32 to vector<8x256xf32>
    %96 = arith.addf %95, %94 : vector<8x256xf32>
    %97 = arith.divf %95, %96 : vector<8x256xf32>
    %98 = vector.extract_strided_slice %85 {offsets = [0, 512], sizes = [8, 256], strides = [1, 1]} : vector<8x1024xf32> to vector<8x256xf32>
    %99 = math.tanh %98 : vector<8x256xf32>
    %100 = vector.extract_strided_slice %85 {offsets = [0, 768], sizes = [8, 256], strides = [1, 1]} : vector<8x1024xf32> to vector<8x256xf32>
    %101 = arith.negf %100 : vector<8x256xf32>
    %102 = math.exp %101 : vector<8x256xf32>
    %cst_32 = arith.constant 1.000000e+00 : f32
    %103 = vector.broadcast %cst_32 : f32 to vector<8x256xf32>
    %104 = arith.addf %103, %102 : vector<8x256xf32>
    %105 = arith.divf %103, %104 : vector<8x256xf32>
    %106 = arith.mulf %97, %76 : vector<8x256xf32>
    %107 = arith.mulf %91, %99 : vector<8x256xf32>
    %108 = arith.addf %106, %107 : vector<8x256xf32>
    %109 = math.tanh %108 : vector<8x256xf32>
    %110 = arith.mulf %105, %109 : vector<8x256xf32>
    %c3_i32 = arith.constant 3 : i32
    %c8_i32_33 = arith.constant 8 : i32
    %111 = arith.muli %c3_i32, %c8_i32_33 : i32
    %112 = tpu.assume_multiple %111, 8 : i32
    %113 = arith.index_cast %112 : i32 to index
    %c0_34 = arith.constant 0 : index
    %114 = vector.load %arg11[%113, %c0_34] : memref<64x1024xf32, #tpu.memory_space<vmem>>, vector<8x1024xf32>
    %115 = arith.truncf %110 : vector<8x256xf32> to vector<8x256xbf16>
    %cst_35 = arith.constant dense<0.000000e+00> : vector<8x1024xf32>
    %116 = tpu.matmul %115, %12, %cst_35 {dimension_numbers = #tpu.dot_dimension_numbers<[1], [0], [0], [1], [0, 0, 1, 1], [], []>} : vector<8x256xbf16>, vector<256x1024xbf16>, vector<8x1024xf32> -> vector<8x1024xf32>
    %117 = arith.addf %114, %116 : vector<8x1024xf32>
    %118 = vector.extract_strided_slice %117 {offsets = [0, 0], sizes = [8, 256], strides = [1, 1]} : vector<8x1024xf32> to vector<8x256xf32>
    %119 = arith.negf %118 : vector<8x256xf32>
    %120 = math.exp %119 : vector<8x256xf32>
    %cst_36 = arith.constant 1.000000e+00 : f32
    %121 = vector.broadcast %cst_36 : f32 to vector<8x256xf32>
    %122 = arith.addf %121, %120 : vector<8x256xf32>
    %123 = arith.divf %121, %122 : vector<8x256xf32>
    %124 = vector.extract_strided_slice %117 {offsets = [0, 256], sizes = [8, 256], strides = [1, 1]} : vector<8x1024xf32> to vector<8x256xf32>
    %125 = arith.negf %124 : vector<8x256xf32>
    %126 = math.exp %125 : vector<8x256xf32>
    %cst_37 = arith.constant 1.000000e+00 : f32
    %127 = vector.broadcast %cst_37 : f32 to vector<8x256xf32>
    %128 = arith.addf %127, %126 : vector<8x256xf32>
    %129 = arith.divf %127, %128 : vector<8x256xf32>
    %130 = vector.extract_strided_slice %117 {offsets = [0, 512], sizes = [8, 256], strides = [1, 1]} : vector<8x1024xf32> to vector<8x256xf32>
    %131 = math.tanh %130 : vector<8x256xf32>
    %132 = vector.extract_strided_slice %117 {offsets = [0, 768], sizes = [8, 256], strides = [1, 1]} : vector<8x1024xf32> to vector<8x256xf32>
    %133 = arith.negf %132 : vector<8x256xf32>
    %134 = math.exp %133 : vector<8x256xf32>
    %cst_38 = arith.constant 1.000000e+00 : f32
    %135 = vector.broadcast %cst_38 : f32 to vector<8x256xf32>
    %136 = arith.addf %135, %134 : vector<8x256xf32>
    %137 = arith.divf %135, %136 : vector<8x256xf32>
    %138 = arith.mulf %129, %108 : vector<8x256xf32>
    %139 = arith.mulf %123, %131 : vector<8x256xf32>
    %140 = arith.addf %138, %139 : vector<8x256xf32>
    %141 = math.tanh %140 : vector<8x256xf32>
    %142 = arith.mulf %137, %141 : vector<8x256xf32>
    %c4_i32 = arith.constant 4 : i32
    %c8_i32_39 = arith.constant 8 : i32
    %143 = arith.muli %c4_i32, %c8_i32_39 : i32
    %144 = tpu.assume_multiple %143, 8 : i32
    %145 = arith.index_cast %144 : i32 to index
    %c0_40 = arith.constant 0 : index
    %146 = vector.load %arg11[%145, %c0_40] : memref<64x1024xf32, #tpu.memory_space<vmem>>, vector<8x1024xf32>
    %147 = arith.truncf %142 : vector<8x256xf32> to vector<8x256xbf16>
    %cst_41 = arith.constant dense<0.000000e+00> : vector<8x1024xf32>
    %148 = tpu.matmul %147, %12, %cst_41 {dimension_numbers = #tpu.dot_dimension_numbers<[1], [0], [0], [1], [0, 0, 1, 1], [], []>} : vector<8x256xbf16>, vector<256x1024xbf16>, vector<8x1024xf32> -> vector<8x1024xf32>
    %149 = arith.addf %146, %148 : vector<8x1024xf32>
    %150 = vector.extract_strided_slice %149 {offsets = [0, 0], sizes = [8, 256], strides = [1, 1]} : vector<8x1024xf32> to vector<8x256xf32>
    %151 = arith.negf %150 : vector<8x256xf32>
    %152 = math.exp %151 : vector<8x256xf32>
    %cst_42 = arith.constant 1.000000e+00 : f32
    %153 = vector.broadcast %cst_42 : f32 to vector<8x256xf32>
    %154 = arith.addf %153, %152 : vector<8x256xf32>
    %155 = arith.divf %153, %154 : vector<8x256xf32>
    %156 = vector.extract_strided_slice %149 {offsets = [0, 256], sizes = [8, 256], strides = [1, 1]} : vector<8x1024xf32> to vector<8x256xf32>
    %157 = arith.negf %156 : vector<8x256xf32>
    %158 = math.exp %157 : vector<8x256xf32>
    %cst_43 = arith.constant 1.000000e+00 : f32
    %159 = vector.broadcast %cst_43 : f32 to vector<8x256xf32>
    %160 = arith.addf %159, %158 : vector<8x256xf32>
    %161 = arith.divf %159, %160 : vector<8x256xf32>
    %162 = vector.extract_strided_slice %149 {offsets = [0, 512], sizes = [8, 256], strides = [1, 1]} : vector<8x1024xf32> to vector<8x256xf32>
    %163 = math.tanh %162 : vector<8x256xf32>
    %164 = vector.extract_strided_slice %149 {offsets = [0, 768], sizes = [8, 256], strides = [1, 1]} : vector<8x1024xf32> to vector<8x256xf32>
    %165 = arith.negf %164 : vector<8x256xf32>
    %166 = math.exp %165 : vector<8x256xf32>
    %cst_44 = arith.constant 1.000000e+00 : f32
    %167 = vector.broadcast %cst_44 : f32 to vector<8x256xf32>
    %168 = arith.addf %167, %166 : vector<8x256xf32>
    %169 = arith.divf %167, %168 : vector<8x256xf32>
    %170 = arith.mulf %161, %140 : vector<8x256xf32>
    %171 = arith.mulf %155, %163 : vector<8x256xf32>
    %172 = arith.addf %170, %171 : vector<8x256xf32>
    %173 = math.tanh %172 : vector<8x256xf32>
    %174 = arith.mulf %169, %173 : vector<8x256xf32>
    %c5_i32 = arith.constant 5 : i32
    %c8_i32_45 = arith.constant 8 : i32
    %175 = arith.muli %c5_i32, %c8_i32_45 : i32
    %176 = tpu.assume_multiple %175, 8 : i32
    %177 = arith.index_cast %176 : i32 to index
    %c0_46 = arith.constant 0 : index
    %178 = vector.load %arg11[%177, %c0_46] : memref<64x1024xf32, #tpu.memory_space<vmem>>, vector<8x1024xf32>
    %179 = arith.truncf %174 : vector<8x256xf32> to vector<8x256xbf16>
    %cst_47 = arith.constant dense<0.000000e+00> : vector<8x1024xf32>
    %180 = tpu.matmul %179, %12, %cst_47 {dimension_numbers = #tpu.dot_dimension_numbers<[1], [0], [0], [1], [0, 0, 1, 1], [], []>} : vector<8x256xbf16>, vector<256x1024xbf16>, vector<8x1024xf32> -> vector<8x1024xf32>
    %181 = arith.addf %178, %180 : vector<8x1024xf32>
    %182 = vector.extract_strided_slice %181 {offsets = [0, 0], sizes = [8, 256], strides = [1, 1]} : vector<8x1024xf32> to vector<8x256xf32>
    %183 = arith.negf %182 : vector<8x256xf32>
    %184 = math.exp %183 : vector<8x256xf32>
    %cst_48 = arith.constant 1.000000e+00 : f32
    %185 = vector.broadcast %cst_48 : f32 to vector<8x256xf32>
    %186 = arith.addf %185, %184 : vector<8x256xf32>
    %187 = arith.divf %185, %186 : vector<8x256xf32>
    %188 = vector.extract_strided_slice %181 {offsets = [0, 256], sizes = [8, 256], strides = [1, 1]} : vector<8x1024xf32> to vector<8x256xf32>
    %189 = arith.negf %188 : vector<8x256xf32>
    %190 = math.exp %189 : vector<8x256xf32>
    %cst_49 = arith.constant 1.000000e+00 : f32
    %191 = vector.broadcast %cst_49 : f32 to vector<8x256xf32>
    %192 = arith.addf %191, %190 : vector<8x256xf32>
    %193 = arith.divf %191, %192 : vector<8x256xf32>
    %194 = vector.extract_strided_slice %181 {offsets = [0, 512], sizes = [8, 256], strides = [1, 1]} : vector<8x1024xf32> to vector<8x256xf32>
    %195 = math.tanh %194 : vector<8x256xf32>
    %196 = vector.extract_strided_slice %181 {offsets = [0, 768], sizes = [8, 256], strides = [1, 1]} : vector<8x1024xf32> to vector<8x256xf32>
    %197 = arith.negf %196 : vector<8x256xf32>
    %198 = math.exp %197 : vector<8x256xf32>
    %cst_50 = arith.constant 1.000000e+00 : f32
    %199 = vector.broadcast %cst_50 : f32 to vector<8x256xf32>
    %200 = arith.addf %199, %198 : vector<8x256xf32>
    %201 = arith.divf %199, %200 : vector<8x256xf32>
    %202 = arith.mulf %193, %172 : vector<8x256xf32>
    %203 = arith.mulf %187, %195 : vector<8x256xf32>
    %204 = arith.addf %202, %203 : vector<8x256xf32>
    %205 = math.tanh %204 : vector<8x256xf32>
    %206 = arith.mulf %201, %205 : vector<8x256xf32>
    %c6_i32 = arith.constant 6 : i32
    %c8_i32_51 = arith.constant 8 : i32
    %207 = arith.muli %c6_i32, %c8_i32_51 : i32
    %208 = tpu.assume_multiple %207, 8 : i32
    %209 = arith.index_cast %208 : i32 to index
    %c0_52 = arith.constant 0 : index
    %210 = vector.load %arg11[%209, %c0_52] : memref<64x1024xf32, #tpu.memory_space<vmem>>, vector<8x1024xf32>
    %211 = arith.truncf %206 : vector<8x256xf32> to vector<8x256xbf16>
    %cst_53 = arith.constant dense<0.000000e+00> : vector<8x1024xf32>
    %212 = tpu.matmul %211, %12, %cst_53 {dimension_numbers = #tpu.dot_dimension_numbers<[1], [0], [0], [1], [0, 0, 1, 1], [], []>} : vector<8x256xbf16>, vector<256x1024xbf16>, vector<8x1024xf32> -> vector<8x1024xf32>
    %213 = arith.addf %210, %212 : vector<8x1024xf32>
    %214 = vector.extract_strided_slice %213 {offsets = [0, 0], sizes = [8, 256], strides = [1, 1]} : vector<8x1024xf32> to vector<8x256xf32>
    %215 = arith.negf %214 : vector<8x256xf32>
    %216 = math.exp %215 : vector<8x256xf32>
    %cst_54 = arith.constant 1.000000e+00 : f32
    %217 = vector.broadcast %cst_54 : f32 to vector<8x256xf32>
    %218 = arith.addf %217, %216 : vector<8x256xf32>
    %219 = arith.divf %217, %218 : vector<8x256xf32>
    %220 = vector.extract_strided_slice %213 {offsets = [0, 256], sizes = [8, 256], strides = [1, 1]} : vector<8x1024xf32> to vector<8x256xf32>
    %221 = arith.negf %220 : vector<8x256xf32>
    %222 = math.exp %221 : vector<8x256xf32>
    %cst_55 = arith.constant 1.000000e+00 : f32
    %223 = vector.broadcast %cst_55 : f32 to vector<8x256xf32>
    %224 = arith.addf %223, %222 : vector<8x256xf32>
    %225 = arith.divf %223, %224 : vector<8x256xf32>
    %226 = vector.extract_strided_slice %213 {offsets = [0, 512], sizes = [8, 256], strides = [1, 1]} : vector<8x1024xf32> to vector<8x256xf32>
    %227 = math.tanh %226 : vector<8x256xf32>
    %228 = vector.extract_strided_slice %213 {offsets = [0, 768], sizes = [8, 256], strides = [1, 1]} : vector<8x1024xf32> to vector<8x256xf32>
    %229 = arith.negf %228 : vector<8x256xf32>
    %230 = math.exp %229 : vector<8x256xf32>
    %cst_56 = arith.constant 1.000000e+00 : f32
    %231 = vector.broadcast %cst_56 : f32 to vector<8x256xf32>
    %232 = arith.addf %231, %230 : vector<8x256xf32>
    %233 = arith.divf %231, %232 : vector<8x256xf32>
    %234 = arith.mulf %225, %204 : vector<8x256xf32>
    %235 = arith.mulf %219, %227 : vector<8x256xf32>
    %236 = arith.addf %234, %235 : vector<8x256xf32>
    %237 = math.tanh %236 : vector<8x256xf32>
    %238 = arith.mulf %233, %237 : vector<8x256xf32>
    %c7_i32 = arith.constant 7 : i32
    %c8_i32_57 = arith.constant 8 : i32
    %239 = arith.muli %c7_i32, %c8_i32_57 : i32
    %240 = tpu.assume_multiple %239, 8 : i32
    %241 = arith.index_cast %240 : i32 to index
    %c0_58 = arith.constant 0 : index
    %242 = vector.load %arg11[%241, %c0_58] : memref<64x1024xf32, #tpu.memory_space<vmem>>, vector<8x1024xf32>
    %243 = arith.truncf %238 : vector<8x256xf32> to vector<8x256xbf16>
    %cst_59 = arith.constant dense<0.000000e+00> : vector<8x1024xf32>
    %244 = tpu.matmul %243, %12, %cst_59 {dimension_numbers = #tpu.dot_dimension_numbers<[1], [0], [0], [1], [0, 0, 1, 1], [], []>} : vector<8x256xbf16>, vector<256x1024xbf16>, vector<8x1024xf32> -> vector<8x1024xf32>
    %245 = arith.addf %242, %244 : vector<8x1024xf32>
    %246 = vector.extract_strided_slice %245 {offsets = [0, 0], sizes = [8, 256], strides = [1, 1]} : vector<8x1024xf32> to vector<8x256xf32>
    %247 = arith.negf %246 : vector<8x256xf32>
    %248 = math.exp %247 : vector<8x256xf32>
    %cst_60 = arith.constant 1.000000e+00 : f32
    %249 = vector.broadcast %cst_60 : f32 to vector<8x256xf32>
    %250 = arith.addf %249, %248 : vector<8x256xf32>
    %251 = arith.divf %249, %250 : vector<8x256xf32>
    %252 = vector.extract_strided_slice %245 {offsets = [0, 256], sizes = [8, 256], strides = [1, 1]} : vector<8x1024xf32> to vector<8x256xf32>
    %253 = arith.negf %252 : vector<8x256xf32>
    %254 = math.exp %253 : vector<8x256xf32>
    %cst_61 = arith.constant 1.000000e+00 : f32
    %255 = vector.broadcast %cst_61 : f32 to vector<8x256xf32>
    %256 = arith.addf %255, %254 : vector<8x256xf32>
    %257 = arith.divf %255, %256 : vector<8x256xf32>
    %258 = vector.extract_strided_slice %245 {offsets = [0, 512], sizes = [8, 256], strides = [1, 1]} : vector<8x1024xf32> to vector<8x256xf32>
    %259 = math.tanh %258 : vector<8x256xf32>
    %260 = vector.extract_strided_slice %245 {offsets = [0, 768], sizes = [8, 256], strides = [1, 1]} : vector<8x1024xf32> to vector<8x256xf32>
    %261 = arith.negf %260 : vector<8x256xf32>
    %262 = math.exp %261 : vector<8x256xf32>
    %cst_62 = arith.constant 1.000000e+00 : f32
    %263 = vector.broadcast %cst_62 : f32 to vector<8x256xf32>
    %264 = arith.addf %263, %262 : vector<8x256xf32>
    %265 = arith.divf %263, %264 : vector<8x256xf32>
    %266 = arith.mulf %257, %236 : vector<8x256xf32>
    %267 = arith.mulf %251, %259 : vector<8x256xf32>
    %268 = arith.addf %266, %267 : vector<8x256xf32>
    %269 = math.tanh %268 : vector<8x256xf32>
    %270 = arith.mulf %265, %269 : vector<8x256xf32>
    %c8_i32_63 = arith.constant 8 : i32
    %c0_64 = arith.constant 0 : index
    %c0_65 = arith.constant 0 : index
    %271 = vector.load %arg12[%c0_64, %c0_65] : memref<8x256xf32, #tpu.memory_space<vmem>>, vector<8x256xf32>
    tpu.vector_store %arg12[%c0_64, %c0_65], %270 {strides = array<i32>} : memref<8x256xf32, #tpu.memory_space<vmem>>, vector<8x256xf32>,
    %c0_66 = arith.constant 0 : index
    %c0_67 = arith.constant 0 : index
    %272 = vector.load %arg13[%c0_66, %c0_67] : memref<8x256xf32, #tpu.memory_space<vmem>>, vector<8x256xf32>
    tpu.vector_store %arg13[%c0_66, %c0_67], %268 {strides = array<i32>} : memref<8x256xf32, #tpu.memory_space<vmem>>, vector<8x256xf32>,
    %c0_i32_68 = arith.constant 0 : i32
    %273 = arith.cmpi eq, %arg1, %c0_i32_68 : i32
    %274 = arith.extui %273 : i1 to i32
    %c0_i32_69 = arith.constant 0 : i32
    %275 = arith.cmpi ne, %274, %c0_i32_69 : i32
    scf.if %275 {
      %276 = arith.truncf %270 : vector<8x256xf32> to vector<8x256xbf16>
      %c0_70 = arith.constant 0 : index
      %c0_71 = arith.constant 0 : index
      %277 = vector.load %arg6[%c0_70, %c0_71] : memref<256x128xbf16, #tpu.memory_space<vmem>>, vector<256x128xbf16>
      %cst_72 = arith.constant dense<0.000000e+00> : vector<8x128xf32>
      %278 = tpu.matmul %276, %277, %cst_72 {dimension_numbers = #tpu.dot_dimension_numbers<[1], [0], [0], [1], [0, 0, 1, 1], [], []>} : vector<8x256xbf16>, vector<256x128xbf16>, vector<8x128xf32> -> vector<8x128xf32>
      %c0_73 = arith.constant 0 : index
      %c0_74 = arith.constant 0 : index
      %279 = vector.load %arg7[%c0_73, %c0_74] : memref<1x128xf32, #tpu.memory_space<vmem>>, vector<1x128xf32>
      %280 = vector.broadcast %279 : vector<1x128xf32> to vector<8x128xf32>
      %281 = arith.addf %278, %280 : vector<8x128xf32>
      %cst_75 = arith.constant 0.000000e+00 : f32
      %282 = vector.broadcast %cst_75 : f32 to vector<8x128xf32>
      %283 = arith.maximumf %281, %282 : vector<8x128xf32>
      %284 = arith.truncf %283 : vector<8x128xf32> to vector<8x128xbf16>
      %c0_76 = arith.constant 0 : index
      %c0_77 = arith.constant 0 : index
      %285 = vector.load %arg8[%c0_76, %c0_77] : memref<128x128xbf16, #tpu.memory_space<vmem>>, vector<128x128xbf16>
      %cst_78 = arith.constant dense<0.000000e+00> : vector<8x128xf32>
      %286 = tpu.matmul %284, %285, %cst_78 {dimension_numbers = #tpu.dot_dimension_numbers<[1], [0], [0], [1], [0, 0, 1, 1], [], []>} : vector<8x128xbf16>, vector<128x128xbf16>, vector<8x128xf32> -> vector<8x128xf32>
      %c0_79 = arith.constant 0 : index
      %c0_80 = arith.constant 0 : index
      %287 = vector.load %arg9[%c0_79, %c0_80] : memref<1x128xf32, #tpu.memory_space<vmem>>, vector<1x128xf32>
      %288 = vector.broadcast %287 : vector<1x128xf32> to vector<8x128xf32>
      %289 = arith.addf %286, %288 : vector<8x128xf32>
      %c0_81 = arith.constant 0 : index
      %c0_82 = arith.constant 0 : index
      %290 = vector.load %arg10[%c0_81, %c0_82] : memref<8x128xf32, #tpu.memory_space<vmem>>, vector<8x128xf32>
      tpu.vector_store %arg10[%c0_81, %c0_82], %289 {strides = array<i32>} : memref<8x128xf32, #tpu.memory_space<vmem>>, vector<8x128xf32>,
    } else {
    }
    return
  }
  func.func @transform_0(%arg0: i32, %arg1: i32) -> (i32, i32, i32) {
    %c0_i32 = arith.constant 0 : i32
    %c0_i32_0 = arith.constant 0 : i32
    return %arg0, %arg1, %c0_i32 : i32, i32, i32
  }
  func.func @transform_1(%arg0: i32, %arg1: i32) -> (i32, i32) {
    %c0_i32 = arith.constant 0 : i32
    %c0_i32_0 = arith.constant 0 : i32
    %c0_i32_1 = arith.constant 0 : i32
    return %c0_i32, %c0_i32_0 : i32, i32
  }
  func.func @transform_2(%arg0: i32, %arg1: i32) -> (i32, i32) {
    %c0_i32 = arith.constant 0 : i32
    %c0_i32_0 = arith.constant 0 : i32
    %c0_i32_1 = arith.constant 0 : i32
    return %c0_i32, %c0_i32_0 : i32, i32
  }
  func.func @transform_3(%arg0: i32, %arg1: i32) -> (i32, i32) {
    %c0_i32 = arith.constant 0 : i32
    %c0_i32_0 = arith.constant 0 : i32
    %c0_i32_1 = arith.constant 0 : i32
    return %c0_i32, %c0_i32_0 : i32, i32
  }
  func.func @transform_4(%arg0: i32, %arg1: i32) -> (i32, i32) {
    %c0_i32 = arith.constant 0 : i32
    %c0_i32_0 = arith.constant 0 : i32
    %c0_i32_1 = arith.constant 0 : i32
    return %c0_i32, %c0_i32_0 : i32, i32
  }
  func.func @transform_5(%arg0: i32, %arg1: i32) -> (i32, i32) {
    %c0_i32 = arith.constant 0 : i32
    %c0_i32_0 = arith.constant 0 : i32
    %c0_i32_1 = arith.constant 0 : i32
    return %c0_i32, %c0_i32_0 : i32, i32
  }
  func.func @transform_6(%arg0: i32, %arg1: i32) -> (i32, i32) {
    %c0_i32 = arith.constant 0 : i32
    %c0_i32_0 = arith.constant 0 : i32
    %c0_i32_1 = arith.constant 0 : i32
    return %c0_i32, %c0_i32_0 : i32, i32
  }
  func.func @transform_7(%arg0: i32, %arg1: i32) -> (i32, i32) {
    %c0_i32 = arith.constant 0 : i32
    %c0_i32_0 = arith.constant 0 : i32
    %c0_i32_1 = arith.constant 0 : i32
    return %c0_i32, %c0_i32_0 : i32, i32
  }
  func.func @transform_8(%arg0: i32, %arg1: i32) -> (i32, i32) {
    %c0_i32 = arith.constant 0 : i32
    %c0_i32_0 = arith.constant 0 : i32
    return %arg0, %c0_i32 : i32, i32
  }
}

</mosaic_0001>

<bundles_post_ra>
// kernel: tpu_custom_call.1
= control target key start
LH: loop header
LB: loop body
LE: loop exit
PB: predicated region body
PF: predicated region fallthrough
CT: control target
= control target key end

     0   :  { %13 = vsyncpa [#allocation6], 0  ;;  %s8580_s0 = inlined_call_operand.hbm [shape: f32[1,64,128], index: 0, kind: input, shape index: {}]   ;;  %s8581_s1 = inlined_call_operand.hbm [shape: bf16[128,1024], index: 1, kind: input, shape index: {}]   ;;  %s8582_s2 = inlined_call_operand.hbm [shape: f32[1,1024], index: 2, kind: input, shape index: {}]   ;;  %s8583_s3 = inlined_call_operand.hbm [shape: bf16[256,1024], index: 3, kind: input, shape index: {}]   ;;  %s8584_s4 = inlined_call_operand.hbm [shape: bf16[256,128], index: 4, kind: input, shape index: {}]   ;;  %s8585_s5 = inlined_call_operand.vmem [shape: f32[1,128], index: 5, kind: input, shape index: {}]   ;;  %s8586_s6 = inlined_call_operand.hbm [shape: bf16[128,128], index: 6, kind: input, shape index: {}]   ;;  %s8587_s7 = inlined_call_operand.vmem [shape: f32[1,128], index: 7, kind: input, shape index: {}]   ;;  %s8588_s8 = inlined_call_operand.hbm [shape: f32[8,128], index: 8, kind: output, shape index: {}]  }
   0x1   :  { %14 = vsyncpa [#allocation9], 0 }
   0x2   :  { %15 = vsyncpa [#allocation12], 0 }
   0x3   :  { %16 = vsyncpa [#allocation15], 0  ;;  %s35_s29 = sshll.u32 %s8581_s1, 4  ;;  %s36_s29 = int_to_ptr.hbm [resolvable:$true] %s35_s29 }
   0x4   :  { %17 = vsyncpa [#allocation7], 0  ;;  %s6308_s30 = smov [#allocation8]   ;;  %s59_s12 = sshll.u32 %s8583_s3, 4  ;;  %s60_s12 = int_to_ptr.hbm [resolvable:$true] %s59_s12 }
   0x5   :  { %s37_s9 = sshll.u32 %s6308_s30, 4  ;;  %s6309_s13 = smov 512   ;;  %s38_s9 = int_to_ptr.vmem [resolvable:$true] %s37_s9 }
   0x6   :  { %s6310_s14 = smov 32   ;;  %s6311_s15 = smov [#allocation11]  }
   0x7   :  { %43 = dma.hbm_to_vmem [thread:$0]  %s36_s29, 8192, %s38_s9, [#allocation9], %s6309_s13, %s6309_s13, %s6310_s14  }
   0x8   :  { %s61_s16 = sshll.u32 %s6311_s15, 4  ;;  %s22_s19 = sshll.u32 %s8580_s0, 4  ;;  %s62_s16 = int_to_ptr.vmem [resolvable:$true] %s61_s16  ;;  %s23_s19 = int_to_ptr.hbm [resolvable:$true] %s22_s19 }
   0x9   :  { %67 = dma.hbm_to_vmem [thread:$0]  %s60_s12, 16384, %s62_s16, [#allocation12], %s6309_s13, %s6309_s13, %s6310_s14  }
   0xa   :  { %s6312_s1 = smov [#allocation5]   ;;  %s49_s3 = sshll.u32 %s8582_s2, 4  ;;  %s50_s3 = int_to_ptr.hbm [resolvable:$true] %s49_s3 }
   0xb   :  { %s24_s20 = sshll.u32 %s6312_s1, 4  ;;  %s6313_s23 = smov 128   ;;  %s25_s20 = int_to_ptr.vmem [resolvable:$true] %s24_s20 }
   0xc   :  { %s6314_s24 = smov 8   ;;  %s6315_s25 = smov [#allocation10]  }
   0xd   :  { %30 = dma.hbm_to_vmem [thread:$0]  %s23_s19, 1024, %s25_s20, [#allocation6], %s6313_s23, %s6313_s23, %s6314_s24  }
   0xe   :  { %s51_s26 = sshll.u32 %s6315_s25, 4  ;;  %s72_s0 = sshll.u32 %s8584_s4, 4  ;;  %s52_s26 = int_to_ptr.vmem [resolvable:$true] %s51_s26  ;;  %s73_s0 = int_to_ptr.hbm [resolvable:$true] %s72_s0 }
   0xf   :  { %54 = dma.hbm_to_vmem [thread:$0]  %s50_s3, 128, %s52_s26, [#allocation9]  }
  0x10   :  { %s6316_s29 = smov [#allocation13]   ;;  %s87_s2 = sshll.u32 %s8586_s6, 4  ;;  %s88_s2 = int_to_ptr.hbm [resolvable:$true] %s87_s2 }
  0x11   :  { %s74_s30 = sshll.u32 %s6316_s29, 4  ;;  %s6317_s11 = smov 64   ;;  %s75_s30 = int_to_ptr.vmem [resolvable:$true] %s74_s30 }
  0x12   :  { %s6318_s12 = smov 4   ;;  %s6319_s13 = smov [#allocation14]  }
  0x13   :  { %80 = dma.hbm_to_vmem [thread:$0]  %s73_s0, 2048, %s75_s30, [#allocation12], %s6317_s11, %s6317_s11, %s6318_s12  }
  0x14   :  { %s89_s14 = sshll.u32 %s6319_s13, 4  ;;  %s90_s14 = int_to_ptr.vmem [resolvable:$true] %s89_s14 }
  0x15   :  { %95 = dma.hbm_to_vmem [thread:$0]  %s88_s2, 1024, %s90_s14, [#allocation15], %s6317_s11, %s6317_s11, %s6318_s12  }
  0x16   :  { %6298 = dma.done.wait [#allocation6], 1024  }
  0x17   :  { %6299 = vsyncadd [#allocation6], 4294966272 }
  0x18   :  { %6300 = dma.done.wait [#allocation9], 8320  }
  0x19   :  { %6301 = vsyncadd [#allocation9], 4294958976 }
  0x1a   :  { %6302 = dma.done.wait [#allocation12], 18432  }
  0x1b   :  { %6303 = vsyncadd [#allocation12], 4294948864 }
  0x1c   :  { %6304 = dma.done.wait [#allocation15], 1024  }
  0x1d   :  { %6305 = vsyncadd [#allocation15], 4294966272  ;;  %v4956_v0 = vld [vmem:[#allocation8 + $0x1c0] sm:$0xf]  ;;  %v5698_v2 = vld [vmem:[#allocation8 + $0x1c4] sm:$0xf] }
  0x1e   :  { %v5702_v1 = vld [vmem:[#allocation8 + $0x1dc] sm:$0xf0]  ;;  %v4958_v4 = vld [vmem:[#allocation8 + $0x1e0] sm:$0xf0]  ;;  %v4964_v5 = vld [vmem:[#allocation8 + $0x1c8] sm:$0xf] }
  0x1f   :  { %v4957_v3 = vor.u32 %v5702_v1, %v4956_v0  ;;  %v5703_v6 = vld [vmem:[#allocation8 + $0x1e4] sm:$0xf0]  ;;  %v4961_v7 = vor.u32 %v5698_v2, %v4958_v4  ;;  %v5699_v9 = vld [vmem:[#allocation8 + $0x1cc] sm:$0xf]  ;;  %v4924_v11 = vld [vmem:[#allocation8 + $0x180] sm:$0xf] }
  0x20   :  { %v4965_v8 = vor.u32 %v5703_v6, %v4964_v5  ;;  %v4966_v10 = vld [vmem:[#allocation8 + $0x1e8] sm:$0xf0]  ;;  %v5694_v13 = vld [vmem:[#allocation8 + $0x19c] sm:$0xf0]  ;;  %v5690_v14 = vld [vmem:[#allocation8 + $0x184] sm:$0xf] }
  0x21   :  { %544 = vmatpush.bf16.msra.mxu0 %v4957_v3  ;;  %v4969_v12 = vor.u32 %v5699_v9, %v4966_v10  ;;  %v4926_v15 = vld [vmem:[#allocation8 + $0x1a0] sm:$0xf0]  ;;  %573 = vmatpush.bf16.msra.mxu1 %v4961_v7  ;;  %v4925_v16 = vor.u32 %v5694_v13, %v4924_v11  ;;  %v4932_v18 = vld [vmem:[#allocation8 + $0x188] sm:$0xf]  ;;  %v5691_v20 = vld [vmem:[#allocation8 + $0x18c] sm:$0xf] }
  0x22   :  { %602 = vmatpush.bf16.msra.mxu2 %v4965_v8  ;;  %v4929_v17 = vor.u32 %v5690_v14, %v4926_v15  ;;  %v5695_v19 = vld [vmem:[#allocation8 + $0x1a4] sm:$0xf0]  ;;  %v4934_v22 = vld [vmem:[#allocation8 + $0x1a8] sm:$0xf0]  ;;  %v4892_v23 = vld [vmem:[#allocation8 + $0x140] sm:$0xf] }
  0x23   :  { %631 = vmatpush.bf16.msra.mxu3 %v4969_v12  ;;  %v4933_v21 = vor.u32 %v5695_v19, %v4932_v18  ;;  %v5686_v24 = vld [vmem:[#allocation8 + $0x15c] sm:$0xf0]  ;;  %v4937_v25 = vor.u32 %v5691_v20, %v4934_v22  ;;  %v5682_v26 = vld [vmem:[#allocation8 + $0x144] sm:$0xf]  ;;  %v4900_v28 = vld [vmem:[#allocation8 + $0x148] sm:$0xf] }
  0x24   :  { %v4894_v27 = vld [vmem:[#allocation8 + $0x160] sm:$0xf0]  ;;  %v4893_v29 = vor.u32 %v5686_v24, %v4892_v23  ;;  %v5687_v30 = vld [vmem:[#allocation8 + $0x164] sm:$0xf0]  ;;  %v5683_v31 = vld [vmem:[#allocation8 + $0x14c] sm:$0xf] }
  0x25   :  { %545 = vmatpush.bf16.msra.mxu0 %v4925_v16  ;;  %v4902_v32 = vld [vmem:[#allocation8 + $0x168] sm:$0xf0]  ;;  %574 = vmatpush.bf16.msra.mxu1 %v4929_v17  ;;  %v4897_v33 = vor.u32 %v5682_v26, %v4894_v27  ;;  %v4901_v34 = vor.u32 %v5687_v30, %v4900_v28  ;;  %v4860_v35 = vld [vmem:[#allocation8 + $0x100] sm:$0xf]  ;;  %v5674_v37 = vld [vmem:[#allocation8 + $0x104] sm:$0xf] }
  0x26   :  { %603 = vmatpush.bf16.msra.mxu2 %v4933_v21  ;;  %v5678_v36 = vld [vmem:[#allocation8 + $0x11c] sm:$0xf0]  ;;  %v4905_v38 = vor.u32 %v5683_v31, %v4902_v32  ;;  %v4862_v39 = vld [vmem:[#allocation8 + $0x120] sm:$0xf0]  ;;  %v4868_v40 = vld [vmem:[#allocation8 + $0x108] sm:$0xf] }
  0x27   :  { %632 = vmatpush.bf16.msra.mxu3 %v4937_v25  ;;  %v5679_v41 = vld [vmem:[#allocation8 + $0x124] sm:$0xf0]  ;;  %v5675_v42 = vld [vmem:[#allocation8 + $0x10c] sm:$0xf]  ;;  %v4861_v44 = vor.u32 %v5678_v36, %v4860_v35  ;;  %v4865_v45 = vor.u32 %v5674_v37, %v4862_v39  ;;  %v4828_v47 = vld [vmem:[#allocation8 + $0xc0] sm:$0xf] }
  0x28   :  { %v4870_v43 = vld [vmem:[#allocation8 + $0x128] sm:$0xf0]  ;;  %v4869_v46 = vor.u32 %v5679_v41, %v4868_v40  ;;  %v5670_v48 = vld [vmem:[#allocation8 + $0xdc] sm:$0xf0]  ;;  %v5666_v49 = vld [vmem:[#allocation8 + $0xc4] sm:$0xf] }
  0x29   :  { %546 = vmatpush.bf16.msra.mxu0 %v4893_v29  ;;  %575 = vmatpush.bf16.msra.mxu1 %v4897_v33  ;;  %v4873_v50 = vor.u32 %v5675_v42, %v4870_v43  ;;  %v4830_v51 = vld [vmem:[#allocation8 + $0xe0] sm:$0xf0]  ;;  %v4836_v52 = vld [vmem:[#allocation8 + $0xc8] sm:$0xf]  ;;  %v5667_v54 = vld [vmem:[#allocation8 + $0xcc] sm:$0xf]  ;;  %v4829_v56 = vor.u32 %v5670_v48, %v4828_v47 }
  0x2a   :  { %604 = vmatpush.bf16.msra.mxu2 %v4901_v34  ;;  %v5671_v53 = vld [vmem:[#allocation8 + $0xe4] sm:$0xf0]  ;;  %v4838_v55 = vld [vmem:[#allocation8 + $0xe8] sm:$0xf0]  ;;  %v4833_v57 = vor.u32 %v5666_v49, %v4830_v51  ;;  %v4796_v59 = vld [vmem:[#allocation8 + $0x80] sm:$0xf] }
  0x2b   :  { %633 = vmatpush.bf16.msra.mxu3 %v4905_v38  ;;  %v4837_v58 = vor.u32 %v5671_v53, %v4836_v52  ;;  %v5662_v60 = vld [vmem:[#allocation8 + $0x9c] sm:$0xf0]  ;;  %v5658_v61 = vld [vmem:[#allocation8 + $0x84] sm:$0xf]  ;;  %v4841_v62 = vor.u32 %v5667_v54, %v4838_v55  ;;  %v4804_v0 = vld [vmem:[#allocation8 + $0x88] sm:$0xf] }
  0x2c   :  { %v4798_v63 = vld [vmem:[#allocation8 + $0xa0] sm:$0xf0]  ;;  %v5663_v1 = vld [vmem:[#allocation8 + $0xa4] sm:$0xf0]  ;;  %v5659_v2 = vld [vmem:[#allocation8 + $0x8c] sm:$0xf]  ;;  %v4797_v4 = vor.u32 %v5662_v60, %v4796_v59 }
  0x2d   :  { %547 = vmatpush.bf16.msra.mxu0 %v4861_v44  ;;  %576 = vmatpush.bf16.msra.mxu1 %v4865_v45  ;;  %v4806_v3 = vld [vmem:[#allocation8 + $0xa8] sm:$0xf0]  ;;  %v4801_v5 = vor.u32 %v5658_v61, %v4798_v63  ;;  %v4805_v6 = vor.u32 %v5663_v1, %v4804_v0  ;;  %v4764_v7 = vld [vmem:[#allocation8 + $0x40] sm:$0xf]  ;;  %v5650_v9 = vld [vmem:[#allocation8 + $0x44] sm:$0xf] }
  0x2e   :  { %605 = vmatpush.bf16.msra.mxu2 %v4869_v46  ;;  %v5654_v8 = vld [vmem:[#allocation8 + $0x5c] sm:$0xf0]  ;;  %v4809_v10 = vor.u32 %v5659_v2, %v4806_v3  ;;  %v4766_v11 = vld [vmem:[#allocation8 + $0x60] sm:$0xf0]  ;;  %v4772_v12 = vld [vmem:[#allocation8 + $0x48] sm:$0xf] }
  0x2f   :  { %634 = vmatpush.bf16.msra.mxu3 %v4873_v50  ;;  %v5655_v13 = vld [vmem:[#allocation8 + $0x64] sm:$0xf0]  ;;  %v5651_v14 = vld [vmem:[#allocation8 + $0x4c] sm:$0xf]  ;;  %v4765_v16 = vor.u32 %v5654_v8, %v4764_v7  ;;  %v4769_v17 = vor.u32 %v5650_v9, %v4766_v11  ;;  %v4732_v19 = vld [vmem:[#allocation8] sm:$0xf] }
  0x30   :  { %v4774_v15 = vld [vmem:[#allocation8 + $0x68] sm:$0xf0]  ;;  %v4773_v18 = vor.u32 %v5655_v13, %v4772_v12  ;;  %v5646_v20 = vld [vmem:[#allocation8 + $0x1c] sm:$0xf0]  ;;  %v5642_v21 = vld [vmem:[#allocation8 + $0x4] sm:$0xf] }
  0x31   :  { %548 = vmatpush.bf16.msra.mxu0 %v4829_v56  ;;  %577 = vmatpush.bf16.msra.mxu1 %v4833_v57  ;;  %v4777_v22 = vor.u32 %v5651_v14, %v4774_v15  ;;  %v4734_v23 = vld [vmem:[#allocation8 + $0x20] sm:$0xf0]  ;;  %v4740_v24 = vld [vmem:[#allocation8 + $0x8] sm:$0xf]  ;;  %v5643_v26 = vld [vmem:[#allocation8 + $0xc] sm:$0xf]  ;;  %v4733_v28 = vor.u32 %v5646_v20, %v4732_v19 }
  0x32   :  { %606 = vmatpush.bf16.msra.mxu2 %v4837_v58  ;;  %v5647_v25 = vld [vmem:[#allocation8 + $0x24] sm:$0xf0]  ;;  %v4742_v27 = vld [vmem:[#allocation8 + $0x28] sm:$0xf0]  ;;  %v130_v29 = vld [vmem:[#allocation5] sm:$0xff]  ;;  %v4737_v31 = vor.u32 %v5642_v21, %v4734_v23  ;;  %s6321_s17 = smov [#allocation16]  }
  0x33   :  { %635 = vmatpush.bf16.msra.mxu3 %v4841_v62  ;;  %v131_v30 = vld [vmem:[#allocation5 + $0x8] sm:$0xff]  ;;  %v4741_v32 = vor.u32 %v5647_v25, %v4740_v24  ;;  %v4745_v33 = vor.u32 %v5643_v26, %v4742_v27  ;;  %v4972_v35 = vld [vmem:[#allocation8 + $0x1d0] sm:$0xf]  ;;  %v5700_v37 = vld [vmem:[#allocation8 + $0x1d4] sm:$0xf]  ;;  %s4708_s18 = sshll.u32 %s6321_s17, 4  ;;  %s4709_s18 = int_to_ptr.vmem [resolvable:$true] %s4708_s18 }
  0x34   :  { %v6385_v34 = vpack.c.bf16 %v131_v30, %v130_v29  ;;  %v5704_v36 = vld [vmem:[#allocation8 + $0x1ec] sm:$0xf0]  ;;  %v4974_v39 = vld [vmem:[#allocation8 + $0x1f0] sm:$0xf0]  ;;  %v4980_v40 = vld [vmem:[#allocation8 + $0x1d8] sm:$0xf] }
  0x35   :  { %549 = vmatpush.bf16.msra.mxu0 %v4797_v4  ;;  %578 = vmatpush.bf16.msra.mxu1 %v4801_v5  ;;  %v4973_v38 = vor.u32 %v5704_v36, %v4972_v35  ;;  %v5705_v41 = vld [vmem:[#allocation8 + $0x1f4] sm:$0xf0]  ;;  %v4977_v42 = vor.u32 %v5700_v37, %v4974_v39  ;;  %v5701_v44 = vld [vmem:[#allocation8 + $0x1dc] sm:$0xf]  ;;  %v4940_v46 = vld [vmem:[#allocation8 + $0x190] sm:$0xf] }
  0x36   :  { %607 = vmatpush.bf16.msra.mxu2 %v4805_v6  ;;  %v4981_v43 = vor.u32 %v5705_v41, %v4980_v40  ;;  %v4982_v45 = vld [vmem:[#allocation8 + $0x1f8] sm:$0xf0]  ;;  %v5696_v48 = vld [vmem:[#allocation8 + $0x1ac] sm:$0xf0]  ;;  %v5692_v49 = vld [vmem:[#allocation8 + $0x194] sm:$0xf] }
  0x37   :  { %636 = vmatpush.bf16.msra.mxu3 %v4809_v10  ;;  %v4985_v47 = vor.u32 %v5701_v44, %v4982_v45  ;;  %v4942_v50 = vld [vmem:[#allocation8 + $0x1b0] sm:$0xf0]  ;;  %v4941_v51 = vor.u32 %v5696_v48, %v4940_v46  ;;  %v4948_v53 = vld [vmem:[#allocation8 + $0x198] sm:$0xf]  ;;  %v5693_v55 = vld [vmem:[#allocation8 + $0x19c] sm:$0xf] }
  0x38   :  { %v4945_v52 = vor.u32 %v5692_v49, %v4942_v50  ;;  %v5697_v54 = vld [vmem:[#allocation8 + $0x1b4] sm:$0xf0]  ;;  %v4950_v57 = vld [vmem:[#allocation8 + $0x1b8] sm:$0xf0]  ;;  %v4908_v58 = vld [vmem:[#allocation8 + $0x150] sm:$0xf] }
  0x39   :  { %550 = vmatpush.bf16.msra.mxu0 %v4765_v16  ;;  %579 = vmatpush.bf16.msra.mxu1 %v4769_v17  ;;  %v4949_v56 = vor.u32 %v5697_v54, %v4948_v53  ;;  %v5688_v59 = vld [vmem:[#allocation8 + $0x16c] sm:$0xf0]  ;;  %v4953_v60 = vor.u32 %v5693_v55, %v4950_v57  ;;  %v5684_v61 = vld [vmem:[#allocation8 + $0x154] sm:$0xf]  ;;  %v4916_v63 = vld [vmem:[#allocation8 + $0x158] sm:$0xf] }
  0x3a   :  { %608 = vmatpush.bf16.msra.mxu2 %v4773_v18  ;;  %v4910_v62 = vld [vmem:[#allocation8 + $0x170] sm:$0xf0]  ;;  %v4909_v0 = vor.u32 %v5688_v59, %v4908_v58  ;;  %v5689_v1 = vld [vmem:[#allocation8 + $0x174] sm:$0xf0]  ;;  %v5685_v2 = vld [vmem:[#allocation8 + $0x15c] sm:$0xf] }
  0x3b   :  { %637 = vmatpush.bf16.msra.mxu3 %v4777_v22  ;;  %v4918_v3 = vld [vmem:[#allocation8 + $0x178] sm:$0xf0]  ;;  %v132_v4 = vld [vmem:[#allocation5 + $0x10] sm:$0xff]  ;;  %v4913_v5 = vor.u32 %v5684_v61, %v4910_v62  ;;  %v4917_v6 = vor.u32 %v5689_v1, %v4916_v63  ;;  %v4884_v14 = vld [vmem:[#allocation8 + $0x118] sm:$0xf]  ;;  %s4710_s20 = sshll.u32 %s8588_s8, 4  ;;  %s4711_s20 = int_to_ptr.hbm [resolvable:$true] %s4710_s20 }
  0x3c   :  { %v4876_v7 = vld [vmem:[#allocation8 + $0x110] sm:$0xf]  ;;  %v133_v9 = vld [vmem:[#allocation5 + $0x18] sm:$0xff]  ;;  %v4921_v10 = vor.u32 %v5685_v2, %v4918_v3  ;;  %v5676_v11 = vld [vmem:[#allocation8 + $0x114] sm:$0xf] }
  0x3d   :  { %551 = vmatpush.bf16.msra.mxu0 %v4733_v28  ;;  %580 = vmatpush.bf16.msra.mxu1 %v4737_v31  ;;  %v5680_v8 = vld [vmem:[#allocation8 + $0x12c] sm:$0xf0]  ;;  %v4878_v12 = vld [vmem:[#allocation8 + $0x130] sm:$0xf0]  ;;  %v5681_v15 = vld [vmem:[#allocation8 + $0x134] sm:$0xf0]  ;;  %v6391_v16 = vpack.c.bf16 %v133_v9, %v132_v4 }
  0x3e   :  { %609 = vmatpush.bf16.msra.mxu2 %v4741_v32  ;;  %v4877_v13 = vor.u32 %v5680_v8, %v4876_v7  ;;  %v4881_v17 = vor.u32 %v5676_v11, %v4878_v12  ;;  %v5677_v18 = vld [vmem:[#allocation8 + $0x11c] sm:$0xf]  ;;  %v4885_v20 = vor.u32 %v5681_v15, %v4884_v14  ;;  %v4844_v22 = vld [vmem:[#allocation8 + $0xd0] sm:$0xf]  ;;  %v5668_v24 = vld [vmem:[#allocation8 + $0xd4] sm:$0xf] }
  0x3f   :  { %638 = vmatpush.bf16.msra.mxu3 %v4745_v33  ;;  %v4886_v19 = vld [vmem:[#allocation8 + $0x138] sm:$0xf0]  ;;  %v5672_v23 = vld [vmem:[#allocation8 + $0xec] sm:$0xf0]  ;;  %v4846_v26 = vld [vmem:[#allocation8 + $0xf0] sm:$0xf0] }
  0x40   :  { %552 = vmatmul.bf16.vlgmr.msra.gmra.mxu0 %v6385_v34  ;;  %581 = vmatmul.bf16.vlgmr.msra.gmra.mxu1 %v6385_v34  ;;  %v4889_v21 = vor.u32 %v5677_v18, %v4886_v19  ;;  %v4845_v25 = vor.u32 %v5672_v23, %v4844_v22  ;;  %v4852_v27 = vld [vmem:[#allocation8 + $0xd8] sm:$0xf]  ;;  %v4849_v29 = vor.u32 %v5668_v24, %v4846_v26  ;;  %v5669_v31 = vld [vmem:[#allocation8 + $0xdc] sm:$0xf]  ;;  %v4812_v33 = vld [vmem:[#allocation8 + $0x90] sm:$0xf] }
  0x41   :  { %610 = vmatmul.bf16.vlgmr.msra.gmra.mxu2 %v6385_v34  ;;  %660 = vmatpush.bf16.msrb.mxu0 %v4973_v38  ;;  %v5673_v28 = vld [vmem:[#allocation8 + $0xf4] sm:$0xf0]  ;;  %v4854_v32 = vld [vmem:[#allocation8 + $0xf8] sm:$0xf0]  ;;  %v5664_v36 = vld [vmem:[#allocation8 + $0xac] sm:$0xf0] }
  0x42   :  { %639 = vmatmul.bf16.vlgmr.msra.gmra.mxu3 %v6385_v34  ;;  %689 = vmatpush.bf16.msrb.mxu1 %v4977_v42  ;;  %v4853_v30 = vor.u32 %v5673_v28, %v4852_v27  ;;  %v4857_v35 = vor.u32 %v5669_v31, %v4854_v32  ;;  %v5660_v37 = vld [vmem:[#allocation8 + $0x94] sm:$0xf]  ;;  %v4813_v39 = vor.u32 %v5664_v36, %v4812_v33  ;;  %v4820_v41 = vld [vmem:[#allocation8 + $0x98] sm:$0xf]  ;;  %v4822_v44 = vld [vmem:[#allocation8 + $0xb8] sm:$0xf0] }
  0x43   :  { %718 = vmatpush.bf16.msrb.mxu2 %v4981_v43  ;;  %747 = vmatpush.bf16.msrb.mxu3 %v4985_v47  ;;  %v4814_v38 = vld [vmem:[#allocation8 + $0xb0] sm:$0xf0]  ;;  %v5665_v42 = vld [vmem:[#allocation8 + $0xb4] sm:$0xf0]  ;;  %v5661_v43 = vld [vmem:[#allocation8 + $0x9c] sm:$0xf] }
  0x44   :  { %v4817_v40 = vor.u32 %v5660_v37, %v4814_v38  ;;  %v4780_v45 = vld [vmem:[#allocation8 + $0x50] sm:$0xf]  ;;  %v4821_v47 = vor.u32 %v5665_v42, %v4820_v41  ;;  %v5652_v48 = vld [vmem:[#allocation8 + $0x54] sm:$0xf]  ;;  %v134_v50 = vld [vmem:[#allocation5 + $0x20] sm:$0xff] }
  0x45   :  { %661 = vmatpush.bf16.msrb.mxu0 %v4941_v51  ;;  %v5656_v46 = vld [vmem:[#allocation8 + $0x6c] sm:$0xf0]  ;;  %v4782_v49 = vld [vmem:[#allocation8 + $0x70] sm:$0xf0]  ;;  %v4825_v51 = vor.u32 %v5661_v43, %v4822_v44  ;;  %v4788_v53 = vld [vmem:[#allocation8 + $0x58] sm:$0xf] }
  0x46   :  { %690 = vmatpush.bf16.msrb.mxu1 %v4945_v52  ;;  %v4781_v52 = vor.u32 %v5656_v46, %v4780_v45  ;;  %v5657_v54 = vld [vmem:[#allocation8 + $0x74] sm:$0xf0]  ;;  %v5653_v55 = vld [vmem:[#allocation8 + $0x5c] sm:$0xf]  ;;  %v4748_v58 = vld [vmem:[#allocation8 + $0x10] sm:$0xf] }
  0x47   :  { %719 = vmatpush.bf16.msrb.mxu2 %v4949_v56  ;;  %748 = vmatpush.bf16.msrb.mxu3 %v4953_v60  ;;  %v4785_v56 = vor.u32 %v5652_v48, %v4782_v49  ;;  %v4790_v57 = vld [vmem:[#allocation8 + $0x78] sm:$0xf0]  ;;  %v5648_v59 = vld [vmem:[#allocation8 + $0x2c] sm:$0xf0]  ;;  %v135_v60 = vld [vmem:[#allocation5 + $0x28] sm:$0xff]  ;;  %v4789_v63 = vor.u32 %v5657_v54, %v4788_v53 }
  0x48   :  { %v5644_v61 = vld [vmem:[#allocation8 + $0x14] sm:$0xf]  ;;  %v4749_v1 = vor.u32 %v5648_v59, %v4748_v58  ;;  %v4756_v2 = vld [vmem:[#allocation8 + $0x18] sm:$0xf]  ;;  %v6397_v4 = vpack.c.bf16 %v135_v60, %v134_v50  ;;  %v4758_v7 = vld [vmem:[#allocation8 + $0x38] sm:$0xf0] }
  0x49   :  { %662 = vmatpush.bf16.msrb.mxu0 %v4909_v0  ;;  %v4750_v62 = vld [vmem:[#allocation8 + $0x30] sm:$0xf0]  ;;  %v4793_v0 = vor.u32 %v5653_v55, %v4790_v57  ;;  %v5649_v3 = vld [vmem:[#allocation8 + $0x34] sm:$0xf0]  ;;  %v5766_v11 = vld [vmem:[#allocation11 + $0x1dc] sm:$0xf0] }
  0x4a   :  { %691 = vmatpush.bf16.msrb.mxu1 %v4913_v5  ;;  %v4753_v5 = vor.u32 %v5644_v61, %v4750_v62  ;;  %v4757_v8 = vor.u32 %v5649_v3, %v4756_v2  ;;  %v5468_v12 = vld [vmem:[#allocation11 + $0x3c0] sm:$0xf]  ;;  %v5762_v15 = vld [vmem:[#allocation11 + $0x1c4] sm:$0xf]  ;;  %v136_v32 = vld [vmem:[#allocation5 + $0x30] sm:$0xff] }
  0x4b   :  { %720 = vmatpush.bf16.msrb.mxu2 %v4917_v6  ;;  %749 = vmatpush.bf16.msrb.mxu3 %v4921_v10  ;;  %v5645_v6 = vld [vmem:[#allocation8 + $0x1c] sm:$0xf]  ;;  %v5212_v10 = vld [vmem:[#allocation11 + $0x1c0] sm:$0xf]  ;;  %v5818_v31 = vld [vmem:[#allocation11 + $0x384] sm:$0xf] }
  0x4c   :  { %v4761_v9 = vor.u32 %v5645_v6, %v4758_v7  ;;  %v5830_v14 = vld [vmem:[#allocation11 + $0x3dc] sm:$0xf0]  ;;  %v137_v33 = vld [vmem:[#allocation5 + $0x38] sm:$0xff]  ;;  %v5438_v36 = vld [vmem:[#allocation11 + $0x3a0] sm:$0xf0] }
  0x4d   :  { %663 = vmatpush.bf16.msrb.mxu0 %v4877_v13  ;;  %v6403_v13 = vor.u32 %v5766_v11, %v5212_v10  ;;  %v6405_v18 = vor.u32 %v5830_v14, %v5468_v12  ;;  %v5180_v22 = vld [vmem:[#allocation11 + $0x180] sm:$0xf]  ;;  %v5746_v42 = vld [vmem:[#allocation11 + $0x144] sm:$0xf]  ;;  %v6435_v50 = vpack.c.bf16 %v137_v33, %v136_v32 }
  0x4e   :  { %692 = vmatpush.bf16.msrb.mxu1 %v4881_v17  ;;  %v5214_v17 = vld [vmem:[#allocation11 + $0x1e0] sm:$0xf0]  ;;  %v5758_v24 = vld [vmem:[#allocation11 + $0x19c] sm:$0xf0] }
  0x4f   :  { %721 = vmatpush.bf16.msrb.mxu2 %v4885_v20  ;;  %750 = vmatpush.bf16.msrb.mxu3 %v4889_v21  ;;  %8876 = vst [vmem:[#allocation22_spill] sm:$0xff] %v6403_v13  ;;  %v6407_v19 = vor.u32 %v5762_v15, %v5214_v17  ;;  %v5826_v20 = vld [vmem:[#allocation11 + $0x3c4] sm:$0xf]  ;;  %v5822_v26 = vld [vmem:[#allocation11 + $0x39c] sm:$0xf0]  ;;  %v6414_v27 = vor.u32 %v5758_v24, %v5180_v22 }
  0x50   :  { %557 = vmatmul.bf16.gmra.mxu0 %v6391_v16  ;;  %586 = vmatmul.bf16.gmra.mxu1 %v6391_v16  ;;  %8877 = vst [vmem:[#allocation23_spill] sm:$0xff] %v6405_v18  ;;  %v5470_v21 = vld [vmem:[#allocation11 + $0x3e0] sm:$0xf0]  ;;  %v5148_v37 = vld [vmem:[#allocation11 + $0x140] sm:$0xf] }
  0x51   :  { %615 = vmatmul.bf16.gmra.mxu2 %v6391_v16  ;;  %664 = vmatpush.bf16.msrb.mxu0 %v4845_v25  ;;  %8878 = vst [vmem:[#allocation24_spill] sm:$0xff] %v6407_v19  ;;  %v6410_v23 = vor.u32 %v5826_v20, %v5470_v21  ;;  %v5436_v25 = vld [vmem:[#allocation11 + $0x380] sm:$0xf]  ;;  %v5150_v44 = vld [vmem:[#allocation11 + $0x160] sm:$0xf0] }
  0x52   :  { %644 = vmatmul.bf16.gmra.mxu3 %v6391_v16  ;;  %693 = vmatpush.bf16.msrb.mxu1 %v4849_v29  ;;  %8880 = vst [vmem:[#allocation26_spill] sm:$0xff] %v6414_v27  ;;  %v6416_v28 = vor.u32 %v5822_v26, %v5436_v25  ;;  %v5754_v29 = vld [vmem:[#allocation11 + $0x184] sm:$0xf]  ;;  %v5750_v38 = vld [vmem:[#allocation11 + $0x15c] sm:$0xf0]  ;;  %v6430_v48 = vor.u32 %v5746_v42, %v5150_v44 }
  0x53   :  { %722 = vmatpush.bf16.msrb.mxu2 %v4853_v30  ;;  %751 = vmatpush.bf16.msrb.mxu3 %v4857_v35  ;;  %8879 = vst [vmem:[#allocation25_spill] sm:$0xff] %v6410_v23  ;;  %v5182_v30 = vld [vmem:[#allocation11 + $0x1a0] sm:$0xf0]  ;;  %v5814_v41 = vld [vmem:[#allocation11 + $0x35c] sm:$0xf0]  ;;  %v6424_v43 = vor.u32 %v5750_v38, %v5148_v37 }
  0x54   :  { %8881 = vst [vmem:[#allocation27_spill] sm:$0xff] %v6416_v28  ;;  %v6419_v35 = vor.u32 %v5754_v29, %v5182_v30  ;;  %v5810_v45 = vld [vmem:[#allocation11 + $0x344] sm:$0xf]  ;;  %v5372_v53 = vld [vmem:[#allocation11 + $0x300] sm:$0xf] }
  0x55   :  { %665 = vmatpush.bf16.msrb.mxu0 %v4813_v39  ;;  %v6421_v39 = vor.u32 %v5818_v31, %v5438_v36  ;;  %8884 = vst [vmem:[#allocation30_spill] sm:$0xff] %v6424_v43  ;;  %v5406_v46 = vld [vmem:[#allocation11 + $0x360] sm:$0xf0]  ;;  %v5806_v55 = vld [vmem:[#allocation11 + $0x31c] sm:$0xf0] }
  0x56   :  { %694 = vmatpush.bf16.msrb.mxu1 %v4817_v40  ;;  %8882 = vst [vmem:[#allocation28_spill] sm:$0xff] %v6419_v35  ;;  %v5404_v40 = vld [vmem:[#allocation11 + $0x340] sm:$0xf]  ;;  %v6433_v49 = vor.u32 %v5810_v45, %v5406_v46  ;;  %v5118_v57 = vld [vmem:[#allocation11 + $0x120] sm:$0xf0]  ;;  %v6447_v58 = vor.u32 %v5806_v55, %v5372_v53 }
  0x57   :  { %723 = vmatpush.bf16.msrb.mxu2 %v4821_v47  ;;  %752 = vmatpush.bf16.msrb.mxu3 %v4825_v51  ;;  %8883 = vst [vmem:[#allocation29_spill] sm:$0xff] %v6421_v39  ;;  %v6428_v47 = vor.u32 %v5814_v41, %v5404_v40  ;;  %v5116_v51 = vld [vmem:[#allocation11 + $0x100] sm:$0xf]  ;;  %v5802_v60 = vld [vmem:[#allocation11 + $0x304] sm:$0xf] }
  0x58   :  { %8886 = vst [vmem:[#allocation32_spill] sm:$0xff] %v6430_v48  ;;  %v5374_v61 = vld [vmem:[#allocation11 + $0x320] sm:$0xf0]  ;;  %v5084_v62 = vld [vmem:[#allocation11 + $0xc0] sm:$0xf] }
  0x59   :  { %666 = vmatpush.bf16.msrb.mxu0 %v4781_v52  ;;  %8885 = vst [vmem:[#allocation31_spill] sm:$0xff] %v6428_v47  ;;  %v5742_v52 = vld [vmem:[#allocation11 + $0x11c] sm:$0xf0]  ;;  %v5730_v6 = vld [vmem:[#allocation11 + $0xc4] sm:$0xf] }
  0x5a   :  { %695 = vmatpush.bf16.msrb.mxu1 %v4785_v56  ;;  %8887 = vst [vmem:[#allocation33_spill] sm:$0xff] %v6433_v49  ;;  %v6445_v54 = vor.u32 %v5742_v52, %v5116_v51  ;;  %v5738_v56 = vld [vmem:[#allocation11 + $0x104] sm:$0xf]  ;;  %v5798_v2 = vld [vmem:[#allocation11 + $0x2dc] sm:$0xf0] }
  0x5b   :  { %724 = vmatpush.bf16.msrb.mxu2 %v4789_v63  ;;  %753 = vmatpush.bf16.msrb.mxu3 %v4793_v0  ;;  %8889 = vst [vmem:[#allocation35_spill] sm:$0xff] %v6447_v58  ;;  %v6449_v59 = vor.u32 %v5738_v56, %v5118_v57  ;;  %v6452_v63 = vor.u32 %v5802_v60, %v5374_v61  ;;  %v5734_v0 = vld [vmem:[#allocation11 + $0xdc] sm:$0xf0]  ;;  %v5086_v7 = vld [vmem:[#allocation11 + $0xe0] sm:$0xf0] }
  0x5c   :  { %8888 = vst [vmem:[#allocation34_spill] sm:$0xff] %v6445_v54  ;;  %v6456_v3 = vor.u32 %v5734_v0, %v5084_v62  ;;  %v5342_v10 = vld [vmem:[#allocation11 + $0x2e0] sm:$0xf0]  ;;  %v5052_v11 = vld [vmem:[#allocation11 + $0x80] sm:$0xf] }
  0x5d   :  { %667 = vmatpush.bf16.msrb.mxu0 %v4749_v1  ;;  %8890 = vst [vmem:[#allocation36_spill] sm:$0xff] %v6449_v59  ;;  %v5340_v1 = vld [vmem:[#allocation11 + $0x2c0] sm:$0xf]  ;;  %v5722_v20 = vld [vmem:[#allocation11 + $0x84] sm:$0xf] }
  0x5e   :  { %696 = vmatpush.bf16.msrb.mxu1 %v4753_v5  ;;  %8891 = vst [vmem:[#allocation37_spill] sm:$0xff] %v6452_v63  ;;  %v6458_v5 = vor.u32 %v5798_v2, %v5340_v1  ;;  %v5726_v12 = vld [vmem:[#allocation11 + $0x9c] sm:$0xf0]  ;;  %v5054_v22 = vld [vmem:[#allocation11 + $0xa0] sm:$0xf0] }
  0x5f   :  { %725 = vmatpush.bf16.msrb.mxu2 %v4757_v8  ;;  %754 = vmatpush.bf16.msrb.mxu3 %v4761_v9  ;;  %8892 = vst [vmem:[#allocation38_spill] sm:$0xff] %v6456_v3  ;;  %v5794_v8 = vld [vmem:[#allocation11 + $0x2c4] sm:$0xf]  ;;  %v6461_v9 = vor.u32 %v5730_v6, %v5086_v7  ;;  %v5308_v15 = vld [vmem:[#allocation11 + $0x280] sm:$0xf]  ;;  %v6466_v21 = vor.u32 %v5726_v12, %v5052_v11 }
  0x60   :  { %562 = vmatmul.bf16.gmra.mxu0 %v6397_v4  ;;  %591 = vmatmul.bf16.gmra.mxu1 %v6397_v4  ;;  %8893 = vst [vmem:[#allocation39_spill] sm:$0xff] %v6458_v5  ;;  %v6463_v14 = vor.u32 %v5794_v8, %v5342_v10  ;;  %v5790_v17 = vld [vmem:[#allocation11 + $0x29c] sm:$0xf0]  ;;  %v5786_v24 = vld [vmem:[#allocation11 + $0x284] sm:$0xf]  ;;  %v6472_v29 = vor.u32 %v5722_v20, %v5054_v22 }
  0x61   :  { %620 = vmatmul.bf16.gmra.mxu2 %v6397_v4  ;;  %1625 = vmatpush.bf16.msra.mxu0 %v6403_v13  ;;  %8894 = vst [vmem:[#allocation40_spill] sm:$0xff] %v6461_v9  ;;  %v5310_v25 = vld [vmem:[#allocation11 + $0x2a0] sm:$0xf0]  ;;  %v6470_v26 = vor.u32 %v5790_v17, %v5308_v15  ;;  %v5020_v31 = vld [vmem:[#allocation11 + $0x40] sm:$0xf] }
  0x62   :  { %649 = vmatmul.bf16.gmra.mxu3 %v6397_v4  ;;  %1638 = vmatpush.bf16.msra.mxu1 %v6405_v18  ;;  %8895 = vst [vmem:[#allocation41_spill] sm:$0xff] %v6463_v14  ;;  %v6475_v30 = vor.u32 %v5786_v24, %v5310_v25  ;;  %v5718_v32 = vld [vmem:[#allocation11 + $0x5c] sm:$0xf0]  ;;  %v5714_v37 = vld [vmem:[#allocation11 + $0x44] sm:$0xf] }
  0x63   :  { %1651 = vmatpush.bf16.msra.mxu2 %v6407_v19  ;;  %1664 = vmatpush.bf16.msra.mxu3 %v6410_v23  ;;  %8896 = vst [vmem:[#allocation42_spill] sm:$0xff] %v6466_v21  ;;  %v5276_v33 = vld [vmem:[#allocation11 + $0x240] sm:$0xf]  ;;  %v5022_v38 = vld [vmem:[#allocation11 + $0x60] sm:$0xf0]  ;;  %v6481_v42 = vor.u32 %v5718_v32, %v5020_v31 }
  0x64   :  { %8897 = vst [vmem:[#allocation43_spill] sm:$0xff] %v6470_v26  ;;  %v5782_v36 = vld [vmem:[#allocation11 + $0x25c] sm:$0xf0]  ;;  %v5778_v40 = vld [vmem:[#allocation11 + $0x244] sm:$0xf]  ;;  %v6485_v45 = vor.u32 %v5714_v37, %v5022_v38 }
  0x65   :  { %1626 = vmatpush.bf16.msra.mxu0 %v6414_v27  ;;  %8898 = vst [vmem:[#allocation44_spill] sm:$0xff] %v6472_v29  ;;  %v5278_v41 = vld [vmem:[#allocation11 + $0x260] sm:$0xf0]  ;;  %v6483_v44 = vor.u32 %v5782_v36, %v5276_v33  ;;  %v4988_v51 = vld [vmem:[#allocation11] sm:$0xf] }
  0x66   :  { %1639 = vmatpush.bf16.msra.mxu1 %v6416_v28  ;;  %8899 = vst [vmem:[#allocation45_spill] sm:$0xff] %v6475_v30  ;;  %v6488_v46 = vor.u32 %v5778_v40, %v5278_v41  ;;  %v5710_v52 = vld [vmem:[#allocation11 + $0x1c] sm:$0xf0]  ;;  %v5706_v57 = vld [vmem:[#allocation11 + $0x4] sm:$0xf] }
  0x67   :  { %1652 = vmatpush.bf16.msra.mxu2 %v6419_v35  ;;  %1665 = vmatpush.bf16.msra.mxu3 %v6421_v39  ;;  %8900 = vst [vmem:[#allocation46_spill] sm:$0xff] %v6481_v42  ;;  %v5244_v53 = vld [vmem:[#allocation11 + $0x200] sm:$0xf]  ;;  %v6494_v55 = vor.u32 %v5710_v52, %v4988_v51  ;;  %v4990_v60 = vld [vmem:[#allocation11 + $0x20] sm:$0xf0] }
  0x68   :  { %8901 = vst [vmem:[#allocation47_spill] sm:$0xff] %v6483_v44  ;;  %v5774_v56 = vld [vmem:[#allocation11 + $0x21c] sm:$0xf0]  ;;  %v6500_v62 = vor.u32 %v5706_v57, %v4990_v60  ;;  %v5770_v0 = vld [vmem:[#allocation11 + $0x204] sm:$0xf] }
  0x69   :  { %1627 = vmatpush.bf16.msra.mxu0 %v6424_v43  ;;  %8902 = vst [vmem:[#allocation48_spill] sm:$0xff] %v6485_v45  ;;  %v6498_v61 = vor.u32 %v5774_v56, %v5244_v53  ;;  %v5246_v1 = vld [vmem:[#allocation11 + $0x220] sm:$0xf0]  ;;  %v5220_v2 = vld [vmem:[#allocation11 + $0x1c8] sm:$0xf] }
  0x6a   :  { %1640 = vmatpush.bf16.msra.mxu1 %v6428_v47  ;;  %8903 = vst [vmem:[#allocation49_spill] sm:$0xff] %v6488_v46  ;;  %v5767_v6 = vld [vmem:[#allocation11 + $0x1e4] sm:$0xf0]  ;;  %v5763_v12 = vld [vmem:[#allocation11 + $0x1cc] sm:$0xf] }
  0x6b   :  { %1653 = vmatpush.bf16.msra.mxu2 %v6430_v48  ;;  %1666 = vmatpush.bf16.msra.mxu3 %v6433_v49  ;;  %8904 = vst [vmem:[#allocation50_spill] sm:$0xff] %v6494_v55  ;;  %v5476_v7 = vld [vmem:[#allocation11 + $0x3c8] sm:$0xf]  ;;  %v6505_v10 = vor.u32 %v5767_v6, %v5220_v2  ;;  %v5222_v15 = vld [vmem:[#allocation11 + $0x1e8] sm:$0xf0] }
  0x6c   :  { %8905 = vst [vmem:[#allocation51_spill] sm:$0xff] %v6498_v61  ;;  %v5831_v8 = vld [vmem:[#allocation11 + $0x3e4] sm:$0xf0]  ;;  %v5827_v17 = vld [vmem:[#allocation11 + $0x3cc] sm:$0xf]  ;;  %v6510_v20 = vor.u32 %v5763_v12, %v5222_v15 }
  0x6d   :  { %1628 = vmatpush.bf16.msra.mxu0 %v6445_v54  ;;  %8906 = vst [vmem:[#allocation52_spill] sm:$0xff] %v6500_v62  ;;  %v6507_v11 = vor.u32 %v5831_v8, %v5476_v7  ;;  %v5478_v22 = vld [vmem:[#allocation11 + $0x3e8] sm:$0xf0]  ;;  %v5188_v24 = vld [vmem:[#allocation11 + $0x188] sm:$0xf] }
  0x6e   :  { %1641 = vmatpush.bf16.msra.mxu1 %v6447_v58  ;;  %8908 = vst [vmem:[#allocation54_spill] sm:$0xff] %v6505_v10  ;;  %v5759_v25 = vld [vmem:[#allocation11 + $0x1a4] sm:$0xf0]  ;;  %v6514_v31 = vor.u32 %v5827_v17, %v5478_v22  ;;  %v5755_v36 = vld [vmem:[#allocation11 + $0x18c] sm:$0xf] }
  0x6f   :  { %1654 = vmatpush.bf16.msra.mxu2 %v6449_v59  ;;  %1667 = vmatpush.bf16.msra.mxu3 %v6452_v63  ;;  %8909 = vst [vmem:[#allocation55_spill] sm:$0xff] %v6507_v11  ;;  %v5444_v32 = vld [vmem:[#allocation11 + $0x388] sm:$0xf]  ;;  %v6518_v37 = vor.u32 %v5759_v25, %v5188_v24  ;;  %v5190_v38 = vld [vmem:[#allocation11 + $0x1a8] sm:$0xf0] }
  0x70   :  { %567 = vmatmul.bf16.gmra.mxu0 %v6435_v50  ;;  %596 = vmatmul.bf16.gmra.mxu1 %v6435_v50  ;;  %8910 = vst [vmem:[#allocation56_spill] sm:$0xff] %v6510_v20  ;;  %v5823_v33 = vld [vmem:[#allocation11 + $0x3a4] sm:$0xf0]  ;;  %v5819_v40 = vld [vmem:[#allocation11 + $0x38c] sm:$0xf]  ;;  %v6524_v52 = vor.u32 %v5755_v36, %v5190_v38 }
  0x71   :  { %625 = vmatmul.bf16.gmra.mxu2 %v6435_v50  ;;  %1629 = vmatpush.bf16.msra.mxu0 %v6456_v3  ;;  %8911 = vst [vmem:[#allocation57_spill] sm:$0xff] %v6514_v31  ;;  %v5446_v41 = vld [vmem:[#allocation11 + $0x3a8] sm:$0xf0]  ;;  %v6522_v51 = vor.u32 %v5823_v33, %v5444_v32  ;;  %v5156_v56 = vld [vmem:[#allocation11 + $0x148] sm:$0xf] }
  0x72   :  { %654 = vmatmul.bf16.gmra.mxu3 %v6435_v50  ;;  %1642 = vmatpush.bf16.msra.mxu1 %v6458_v5  ;;  %8912 = vst [vmem:[#allocation58_spill] sm:$0xff] %v6518_v37  ;;  %v6527_v53 = vor.u32 %v5819_v40, %v5446_v41  ;;  %v5751_v57 = vld [vmem:[#allocation11 + $0x164] sm:$0xf0]  ;;  %v5158_v2 = vld [vmem:[#allocation11 + $0x168] sm:$0xf0] }
  0x73   :  { %1655 = vmatpush.bf16.msra.mxu2 %v6461_v9  ;;  %1668 = vmatpush.bf16.msra.mxu3 %v6463_v14  ;;  %8913 = vst [vmem:[#allocation59_spill] sm:$0xff] %v6522_v51  ;;  %v5412_v60 = vld [vmem:[#allocation11 + $0x348] sm:$0xf]  ;;  %v5811_v6 = vld [vmem:[#allocation11 + $0x34c] sm:$0xf]  ;;  %v6533_v8 = vor.u32 %v5751_v57, %v5156_v56 }
  0x74   :  { %8914 = vst [vmem:[#allocation60_spill] sm:$0xff] %v6524_v52  ;;  %v5414_v7 = vld [vmem:[#allocation11 + $0x368] sm:$0xf0]  ;;  %v5124_v17 = vld [vmem:[#allocation11 + $0x108] sm:$0xf] }
  0x75   :  { %1630 = vmatpush.bf16.msra.mxu0 %v6466_v21  ;;  %8915 = vst [vmem:[#allocation61_spill] sm:$0xff] %v6527_v53  ;;  %v5743_v22 = vld [vmem:[#allocation11 + $0x124] sm:$0xf0]  ;;  %v6540_v25 = vor.u32 %v5811_v6, %v5414_v7  ;;  %v5739_v33 = vld [vmem:[#allocation11 + $0x10c] sm:$0xf] }
  0x76   :  { %1643 = vmatpush.bf16.msra.mxu1 %v6470_v26  ;;  %8916 = vst [vmem:[#allocation62_spill] sm:$0xff] %v6533_v8  ;;  %v5380_v24 = vld [vmem:[#allocation11 + $0x308] sm:$0xf]  ;;  %v5126_v36 = vld [vmem:[#allocation11 + $0x128] sm:$0xf0]  ;;  %v6546_v41 = vor.u32 %v5743_v22, %v5124_v17 }
  0x77   :  { %1656 = vmatpush.bf16.msra.mxu2 %v6472_v29  ;;  %1669 = vmatpush.bf16.msra.mxu3 %v6475_v30  ;;  %8919 = vst [vmem:[#allocation65_spill] sm:$0xff] %v6540_v25  ;;  %v5807_v32 = vld [vmem:[#allocation11 + $0x324] sm:$0xf0]  ;;  %v5803_v38 = vld [vmem:[#allocation11 + $0x30c] sm:$0xf]  ;;  %v6552_v57 = vor.u32 %v5739_v33, %v5126_v36 }
  0x78   :  { %v5382_v40 = vld [vmem:[#allocation11 + $0x328] sm:$0xf0]  ;;  %8920 = vst [vmem:[#allocation66_spill] sm:$0xff] %v6546_v41  ;;  %v6550_v56 = vor.u32 %v5807_v32, %v5380_v24  ;;  %v5060_v33 = vld [vmem:[#allocation11 + $0x88] sm:$0xf] }
  0x79   :  { %1631 = vmatpush.bf16.msra.mxu0 %v6481_v42  ;;  %8922 = vst [vmem:[#allocation68_spill] sm:$0xff] %v6552_v57  ;;  %v5731_v6 = vld [vmem:[#allocation11 + $0xcc] sm:$0xf]  ;;  %v5727_v36 = vld [vmem:[#allocation11 + $0xa4] sm:$0xf0] }
  0x7a   :  { %1644 = vmatpush.bf16.msra.mxu1 %v6483_v44  ;;  %8921 = vst [vmem:[#allocation67_spill] sm:$0xff] %v6550_v56  ;;  %v5094_v7 = vld [vmem:[#allocation11 + $0xe8] sm:$0xf0] }
  0x7b   :  { %1657 = vmatpush.bf16.msra.mxu2 %v6485_v45  ;;  %1670 = vmatpush.bf16.msra.mxu3 %v6488_v46  ;;  %v5795_v17 = vld [vmem:[#allocation11 + $0x2cc] sm:$0xf]  ;;  %v6564_v32 = vor.u32 %v5731_v6, %v5094_v7  ;;  %v5028_v6 = vld [vmem:[#allocation11 + $0x48] sm:$0xf] }
  0x7c   :  { %v5350_v22 = vld [vmem:[#allocation11 + $0x2e8] sm:$0xf0]  ;;  %v5719_v7 = vld [vmem:[#allocation11 + $0x64] sm:$0xf0] }
  0x7d   :  { %1632 = vmatpush.bf16.msra.mxu0 %v6494_v55  ;;  %8926 = vst [vmem:[#allocation72_spill] sm:$0xff] %v6564_v32 }
  0x7e   :  { %1645 = vmatpush.bf16.msra.mxu1 %v6498_v61 }
  0x7f   :  { %1658 = vmatpush.bf16.msra.mxu2 %v6500_v62 }
  0x80   :  { %668 = vmatmul.bf16.vlgmr.msrb.gmra.mxu0 %v6385_v34  ;;  %697 = vmatmul.bf16.vlgmr.msrb.gmra.mxu1 %v6385_v34 }
  0x81   :  { %726 = vmatmul.bf16.vlgmr.msrb.gmra.mxu2 %v6385_v34  ;;  %1677 = vmatpush.bf16.msrb.mxu0 %v6505_v10 }
  0x82   :  { %755 = vmatmul.bf16.vlgmr.msrb.gmra.mxu3 %v6385_v34  ;;  %v6503_v34 = vor.u32 %v5770_v0, %v5246_v1  ;;  %1690 = vmatpush.bf16.msrb.mxu1 %v6507_v11  ;;  %v5815_v0 = vld [vmem:[#allocation11 + $0x364] sm:$0xf0]  ;;  %v5747_v1 = vld [vmem:[#allocation11 + $0x14c] sm:$0xf]  ;;  %v5492_v11 = vld [vmem:[#allocation11 + $0x3d8] sm:$0xf] }
  0x83   :  { %1703 = vmatpush.bf16.msrb.mxu2 %v6510_v20  ;;  %v6535_v12 = vor.u32 %v5815_v0, %v5412_v60  ;;  %v6537_v15 = vor.u32 %v5747_v1, %v5158_v2  ;;  %v5092_v60 = vld [vmem:[#allocation11 + $0xc8] sm:$0xf]  ;;  %v6555_v2 = vor.u32 %v5803_v38, %v5382_v40  ;;  %v6567_v40 = vor.u32 %v5795_v17, %v5350_v22 }
  0x84   :  { %8907 = vst [vmem:[#allocation53_spill] sm:$0xff] %v6503_v34  ;;  %1671 = vmatpush.bf16.msra.mxu3 %v6503_v34  ;;  %v5735_v0 = vld [vmem:[#allocation11 + $0xe4] sm:$0xf0] }
  0x85   :  { %1678 = vmatpush.bf16.msrb.mxu0 %v6518_v37  ;;  %8917 = vst [vmem:[#allocation63_spill] sm:$0xff] %v6535_v12  ;;  %v5348_v1 = vld [vmem:[#allocation11 + $0x2c8] sm:$0xf]  ;;  %v5769_v37 = vld [vmem:[#allocation11 + $0x1f4] sm:$0xf0] }
  0x86   :  { %1691 = vmatpush.bf16.msrb.mxu1 %v6522_v51  ;;  %8918 = vst [vmem:[#allocation64_spill] sm:$0xff] %v6537_v15  ;;  %v5316_v38 = vld [vmem:[#allocation11 + $0x288] sm:$0xf] }
  0x87   :  { %1704 = vmatpush.bf16.msrb.mxu2 %v6524_v52  ;;  %8923 = vst [vmem:[#allocation69_spill] sm:$0xff] %v6555_v2  ;;  %v5284_v17 = vld [vmem:[#allocation11 + $0x248] sm:$0xf]  ;;  %v5784_v52 = vld [vmem:[#allocation11 + $0x26c] sm:$0xf0] }
  0x88   :  { %1716 = vmatpush.bf16.msrb.mxu3 %v6514_v31  ;;  %8927 = vst [vmem:[#allocation73_spill] sm:$0xff] %v6567_v40  ;;  %v5776_v31 = vld [vmem:[#allocation11 + $0x22c] sm:$0xf0] }
  0x89   :  { %1679 = vmatpush.bf16.msrb.mxu0 %v6533_v8 }
  0x8a   :  { %1692 = vmatpush.bf16.msrb.mxu1 %v6535_v12  ;;  %v6558_v12 = vor.u32 %v5735_v0, %v5092_v60  ;;  %v5787_v60 = vld [vmem:[#allocation11 + $0x28c] sm:$0xf] }
  0x8b   :  { %1705 = vmatpush.bf16.msrb.mxu2 %v6537_v15  ;;  %v5723_v15 = vld [vmem:[#allocation11 + $0x8c] sm:$0xf] }
  0x8c   :  { %1717 = vmatpush.bf16.msrb.mxu3 %v6527_v53  ;;  %8924 = vst [vmem:[#allocation70_spill] sm:$0xff] %v6558_v12  ;;  %v5318_v0 = vld [vmem:[#allocation11 + $0x2a8] sm:$0xf0]  ;;  %v5728_v53 = vld [vmem:[#allocation11 + $0xac] sm:$0xf0] }
  0x8d   :  { %1680 = vmatpush.bf16.msrb.mxu0 %v6546_v41  ;;  %v5062_v41 = vld [vmem:[#allocation11 + $0xa8] sm:$0xf0]  ;;  %v6579_v22 = vor.u32 %v5787_v60, %v5318_v0  ;;  %v5252_v60 = vld [vmem:[#allocation11 + $0x208] sm:$0xf] }
  0x8e   :  { %1693 = vmatpush.bf16.msrb.mxu1 %v6550_v56  ;;  %v6570_v56 = vor.u32 %v5727_v36, %v5060_v33  ;;  %v5779_v33 = vld [vmem:[#allocation11 + $0x24c] sm:$0xf] }
  0x8f   :  { %1706 = vmatpush.bf16.msrb.mxu2 %v6552_v57  ;;  %8931 = vst [vmem:[#allocation77_spill] sm:$0xff] %v6579_v22  ;;  %v5715_v57 = vld [vmem:[#allocation11 + $0x4c] sm:$0xf] }
  0x90   :  { %673 = vmatmul.bf16.gmra.mxu0 %v6391_v16  ;;  %702 = vmatmul.bf16.gmra.mxu1 %v6391_v16  ;;  %8928 = vst [vmem:[#allocation74_spill] sm:$0xff] %v6570_v56  ;;  %v5286_v36 = vld [vmem:[#allocation11 + $0x268] sm:$0xf0] }
  0x91   :  { %731 = vmatmul.bf16.gmra.mxu2 %v6391_v16  ;;  %1718 = vmatpush.bf16.msrb.mxu3 %v6540_v25  ;;  %v5791_v25 = vld [vmem:[#allocation11 + $0x2a4] sm:$0xf0]  ;;  %v6592_v0 = vor.u32 %v5779_v33, %v5286_v36 }
  0x92   :  { %760 = vmatmul.bf16.gmra.mxu3 %v6391_v16  ;;  %v5799_v16 = vld [vmem:[#allocation11 + $0x2e4] sm:$0xf0]  ;;  %1681 = vmatpush.bf16.msrb.mxu0 %v6558_v12  ;;  %v5030_v12 = vld [vmem:[#allocation11 + $0x68] sm:$0xf0] }
  0x93   :  { %v6562_v24 = vor.u32 %v5799_v16, %v5348_v1  ;;  %1707 = vmatpush.bf16.msrb.mxu2 %v6564_v32  ;;  %v6574_v1 = vor.u32 %v5791_v25, %v5316_v38  ;;  %v6576_v16 = vor.u32 %v5723_v15, %v5062_v41  ;;  %v6588_v25 = vor.u32 %v5715_v57, %v5030_v12  ;;  %v4996_v41 = vld [vmem:[#allocation11 + $0x8] sm:$0xf]  ;;  %v5068_v32 = vld [vmem:[#allocation11 + $0x90] sm:$0xf] }
  0x94   :  { %v5711_v38 = vld [vmem:[#allocation11 + $0x24] sm:$0xf0]  ;;  %8935 = vst [vmem:[#allocation81_spill] sm:$0xff] %v6592_v0 }
  0x95   :  { %8925 = vst [vmem:[#allocation71_spill] sm:$0xff] %v6562_v24  ;;  %1719 = vmatpush.bf16.msrb.mxu3 %v6555_v2  ;;  %1694 = vmatpush.bf16.msrb.mxu1 %v6562_v24  ;;  %v5783_v2 = vld [vmem:[#allocation11 + $0x264] sm:$0xf0]  ;;  %v6582_v24 = vor.u32 %v5719_v7, %v5028_v6  ;;  %v5707_v6 = vld [vmem:[#allocation11 + $0xc] sm:$0xf]  ;;  %v6598_v12 = vor.u32 %v5711_v38, %v4996_v41 }
  0x96   :  { %8929 = vst [vmem:[#allocation75_spill] sm:$0xff] %v6574_v1  ;;  %1682 = vmatpush.bf16.msrb.mxu0 %v6570_v56  ;;  %v6586_v15 = vor.u32 %v5783_v2, %v5284_v17  ;;  %v4998_v7 = vld [vmem:[#allocation11 + $0x28] sm:$0xf0]  ;;  %v5484_v41 = vld [vmem:[#allocation11 + $0x3d0] sm:$0xf] }
  0x97   :  { %8930 = vst [vmem:[#allocation76_spill] sm:$0xff] %v6576_v16  ;;  %1708 = vmatpush.bf16.msrb.mxu2 %v6576_v16  ;;  %v5771_v2 = vld [vmem:[#allocation11 + $0x20c] sm:$0xf]  ;;  %v6604_v33 = vor.u32 %v5707_v6, %v4998_v7  ;;  %v5832_v38 = vld [vmem:[#allocation11 + $0x3ec] sm:$0xf0] }
  0x98   :  { %8932 = vst [vmem:[#allocation78_spill] sm:$0xff] %v6582_v24  ;;  %v5254_v17 = vld [vmem:[#allocation11 + $0x228] sm:$0xf0]  ;;  %v5230_v6 = vld [vmem:[#allocation11 + $0x1f0] sm:$0xf0] }
  0x99   :  { %1720 = vmatpush.bf16.msrb.mxu3 %v6567_v40  ;;  %1695 = vmatpush.bf16.msrb.mxu1 %v6574_v1  ;;  %8933 = vst [vmem:[#allocation79_spill] sm:$0xff] %v6586_v15  ;;  %v5775_v40 = vld [vmem:[#allocation11 + $0x224] sm:$0xf0]  ;;  %v6607_v36 = vor.u32 %v5771_v2, %v5254_v17  ;;  %v5828_v2 = vld [vmem:[#allocation11 + $0x3d4] sm:$0xf] }
  0x9a   :  { %8934 = vst [vmem:[#allocation80_spill] sm:$0xff] %v6588_v25  ;;  %1683 = vmatpush.bf16.msrb.mxu0 %v6582_v24  ;;  %v6602_v57 = vor.u32 %v5775_v40, %v5252_v60  ;;  %v5768_v40 = vld [vmem:[#allocation11 + $0x1ec] sm:$0xf0]  ;;  %v5764_v60 = vld [vmem:[#allocation11 + $0x1d4] sm:$0xf] }
  0x9b   :  { %8936 = vst [vmem:[#allocation82_spill] sm:$0xff] %v6598_v12  ;;  %1709 = vmatpush.bf16.msrb.mxu2 %v6588_v25  ;;  %v5486_v17 = vld [vmem:[#allocation11 + $0x3f0] sm:$0xf0]  ;;  %v8629_v25 = vmov 0.0|0.0   ;;  %v5824_v24 = vld [vmem:[#allocation11 + $0x3ac] sm:$0xf0] }
  0x9c   :  { %8937 = vst [vmem:[#allocation83_spill] sm:$0xff] %v6602_v57  ;;  %v5198_v1 = vld [vmem:[#allocation11 + $0x1b0] sm:$0xf0] }
  0x9d   :  { %1721 = vmatpush.bf16.msrb.mxu3 %v6579_v22  ;;  %1696 = vmatpush.bf16.msrb.mxu1 %v6586_v15  ;;  %8938 = vst [vmem:[#allocation84_spill] sm:$0xff] %v6604_v33  ;;  %v5452_v15 = vld [vmem:[#allocation11 + $0x390] sm:$0xf]  ;;  %v6628_v22 = vor.u32 %v5828_v2, %v5486_v17  ;;  %v5740_v56 = vld [vmem:[#allocation11 + $0x114] sm:$0xf] }
  0x9e   :  { %8939 = vst [vmem:[#allocation85_spill] sm:$0xff] %v6607_v36  ;;  %1684 = vmatpush.bf16.msrb.mxu0 %v6598_v12  ;;  %v5196_v12 = vld [vmem:[#allocation11 + $0x190] sm:$0xf] }
  0x9f   :  { %1710 = vmatpush.bf16.msrb.mxu2 %v6604_v33  ;;  %v6623_v33 = vor.u32 %v5832_v38, %v5484_v41  ;;  %8945 = vst [vmem:[#allocation91_spill] sm:$0xff] %v6628_v22  ;;  %v6638_v38 = vor.u32 %v5824_v24, %v5452_v15  ;;  %v5752_v2 = vld [vmem:[#allocation11 + $0x16c] sm:$0xf0]  ;;  %v5812_v24 = vld [vmem:[#allocation11 + $0x354] sm:$0xf] }
  0xa0   :  { %678 = vmatmul.bf16.gmra.mxu0 %v6397_v4  ;;  %707 = vmatmul.bf16.gmra.mxu1 %v6397_v4  ;;  %v5420_v17 = vld [vmem:[#allocation11 + $0x350] sm:$0xf]  ;;  %v5422_v15 = vld [vmem:[#allocation11 + $0x370] sm:$0xf0] }
  0xa1   :  { %736 = vmatmul.bf16.gmra.mxu2 %v6397_v4  ;;  %1722 = vmatpush.bf16.msrb.mxu3 %v6592_v0  ;;  %8943 = vst [vmem:[#allocation89_spill] sm:$0xff] %v6623_v33  ;;  %v6625_v0 = vor.u32 %v5764_v60, %v5230_v6  ;;  %v5164_v6 = vld [vmem:[#allocation11 + $0x150] sm:$0xf] }
  0xa2   :  { %765 = vmatmul.bf16.gmra.mxu3 %v6397_v4  ;;  %1697 = vmatpush.bf16.msrb.mxu1 %v6602_v57  ;;  %v5228_v4 = vld [vmem:[#allocation11 + $0x1d0] sm:$0xf]  ;;  %8947 = vst [vmem:[#allocation93_spill] sm:$0xff] %v6638_v38 }
  0xa3   :  { %8944 = vst [vmem:[#allocation90_spill] sm:$0xff] %v6625_v0 }
  0xa5   :  { %1723 = vmatpush.bf16.msrb.mxu3 %v6607_v36  ;;  %v6621_v36 = vor.u32 %v5768_v40, %v5228_v4  ;;  %v5820_v4 = vld [vmem:[#allocation11 + $0x394] sm:$0xf] }
  0xa6   :  { %v5454_v40 = vld [vmem:[#allocation11 + $0x3b0] sm:$0xf0] }
  0xa7   :  { %8942 = vst [vmem:[#allocation88_spill] sm:$0xff] %v6621_v36 }
  0xb0   :  { %683 = vmatmul.bf16.gmra.mxu0 %v6435_v50  ;;  %712 = vmatmul.bf16.gmra.mxu1 %v6435_v50 }
  0xb1   :  { %741 = vmatmul.bf16.gmra.mxu2 %v6435_v50 }
  0xb2   :  { %770 = vmatmul.bf16.gmra.mxu3 %v6435_v50  ;;  %v5760_v50 = vld [vmem:[#allocation11 + $0x1ac] sm:$0xf0] }
  0xb3   :  { %v6634_v41 = vor.u32 %v5760_v50, %v5196_v12  ;;  %v5748_v12 = vld [vmem:[#allocation11 + $0x154] sm:$0xf] }
  0xb4   :  { %v5166_v50 = vld [vmem:[#allocation11 + $0x170] sm:$0xf0] }
  0xb5   :  { %8946 = vst [vmem:[#allocation92_spill] sm:$0xff] %v6634_v41 }
  0xbd   :  { %v6617_v7 = vpop.f32.mrf.mxu0  ;;  %v6619_v57 = vpop.f32.mrf.mxu1 }
  0xbe   :  { %8940 = vst [vmem:[#allocation86_spill] sm:$0xff] %v6617_v7  ;;  %v5756_v7 = vld [vmem:[#allocation11 + $0x194] sm:$0xf] }
  0xbf   :  { %8941 = vst [vmem:[#allocation87_spill] sm:$0xff] %v6619_v57  ;;  %v6640_v60 = vor.u32 %v5756_v7, %v5198_v1  ;;  %v6651_v1 = vld [vmem:[#allocation10] sm:$0xff] }
  0xc0   :  { %1633 = vmatmul.bf16.vlgmr.msra.gmra.mxu0 %v8629_v25  ;;  %1646 = vmatmul.bf16.vlgmr.msra.gmra.mxu1 %v8629_v25 }
  0xc1   :  { %1659 = vmatmul.bf16.vlgmr.msra.gmra.mxu2 %v8629_v25  ;;  %1729 = vmatpush.bf16.msra.mxu0 %v6621_v36  ;;  %8948 = vst [vmem:[#allocation94_spill] sm:$0xff] %v6640_v60  ;;  %v5816_v36 = vld [vmem:[#allocation11 + $0x36c] sm:$0xf0] }
  0xc2   :  { %1672 = vmatmul.bf16.vlgmr.msra.gmra.mxu3 %v8629_v25  ;;  %1742 = vmatpush.bf16.msra.mxu1 %v6623_v33  ;;  %v6645_v25 = vor.u32 %v5820_v4, %v5454_v40  ;;  %v6660_v4 = vor.u32 %v5816_v36, %v5420_v17  ;;  %v6662_v40 = vor.u32 %v5748_v12, %v5166_v50  ;;  %v5100_v50 = vld [vmem:[#allocation11 + $0xd0] sm:$0xf] }
  0xc3   :  { %1755 = vmatpush.bf16.msra.mxu2 %v6625_v0  ;;  %1768 = vmatpush.bf16.msra.mxu3 %v6628_v22  ;;  %v6656_v22 = vor.u32 %v5752_v2, %v5164_v6  ;;  %v5132_v0 = vld [vmem:[#allocation11 + $0x110] sm:$0xf]  ;;  %v5804_v6 = vld [vmem:[#allocation11 + $0x314] sm:$0xf] }
  0xc4   :  { %v6643_v57 = vpop.f32.mrf.mxu2  ;;  %8950 = vst [vmem:[#allocation96_spill] sm:$0xff] %v6645_v25  ;;  %v5390_v2 = vld [vmem:[#allocation11 + $0x330] sm:$0xf0] }
  0xc5   :  { %8949 = vst [vmem:[#allocation95_spill] sm:$0xff] %v6643_v57  ;;  %v6647_v16 = vpop.f32.mrf.mxu3  ;;  %v6649_v33 = vpop.f32.mrf.mxu0  ;;  %1730 = vmatpush.bf16.msra.mxu0 %v6634_v41  ;;  %v6665_v57 = vor.u32 %v5812_v24, %v5422_v15  ;;  %v5808_v41 = vld [vmem:[#allocation11 + $0x32c] sm:$0xf0] }
  0xc6   :  { %8951 = vst [vmem:[#allocation97_spill] sm:$0xff] %v6647_v16  ;;  %v6654_v7 = vpop.f32.mrf.mxu1  ;;  %1743 = vmatpush.bf16.msra.mxu1 %v6638_v38  ;;  %v5388_v16 = vld [vmem:[#allocation11 + $0x310] sm:$0xf]  ;;  %v6668_v38 = vperm.slane %v6651_v1, 0 }
  0xc7   :  { %8952 = vst [vmem:[#allocation98_spill] sm:$0xff] %v6649_v33  ;;  %1756 = vmatpush.bf16.msra.mxu2 %v6640_v60  ;;  %v5744_v33 = vld [vmem:[#allocation11 + $0x12c] sm:$0xf0]  ;;  %1769 = vmatpush.bf16.msra.mxu3 %v6645_v25  ;;  %v6675_v17 = vor.u32 %v5808_v41, %v5388_v16  ;;  %v6682_v60 = vor.u32 %v5804_v6, %v5390_v2  ;;  %v5358_v41 = vld [vmem:[#allocation11 + $0x2f0] sm:$0xf0] }
  0xc8   :  { %8953 = vst [vmem:[#allocation99_spill] sm:$0xff] %v6654_v7  ;;  %v5134_v7 = vld [vmem:[#allocation11 + $0x130] sm:$0xf0]  ;;  %v6671_v36 = vor.u32 %v5744_v33, %v5132_v0  ;;  %v5736_v24 = vld [vmem:[#allocation11 + $0xec] sm:$0xf0] }
  0xc9   :  { %8954 = vst [vmem:[#allocation100_spill] sm:$0xff] %v6656_v22  ;;  %1731 = vmatpush.bf16.msra.mxu0 %v6656_v22  ;;  %v6677_v12 = vor.u32 %v5740_v56, %v5134_v7  ;;  %v5356_v15 = vld [vmem:[#allocation11 + $0x2d0] sm:$0xf]  ;;  %v5732_v0 = vld [vmem:[#allocation11 + $0xd4] sm:$0xf] }
  0xca   :  { %8955 = vst [vmem:[#allocation101_spill] sm:$0xff] %v6660_v4  ;;  %1744 = vmatpush.bf16.msra.mxu1 %v6660_v4  ;;  %v5800_v22 = vld [vmem:[#allocation11 + $0x2ec] sm:$0xf0]  ;;  %v5102_v33 = vld [vmem:[#allocation11 + $0xf0] sm:$0xf0]  ;;  %v6685_v4 = vperm.slane %v6651_v1, 1 }
  0xcb   :  { %8956 = vst [vmem:[#allocation102_spill] sm:$0xff] %v6662_v40  ;;  %1757 = vmatpush.bf16.msra.mxu2 %v6662_v40  ;;  %1770 = vmatpush.bf16.msra.mxu3 %v6665_v57  ;;  %v5796_v56 = vld [vmem:[#allocation11 + $0x2d4] sm:$0xf]  ;;  %v6700_v2 = vor.u32 %v5800_v22, %v5356_v15  ;;  %v6711_v15 = vperm.slane %v6651_v1, 2 }
  0xcc   :  { %8957 = vst [vmem:[#allocation103_spill] sm:$0xff] %v6665_v57  ;;  %v6680_v25 = vpop.f32.mrf.mxu2  ;;  %v5788_v22 = vld [vmem:[#allocation11 + $0x294] sm:$0xf] }
  0xcd   :  { %8958 = vst [vmem:[#allocation104_spill] sm:$0xff] %v6668_v38  ;;  %v6687_v40 = vpop.f32.mrf.mxu3  ;;  %v558_v16 = vpop.f32.mrf.mxu0  ;;  %1732 = vmatpush.bf16.msra.mxu0 %v6671_v36 }
  0xce   :  { %8959 = vst [vmem:[#allocation105_spill] sm:$0xff] %v6671_v36  ;;  %v6691_v7 = vadd.f32 %v558_v16, %v6668_v38  ;;  %v587_v57 = vpop.f32.mrf.mxu1  ;;  %1745 = vmatpush.bf16.msra.mxu1 %v6675_v17  ;;  %v5324_v36 = vld [vmem:[#allocation11 + $0x290] sm:$0xf]  ;;  %v8971_v16 = vmov 0.0|0.0  }
  0xcf   :  { %8960 = vst [vmem:[#allocation106_spill] sm:$0xff] %v6675_v17  ;;  %1758 = vmatpush.bf16.msra.mxu2 %v6677_v12  ;;  %v6698_v6 = vadd.f32 %v587_v57, %v6685_v4  ;;  %1771 = vmatpush.bf16.msra.mxu3 %v6682_v60  ;;  %v5070_v17 = vld [vmem:[#allocation11 + $0xb0] sm:$0xf0] }
  0xd0   :  { %8961 = vst [vmem:[#allocation107_spill] sm:$0xff] %v6677_v12  ;;  %1685 = vmatmul.bf16.vlgmr.msrb.gmra.mxu0 %v8971_v16  ;;  %1698 = vmatmul.bf16.vlgmr.msrb.gmra.mxu1 %v8971_v16  ;;  %v5326_v57 = vld [vmem:[#allocation11 + $0x2b0] sm:$0xf0]  ;;  %v5292_v12 = vld [vmem:[#allocation11 + $0x250] sm:$0xf] }
  0xd1   :  { %8962 = vst [vmem:[#allocation108_spill] sm:$0xff] %v6680_v25  ;;  %v6693_v25 = vor.u32 %v5736_v24, %v5100_v50  ;;  %v6706_v50 = vor.u32 %v5796_v56, %v5358_v41  ;;  %v5792_v24 = vld [vmem:[#allocation11 + $0x2ac] sm:$0xf0]  ;;  %1711 = vmatmul.bf16.vlgmr.msrb.gmra.mxu2 %v8971_v16  ;;  %v6727_v51 = vor.u32 %v5788_v22, %v5326_v57 }
  0xd2   :  { %8963 = vst [vmem:[#allocation109_spill] sm:$0xff] %v6682_v60  ;;  %1724 = vmatmul.bf16.vlgmr.msrb.gmra.mxu3 %v8971_v16  ;;  %1746 = vmatpush.bf16.msra.mxu1 %v6700_v2  ;;  %v6722_v56 = vor.u32 %v5792_v24, %v5324_v36  ;;  %v5720_v60 = vld [vmem:[#allocation11 + $0x6c] sm:$0xf0]  ;;  %v5780_v36 = vld [vmem:[#allocation11 + $0x254] sm:$0xf] }
  0xd3   :  { %8964 = vst [vmem:[#allocation110_spill] sm:$0xff] %v6685_v4  ;;  %1733 = vmatpush.bf16.msra.mxu0 %v6693_v25  ;;  %1772 = vmatpush.bf16.msra.mxu3 %v6706_v50  ;;  %v5004_v57 = vld [vmem:[#allocation11 + $0x10] sm:$0xf] }
  0xd4   :  { %8965 = vst [vmem:[#allocation111_spill] sm:$0xff] %v6687_v40  ;;  %v6702_v40 = vor.u32 %v5732_v0, %v5102_v33  ;;  %v6714_v0 = vperm.slane %v6651_v1, 3  ;;  %v6718_v33 = vor.u32 %v5728_v53, %v5068_v32  ;;  %v616_v8 = vpop.f32.mrf.mxu2  ;;  %v5038_v53 = vld [vmem:[#allocation11 + $0x70] sm:$0xf0] }
  0xd5   :  { %8966 = vst [vmem:[#allocation112_spill] sm:$0xff] %v6691_v7  ;;  %v5724_v7 = vld [vmem:[#allocation11 + $0x94] sm:$0xf]  ;;  %v6730_v32 = vadd.f32 %v616_v8, %v6711_v15  ;;  %v6744_v8 = vor.u32 %v5784_v52, %v5292_v12  ;;  %v5833_v52 = vld [vmem:[#allocation11 + $0x3f4] sm:$0xf0] }
  0xd6   :  { %8967 = vst [vmem:[#allocation113_spill] sm:$0xff] %v6693_v25  ;;  %1759 = vmatpush.bf16.msra.mxu2 %v6702_v40  ;;  %v6724_v41 = vor.u32 %v5724_v7, %v5070_v17  ;;  %v5716_v25 = vld [vmem:[#allocation11 + $0x54] sm:$0xf]  ;;  %v6738_v24 = vpop.f32.mrf.mxu1  ;;  %1747 = vmatpush.bf16.msra.mxu1 %v6722_v56  ;;  %v5238_v12 = vld [vmem:[#allocation11 + $0x1f8] sm:$0xf0] }
  0xd7   :  { %8968 = vst [vmem:[#allocation114_spill] sm:$0xff] %v6698_v6  ;;  %v5036_v6 = vld [vmem:[#allocation11 + $0x50] sm:$0xf]  ;;  %v5294_v17 = vld [vmem:[#allocation11 + $0x270] sm:$0xf0]  ;;  %1734 = vmatpush.bf16.msra.mxu0 %v6718_v33  ;;  %1773 = vmatpush.bf16.msra.mxu3 %v6727_v51 }
  0xd8   :  { %8969 = vst [vmem:[#allocation115_spill] sm:$0xff] %v6700_v2  ;;  %v645_v2 = vpop.f32.mrf.mxu3  ;;  %v6740_v22 = vor.u32 %v5720_v60, %v5036_v6  ;;  %v5772_v60 = vld [vmem:[#allocation11 + $0x214] sm:$0xf] }
  0xd9   :  { %8970 = vst [vmem:[#allocation116_spill] sm:$0xff] %v6702_v40  ;;  %v6732_v40 = vpop.f32.mrf.mxu0  ;;  %v6735_v7 = vadd.f32 %v645_v2, %v6714_v0  ;;  %v5708_v2 = vld [vmem:[#allocation11 + $0x14] sm:$0xf] }
  0xda   :  { %8972 = vst [vmem:[#allocation117_spill] sm:$0xff] %v6706_v50  ;;  %v5712_v50 = vld [vmem:[#allocation11 + $0x2c] sm:$0xf0]  ;;  %1760 = vmatpush.bf16.msra.mxu2 %v6724_v41  ;;  %v5262_v6 = vld [vmem:[#allocation11 + $0x230] sm:$0xf0]  ;;  %1748 = vmatpush.bf16.msra.mxu1 %v6744_v8 }
  0xdb   :  { %8973 = vst [vmem:[#allocation118_spill] sm:$0xff] %v6711_v15  ;;  %1735 = vmatpush.bf16.msra.mxu0 %v6740_v22 }
  0xdc   :  { %8974 = vst [vmem:[#allocation119_spill] sm:$0xff] %v6714_v0 }
  0xdd   :  { %8975 = vst [vmem:[#allocation120_spill] sm:$0xff] %v6718_v33  ;;  %v5236_v33 = vld [vmem:[#allocation11 + $0x1d8] sm:$0xf] }
  0xde   :  { %8976 = vst [vmem:[#allocation121_spill] sm:$0xff] %v6722_v56  ;;  %v6752_v56 = vor.u32 %v5712_v50, %v5004_v57  ;;  %v6765_v50 = vor.u32 %v5769_v37, %v5236_v33  ;;  %v5825_v37 = vld [vmem:[#allocation11 + $0x3b4] sm:$0xf0]  ;;  %v5757_v33 = vld [vmem:[#allocation11 + $0x19c] sm:$0xf] }
  0xdf   :  { %8977 = vst [vmem:[#allocation122_spill] sm:$0xff] %v6724_v41  ;;  %v6761_v41 = vpop.f32.mrf.mxu2 }
  0xe0   :  { %8978 = vst [vmem:[#allocation123_spill] sm:$0xff] %v6727_v51  ;;  %v5494_v51 = vld [vmem:[#allocation11 + $0x3f8] sm:$0xf0]  ;;  %v6767_v57 = vpop.f32.mrf.mxu3  ;;  %1736 = vmatpush.bf16.msra.mxu0 %v6752_v56 }
  0xe1   :  { %8979 = vst [vmem:[#allocation124_spill] sm:$0xff] %v6730_v32  ;;  %v5260_v32 = vld [vmem:[#allocation11 + $0x210] sm:$0xf]  ;;  %v563_v34 = vpop.f32.mrf.mxu0 }
  0xe2   :  { %8980 = vst [vmem:[#allocation125_spill] sm:$0xff] %v6732_v40  ;;  %v6746_v40 = vor.u32 %v5716_v25, %v5038_v53  ;;  %v5765_v25 = vld [vmem:[#allocation11 + $0x1dc] sm:$0xf]  ;;  %v6756_v53 = vor.u32 %v5776_v31, %v5260_v32  ;;  %v5204_v31 = vld [vmem:[#allocation11 + $0x198] sm:$0xf] }
  0xe3   :  { %8981 = vst [vmem:[#allocation126_spill] sm:$0xff] %v6735_v7  ;;  %v6749_v7 = vor.u32 %v5780_v36, %v5294_v17  ;;  %v5829_v17 = vld [vmem:[#allocation11 + $0x3dc] sm:$0xf]  ;;  %v5761_v32 = vld [vmem:[#allocation11 + $0x1b4] sm:$0xf0]  ;;  %1737 = vmatmul.bf16.vlgmr.msra.gmra.mxu0 %v8971_v16 }
  0xe4   :  { %8982 = vst [vmem:[#allocation127_spill] sm:$0xff] %v6738_v24  ;;  %v5006_v24 = vld [vmem:[#allocation11 + $0x30] sm:$0xf0]  ;;  %1761 = vmatpush.bf16.msra.mxu2 %v6746_v40  ;;  %1749 = vmatpush.bf16.msra.mxu1 %v6756_v53 }
  0xe5   :  { %8983 = vst [vmem:[#allocation128_spill] sm:$0xff] %v6740_v22  ;;  %v6758_v36 = vor.u32 %v5708_v2, %v5006_v24  ;;  %1774 = vmatpush.bf16.msra.mxu3 %v6749_v7  ;;  %v6763_v22 = vor.u32 %v5772_v60, %v5262_v6  ;;  %v5460_v24 = vld [vmem:[#allocation11 + $0x398] sm:$0xf]  ;;  %v6775_v2 = vadd.f32 %v563_v34, %v6668_v38  ;;  %v5206_v6 = vld [vmem:[#allocation11 + $0x1b8] sm:$0xf0] }
  0xe6   :  { %8984 = vst [vmem:[#allocation129_spill] sm:$0xff] %v6744_v8  ;;  %v6769_v8 = vor.u32 %v5833_v52, %v5492_v11  ;;  %v6777_v60 = vor.u32 %v5829_v17, %v5494_v51  ;;  %v5821_v52 = vld [vmem:[#allocation11 + $0x39c] sm:$0xf]  ;;  %1781 = vmatpush.bf16.msrb.mxu0 %v6765_v50  ;;  %v6786_v34 = vor.u32 %v5761_v32, %v5204_v31  ;;  %v5172_v17 = vld [vmem:[#allocation11 + $0x158] sm:$0xf] }
  0xe7   :  { %8985 = vst [vmem:[#allocation130_spill] sm:$0xff] %v6746_v40  ;;  %v6771_v40 = vor.u32 %v5765_v25, %v5238_v12  ;;  %v5462_v25 = vld [vmem:[#allocation11 + $0x3b8] sm:$0xf0]  ;;  %v6790_v51 = vor.u32 %v5825_v37, %v5460_v24  ;;  %v6792_v12 = vor.u32 %v5757_v33, %v5206_v6  ;;  %1750 = vmatmul.bf16.vlgmr.msra.gmra.mxu1 %v8971_v16  ;;  %v621_v33 = vpop.f32.mrf.mxu2 }
  0xe8   :  { %8986 = vst [vmem:[#allocation131_spill] sm:$0xff] %v6749_v7  ;;  %1762 = vmatpush.bf16.msra.mxu2 %v6758_v36  ;;  %1794 = vmatpush.bf16.msrb.mxu1 %v6769_v8  ;;  %v5749_v31 = vld [vmem:[#allocation11 + $0x15c] sm:$0xf]  ;;  %v5745_v7 = vld [vmem:[#allocation11 + $0x134] sm:$0xf0] }
  0xe9   :  { %8987 = vst [vmem:[#allocation132_spill] sm:$0xff] %v6752_v56  ;;  %1775 = vmatpush.bf16.msra.mxu3 %v6763_v22  ;;  %v5174_v32 = vld [vmem:[#allocation11 + $0x178] sm:$0xf0] }
  0xea   :  { %8988 = vst [vmem:[#allocation133_spill] sm:$0xff] %v6756_v53  ;;  %v5813_v24 = vld [vmem:[#allocation11 + $0x35c] sm:$0xf]  ;;  %1782 = vmatpush.bf16.msrb.mxu0 %v6786_v34  ;;  %v5140_v53 = vld [vmem:[#allocation11 + $0x118] sm:$0xf] }
  0xeb   :  { %8989 = vst [vmem:[#allocation134_spill] sm:$0xff] %v6758_v36  ;;  %1763 = vmatmul.bf16.vlgmr.msra.gmra.mxu2 %v8971_v16  ;;  %v5430_v37 = vld [vmem:[#allocation11 + $0x378] sm:$0xf0] }
  0xec   :  { %8990 = vst [vmem:[#allocation135_spill] sm:$0xff] %v6761_v41  ;;  %v592_v41 = vpop.f32.mrf.mxu1  ;;  %1807 = vmatpush.bf16.msrb.mxu2 %v6771_v40  ;;  %1776 = vmatmul.bf16.vlgmr.msra.gmra.mxu3 %v8971_v16 }
  0xed   :  { %8991 = vst [vmem:[#allocation136_spill] sm:$0xff] %v6763_v22  ;;  %v6782_v11 = vadd.f32 %v592_v41, %v6685_v4  ;;  %v5428_v41 = vld [vmem:[#allocation11 + $0x358] sm:$0xf]  ;;  %1820 = vmatpush.bf16.msrb.mxu3 %v6777_v60  ;;  %1795 = vmatpush.bf16.msrb.mxu1 %v6790_v51  ;;  %v6813_v22 = vor.u32 %v5749_v31, %v5174_v32 }
  0xee   :  { %8992 = vst [vmem:[#allocation137_spill] sm:$0xff] %v6765_v50 }
  0xef   :  { %8993 = vst [vmem:[#allocation138_spill] sm:$0xff] %v6767_v57  ;;  %v5817_v57 = vld [vmem:[#allocation11 + $0x374] sm:$0xf0] }
  0xf0   :  { %8994 = vst [vmem:[#allocation139_spill] sm:$0xff] %v6769_v8  ;;  %1808 = vmatpush.bf16.msrb.mxu2 %v6792_v12  ;;  %v6811_v8 = vor.u32 %v5817_v57, %v5428_v41  ;;  %v5398_v57 = vld [vmem:[#allocation11 + $0x338] sm:$0xf0]  ;;  %v6824_v41 = vor.u32 %v5745_v7, %v5140_v53 }
  0xf1   :  { %8995 = vst [vmem:[#allocation140_spill] sm:$0xff] %v6771_v40  ;;  %v5797_v7 = vld [vmem:[#allocation11 + $0x2dc] sm:$0xf] }
  0xf2   :  { %8996 = vst [vmem:[#allocation141_spill] sm:$0xff] %v6775_v2  ;;  %v5753_v2 = vld [vmem:[#allocation11 + $0x174] sm:$0xf0]  ;;  %1796 = vmatpush.bf16.msrb.mxu1 %v6811_v8  ;;  %v5366_v53 = vld [vmem:[#allocation11 + $0x2f8] sm:$0xf0] }
  0xf3   :  { %8997 = vst [vmem:[#allocation142_spill] sm:$0xff] %v6777_v60  ;;  %v6802_v6 = vor.u32 %v5753_v2, %v5172_v17  ;;  %v6809_v60 = vpop.f32.mrf.mxu0 }
  0xf4   :  { %8998 = vst [vmem:[#allocation143_spill] sm:$0xff] %v6782_v11  ;;  %v6796_v11 = vor.u32 %v5821_v52, %v5462_v25  ;;  %v6807_v52 = vadd.f32 %v621_v33, %v6711_v15  ;;  %v650_v25 = vpop.f32.mrf.mxu3  ;;  %v6819_v17 = vpop.f32.mrf.mxu1  ;;  %v5809_v33 = vld [vmem:[#allocation11 + $0x334] sm:$0xf0]  ;;  %1809 = vmatpush.bf16.msrb.mxu2 %v6813_v22 }
  0xf5   :  { %8999 = vst [vmem:[#allocation144_spill] sm:$0xff] %v6786_v34  ;;  %v5396_v34 = vld [vmem:[#allocation11 + $0x318] sm:$0xf]  ;;  %v6817_v2 = vadd.f32 %v650_v25, %v6714_v0  ;;  %1783 = vmatpush.bf16.msrb.mxu0 %v6802_v6 }
  0xf6   :  { %9000 = vst [vmem:[#allocation145_spill] sm:$0xff] %v6790_v51  ;;  %1821 = vmatpush.bf16.msrb.mxu3 %v6796_v11  ;;  %v6821_v51 = vor.u32 %v5813_v24, %v5430_v37  ;;  %v6828_v31 = vor.u32 %v5809_v33, %v5396_v34  ;;  %v5108_v25 = vld [vmem:[#allocation11 + $0xd8] sm:$0xf] }
  0xf7   :  { %9001 = vst [vmem:[#allocation146_spill] sm:$0xff] %v6792_v12  ;;  %v5142_v12 = vld [vmem:[#allocation11 + $0x138] sm:$0xf0]  ;;  %v5737_v24 = vld [vmem:[#allocation11 + $0xf4] sm:$0xf0] }
  0xf8   :  { %9002 = vst [vmem:[#allocation147_spill] sm:$0xff] %v6796_v11  ;;  %v5364_v37 = vld [vmem:[#allocation11 + $0x2d8] sm:$0xf]  ;;  %v5733_v11 = vld [vmem:[#allocation11 + $0xdc] sm:$0xf]  ;;  %v6838_v34 = vor.u32 %v5737_v24, %v5108_v25  ;;  %1797 = vmatpush.bf16.msrb.mxu1 %v6828_v31  ;;  %v6852_v24 = vor.u32 %v5797_v7, %v5366_v53 }
  0xf9   :  { %9003 = vst [vmem:[#allocation148_spill] sm:$0xff] %v6802_v6  ;;  %v5110_v6 = vld [vmem:[#allocation11 + $0xf8] sm:$0xf0]  ;;  %1784 = vmatpush.bf16.msrb.mxu0 %v6824_v41  ;;  %v5044_v53 = vld [vmem:[#allocation11 + $0x58] sm:$0xf] }
  0xfa   :  { %9004 = vst [vmem:[#allocation149_spill] sm:$0xff] %v6807_v52  ;;  %v5741_v52 = vld [vmem:[#allocation11 + $0x11c] sm:$0xf]  ;;  %1822 = vmatpush.bf16.msrb.mxu3 %v6821_v51  ;;  %v6846_v33 = vor.u32 %v5733_v11, %v5110_v6 }
  0xfb   :  { %9005 = vst [vmem:[#allocation150_spill] sm:$0xff] %v6809_v60  ;;  %v5805_v60 = vld [vmem:[#allocation11 + $0x31c] sm:$0xf]  ;;  %v6830_v32 = vor.u32 %v5741_v52, %v5142_v12  ;;  %v568_v52 = vpop.f32.mrf.mxu0 }
  0xfc   :  { %9006 = vst [vmem:[#allocation151_spill] sm:$0xff] %v6811_v8  ;;  %v6836_v8 = vpop.f32.mrf.mxu2  ;;  %v6842_v12 = vpop.f32.mrf.mxu3  ;;  %v5334_v11 = vld [vmem:[#allocation11 + $0x2b8] sm:$0xf0] }
  0xfd   :  { %9007 = vst [vmem:[#allocation152_spill] sm:$0xff] %v6813_v22  ;;  %1810 = vmatpush.bf16.msrb.mxu2 %v6830_v32  ;;  %v5332_v22 = vld [vmem:[#allocation11 + $0x298] sm:$0xf]  ;;  %v597_v25 = vpop.f32.mrf.mxu1  ;;  %1785 = vmatpush.bf16.msrb.mxu0 %v6838_v34 }
  0xfe   :  { %9008 = vst [vmem:[#allocation153_spill] sm:$0xff] %v6817_v2  ;;  %v5801_v2 = vld [vmem:[#allocation11 + $0x2f4] sm:$0xf0] }
  0xff   :  { %9009 = vst [vmem:[#allocation154_spill] sm:$0xff] %v6819_v17  ;;  %v6833_v17 = vor.u32 %v5805_v60, %v5398_v57  ;;  %v6844_v60 = vor.u32 %v5801_v2, %v5364_v37  ;;  %v5076_v57 = vld [vmem:[#allocation11 + $0x98] sm:$0xf]  ;;  %v5789_v2 = vld [vmem:[#allocation11 + $0x29c] sm:$0xf] }
 0x100   :  { %9010 = vst [vmem:[#allocation155_spill] sm:$0xff] %v6821_v51  ;;  %v5729_v51 = vld [vmem:[#allocation11 + $0xb4] sm:$0xf0] }
 0x101   :  { %9011 = vst [vmem:[#allocation156_spill] sm:$0xff] %v6824_v41  ;;  %1823 = vmatpush.bf16.msrb.mxu3 %v6833_v17  ;;  %v5078_v41 = vld [vmem:[#allocation11 + $0xb8] sm:$0xf0]  ;;  %v6858_v6 = vor.u32 %v5729_v51, %v5076_v57  ;;  %1798 = vmatpush.bf16.msrb.mxu1 %v6844_v60 }
 0x102   :  { %9012 = vst [vmem:[#allocation157_spill] sm:$0xff] %v6828_v31  ;;  %v5793_v31 = vld [vmem:[#allocation11 + $0x2b4] sm:$0xf0]  ;;  %1811 = vmatpush.bf16.msrb.mxu2 %v6846_v33  ;;  %v5781_v51 = vld [vmem:[#allocation11 + $0x25c] sm:$0xf] }
 0x103   :  { %9013 = vst [vmem:[#allocation158_spill] sm:$0xff] %v6830_v32  ;;  %v5725_v32 = vld [vmem:[#allocation11 + $0x9c] sm:$0xf]  ;;  %v6862_v37 = vor.u32 %v5793_v31, %v5332_v22  ;;  %1786 = vmatpush.bf16.msrb.mxu0 %v6858_v6  ;;  %v6877_v31 = vpop.f32.mrf.mxu0 }
 0x104   :  { %9014 = vst [vmem:[#allocation159_spill] sm:$0xff] %v6833_v17  ;;  %v6864_v7 = vor.u32 %v5725_v32, %v5078_v41  ;;  %v5717_v17 = vld [vmem:[#allocation11 + $0x5c] sm:$0xf]  ;;  %v655_v41 = vpop.f32.mrf.mxu3 }
 0x105   :  { %9015 = vst [vmem:[#allocation160_spill] sm:$0xff] %v6836_v8  ;;  %v6850_v8 = vadd.f32 %v568_v52, %v6668_v38  ;;  %v5721_v52 = vld [vmem:[#allocation11 + $0x74] sm:$0xf0]  ;;  %1824 = vmatpush.bf16.msrb.mxu3 %v6852_v24  ;;  %v5302_v57 = vld [vmem:[#allocation11 + $0x278] sm:$0xf0]  ;;  %1799 = vmatpush.bf16.msrb.mxu1 %v6862_v37 }
 0x106   :  { %9016 = vst [vmem:[#allocation161_spill] sm:$0xff] %v6838_v34  ;;  %v5046_v34 = vld [vmem:[#allocation11 + $0x78] sm:$0xf0]  ;;  %1812 = vmatpush.bf16.msrb.mxu2 %v6864_v7 }
 0x107   :  { %9017 = vst [vmem:[#allocation162_spill] sm:$0xff] %v6842_v12  ;;  %v6855_v12 = vadd.f32 %v597_v25, %v6685_v4  ;;  %v6867_v25 = vor.u32 %v5789_v2, %v5334_v11  ;;  %v6881_v2 = vor.u32 %v5717_v17, %v5046_v34  ;;  %v5012_v11 = vld [vmem:[#allocation11 + $0x18] sm:$0xf] }
 0x108   :  { %9018 = vst [vmem:[#allocation163_spill] sm:$0xff] %v6844_v60  ;;  %v626_v60 = vpop.f32.mrf.mxu2 }
 0x109   :  { %9019 = vst [vmem:[#allocation164_spill] sm:$0xff] %v6846_v33  ;;  %v6870_v33 = vor.u32 %v5721_v52, %v5044_v53  ;;  %v6875_v22 = vadd.f32 %v626_v60, %v6711_v15  ;;  %1825 = vmatpush.bf16.msrb.mxu3 %v6867_v25  ;;  %v6885_v53 = vadd.f32 %v655_v41, %v6714_v0  ;;  %v6887_v52 = vpop.f32.mrf.mxu1  ;;  %v5777_v60 = vld [vmem:[#allocation11 + $0x234] sm:$0xf0] }
 0x10a   :  { %9020 = vst [vmem:[#allocation165_spill] sm:$0xff] %v6850_v8  ;;  %v5300_v8 = vld [vmem:[#allocation11 + $0x258] sm:$0xf]  ;;  %1813 = vmatpush.bf16.msrb.mxu2 %v6881_v2 }
 0x10b   :  { %9021 = vst [vmem:[#allocation166_spill] sm:$0xff] %v6852_v24  ;;  %v5713_v24 = vld [vmem:[#allocation11 + $0x34] sm:$0xf0]  ;;  %1787 = vmatpush.bf16.msrb.mxu0 %v6870_v33  ;;  %v6910_v41 = vpop.f32.mrf.mxu0 }
 0x10c   :  { %9022 = vst [vmem:[#allocation167_spill] sm:$0xff] %v6855_v12  ;;  %v5785_v12 = vld [vmem:[#allocation11 + $0x274] sm:$0xf0]  ;;  %v6892_v17 = vor.u32 %v5713_v24, %v5012_v11  ;;  %v6908_v24 = vpop.f32.mrf.mxu3 }
 0x10d   :  { %9023 = vst [vmem:[#allocation168_spill] sm:$0xff] %v6858_v6  ;;  %v6879_v32 = vor.u32 %v5785_v12, %v5300_v8  ;;  %v5268_v6 = vld [vmem:[#allocation11 + $0x218] sm:$0xf]  ;;  %v5270_v8 = vld [vmem:[#allocation11 + $0x238] sm:$0xf0] }
 0x10e   :  { %9024 = vst [vmem:[#allocation169_spill] sm:$0xff] %v6862_v37  ;;  %v6889_v37 = vor.u32 %v5781_v51, %v5302_v57  ;;  %v6896_v34 = vor.u32 %v5777_v60, %v5268_v6 }
 0x10f   :  { %9025 = vst [vmem:[#allocation170_spill] sm:$0xff] %v6864_v7  ;;  %v5014_v7 = vld [vmem:[#allocation11 + $0x38] sm:$0xf0]  ;;  %1800 = vmatpush.bf16.msrb.mxu1 %v6879_v32  ;;  %1788 = vmatpush.bf16.msrb.mxu0 %v6892_v17 }
 0x110   :  { %9026 = vst [vmem:[#allocation171_spill] sm:$0xff] %v6867_v25  ;;  %1826 = vmatpush.bf16.msrb.mxu3 %v6889_v37  ;;  %v6904_v57 = vpop.f32.mrf.mxu2 }
 0x111   :  { %9027 = vst [vmem:[#allocation172_spill] sm:$0xff] %v6870_v33  ;;  %v6913_v6 = vpop.f32.mrf.mxu1 }
 0x112   :  { %9028 = vst [vmem:[#allocation173_spill] sm:$0xff] %v6875_v22  ;;  %v5709_v22 = vld [vmem:[#allocation11 + $0x1c] sm:$0xf]  ;;  %1789 = vmatmul.bf16.vlgmr.msrb.gmra.mxu0 %v8971_v16 }
 0x113   :  { %9029 = vst [vmem:[#allocation174_spill] sm:$0xff] %v6877_v31  ;;  %v5773_v31 = vld [vmem:[#allocation11 + $0x21c] sm:$0xf]  ;;  %v6898_v12 = vor.u32 %v5709_v22, %v5014_v7  ;;  %1801 = vmatpush.bf16.msrb.mxu1 %v6896_v34  ;;  %1980 = vmatpush.bf16.msra.mxu0 %v6403_v13 }
 0x114   :  { %9030 = vst [vmem:[#allocation175_spill] sm:$0xff] %v6879_v32  ;;  %v6901_v51 = vor.u32 %v5773_v31, %v5270_v8  ;;  %v6927_v22 = vpop.f32.mrf.mxu3  ;;  %v6929_v31 = vpop.f32.mrf.mxu0  ;;  %v6947_v8 = vperm.slane %v6651_v1, 5 }
 0x115   :  { %9031 = vst [vmem:[#allocation176_spill] sm:$0xff] %v6881_v2  ;;  %1814 = vmatpush.bf16.msrb.mxu2 %v6898_v12 }
 0x116   :  { %9032 = vst [vmem:[#allocation177_spill] sm:$0xff] %v6885_v53  ;;  %1827 = vmatpush.bf16.msrb.mxu3 %v6901_v51  ;;  %1802 = vmatmul.bf16.vlgmr.msrb.gmra.mxu1 %v8971_v16 }
 0x117   :  { %9033 = vst [vmem:[#allocation178_spill] sm:$0xff] %v6887_v52  ;;  %1993 = vmatpush.bf16.msra.mxu1 %v6405_v18  ;;  %1981 = vmatpush.bf16.msra.mxu0 %v6414_v27 }
 0x118   :  { %9034 = vst [vmem:[#allocation179_spill] sm:$0xff] %v6889_v37  ;;  %1815 = vmatmul.bf16.vlgmr.msrb.gmra.mxu2 %v8971_v16  ;;  %v6925_v7 = vpop.f32.mrf.mxu2 }
 0x119   :  { %9035 = vst [vmem:[#allocation180_spill] sm:$0xff] %v6892_v17  ;;  %2006 = vmatpush.bf16.msra.mxu2 %v6407_v19  ;;  %1828 = vmatmul.bf16.vlgmr.msrb.gmra.mxu3 %v8971_v16  ;;  %v6932_v11 = vpop.f32.mrf.mxu1  ;;  %v6942_v16 = vperm.slane %v6651_v1, 4 }
 0x11a   :  { %9036 = vst [vmem:[#allocation181_spill] sm:$0xff] %v6896_v34  ;;  %2019 = vmatpush.bf16.msra.mxu3 %v6410_v23 }
 0x11b   :  { %9037 = vst [vmem:[#allocation182_spill] sm:$0xff] %v6898_v12  ;;  %1994 = vmatpush.bf16.msra.mxu1 %v6416_v28  ;;  %1982 = vmatpush.bf16.msra.mxu0 %v6424_v43 }
 0x11c   :  { %9038 = vst [vmem:[#allocation183_spill] sm:$0xff] %v6901_v51 }
 0x11d   :  { %9039 = vst [vmem:[#allocation184_spill] sm:$0xff] %v6904_v57  ;;  %2007 = vmatpush.bf16.msra.mxu2 %v6419_v35  ;;  %v674_v57 = vpop.f32.mrf.mxu0 }
 0x11e   :  { %9040 = vst [vmem:[#allocation185_spill] sm:$0xff] %v6908_v24  ;;  %2020 = vmatpush.bf16.msra.mxu3 %v6421_v39  ;;  %v6949_v24 = vpop.f32.mrf.mxu3  ;;  %v6953_v52 = vadd.f32 %v674_v57, %v6942_v16  ;;  %v6969_v57 = vperm.slane %v6651_v1, 7 }
 0x11f   :  { %9041 = vst [vmem:[#allocation186_spill] sm:$0xff] %v6929_v31  ;;  %1995 = vmatpush.bf16.msra.mxu1 %v6428_v47  ;;  %1983 = vmatpush.bf16.msra.mxu0 %v6445_v54 }
 0x120   :  { %9042 = vst [vmem:[#allocation187_spill] sm:$0xff] %v6932_v11  ;;  %v6944_v60 = vpop.f32.mrf.mxu2 }
 0x121   :  { %2008 = vmatpush.bf16.msra.mxu2 %v6430_v48  ;;  %9043 = vst [vmem:[#allocation188_spill] sm:$0xff] %v6942_v16  ;;  %v703_v53 = vpop.f32.mrf.mxu1 }
 0x122   :  { %2021 = vmatpush.bf16.msra.mxu3 %v6433_v49  ;;  %9044 = vst [vmem:[#allocation189_spill] sm:$0xff] %v6944_v60  ;;  %v6958_v11 = vadd.f32 %v703_v53, %v6947_v8 }
 0x123   :  { %9045 = vst [vmem:[#allocation190_spill] sm:$0xff] %v6947_v8  ;;  %1996 = vmatpush.bf16.msra.mxu1 %v6447_v58  ;;  %1984 = vmatpush.bf16.msra.mxu0 %v6456_v3 }
 0x124   :  { %9046 = vst [vmem:[#allocation191_spill] sm:$0xff] %v6949_v24  ;;  %v6965_v24 = vperm.slane %v6651_v1, 6 }
 0x125   :  { %2009 = vmatpush.bf16.msra.mxu2 %v6449_v59  ;;  %9047 = vst [vmem:[#allocation192_spill] sm:$0xff] %v6953_v52  ;;  %v6974_v60 = vpop.f32.mrf.mxu0 }
 0x126   :  { %2022 = vmatpush.bf16.msra.mxu3 %v6452_v63  ;;  %9048 = vst [vmem:[#allocation193_spill] sm:$0xff] %v6958_v11  ;;  %v761_v11 = vpop.f32.mrf.mxu3 }
 0x127   :  { %1997 = vmatpush.bf16.msra.mxu1 %v6458_v5  ;;  %1985 = vmatpush.bf16.msra.mxu0 %v6466_v21  ;;  %9049 = vst [vmem:[#allocation194_spill] sm:$0xff] %v6965_v24  ;;  %v6978_v31 = vadd.f32 %v761_v11, %v6969_v57 }
 0x128   :  { %9050 = vst [vmem:[#allocation195_spill] sm:$0xff] %v6969_v57  ;;  %v732_v52 = vpop.f32.mrf.mxu2 }
 0x129   :  { %2010 = vmatpush.bf16.msra.mxu2 %v6461_v9  ;;  %v6972_v53 = vadd.f32 %v732_v52, %v6965_v24  ;;  %9052 = vst [vmem:[#allocation197_spill] sm:$0xff] %v6974_v60 }
 0x12a   :  { %2023 = vmatpush.bf16.msra.mxu3 %v6463_v14  ;;  %9053 = vst [vmem:[#allocation198_spill] sm:$0xff] %v6978_v31  ;;  %v6980_v14 = vpop.f32.mrf.mxu1  ;;  %v9058_v31 = vld [vmem:[#allocation53_spill] sm:$0xff] }
 0x12b   :  { %9051 = vst [vmem:[#allocation196_spill] sm:$0xff] %v6972_v53  ;;  %1998 = vmatpush.bf16.msra.mxu1 %v6470_v26  ;;  %1986 = vmatpush.bf16.msra.mxu0 %v6481_v42  ;;  %v9059_v53 = vld [vmem:[#allocation55_spill] sm:$0xff] }
 0x12c   :  { %9054 = vst [vmem:[#allocation199_spill] sm:$0xff] %v6980_v14 }
 0x12d   :  { %2011 = vmatpush.bf16.msra.mxu2 %v6472_v29  ;;  %v679_v11 = vpop.f32.mrf.mxu0 }
 0x12e   :  { %2024 = vmatpush.bf16.msra.mxu3 %v6475_v30  ;;  %v6993_v52 = vpop.f32.mrf.mxu3  ;;  %v6997_v14 = vadd.f32 %v679_v11, %v6942_v16  ;;  %v9066_v11 = vld [vmem:[#allocation61_spill] sm:$0xff] }
 0x12f   :  { %1999 = vmatpush.bf16.msra.mxu1 %v6483_v44  ;;  %1987 = vmatpush.bf16.msra.mxu0 %v6494_v55  ;;  %9056 = vst [vmem:[#allocation201_spill] sm:$0xff] %v6993_v52  ;;  %v9061_v44 = vld [vmem:[#allocation58_spill] sm:$0xff]  ;;  %v9064_v52 = vld [vmem:[#allocation59_spill] sm:$0xff] }
 0x130   :  { %v6990_v1 = vpop.f32.mrf.mxu2  ;;  %9057 = vst [vmem:[#allocation202_spill] sm:$0xff] %v6997_v14 }
 0x131   :  { %2012 = vmatpush.bf16.msra.mxu2 %v6485_v45  ;;  %9055 = vst [vmem:[#allocation200_spill] sm:$0xff] %v6990_v1  ;;  %v9062_v1 = vld [vmem:[#allocation57_spill] sm:$0xff] }
 0x132   :  { %2025 = vmatpush.bf16.msra.mxu3 %v6488_v46  ;;  %v708_v60 = vpop.f32.mrf.mxu1 }
 0x133   :  { %2032 = vmatpush.bf16.msrb.mxu0 %v6505_v10  ;;  %2000 = vmatpush.bf16.msra.mxu1 %v6498_v61  ;;  %v7002_v46 = vadd.f32 %v708_v60, %v6947_v8  ;;  %v9065_v61 = vld [vmem:[#allocation62_spill] sm:$0xff]  ;;  %v9067_v10 = vld [vmem:[#allocation64_spill] sm:$0xff] }
 0x135   :  { %2013 = vmatpush.bf16.msra.mxu2 %v6500_v62  ;;  %9060 = vst [vmem:[#allocation203_spill] sm:$0xff] %v7002_v46  ;;  %v7014_v46 = vpop.f32.mrf.mxu0 }
 0x136   :  { %2026 = vmatpush.bf16.msra.mxu3 %v9058_v31  ;;  %v766_v60 = vpop.f32.mrf.mxu3  ;;  %9069 = vst [vmem:[#allocation205_spill] sm:$0xff] %v7014_v46 }
 0x137   :  { %2045 = vmatpush.bf16.msrb.mxu1 %v9059_v53  ;;  %2033 = vmatpush.bf16.msrb.mxu0 %v9061_v44  ;;  %v7017_v31 = vadd.f32 %v766_v60, %v6969_v57  ;;  %v9080_v60 = vld [vmem:[#allocation72_spill] sm:$0xff] }
 0x138   :  { %v737_v14 = vpop.f32.mrf.mxu2 }
 0x139   :  { %2058 = vmatpush.bf16.msrb.mxu2 %v6510_v20  ;;  %v9063_v20 = vld [vmem:[#allocation60_spill] sm:$0xff]  ;;  %v7012_v53 = vadd.f32 %v737_v14, %v6965_v24  ;;  %9070 = vst [vmem:[#allocation206_spill] sm:$0xff] %v7017_v31  ;;  %v9077_v14 = vld [vmem:[#allocation70_spill] sm:$0xff] }
 0x13a   :  { %2071 = vmatpush.bf16.msrb.mxu3 %v9062_v1  ;;  %v7019_v1 = vpop.f32.mrf.mxu1 }
 0x13b   :  { %2046 = vmatpush.bf16.msrb.mxu1 %v9064_v52  ;;  %2034 = vmatpush.bf16.msrb.mxu0 %v9065_v61  ;;  %9068 = vst [vmem:[#allocation204_spill] sm:$0xff] %v7012_v53  ;;  %v9073_v52 = vld [vmem:[#allocation66_spill] sm:$0xff]  ;;  %v9074_v61 = vld [vmem:[#allocation65_spill] sm:$0xff] }
 0x13c   :  { %9071 = vst [vmem:[#allocation207_spill] sm:$0xff] %v7019_v1  ;;  %v9078_v53 = vld [vmem:[#allocation69_spill] sm:$0xff] }
 0x13d   :  { %2059 = vmatpush.bf16.msrb.mxu2 %v9063_v20  ;;  %v9072_v20 = vld [vmem:[#allocation63_spill] sm:$0xff]  ;;  %v684_v1 = vpop.f32.mrf.mxu0 }
 0x13e   :  { %2072 = vmatpush.bf16.msrb.mxu3 %v9066_v11  ;;  %v9075_v11 = vld [vmem:[#allocation68_spill] sm:$0xff]  ;;  %v7031_v31 = vpop.f32.mrf.mxu3 }
 0x13f   :  { %2047 = vmatpush.bf16.msrb.mxu1 %v9072_v20  ;;  %2035 = vmatpush.bf16.msrb.mxu0 %v9073_v52  ;;  %9081 = vst [vmem:[#allocation209_spill] sm:$0xff] %v7031_v31  ;;  %v7034_v20 = vadd.f32 %v684_v1, %v6942_v16  ;;  %v9090_v31 = vld [vmem:[#allocation77_spill] sm:$0xff] }
 0x140   :  { %v7028_v46 = vpop.f32.mrf.mxu2 }
 0x141   :  { %2060 = vmatpush.bf16.msrb.mxu2 %v9067_v10  ;;  %v9076_v10 = vld [vmem:[#allocation67_spill] sm:$0xff]  ;;  %9079 = vst [vmem:[#allocation208_spill] sm:$0xff] %v7028_v46 }
 0x142   :  { %2073 = vmatpush.bf16.msrb.mxu3 %v9074_v61  ;;  %9082 = vst [vmem:[#allocation210_spill] sm:$0xff] %v7034_v20  ;;  %v713_v52 = vpop.f32.mrf.mxu1  ;;  %v9083_v61 = vld [vmem:[#allocation71_spill] sm:$0xff]  ;;  %v9091_v20 = vld [vmem:[#allocation80_spill] sm:$0xff] }
 0x143   :  { %2048 = vmatpush.bf16.msrb.mxu1 %v9076_v10  ;;  %2036 = vmatpush.bf16.msrb.mxu0 %v9077_v14  ;;  %v9085_v10 = vld [vmem:[#allocation74_spill] sm:$0xff]  ;;  %v9086_v14 = vld [vmem:[#allocation73_spill] sm:$0xff]  ;;  %v9088_v46 = vld [vmem:[#allocation75_spill] sm:$0xff] }
 0x145   :  { %2061 = vmatpush.bf16.msrb.mxu2 %v9075_v11  ;;  %v7038_v11 = vadd.f32 %v713_v52, %v6947_v8 }
 0x146   :  { %2074 = vmatpush.bf16.msrb.mxu3 %v9078_v53  ;;  %v9087_v53 = vld [vmem:[#allocation76_spill] sm:$0xff]  ;;  %v771_v52 = vpop.f32.mrf.mxu3 }
 0x147   :  { %2049 = vmatpush.bf16.msrb.mxu1 %v9083_v61  ;;  %9084 = vst [vmem:[#allocation211_spill] sm:$0xff] %v7038_v11  ;;  %2037 = vmatpush.bf16.msrb.mxu0 %v9085_v10  ;;  %v7050_v11 = vpop.f32.mrf.mxu0  ;;  %v7053_v10 = vadd.f32 %v771_v52, %v6969_v57 }
 0x148   :  { %v742_v1 = vpop.f32.mrf.mxu2  ;;  %9093 = vst [vmem:[#allocation213_spill] sm:$0xff] %v7050_v11 }
 0x149   :  { %2062 = vmatpush.bf16.msrb.mxu2 %v9080_v60  ;;  %v9089_v60 = vld [vmem:[#allocation78_spill] sm:$0xff]  ;;  %v7048_v61 = vadd.f32 %v742_v1, %v6965_v24  ;;  %9094 = vst [vmem:[#allocation214_spill] sm:$0xff] %v7053_v10  ;;  %v9101_v1 = vld [vmem:[#allocation85_spill] sm:$0xff] }
 0x14a   :  { %2075 = vmatpush.bf16.msrb.mxu3 %v9086_v14  ;;  %v7055_v14 = vpop.f32.mrf.mxu1 }
 0x14b   :  { %2050 = vmatpush.bf16.msrb.mxu1 %v9088_v46  ;;  %2038 = vmatpush.bf16.msrb.mxu0 %v9089_v60  ;;  %9092 = vst [vmem:[#allocation212_spill] sm:$0xff] %v7048_v61  ;;  %v9097_v46 = vld [vmem:[#allocation82_spill] sm:$0xff]  ;;  %v9098_v60 = vld [vmem:[#allocation81_spill] sm:$0xff] }
 0x14c   :  { %9095 = vst [vmem:[#allocation215_spill] sm:$0xff] %v7055_v14  ;;  %v9104_v14 = vld [vmem:[#allocation86_spill] sm:$0xff] }
 0x14d   :  { %2063 = vmatpush.bf16.msrb.mxu2 %v9087_v53  ;;  %v9096_v53 = vld [vmem:[#allocation79_spill] sm:$0xff]  ;;  %v554_v44 = vadd.f32 %v9104_v14, %v6668_v38 }
 0x14e   :  { %2076 = vmatpush.bf16.msrb.mxu3 %v9090_v31  ;;  %v9099_v31 = vld [vmem:[#allocation84_spill] sm:$0xff]  ;;  %v7065_v11 = vpop.f32.mrf.mxu3 }
 0x14f   :  { %2051 = vmatpush.bf16.msrb.mxu1 %v9096_v53  ;;  %2039 = vmatpush.bf16.msrb.mxu0 %v9097_v46  ;;  %9103 = vst [vmem:[#allocation217_spill] sm:$0xff] %v7065_v11  ;;  %v1634_v52 = vpop.f32.mrf.mxu0 }
 0x150   :  { %v7063_v61 = vpop.f32.mrf.mxu2 }
 0x151   :  { %2064 = vmatpush.bf16.msrb.mxu2 %v9091_v20  ;;  %v9100_v20 = vld [vmem:[#allocation83_spill] sm:$0xff]  ;;  %9102 = vst [vmem:[#allocation216_spill] sm:$0xff] %v7063_v61 }
 0x152   :  { %2077 = vmatpush.bf16.msrb.mxu3 %v9098_v60  ;;  %v1647_v10 = vpop.f32.mrf.mxu1 }
 0x153   :  { %2052 = vmatpush.bf16.msrb.mxu1 %v9100_v20  ;;  %v1648_v53 = vadd.f32 %v1647_v10, %v1634_v52  ;;  %v9105_v20 = vld [vmem:[#allocation87_spill] sm:$0xff] }
 0x154   :  { %v583_v30 = vadd.f32 %v9105_v20, %v6685_v4 }
 0x155   :  { %2065 = vmatpush.bf16.msrb.mxu2 %v9099_v31  ;;  %v1833_v62 = vadd.f32 %v1648_v53, %v554_v44 }
 0x156   :  { %2078 = vmatpush.bf16.msrb.mxu3 %v9101_v1  ;;  %v1673_v60 = vpop.f32.mrf.mxu3 }
 0x157   :  { %v5498_v46 = vmul.f32 -1.442695, %v1833_v62  ;;  %v1636_v31 = vpop.f32.mrf.mxu0  ;;  %v9106_v62 = vld [vmem:[#allocation95_spill] sm:$0xff] }
 0x158   :  { %v1660_v55 = vpop.f32.mrf.mxu2 }
 0x159   :  { %5874 = vpow2.f32 %v5498_v46  ;;  %v1674_v1 = vadd.f32 %v1673_v60, %v1660_v55  ;;  %v612_v46 = vadd.f32 %v9106_v62, %v6711_v15 }
 0x15a   :  { %v1649_v26 = vpop.f32.mrf.mxu1 }
 0x15b   :  { %v1834_v61 = vadd.f32 %v1674_v1, %v583_v30 }
 0x15d   :  { %v5499_v45 = vmul.f32 -1.442695, %v1834_v61 }
 0x15e   :  { %v1675_v14 = vpop.f32.mrf.mxu3 }
 0x15f   :  { %v5875_v11 = vpop.eup %5874  ;;  %5876 = vpow2.f32 %v5499_v45  ;;  %v1686_v10 = vpop.f32.mrf.mxu0 }
 0x160   :  { %v7071_v42 = vadd.f32 1.0, %v5875_v11  ;;  %v1662_v5 = vpop.f32.mrf.mxu2  ;;  %v9107_v11 = vld [vmem:[#allocation97_spill] sm:$0xff] }
 0x161   :  { %v641_v60 = vadd.f32 %v9107_v11, %v6714_v0 }
 0x162   :  { %v1699_v44 = vpop.f32.mrf.mxu1  ;;  %5878 = vrcp.f32 %v7071_v42  ;;  %vm1854_vm1 = vweird.f32 %v7071_v42 }
 0x163   :  { %v1700_v31 = vadd.f32 %v1699_v44, %v1686_v10 }
 0x165   :  { %v1835_v53 = vadd.f32 %v1700_v31, %v612_v46  ;;  %v5877_v20 = vpop.eup %5876 }
 0x166   :  { %v7076_v55 = vadd.f32 1.0, %v5877_v20  ;;  %v1725_v45 = vpop.f32.mrf.mxu3 }
 0x167   :  { %v5500_v26 = vmul.f32 -1.442695, %v1835_v53  ;;  %v1688_v5 = vpop.f32.mrf.mxu0 }
 0x168   :  { %v1712_v30 = vpop.f32.mrf.mxu2  ;;  %v5879_v61 = vpop.eup %5878  ;;  %5880 = vrcp.f32 %v7076_v55  ;;  %vm1869_vm8 = vweird.f32 %v7076_v55 }
 0x169   :  { %5882 = vpow2.f32 %v5500_v26  ;;  %v1726_v1 = vadd.f32 %v1725_v45, %v1712_v30  ;;  %v1850_v14 = vmul.f32 %v5879_v61, %v7071_v42  ;;  %v670_v45 = vadd.f32 %v6910_v41, %v6942_v16 }
 0x16a   :  { %v1701_v52 = vpop.f32.mrf.mxu1  ;;  %vm1855_vm0 = vweird.f32 %v5879_v61 }
 0x16b   :  { %v1836_v10 = vadd.f32 %v1726_v1, %v641_v60  ;;  %v1851_v31 = vsub.f32 1.0, %v1850_v14  ;;  %vm7094_vm2 = vmor %vm1854_vm1, %vm1855_vm0 }
 0x16d   :  { %v5501_v44 = vmul.f32 -1.442695, %v1836_v10  ;;  %v1852_v30 = vmul.f32 %v5879_v61, %v1851_v31 }
 0x16e   :  { %v7082_v62 = vpop.eup %5880  ;;  %v1727_v15 = vpop.f32.mrf.mxu3 }
 0x16f   :  { %v5883_v46 = vpop.eup %5882  ;;  %5884 = vpow2.f32 %v5501_v44  ;;  %v1865_v5 = vmul.f32 %v7082_v62, %v7076_v55  ;;  %v1738_v11 = vpop.f32.mrf.mxu0  ;;  %v1853_v44 = vadd.f32 %v5879_v61, %v1852_v30  ;;  %v1858_v15 = vand.u32 2147483647, %v7071_v42 }
 0x170   :  { %v1714_v53 = vpop.f32.mrf.mxu2  ;;  %v1885_v20 = vadd.f32 1.0, %v5883_v46  ;;  %v699_v30 = vadd.f32 %v6913_v6, %v6947_v8  ;;  %vm1870_vm5 = vweird.f32 %v7082_v62 }
 0x171   :  { %v1866_v52 = vsub.f32 1.0, %v1865_v5  ;;  %v1860_v53 = vand.u32 2147483648, %v7071_v42  ;;  %vm1859_vm3 = vcmp.eq.f32.partialorder %v1858_v15, 8.507059e+37  ;;  %vm7111_vm10 = vmor %vm1869_vm8, %vm1870_vm5 }
 0x172   :  { %5886 = vrcp.f32 %v1885_v20  ;;  %v1751_v26 = vpop.f32.mrf.mxu1  ;;  %v1898_v42 = vand.u32 2147483648, %v1885_v20  ;;  %v1896_v38 = vand.u32 2147483647, %v1885_v20  ;;  %vm1892_vm6 = vweird.f32 %v1885_v20 }
 0x173   :  { %v1752_v60 = vadd.f32 %v1751_v26, %v1738_v11  ;;  %v1867_v11 = vmul.f32 %v7082_v62, %v1866_v52 }
 0x174   :  { %vm1897_vm9 = vcmp.eq.f32.partialorder %v1896_v38, 8.507059e+37 }
 0x175   :  { %v5885_v1 = vpop.eup %5884  ;;  %v1837_v14 = vadd.f32 %v1752_v60, %v670_v45  ;;  %v1857_v60 = vsel %vm7094_vm2, %v5879_v61, %v1853_v44  ;;  %v1868_v52 = vadd.f32 %v7082_v62, %v1867_v11  ;;  %v1899_v44 = vor.u32 1.1754944e-38, %v1898_v42 }
 0x176   :  { %v7088_v10 = vadd.f32 1.0, %v5885_v1  ;;  %v1777_v5 = vpop.f32.mrf.mxu3 }
 0x177   :  { %v1740_v26 = vpop.f32.mrf.mxu0 }
 0x178   :  { %v5887_v46 = vpop.eup %5886  ;;  %5888 = vrcp.f32 %v7088_v10  ;;  %v1764_v41 = vpop.f32.mrf.mxu2  ;;  %v1911_v38 = vand.u32 2147483647, %v7088_v10  ;;  %vm1907_vm13 = vweird.f32 %v7088_v10 }
 0x179   :  { %v1888_v0 = vmul.f32 %v5887_v46, %v1885_v20  ;;  %5890 = vtanh.f32 %v1837_v14  ;;  %v1778_v1 = vadd.f32 %v1777_v5, %v1764_v41  ;;  %v1861_v14 = vor.u32 1.1754944e-38, %v1860_v53 }
 0x17a   :  { %v1753_v16 = vpop.f32.mrf.mxu1  ;;  %vm1893_vm4 = vweird.f32 %v5887_v46  ;;  %v1873_v53 = vand.u32 2147483647, %v7076_v55  ;;  %vm1912_vm15 = vcmp.eq.f32.partialorder %v1911_v38, 8.507059e+37 }
 0x17b   :  { %v1889_v45 = vsub.f32 1.0, %v1888_v0  ;;  %v1838_v29 = vadd.f32 %v1778_v1, %v699_v30  ;;  %v1862_v63 = vsel %vm1859_vm3, %v1861_v14, %v1857_v60  ;;  %v1875_v0 = vand.u32 2147483648, %v7076_v55  ;;  %vm1894_vm7 = vmor %vm1892_vm6, %vm1893_vm4 }
 0x17c   :  { %vm1874_vm12 = vcmp.eq.f32.partialorder %v1873_v53, 8.507059e+37 }
 0x17d   :  { %v1890_v4 = vmul.f32 %v5887_v46, %v1889_v45  ;;  %5892 = vtanh.f32 %v1838_v29  ;;  %v1876_v11 = vor.u32 1.1754944e-38, %v1875_v0 }
 0x17e   :  { %v5889_v21 = vpop.eup %5888  ;;  %v1779_v26 = vpop.f32.mrf.mxu3 }
 0x17f   :  { %v5891_v6 = vpop.eup %5890  ;;  %v1903_v61 = vmul.f32 %v5889_v21, %v7088_v10  ;;  %v1891_v16 = vadd.f32 %v5887_v46, %v1890_v4  ;;  %v1913_v4 = vand.u32 2147483648, %v7088_v10  ;;  %vm1908_vm11 = vweird.f32 %v5889_v21 }
 0x180   :  { %v1959_v15 = vmul.f32 %v5891_v6, %v1862_v63  ;;  %v1766_v20 = vpop.f32.mrf.mxu2  ;;  %v1872_v63 = vsel %vm7111_vm10, %v7082_v62, %v1868_v52  ;;  %vm1909_vm14 = vmor %vm1907_vm13, %vm1908_vm11 }
 0x181   :  { %v1904_v41 = vsub.f32 1.0, %v1903_v61  ;;  %v1895_v31 = vsel %vm1894_vm7, %v5887_v46, %v1891_v16  ;;  %v1877_v60 = vsel %vm1874_vm12, %v1876_v11, %v1872_v63  ;;  %v1914_v42 = vor.u32 1.1754944e-38, %v1913_v4 }
 0x182   :  { %v1900_v29 = vsel %vm1897_vm9, %v1899_v44, %v1895_v31  ;;  %v728_v44 = vadd.f32 %v6925_v7, %v6965_v24 }
 0x183   :  { %v1905_v55 = vmul.f32 %v5889_v21, %v1904_v41  ;;  %v1957_v30 = vmul.f32 0.0, %v1900_v29  ;;  %v5893_v46 = vpop.eup %5892 }
 0x184   :  { %v1960_v14 = vmul.f32 %v5893_v46, %v1877_v60 }
 0x185   :  { %v7121_v45 = vadd.f32 %v1959_v15, %v1957_v30  ;;  %v1906_v1 = vadd.f32 %v5889_v21, %v1905_v55 }
 0x187   :  { %v1910_v6 = vsel %vm1909_vm14, %v5889_v21, %v1906_v1  ;;  %v757_v21 = vadd.f32 %v6927_v22, %v6969_v57 }
 0x188   :  { %v1915_v62 = vsel %vm1912_vm15, %v1914_v42, %v1910_v6 }
 0x189   :  { %v1958_v52 = vmul.f32 0.0, %v1915_v62 }
 0x18b   :  { %v7123_v0 = vadd.f32 %v1960_v14, %v1958_v52 }
 0x18f   :  { %v1790_v61 = vpop.f32.mrf.mxu0 }
 0x193   :  { %v1803_v16 = vpop.f32.mrf.mxu1 }
 0x194   :  { %v1804_v53 = vadd.f32 %v1803_v16, %v1790_v61 }
 0x196   :  { %v1839_v10 = vadd.f32 %v1804_v53, %v728_v44 }
 0x197   :  { %v1792_v5 = vpop.f32.mrf.mxu0 }
 0x198   :  { %v5502_v15 = vmul.f32 -1.442695, %v1839_v10 }
 0x19a   :  { %5894 = vpow2.f32 %v5502_v15 }
 0x19b   :  { %v1816_v41 = vpop.f32.mrf.mxu2  ;;  %v1805_v4 = vpop.f32.mrf.mxu1 }
 0x19c   :  { %v1829_v31 = vpop.f32.mrf.mxu3 }
 0x19d   :  { %v1830_v20 = vadd.f32 %v1829_v31, %v1816_v41 }
 0x19f   :  { %v1840_v29 = vadd.f32 %v1830_v20, %v757_v21 }
 0x1a0   :  { %v5895_v11 = vpop.eup %5894 }
 0x1a1   :  { %v5503_v63 = vmul.f32 -1.442695, %v1840_v29  ;;  %v1925_v26 = vadd.f32 1.0, %v5895_v11  ;;  %v9113_v11 = vld [vmem:[#allocation90_spill] sm:$0xff] }
 0x1a3   :  { %5896 = vpow2.f32 %v5503_v63  ;;  %v1818_v55 = vpop.f32.mrf.mxu2  ;;  %v1938_v42 = vand.u32 2147483648, %v1925_v26  ;;  %v1936_v14 = vand.u32 2147483647, %v1925_v26  ;;  %vm1932_vm1 = vweird.f32 %v1925_v26  ;;  %v9112_v63 = vld [vmem:[#allocation88_spill] sm:$0xff] }
 0x1a4   :  { %v1831_v30 = vpop.f32.mrf.mxu3  ;;  %5898 = vrcp.f32 %v1925_v26 }
 0x1a5   :  { %v1939_v52 = vor.u32 1.1754944e-38, %v1938_v42  ;;  %vm1937_vm3 = vcmp.eq.f32.partialorder %v1936_v14, 8.507059e+37  ;;  %v9118_v42 = vld [vmem:[#allocation100_spill] sm:$0xff]  ;;  %v9120_v14 = vld [vmem:[#allocation93_spill] sm:$0xff] }
 0x1a9   :  { %v5897_v7 = vpop.eup %5896 }
 0x1aa   :  { %v1926_v38 = vadd.f32 1.0, %v5897_v7  ;;  %v5899_v46 = vpop.eup %5898 }
 0x1ab   :  { %v1928_v60 = vmul.f32 %v5899_v46, %v1925_v26  ;;  %vm1933_vm0 = vweird.f32 %v5899_v46 }
 0x1ac   :  { %5900 = vrcp.f32 %v1926_v38  ;;  %vm1934_vm2 = vmor %vm1932_vm1, %vm1933_vm0  ;;  %v1953_v41 = vand.u32 2147483648, %v1926_v38  ;;  %v1951_v5 = vand.u32 2147483647, %v1926_v38  ;;  %vm1947_vm5 = vweird.f32 %v1926_v38 }
 0x1ad   :  { %v1929_v1 = vsub.f32 1.0, %v1928_v60  ;;  %5902 = vtanh.f32 %v7121_v45  ;;  %v9116_v60 = vld [vmem:[#allocation89_spill] sm:$0xff] }
 0x1ae   :  { %5904 = vtanh.f32 %v7123_v0  ;;  %v1954_v4 = vor.u32 1.1754944e-38, %v1953_v41  ;;  %vm1952_vm7 = vcmp.eq.f32.partialorder %v1951_v5, 8.507059e+37  ;;  %v9130_v41 = vld [vmem:[#allocation120_spill] sm:$0xff]  ;;  %v9132_v5 = vld [vmem:[#allocation115_spill] sm:$0xff] }
 0x1af   :  { %v1930_v22 = vmul.f32 %v5899_v46, %v1929_v1  ;;  %v9117_v1 = vld [vmem:[#allocation91_spill] sm:$0xff] }
 0x1b1   :  { %v1931_v62 = vadd.f32 %v5899_v46, %v1930_v22  ;;  %v9119_v22 = vld [vmem:[#allocation102_spill] sm:$0xff] }
 0x1b2   :  { %v5901_v6 = vpop.eup %5900 }
 0x1b3   :  { %v1943_v61 = vmul.f32 %v5901_v6, %v1926_v38  ;;  %v1935_v16 = vsel %vm1934_vm2, %v5899_v46, %v1931_v62  ;;  %v5903_v44 = vpop.eup %5902  ;;  %vm1948_vm4 = vweird.f32 %v5901_v6  ;;  %v9114_v46 = vld [vmem:[#allocation92_spill] sm:$0xff]  ;;  %v9115_v38 = vld [vmem:[#allocation94_spill] sm:$0xff]  ;;  %v9122_v62 = vld [vmem:[#allocation105_spill] sm:$0xff] }
 0x1b4   :  { %v1940_v53 = vsel %vm1937_vm3, %v1939_v52, %v1935_v16  ;;  %vm1949_vm6 = vmor %vm1947_vm5, %vm1948_vm4  ;;  %v5905_v26 = vpop.eup %5904  ;;  %v9123_v52 = vld [vmem:[#allocation107_spill] sm:$0xff] }
 0x1b5   :  { %v1944_v10 = vsub.f32 1.0, %v1943_v61  ;;  %v1965_v15 = vmul.f32 %v5903_v44, %v1940_v53  ;;  %v9124_v61 = vld [vmem:[#allocation101_spill] sm:$0xff]  ;;  %v9125_v16 = vld [vmem:[#allocation103_spill] sm:$0xff]  ;;  %v9127_v53 = vld [vmem:[#allocation116_spill] sm:$0xff] }
 0x1b6   :  { %v9126_v44 = vld [vmem:[#allocation113_spill] sm:$0xff] }
 0x1b7   :  { %v1945_v31 = vmul.f32 %v5901_v6, %v1944_v10  ;;  %v7131_v21 = vpack.c.bf16 %v1965_v15, %v1965_v15  ;;  %v9128_v10 = vld [vmem:[#allocation106_spill] sm:$0xff]  ;;  %v9129_v15 = vld [vmem:[#allocation109_spill] sm:$0xff] }
 0x1b9   :  { %v1946_v20 = vadd.f32 %v5901_v6, %v1945_v31  ;;  %1988 = vmatmul.bf16.vlgmr.msra.gmra.mxu0 %v7131_v21  ;;  %2014 = vmatmul.bf16.vlgmr.msra.gmra.mxu2 %v7131_v21  ;;  %v9131_v31 = vld [vmem:[#allocation122_spill] sm:$0xff] }
 0x1ba   :  { %2084 = vmatpush.bf16.msra.mxu0 %v9112_v63  ;;  %2110 = vmatpush.bf16.msra.mxu2 %v9113_v11 }
 0x1bb   :  { %v1950_v29 = vsel %vm1949_vm6, %v5901_v6, %v1946_v20  ;;  %v9121_v6 = vld [vmem:[#allocation96_spill] sm:$0xff]  ;;  %v9133_v20 = vld [vmem:[#allocation117_spill] sm:$0xff] }
 0x1bc   :  { %v1955_v55 = vsel %vm1952_vm7, %v1954_v4, %v1950_v29  ;;  %v9134_v4 = vld [vmem:[#allocation128_spill] sm:$0xff]  ;;  %v9135_v29 = vld [vmem:[#allocation130_spill] sm:$0xff] }
 0x1bd   :  { %v1966_v30 = vmul.f32 %v5905_v26, %v1955_v55  ;;  %v9136_v26 = vld [vmem:[#allocation121_spill] sm:$0xff]  ;;  %v9137_v55 = vld [vmem:[#allocation123_spill] sm:$0xff] }
 0x1be   :  { %2085 = vmatpush.bf16.msra.mxu0 %v9114_v46  ;;  %2111 = vmatpush.bf16.msra.mxu2 %v9115_v38 }
 0x1bf   :  { %v7137_v7 = vpack.c.bf16 %v1966_v30, %v1966_v30  ;;  %v9138_v30 = vld [vmem:[#allocation129_spill] sm:$0xff] }
 0x1c1   :  { %2001 = vmatmul.bf16.vlgmr.msra.gmra.mxu1 %v7137_v7  ;;  %2027 = vmatmul.bf16.vlgmr.msra.gmra.mxu3 %v7137_v7 }
 0x1c2   :  { %2097 = vmatpush.bf16.msra.mxu1 %v9116_v60  ;;  %2123 = vmatpush.bf16.msra.mxu3 %v9117_v1 }
 0x1c3   :  { %2086 = vmatpush.bf16.msra.mxu0 %v9118_v42  ;;  %2112 = vmatpush.bf16.msra.mxu2 %v9119_v22 }
 0x1c6   :  { %2098 = vmatpush.bf16.msra.mxu1 %v9120_v14  ;;  %2124 = vmatpush.bf16.msra.mxu3 %v9121_v6 }
 0x1c7   :  { %2087 = vmatpush.bf16.msra.mxu0 %v9122_v62  ;;  %2113 = vmatpush.bf16.msra.mxu2 %v9123_v52 }
 0x1c9   :  { %2040 = vmatmul.bf16.vlgmr.msrb.gmra.mxu0 %v7131_v21  ;;  %2066 = vmatmul.bf16.vlgmr.msrb.gmra.mxu2 %v7131_v21 }
 0x1ca   :  { %2099 = vmatpush.bf16.msra.mxu1 %v9124_v61  ;;  %2125 = vmatpush.bf16.msra.mxu3 %v9125_v16 }
 0x1cb   :  { %2088 = vmatpush.bf16.msra.mxu0 %v9126_v44  ;;  %2114 = vmatpush.bf16.msra.mxu2 %v9127_v53 }
 0x1ce   :  { %2100 = vmatpush.bf16.msra.mxu1 %v9128_v10  ;;  %2126 = vmatpush.bf16.msra.mxu3 %v9129_v15 }
 0x1cf   :  { %2089 = vmatpush.bf16.msra.mxu0 %v9130_v41  ;;  %2115 = vmatpush.bf16.msra.mxu2 %v9131_v31 }
 0x1d1   :  { %2053 = vmatmul.bf16.vlgmr.msrb.gmra.mxu1 %v7137_v7  ;;  %2079 = vmatmul.bf16.vlgmr.msrb.gmra.mxu3 %v7137_v7 }
 0x1d2   :  { %2101 = vmatpush.bf16.msra.mxu1 %v9132_v5  ;;  %2127 = vmatpush.bf16.msra.mxu3 %v9133_v20  ;;  %v9139_v5 = vld [vmem:[#allocation131_spill] sm:$0xff]  ;;  %v9158_v20 = vld [vmem:[#allocation168_spill] sm:$0xff] }
 0x1d3   :  { %2090 = vmatpush.bf16.msra.mxu0 %v9134_v4  ;;  %2116 = vmatpush.bf16.msra.mxu2 %v9135_v29  ;;  %v9140_v29 = vld [vmem:[#allocation144_spill] sm:$0xff]  ;;  %v9157_v4 = vld [vmem:[#allocation159_spill] sm:$0xff] }
 0x1d6   :  { %2102 = vmatpush.bf16.msra.mxu1 %v9136_v26  ;;  %2128 = vmatpush.bf16.msra.mxu3 %v9137_v55  ;;  %v9141_v26 = vld [vmem:[#allocation146_spill] sm:$0xff]  ;;  %v9142_v55 = vld [vmem:[#allocation133_spill] sm:$0xff] }
 0x1d7   :  { %2091 = vmatpush.bf16.msra.mxu0 %v6752_v56  ;;  %2117 = vmatpush.bf16.msra.mxu2 %v6758_v36  ;;  %v9143_v56 = vld [vmem:[#allocation136_spill] sm:$0xff]  ;;  %v9144_v36 = vld [vmem:[#allocation139_spill] sm:$0xff] }
 0x1da   :  { %2103 = vmatpush.bf16.msra.mxu1 %v9138_v30  ;;  %2129 = vmatpush.bf16.msra.mxu3 %v9139_v5  ;;  %v9147_v30 = vld [vmem:[#allocation152_spill] sm:$0xff]  ;;  %v9148_v5 = vld [vmem:[#allocation145_spill] sm:$0xff] }
 0x1db   :  { %2136 = vmatpush.bf16.msrb.mxu0 %v6765_v50  ;;  %2162 = vmatpush.bf16.msrb.mxu2 %v6771_v40  ;;  %v9145_v50 = vld [vmem:[#allocation142_spill] sm:$0xff]  ;;  %v9146_v40 = vld [vmem:[#allocation148_spill] sm:$0xff] }
 0x1dc   :  { %2092 = vmatmul.bf16.vlgmr.msra.gmra.mxu0 %v7131_v21  ;;  %2118 = vmatmul.bf16.vlgmr.msra.gmra.mxu2 %v7131_v21 }
 0x1de   :  { %2104 = vmatpush.bf16.msra.mxu1 %v9142_v55  ;;  %2130 = vmatpush.bf16.msra.mxu3 %v9143_v56  ;;  %v9151_v55 = vld [vmem:[#allocation158_spill] sm:$0xff]  ;;  %v9152_v56 = vld [vmem:[#allocation151_spill] sm:$0xff] }
 0x1df   :  { %2137 = vmatpush.bf16.msrb.mxu0 %v9140_v29  ;;  %2163 = vmatpush.bf16.msrb.mxu2 %v9141_v26  ;;  %v9149_v29 = vld [vmem:[#allocation147_spill] sm:$0xff]  ;;  %v9150_v26 = vld [vmem:[#allocation156_spill] sm:$0xff] }
 0x1e1   :  { %2105 = vmatmul.bf16.vlgmr.msra.gmra.mxu1 %v7137_v7  ;;  %2131 = vmatmul.bf16.vlgmr.msra.gmra.mxu3 %v7137_v7 }
 0x1e2   :  { %2149 = vmatpush.bf16.msrb.mxu1 %v9144_v36  ;;  %2175 = vmatpush.bf16.msrb.mxu3 %v9145_v50  ;;  %v9153_v36 = vld [vmem:[#allocation155_spill] sm:$0xff]  ;;  %v9154_v50 = vld [vmem:[#allocation161_spill] sm:$0xff] }
 0x1e3   :  { %2138 = vmatpush.bf16.msrb.mxu0 %v9146_v40  ;;  %2164 = vmatpush.bf16.msrb.mxu2 %v9147_v30  ;;  %v9155_v40 = vld [vmem:[#allocation164_spill] sm:$0xff]  ;;  %v9156_v30 = vld [vmem:[#allocation157_spill] sm:$0xff] }
 0x1e6   :  { %2150 = vmatpush.bf16.msrb.mxu1 %v9148_v5  ;;  %2176 = vmatpush.bf16.msrb.mxu3 %v9149_v29  ;;  %v9159_v5 = vld [vmem:[#allocation170_spill] sm:$0xff]  ;;  %v9160_v29 = vld [vmem:[#allocation163_spill] sm:$0xff] }
 0x1e7   :  { %2139 = vmatpush.bf16.msrb.mxu0 %v9150_v26  ;;  %2165 = vmatpush.bf16.msrb.mxu2 %v9151_v55  ;;  %v9161_v26 = vld [vmem:[#allocation166_spill] sm:$0xff] }
 0x1ea   :  { %2151 = vmatpush.bf16.msrb.mxu1 %v9152_v56  ;;  %2177 = vmatpush.bf16.msrb.mxu3 %v9153_v36  ;;  %v9162_v36 = vld [vmem:[#allocation169_spill] sm:$0xff] }
 0x1eb   :  { %2140 = vmatpush.bf16.msrb.mxu0 %v9154_v50  ;;  %2166 = vmatpush.bf16.msrb.mxu2 %v9155_v40 }
 0x1ee   :  { %2152 = vmatpush.bf16.msrb.mxu1 %v9156_v30  ;;  %2178 = vmatpush.bf16.msrb.mxu3 %v9157_v4 }
 0x1ef   :  { %2141 = vmatpush.bf16.msrb.mxu0 %v9158_v20  ;;  %2167 = vmatpush.bf16.msrb.mxu2 %v9159_v5 }
 0x1f2   :  { %2153 = vmatpush.bf16.msrb.mxu1 %v9160_v29  ;;  %2179 = vmatpush.bf16.msrb.mxu3 %v9161_v26 }
 0x1f3   :  { %2142 = vmatpush.bf16.msrb.mxu0 %v6870_v33  ;;  %2168 = vmatpush.bf16.msrb.mxu2 %v6881_v2 }
 0x1f6   :  { %2154 = vmatpush.bf16.msrb.mxu1 %v9162_v36  ;;  %2180 = vmatpush.bf16.msrb.mxu3 %v6867_v25 }
 0x1f7   :  { %2143 = vmatpush.bf16.msrb.mxu0 %v6892_v17  ;;  %2169 = vmatpush.bf16.msrb.mxu2 %v6898_v12 }
 0x1fa   :  { %2155 = vmatpush.bf16.msrb.mxu1 %v6879_v32  ;;  %2181 = vmatpush.bf16.msrb.mxu3 %v6889_v37 }
 0x1fb   :  { %2335 = vmatpush.bf16.msra.mxu0 %v6403_v13  ;;  %2361 = vmatpush.bf16.msra.mxu2 %v6407_v19 }
 0x1fc   :  { %2144 = vmatmul.bf16.vlgmr.msrb.gmra.mxu0 %v7131_v21  ;;  %2170 = vmatmul.bf16.vlgmr.msrb.gmra.mxu2 %v7131_v21  ;;  %v9163_v21 = vld [vmem:[#allocation37_spill] sm:$0xff] }
 0x1fe   :  { %2156 = vmatpush.bf16.msrb.mxu1 %v6896_v34  ;;  %2182 = vmatpush.bf16.msrb.mxu3 %v6901_v51  ;;  %v9213_v34 = vld [vmem:[#allocation99_spill] sm:$0xff] }
 0x1ff   :  { %2336 = vmatpush.bf16.msra.mxu0 %v6414_v27  ;;  %2362 = vmatpush.bf16.msra.mxu2 %v6419_v35 }
 0x201   :  { %2157 = vmatmul.bf16.vlgmr.msrb.gmra.mxu1 %v7137_v7  ;;  %2183 = vmatmul.bf16.vlgmr.msrb.gmra.mxu3 %v7137_v7  ;;  %v9164_v7 = vld [vmem:[#allocation42_spill] sm:$0xff] }
 0x202   :  { %2348 = vmatpush.bf16.msra.mxu1 %v6405_v18  ;;  %2374 = vmatpush.bf16.msra.mxu3 %v6410_v23 }
 0x203   :  { %2337 = vmatpush.bf16.msra.mxu0 %v6424_v43  ;;  %2363 = vmatpush.bf16.msra.mxu2 %v6430_v48  ;;  %v9211_v43 = vld [vmem:[#allocation98_spill] sm:$0xff] }
 0x206   :  { %2349 = vmatpush.bf16.msra.mxu1 %v6416_v28  ;;  %2375 = vmatpush.bf16.msra.mxu3 %v6421_v39  ;;  %v9165_v28 = vld [vmem:[#allocation44_spill] sm:$0xff]  ;;  %v9166_v39 = vld [vmem:[#allocation39_spill] sm:$0xff] }
 0x207   :  { %2338 = vmatpush.bf16.msra.mxu0 %v6445_v54  ;;  %2364 = vmatpush.bf16.msra.mxu2 %v6449_v59  ;;  %v9167_v54 = vld [vmem:[#allocation41_spill] sm:$0xff]  ;;  %v9168_v59 = vld [vmem:[#allocation46_spill] sm:$0xff] }
 0x20a   :  { %2350 = vmatpush.bf16.msra.mxu1 %v6428_v47  ;;  %2376 = vmatpush.bf16.msra.mxu3 %v6433_v49  ;;  %v9169_v47 = vld [vmem:[#allocation48_spill] sm:$0xff]  ;;  %v9170_v49 = vld [vmem:[#allocation43_spill] sm:$0xff] }
 0x20b   :  { %2339 = vmatpush.bf16.msra.mxu0 %v6456_v3  ;;  %2365 = vmatpush.bf16.msra.mxu2 %v6461_v9  ;;  %v9171_v3 = vld [vmem:[#allocation45_spill] sm:$0xff]  ;;  %v9172_v9 = vld [vmem:[#allocation50_spill] sm:$0xff] }
 0x20e   :  { %2351 = vmatpush.bf16.msra.mxu1 %v6447_v58  ;;  %2377 = vmatpush.bf16.msra.mxu3 %v9163_v21  ;;  %v9173_v58 = vld [vmem:[#allocation52_spill] sm:$0xff]  ;;  %v9174_v21 = vld [vmem:[#allocation54_spill] sm:$0xff] }
 0x20f   :  { %2340 = vmatpush.bf16.msra.mxu0 %v9164_v7  ;;  %2366 = vmatpush.bf16.msra.mxu2 %v9165_v28  ;;  %v9175_v7 = vld [vmem:[#allocation56_spill] sm:$0xff]  ;;  %v9176_v28 = vld [vmem:[#allocation47_spill] sm:$0xff] }
 0x212   :  { %2352 = vmatpush.bf16.msra.mxu1 %v9166_v39  ;;  %2378 = vmatpush.bf16.msra.mxu3 %v9167_v54  ;;  %v9177_v39 = vld [vmem:[#allocation49_spill] sm:$0xff]  ;;  %v9178_v54 = vld [vmem:[#allocation58_spill] sm:$0xff] }
 0x213   :  { %2341 = vmatpush.bf16.msra.mxu0 %v9168_v59  ;;  %2367 = vmatpush.bf16.msra.mxu2 %v9169_v47  ;;  %v9179_v59 = vld [vmem:[#allocation60_spill] sm:$0xff]  ;;  %v9180_v47 = vld [vmem:[#allocation51_spill] sm:$0xff] }
 0x216   :  { %2353 = vmatpush.bf16.msra.mxu1 %v9170_v49  ;;  %2379 = vmatpush.bf16.msra.mxu3 %v9171_v3  ;;  %v9181_v49 = vld [vmem:[#allocation53_spill] sm:$0xff]  ;;  %v9182_v3 = vld [vmem:[#allocation55_spill] sm:$0xff] }
 0x217   :  { %2342 = vmatpush.bf16.msra.mxu0 %v9172_v9  ;;  %2368 = vmatpush.bf16.msra.mxu2 %v9173_v58  ;;  %v9183_v9 = vld [vmem:[#allocation57_spill] sm:$0xff]  ;;  %v9184_v58 = vld [vmem:[#allocation62_spill] sm:$0xff] }
 0x21a   :  { %2354 = vmatpush.bf16.msra.mxu1 %v9176_v28  ;;  %2380 = vmatpush.bf16.msra.mxu3 %v9177_v39  ;;  %v9187_v28 = vld [vmem:[#allocation61_spill] sm:$0xff]  ;;  %v9188_v39 = vld [vmem:[#allocation66_spill] sm:$0xff] }
 0x21b   :  { %2387 = vmatpush.bf16.msrb.mxu0 %v9174_v21  ;;  %2413 = vmatpush.bf16.msrb.mxu2 %v9175_v7  ;;  %v9185_v21 = vld [vmem:[#allocation64_spill] sm:$0xff]  ;;  %v9186_v7 = vld [vmem:[#allocation59_spill] sm:$0xff] }
 0x21e   :  { %2355 = vmatpush.bf16.msra.mxu1 %v9180_v47  ;;  %2381 = vmatpush.bf16.msra.mxu3 %v9181_v49  ;;  %v9191_v47 = vld [vmem:[#allocation65_spill] sm:$0xff]  ;;  %v9192_v49 = vld [vmem:[#allocation70_spill] sm:$0xff] }
 0x21f   :  { %2388 = vmatpush.bf16.msrb.mxu0 %v9178_v54  ;;  %2414 = vmatpush.bf16.msrb.mxu2 %v9179_v59  ;;  %v9189_v54 = vld [vmem:[#allocation68_spill] sm:$0xff]  ;;  %v9190_v59 = vld [vmem:[#allocation63_spill] sm:$0xff] }
 0x222   :  { %2400 = vmatpush.bf16.msrb.mxu1 %v9182_v3  ;;  %2426 = vmatpush.bf16.msrb.mxu3 %v9183_v9  ;;  %v9193_v3 = vld [vmem:[#allocation72_spill] sm:$0xff]  ;;  %v9194_v9 = vld [vmem:[#allocation67_spill] sm:$0xff] }
 0x223   :  { %2389 = vmatpush.bf16.msrb.mxu0 %v9184_v58  ;;  %2415 = vmatpush.bf16.msrb.mxu2 %v9185_v21  ;;  %v9195_v58 = vld [vmem:[#allocation69_spill] sm:$0xff]  ;;  %v9196_v21 = vld [vmem:[#allocation74_spill] sm:$0xff] }
 0x226   :  { %2401 = vmatpush.bf16.msrb.mxu1 %v9186_v7  ;;  %2427 = vmatpush.bf16.msrb.mxu3 %v9187_v28  ;;  %v9197_v7 = vld [vmem:[#allocation76_spill] sm:$0xff]  ;;  %v9198_v28 = vld [vmem:[#allocation71_spill] sm:$0xff] }
 0x227   :  { %2390 = vmatpush.bf16.msrb.mxu0 %v9188_v39  ;;  %2416 = vmatpush.bf16.msrb.mxu2 %v9189_v54  ;;  %v9199_v39 = vld [vmem:[#allocation73_spill] sm:$0xff]  ;;  %v9200_v54 = vld [vmem:[#allocation78_spill] sm:$0xff] }
 0x22a   :  { %2402 = vmatpush.bf16.msrb.mxu1 %v9190_v59  ;;  %2428 = vmatpush.bf16.msrb.mxu3 %v9191_v47  ;;  %v9201_v59 = vld [vmem:[#allocation80_spill] sm:$0xff]  ;;  %v9202_v47 = vld [vmem:[#allocation75_spill] sm:$0xff] }
 0x22b   :  { %2391 = vmatpush.bf16.msrb.mxu0 %v9192_v49  ;;  %2417 = vmatpush.bf16.msrb.mxu2 %v9193_v3  ;;  %v9203_v49 = vld [vmem:[#allocation77_spill] sm:$0xff]  ;;  %v9204_v3 = vld [vmem:[#allocation82_spill] sm:$0xff] }
 0x22e   :  { %2403 = vmatpush.bf16.msrb.mxu1 %v9194_v9  ;;  %2429 = vmatpush.bf16.msrb.mxu3 %v9195_v58  ;;  %v9205_v9 = vld [vmem:[#allocation84_spill] sm:$0xff]  ;;  %v9206_v58 = vld [vmem:[#allocation79_spill] sm:$0xff] }
 0x22f   :  { %2392 = vmatpush.bf16.msrb.mxu0 %v9196_v21  ;;  %2418 = vmatpush.bf16.msrb.mxu2 %v9197_v7  ;;  %v9207_v21 = vld [vmem:[#allocation81_spill] sm:$0xff]  ;;  %v9208_v7 = vld [vmem:[#allocation83_spill] sm:$0xff] }
 0x232   :  { %2404 = vmatpush.bf16.msrb.mxu1 %v9198_v28  ;;  %2430 = vmatpush.bf16.msrb.mxu3 %v9199_v39  ;;  %v9209_v28 = vld [vmem:[#allocation85_spill] sm:$0xff] }
 0x233   :  { %2393 = vmatpush.bf16.msrb.mxu0 %v9200_v54  ;;  %2419 = vmatpush.bf16.msrb.mxu2 %v9201_v59  ;;  %v9210_v59 = vld [vmem:[#allocation104_spill] sm:$0xff] }
 0x236   :  { %2405 = vmatpush.bf16.msrb.mxu1 %v9202_v47  ;;  %2431 = vmatpush.bf16.msrb.mxu3 %v9203_v49  ;;  %v1989_v39 = vpop.f32.mrf.mxu0  ;;  %v556_v47 = vadd.f32 %v9211_v43, %v9210_v59 }
 0x237   :  { %2394 = vmatpush.bf16.msrb.mxu0 %v9204_v3  ;;  %2420 = vmatpush.bf16.msrb.mxu2 %v9205_v9  ;;  %v9212_v9 = vld [vmem:[#allocation110_spill] sm:$0xff] }
 0x23a   :  { %2406 = vmatpush.bf16.msrb.mxu1 %v9206_v58  ;;  %2432 = vmatpush.bf16.msrb.mxu3 %v9207_v21  ;;  %v585_v58 = vadd.f32 %v9213_v34, %v9212_v9 }
 0x23c   :  { %v2015_v54 = vpop.f32.mrf.mxu2 }
 0x23e   :  { %2407 = vmatpush.bf16.msrb.mxu1 %v9208_v7  ;;  %2433 = vmatpush.bf16.msrb.mxu3 %v9209_v28  ;;  %v2002_v48 = vpop.f32.mrf.mxu1  ;;  %v1991_v49 = vpop.f32.mrf.mxu0 }
 0x23f   :  { %v2003_v23 = vadd.f32 %v2002_v48, %v1989_v39  ;;  %v9214_v48 = vld [vmem:[#allocation118_spill] sm:$0xff] }
 0x241   :  { %v2188_v18 = vadd.f32 %v2003_v23, %v556_v47  ;;  %v9215_v23 = vld [vmem:[#allocation108_spill] sm:$0xff] }
 0x243   :  { %v5504_v3 = vmul.f32 -1.442695, %v2188_v18  ;;  %v614_v18 = vadd.f32 %v9215_v23, %v9214_v48 }
 0x244   :  { %v2028_v51 = vpop.f32.mrf.mxu3  ;;  %v2017_v35 = vpop.f32.mrf.mxu2 }
 0x245   :  { %5906 = vpow2.f32 %v5504_v3  ;;  %v2029_v21 = vadd.f32 %v2028_v51, %v2015_v54 }
 0x246   :  { %v2004_v7 = vpop.f32.mrf.mxu1  ;;  %v2041_v28 = vpop.f32.mrf.mxu0 }
 0x247   :  { %v2189_v27 = vadd.f32 %v2029_v21, %v585_v58 }
 0x249   :  { %v5505_v37 = vmul.f32 -1.442695, %v2189_v27 }
 0x24b   :  { %v5907_v32 = vpop.eup %5906  ;;  %5908 = vpow2.f32 %v5505_v37  ;;  %v9216_v37 = vld [vmem:[#allocation119_spill] sm:$0xff] }
 0x24c   :  { %v2202_v19 = vadd.f32 1.0, %v5907_v32  ;;  %v2030_v13 = vpop.f32.mrf.mxu3  ;;  %v2067_v39 = vpop.f32.mrf.mxu2 }
 0x24d   :  { %v9217_v13 = vld [vmem:[#allocation111_spill] sm:$0xff] }
 0x24e   :  { %v2054_v43 = vpop.f32.mrf.mxu1  ;;  %5910 = vrcp.f32 %v2202_v19  ;;  %v2043_v49 = vpop.f32.mrf.mxu0  ;;  %v643_v32 = vadd.f32 %v9217_v13, %v9216_v37  ;;  %v9219_v13 = vld [vmem:[#allocation186_spill] sm:$0xff]  ;;  %vm2209_vm9 = vweird.f32 %v2202_v19 }
 0x24f   :  { %v2055_v47 = vadd.f32 %v2054_v43, %v2041_v28 }
 0x251   :  { %v5909_v34 = vpop.eup %5908  ;;  %v2190_v3 = vadd.f32 %v2055_v47, %v614_v18 }
 0x252   :  { %v7285_v54 = vadd.f32 1.0, %v5909_v34 }
 0x253   :  { %v5506_v35 = vmul.f32 -1.442695, %v2190_v3 }
 0x254   :  { %5912 = vrcp.f32 %v7285_v54  ;;  %v2080_v27 = vpop.f32.mrf.mxu3  ;;  %v7288_v58 = vpop.eup %5910  ;;  %vm2224_vm14 = vweird.f32 %v7285_v54 }
 0x255   :  { %5914 = vpow2.f32 %v5506_v35  ;;  %v2081_v51 = vadd.f32 %v2080_v27, %v2067_v39  ;;  %v2069_v7 = vpop.f32.mrf.mxu2  ;;  %v2205_v28 = vmul.f32 %v7288_v58, %v2202_v19  ;;  %v9218_v27 = vld [vmem:[#allocation188_spill] sm:$0xff]  ;;  %vm2210_vm8 = vweird.f32 %v7288_v58 }
 0x256   :  { %v2056_v21 = vpop.f32.mrf.mxu1  ;;  %vm7308_vm10 = vmor %vm2209_vm9, %vm2210_vm8 }
 0x257   :  { %v2191_v23 = vadd.f32 %v2081_v51, %v643_v32  ;;  %v2206_v34 = vsub.f32 1.0, %v2205_v28  ;;  %v672_v32 = vadd.f32 %v9219_v13, %v9218_v27 }
 0x259   :  { %v2093_v43 = vpop.f32.mrf.mxu0  ;;  %v5507_v18 = vmul.f32 -1.442695, %v2191_v23  ;;  %v2207_v21 = vmul.f32 %v7288_v58, %v2206_v34 }
 0x25a   :  { %v7293_v47 = vpop.eup %5912 }
 0x25b   :  { %v5915_v49 = vpop.eup %5914  ;;  %5916 = vpow2.f32 %v5507_v18  ;;  %v2220_v9 = vmul.f32 %v7293_v47, %v7285_v54  ;;  %v2213_v18 = vand.u32 2147483647, %v2202_v19  ;;  %v2208_v12 = vadd.f32 %v7288_v58, %v2207_v21 }
 0x25c   :  { %v2240_v3 = vadd.f32 1.0, %v5915_v49  ;;  %v2082_v48 = vpop.f32.mrf.mxu3  ;;  %vm2225_vm12 = vweird.f32 %v7293_v47 }
 0x25d   :  { %v2221_v37 = vsub.f32 1.0, %v2220_v9  ;;  %v2215_v48 = vand.u32 2147483648, %v2202_v19  ;;  %vm7312_vm11 = vcmp.eq.f32.partialorder %v2213_v18, 8.507059e+37  ;;  %v2228_v18 = vand.u32 2147483647, %v7285_v54  ;;  %vm7329_vm0 = vmor %vm2224_vm14, %vm2225_vm12 }
 0x25e   :  { %5918 = vrcp.f32 %v2240_v3  ;;  %v2106_v39 = vpop.f32.mrf.mxu1  ;;  %v2253_v27 = vand.u32 2147483648, %v2240_v3  ;;  %vm2247_vm15 = vweird.f32 %v2240_v3 }
 0x25f   :  { %v2119_v35 = vpop.f32.mrf.mxu2  ;;  %v2107_v51 = vadd.f32 %v2106_v39, %v2093_v43  ;;  %v2222_v34 = vmul.f32 %v7293_v47, %v2221_v37  ;;  %v9220_v39 = vld [vmem:[#allocation187_spill] sm:$0xff]  ;;  %v2212_v37 = vsel %vm7308_vm10, %v7288_v58, %v2208_v12  ;;  %vm2229_vm3 = vcmp.eq.f32.partialorder %v2228_v18, 8.507059e+37 }
 0x260   :  { %v701_v9 = vadd.f32 %v9220_v39, %v6947_v8  ;;  %v9254_v8 = vld [vmem:[#allocation182_spill] sm:$0xff] }
 0x261   :  { %v2095_v7 = vpop.f32.mrf.mxu0  ;;  %v5917_v23 = vpop.eup %5916  ;;  %v2192_v28 = vadd.f32 %v2107_v51, %v672_v32 }
 0x262   :  { %v7300_v59 = vadd.f32 1.0, %v5917_v23  ;;  %v2216_v23 = vor.u32 1.1754944e-38, %v2215_v48  ;;  %v2230_v48 = vand.u32 2147483648, %v7285_v54 }
 0x264   :  { %v5919_v49 = vpop.eup %5918  ;;  %5920 = vrcp.f32 %v7300_v59  ;;  %v2132_v43 = vpop.f32.mrf.mxu3  ;;  %v2217_v58 = vsel %vm7312_vm11, %v2216_v23, %v2212_v37  ;;  %v2268_v21 = vand.u32 2147483648, %v7300_v59  ;;  %v2231_v37 = vor.u32 1.1754944e-38, %v2230_v48 }
 0x265   :  { %v2243_v17 = vmul.f32 %v5919_v49, %v2240_v3  ;;  %5922 = vtanh.f32 %v2192_v28  ;;  %v2133_v13 = vadd.f32 %v2132_v43, %v2119_v35  ;;  %vm2248_vm13 = vweird.f32 %v5919_v49 }
 0x266   :  { %v2108_v28 = vpop.f32.mrf.mxu1  ;;  %v2223_v35 = vadd.f32 %v7293_v47, %v2222_v34  ;;  %vm2249_vm1 = vmor %vm2247_vm15, %vm2248_vm13  ;;  %vm2262_vm5 = vweird.f32 %v7300_v59 }
 0x267   :  { %v2121_v32 = vpop.f32.mrf.mxu2  ;;  %v2244_v51 = vsub.f32 1.0, %v2243_v17  ;;  %v2193_v39 = vadd.f32 %v2133_v13, %v701_v9  ;;  %v2251_v17 = vand.u32 2147483647, %v2240_v3  ;;  %v2254_v13 = vor.u32 1.1754944e-38, %v2253_v27 }
 0x268   :  { %v2227_v3 = vsel %vm7329_vm0, %v7293_v47, %v2223_v35  ;;  %v2266_v27 = vand.u32 2147483647, %v7300_v59  ;;  %v2269_v35 = vor.u32 1.1754944e-38, %v2268_v21  ;;  %v9228_v21 = vld [vmem:[#allocation191_spill] sm:$0xff] }
 0x269   :  { %v2245_v19 = vmul.f32 %v5919_v49, %v2244_v51  ;;  %5924 = vtanh.f32 %v2193_v39  ;;  %vm2252_vm2 = vcmp.eq.f32.partialorder %v2251_v17, 8.507059e+37 }
 0x26a   :  { %v5921_v43 = vpop.eup %5920  ;;  %vm2267_vm7 = vcmp.eq.f32.partialorder %v2266_v27, 8.507059e+37 }
 0x26b   :  { %v5923_v32 = vpop.eup %5922  ;;  %v2258_v12 = vmul.f32 %v5921_v43, %v7300_v59  ;;  %v2246_v9 = vadd.f32 %v5919_v49, %v2245_v19  ;;  %vm2263_vm4 = vweird.f32 %v5921_v43 }
 0x26c   :  { %v2314_v51 = vmul.f32 %v5923_v32, %v2217_v58  ;;  %v2134_v28 = vpop.f32.mrf.mxu3  ;;  %vm2264_vm6 = vmor %vm2262_vm5, %vm2263_vm4 }
 0x26d   :  { %v2259_v7 = vsub.f32 1.0, %v2258_v12  ;;  %v2250_v54 = vsel %vm2249_vm1, %v5919_v49, %v2246_v9  ;;  %v2232_v12 = vsel %vm2229_vm3, %v2231_v37, %v2227_v3 }
 0x26e   :  { %v2255_v23 = vsel %vm2252_vm2, %v2254_v13, %v2250_v54 }
 0x26f   :  { %v2260_v39 = vmul.f32 %v5921_v43, %v2259_v7  ;;  %v2312_v19 = vmul.f32 %v2255_v23, %v7121_v45  ;;  %v5925_v32 = vpop.eup %5924  ;;  %v9227_v7 = vld [vmem:[#allocation189_spill] sm:$0xff] }
 0x270   :  { %v2315_v47 = vmul.f32 %v5925_v32, %v2232_v12  ;;  %v730_v54 = vadd.f32 %v9227_v7, %v6965_v24  ;;  %v9253_v24 = vld [vmem:[#allocation180_spill] sm:$0xff] }
 0x271   :  { %v7340_v49 = vadd.f32 %v2314_v51, %v2312_v19  ;;  %v2261_v17 = vadd.f32 %v5921_v43, %v2260_v39 }
 0x273   :  { %v2265_v58 = vsel %vm2264_vm6, %v5921_v43, %v2261_v17  ;;  %v759_v43 = vadd.f32 %v9228_v21, %v6969_v57  ;;  %v9252_v57 = vld [vmem:[#allocation155_spill] sm:$0xff] }
 0x274   :  { %v2270_v18 = vsel %vm2267_vm7, %v2269_v35, %v2265_v58 }
 0x275   :  { %v2313_v48 = vmul.f32 %v2270_v18, %v7123_v0 }
 0x277   :  { %v7343_v34 = vadd.f32 %v2315_v47, %v2313_v48 }
 0x279   :  { %v2145_v9 = vpop.f32.mrf.mxu0 }
 0x27e   :  { %v2158_v45 = vpop.f32.mrf.mxu1 }
 0x27f   :  { %v2171_v13 = vpop.f32.mrf.mxu2  ;;  %v2159_v59 = vadd.f32 %v2158_v45, %v2145_v9 }
 0x281   :  { %v2147_v51 = vpop.f32.mrf.mxu0  ;;  %v2194_v3 = vadd.f32 %v2159_v59, %v730_v54 }
 0x283   :  { %v5508_v28 = vmul.f32 -1.442695, %v2194_v3 }
 0x284   :  { %v2184_v23 = vpop.f32.mrf.mxu3 }
 0x285   :  { %5926 = vpow2.f32 %v5508_v28  ;;  %v2185_v37 = vadd.f32 %v2184_v23, %v2171_v13 }
 0x286   :  { %v2160_v39 = vpop.f32.mrf.mxu1 }
 0x287   :  { %v2173_v0 = vpop.f32.mrf.mxu2  ;;  %v2195_v19 = vadd.f32 %v2185_v37, %v759_v43 }
 0x289   :  { %v5509_v27 = vmul.f32 -1.442695, %v2195_v19 }
 0x28b   :  { %v5927_v32 = vpop.eup %5926  ;;  %5928 = vpow2.f32 %v5509_v27 }
 0x28c   :  { %v2280_v12 = vadd.f32 1.0, %v5927_v32  ;;  %v2186_v17 = vpop.f32.mrf.mxu3 }
 0x28e   :  { %5930 = vrcp.f32 %v2280_v12  ;;  %v2293_v9 = vand.u32 2147483648, %v2280_v12  ;;  %v2291_v13 = vand.u32 2147483647, %v2280_v12  ;;  %vm2287_vm9 = vweird.f32 %v2280_v12 }
 0x290   :  { %v2294_v51 = vor.u32 1.1754944e-38, %v2293_v9  ;;  %vm2292_vm11 = vcmp.eq.f32.partialorder %v2291_v13, 8.507059e+37  ;;  %v9231_v9 = vld [vmem:[#allocation128_spill] sm:$0xff]  ;;  %v9233_v13 = vld [vmem:[#allocation121_spill] sm:$0xff] }
 0x291   :  { %v5929_v47 = vpop.eup %5928 }
 0x292   :  { %v2281_v35 = vadd.f32 1.0, %v5929_v47 }
 0x294   :  { %v5931_v58 = vpop.eup %5930  ;;  %5932 = vrcp.f32 %v2281_v35  ;;  %v2308_v43 = vand.u32 2147483648, %v2281_v35  ;;  %v2306_v0 = vand.u32 2147483647, %v2281_v35  ;;  %vm2302_vm13 = vweird.f32 %v2281_v35 }
 0x295   :  { %v2283_v18 = vmul.f32 %v5931_v58, %v2280_v12  ;;  %5934 = vtanh.f32 %v7340_v49  ;;  %vm2288_vm8 = vweird.f32 %v5931_v58 }
 0x296   :  { %vm2289_vm10 = vmor %vm2287_vm9, %vm2288_vm8  ;;  %5936 = vtanh.f32 %v7343_v34  ;;  %v2309_v32 = vor.u32 1.1754944e-38, %v2308_v43  ;;  %vm2307_vm15 = vcmp.eq.f32.partialorder %v2306_v0, 8.507059e+37  ;;  %v9242_v43 = vld [vmem:[#allocation146_spill] sm:$0xff]  ;;  %v9245_v0 = vld [vmem:[#allocation139_spill] sm:$0xff] }
 0x297   :  { %v2284_v48 = vsub.f32 1.0, %v2283_v18 }
 0x299   :  { %v2285_v45 = vmul.f32 %v5931_v58, %v2284_v48  ;;  %v9230_v48 = vld [vmem:[#allocation117_spill] sm:$0xff] }
 0x29a   :  { %v5933_v7 = vpop.eup %5932 }
 0x29b   :  { %v2286_v54 = vadd.f32 %v5931_v58, %v2285_v45  ;;  %v2298_v59 = vmul.f32 %v5933_v7, %v2281_v35  ;;  %v5935_v23 = vpop.eup %5934  ;;  %vm2303_vm12 = vweird.f32 %v5933_v7  ;;  %v9229_v35 = vld [vmem:[#allocation115_spill] sm:$0xff]  ;;  %v9232_v45 = vld [vmem:[#allocation130_spill] sm:$0xff] }
 0x29c   :  { %vm2304_vm14 = vmor %vm2302_vm13, %vm2303_vm12  ;;  %v5937_v17 = vpop.eup %5936 }
 0x29d   :  { %v2290_v3 = vsel %vm2289_vm10, %v5931_v58, %v2286_v54  ;;  %v2299_v28 = vsub.f32 1.0, %v2298_v59  ;;  %v9235_v54 = vld [vmem:[#allocation132_spill] sm:$0xff]  ;;  %v9236_v59 = vld [vmem:[#allocation134_spill] sm:$0xff] }
 0x29e   :  { %v2295_v21 = vsel %vm2292_vm11, %v2294_v51, %v2290_v3  ;;  %v9237_v51 = vld [vmem:[#allocation137_spill] sm:$0xff]  ;;  %v9238_v3 = vld [vmem:[#allocation140_spill] sm:$0xff] }
 0x29f   :  { %v2320_v37 = vmul.f32 %v5935_v23, %v2295_v21  ;;  %v2300_v39 = vmul.f32 %v5933_v7, %v2299_v28  ;;  %v9239_v28 = vld [vmem:[#allocation129_spill] sm:$0xff]  ;;  %v9240_v23 = vld [vmem:[#allocation131_spill] sm:$0xff]  ;;  %v9241_v21 = vld [vmem:[#allocation144_spill] sm:$0xff] }
 0x2a1   :  { %v7351_v19 = vpack.c.bf16 %v2320_v37, %v2320_v37  ;;  %v2301_v27 = vadd.f32 %v5933_v7, %v2300_v39  ;;  %v9243_v37 = vld [vmem:[#allocation133_spill] sm:$0xff]  ;;  %v9244_v39 = vld [vmem:[#allocation136_spill] sm:$0xff] }
 0x2a3   :  { %v2305_v12 = vsel %vm2304_vm14, %v5933_v7, %v2301_v27  ;;  %2343 = vmatmul.bf16.vlgmr.msra.gmra.mxu0 %v7351_v19  ;;  %2369 = vmatmul.bf16.vlgmr.msra.gmra.mxu2 %v7351_v19  ;;  %v9234_v7 = vld [vmem:[#allocation123_spill] sm:$0xff]  ;;  %v9246_v27 = vld [vmem:[#allocation142_spill] sm:$0xff] }
 0x2a4   :  { %v2310_v47 = vsel %vm2307_vm15, %v2309_v32, %v2305_v12  ;;  %2439 = vmatpush.bf16.msra.mxu0 %v9112_v63  ;;  %2465 = vmatpush.bf16.msra.mxu2 %v9113_v11  ;;  %v9247_v32 = vld [vmem:[#allocation148_spill] sm:$0xff] }
 0x2a5   :  { %v2321_v58 = vmul.f32 %v5937_v17, %v2310_v47  ;;  %v9248_v12 = vld [vmem:[#allocation152_spill] sm:$0xff]  ;;  %v9249_v17 = vld [vmem:[#allocation145_spill] sm:$0xff]  ;;  %v9250_v47 = vld [vmem:[#allocation147_spill] sm:$0xff] }
 0x2a7   :  { %v7357_v18 = vpack.c.bf16 %v2321_v58, %v2321_v58  ;;  %v9251_v58 = vld [vmem:[#allocation156_spill] sm:$0xff] }
 0x2a8   :  { %2440 = vmatpush.bf16.msra.mxu0 %v9114_v46  ;;  %2466 = vmatpush.bf16.msra.mxu2 %v9115_v38 }
 0x2a9   :  { %2356 = vmatmul.bf16.vlgmr.msra.gmra.mxu1 %v7357_v18  ;;  %2382 = vmatmul.bf16.vlgmr.msra.gmra.mxu3 %v7357_v18 }
 0x2aa   :  { %2452 = vmatpush.bf16.msra.mxu1 %v9116_v60  ;;  %2478 = vmatpush.bf16.msra.mxu3 %v9117_v1 }
 0x2ac   :  { %2441 = vmatpush.bf16.msra.mxu0 %v9118_v42  ;;  %2467 = vmatpush.bf16.msra.mxu2 %v9119_v22 }
 0x2ae   :  { %2453 = vmatpush.bf16.msra.mxu1 %v9120_v14  ;;  %2479 = vmatpush.bf16.msra.mxu3 %v9121_v6 }
 0x2b0   :  { %2442 = vmatpush.bf16.msra.mxu0 %v9122_v62  ;;  %2468 = vmatpush.bf16.msra.mxu2 %v9123_v52 }
 0x2b2   :  { %2454 = vmatpush.bf16.msra.mxu1 %v9124_v61  ;;  %2480 = vmatpush.bf16.msra.mxu3 %v9125_v16 }
 0x2b3   :  { %2395 = vmatmul.bf16.vlgmr.msrb.gmra.mxu0 %v7351_v19  ;;  %2421 = vmatmul.bf16.vlgmr.msrb.gmra.mxu2 %v7351_v19 }
 0x2b4   :  { %2443 = vmatpush.bf16.msra.mxu0 %v9126_v44  ;;  %2469 = vmatpush.bf16.msra.mxu2 %v9127_v53 }
 0x2b6   :  { %2455 = vmatpush.bf16.msra.mxu1 %v9128_v10  ;;  %2481 = vmatpush.bf16.msra.mxu3 %v9129_v15 }
 0x2b8   :  { %2444 = vmatpush.bf16.msra.mxu0 %v9130_v41  ;;  %2470 = vmatpush.bf16.msra.mxu2 %v9131_v31 }
 0x2b9   :  { %2408 = vmatmul.bf16.vlgmr.msrb.gmra.mxu1 %v7357_v18  ;;  %2434 = vmatmul.bf16.vlgmr.msrb.gmra.mxu3 %v7357_v18 }
 0x2ba   :  { %2456 = vmatpush.bf16.msra.mxu1 %v9229_v35  ;;  %2482 = vmatpush.bf16.msra.mxu3 %v9230_v48 }
 0x2bc   :  { %2445 = vmatpush.bf16.msra.mxu0 %v9231_v9  ;;  %2471 = vmatpush.bf16.msra.mxu2 %v9232_v45 }
 0x2be   :  { %2457 = vmatpush.bf16.msra.mxu1 %v9233_v13  ;;  %2483 = vmatpush.bf16.msra.mxu3 %v9234_v7 }
 0x2c0   :  { %2446 = vmatpush.bf16.msra.mxu0 %v9235_v54  ;;  %2472 = vmatpush.bf16.msra.mxu2 %v9236_v59 }
 0x2c2   :  { %2458 = vmatpush.bf16.msra.mxu1 %v9239_v28  ;;  %2484 = vmatpush.bf16.msra.mxu3 %v9240_v23 }
 0x2c3   :  { %2447 = vmatmul.bf16.vlgmr.msra.gmra.mxu0 %v7351_v19  ;;  %2473 = vmatmul.bf16.vlgmr.msra.gmra.mxu2 %v7351_v19 }
 0x2c4   :  { %2491 = vmatpush.bf16.msrb.mxu0 %v9237_v51  ;;  %2517 = vmatpush.bf16.msrb.mxu2 %v9238_v3 }
 0x2c6   :  { %2459 = vmatpush.bf16.msra.mxu1 %v9243_v37  ;;  %2485 = vmatpush.bf16.msra.mxu3 %v9244_v39 }
 0x2c8   :  { %2492 = vmatpush.bf16.msrb.mxu0 %v9241_v21  ;;  %2518 = vmatpush.bf16.msrb.mxu2 %v9242_v43 }
 0x2c9   :  { %2460 = vmatmul.bf16.vlgmr.msra.gmra.mxu1 %v7357_v18  ;;  %2486 = vmatmul.bf16.vlgmr.msra.gmra.mxu3 %v7357_v18 }
 0x2ca   :  { %2504 = vmatpush.bf16.msrb.mxu1 %v9245_v0  ;;  %2530 = vmatpush.bf16.msrb.mxu3 %v9246_v27  ;;  %v9332_v27 = vld [vmem:[#allocation193_spill] sm:$0xff] }
 0x2cc   :  { %2493 = vmatpush.bf16.msrb.mxu0 %v9247_v32  ;;  %2519 = vmatpush.bf16.msrb.mxu2 %v9248_v12 }
 0x2ce   :  { %2505 = vmatpush.bf16.msrb.mxu1 %v9249_v17  ;;  %2531 = vmatpush.bf16.msrb.mxu3 %v9250_v47 }
 0x2d0   :  { %2494 = vmatpush.bf16.msrb.mxu0 %v9251_v58  ;;  %2520 = vmatpush.bf16.msrb.mxu2 %v9151_v55 }
 0x2d2   :  { %2506 = vmatpush.bf16.msrb.mxu1 %v9152_v56  ;;  %2532 = vmatpush.bf16.msrb.mxu3 %v9252_v57 }
 0x2d4   :  { %2495 = vmatpush.bf16.msrb.mxu0 %v9154_v50  ;;  %2521 = vmatpush.bf16.msrb.mxu2 %v9155_v40 }
 0x2d6   :  { %2507 = vmatpush.bf16.msrb.mxu1 %v9156_v30  ;;  %2533 = vmatpush.bf16.msrb.mxu3 %v9157_v4  ;;  %v9255_v4 = vld [vmem:[#allocation22_spill] sm:$0xff] }
 0x2d8   :  { %2496 = vmatpush.bf16.msrb.mxu0 %v9158_v20  ;;  %2522 = vmatpush.bf16.msrb.mxu2 %v9159_v5  ;;  %v9256_v20 = vld [vmem:[#allocation24_spill] sm:$0xff]  ;;  %v9257_v5 = vld [vmem:[#allocation175_spill] sm:$0xff] }
 0x2da   :  { %2508 = vmatpush.bf16.msrb.mxu1 %v9160_v29  ;;  %2534 = vmatpush.bf16.msrb.mxu3 %v9161_v26  ;;  %v9258_v29 = vld [vmem:[#allocation179_spill] sm:$0xff] }
 0x2dc   :  { %2497 = vmatpush.bf16.msrb.mxu0 %v6870_v33  ;;  %2523 = vmatpush.bf16.msrb.mxu2 %v6881_v2  ;;  %v9259_v2 = vld [vmem:[#allocation26_spill] sm:$0xff] }
 0x2de   :  { %2509 = vmatpush.bf16.msrb.mxu1 %v9162_v36  ;;  %2535 = vmatpush.bf16.msrb.mxu3 %v6867_v25  ;;  %v9260_v36 = vld [vmem:[#allocation28_spill] sm:$0xff]  ;;  %v9261_v25 = vld [vmem:[#allocation181_spill] sm:$0xff] }
 0x2e0   :  { %2498 = vmatpush.bf16.msrb.mxu0 %v9253_v24  ;;  %2524 = vmatpush.bf16.msrb.mxu2 %v9254_v8  ;;  %v9262_v24 = vld [vmem:[#allocation183_spill] sm:$0xff] }
 0x2e1   :  { %v9263_v8 = vld [vmem:[#allocation23_spill] sm:$0xff] }
 0x2e2   :  { %2510 = vmatpush.bf16.msrb.mxu1 %v9257_v5  ;;  %2536 = vmatpush.bf16.msrb.mxu3 %v9258_v29  ;;  %v9265_v29 = vld [vmem:[#allocation30_spill] sm:$0xff]  ;;  %v9266_v5 = vld [vmem:[#allocation32_spill] sm:$0xff] }
 0x2e3   :  { %2499 = vmatmul.bf16.vlgmr.msrb.gmra.mxu0 %v7351_v19  ;;  %2525 = vmatmul.bf16.vlgmr.msrb.gmra.mxu2 %v7351_v19  ;;  %v9267_v19 = vld [vmem:[#allocation27_spill] sm:$0xff] }
 0x2e4   :  { %2690 = vmatpush.bf16.msra.mxu0 %v9255_v4  ;;  %2716 = vmatpush.bf16.msra.mxu2 %v9256_v20  ;;  %v9264_v4 = vld [vmem:[#allocation25_spill] sm:$0xff]  ;;  %v9274_v20 = vld [vmem:[#allocation40_spill] sm:$0xff] }
 0x2e6   :  { %2511 = vmatpush.bf16.msrb.mxu1 %v9261_v25  ;;  %2537 = vmatpush.bf16.msrb.mxu3 %v9262_v24  ;;  %v9270_v25 = vld [vmem:[#allocation36_spill] sm:$0xff]  ;;  %v9271_v24 = vld [vmem:[#allocation31_spill] sm:$0xff] }
 0x2e8   :  { %2691 = vmatpush.bf16.msra.mxu0 %v9259_v2  ;;  %2717 = vmatpush.bf16.msra.mxu2 %v9260_v36  ;;  %v9268_v2 = vld [vmem:[#allocation29_spill] sm:$0xff]  ;;  %v9269_v36 = vld [vmem:[#allocation34_spill] sm:$0xff] }
 0x2e9   :  { %2512 = vmatmul.bf16.vlgmr.msrb.gmra.mxu1 %v7357_v18  ;;  %2538 = vmatmul.bf16.vlgmr.msrb.gmra.mxu3 %v7357_v18  ;;  %v9275_v18 = vld [vmem:[#allocation35_spill] sm:$0xff] }
 0x2ea   :  { %2703 = vmatpush.bf16.msra.mxu1 %v9263_v8  ;;  %2729 = vmatpush.bf16.msra.mxu3 %v9264_v4  ;;  %v9272_v8 = vld [vmem:[#allocation33_spill] sm:$0xff]  ;;  %v9273_v4 = vld [vmem:[#allocation38_spill] sm:$0xff] }
 0x2ec   :  { %2692 = vmatpush.bf16.msra.mxu0 %v9265_v29  ;;  %2718 = vmatpush.bf16.msra.mxu2 %v9266_v5  ;;  %v9276_v29 = vld [vmem:[#allocation37_spill] sm:$0xff]  ;;  %v9277_v5 = vld [vmem:[#allocation42_spill] sm:$0xff] }
 0x2ee   :  { %2704 = vmatpush.bf16.msra.mxu1 %v9267_v19  ;;  %2730 = vmatpush.bf16.msra.mxu3 %v9268_v2  ;;  %v9278_v19 = vld [vmem:[#allocation44_spill] sm:$0xff]  ;;  %v9279_v2 = vld [vmem:[#allocation39_spill] sm:$0xff] }
 0x2f0   :  { %2693 = vmatpush.bf16.msra.mxu0 %v9269_v36  ;;  %2719 = vmatpush.bf16.msra.mxu2 %v9270_v25  ;;  %v9280_v36 = vld [vmem:[#allocation41_spill] sm:$0xff]  ;;  %v9281_v25 = vld [vmem:[#allocation46_spill] sm:$0xff] }
 0x2f2   :  { %2705 = vmatpush.bf16.msra.mxu1 %v9271_v24  ;;  %2731 = vmatpush.bf16.msra.mxu3 %v9272_v8  ;;  %v9282_v24 = vld [vmem:[#allocation48_spill] sm:$0xff]  ;;  %v9283_v8 = vld [vmem:[#allocation43_spill] sm:$0xff] }
 0x2f4   :  { %2694 = vmatpush.bf16.msra.mxu0 %v9273_v4  ;;  %2720 = vmatpush.bf16.msra.mxu2 %v9274_v20  ;;  %v9284_v4 = vld [vmem:[#allocation45_spill] sm:$0xff]  ;;  %v9285_v20 = vld [vmem:[#allocation50_spill] sm:$0xff] }
 0x2f6   :  { %2706 = vmatpush.bf16.msra.mxu1 %v9275_v18  ;;  %2732 = vmatpush.bf16.msra.mxu3 %v9276_v29  ;;  %v9286_v18 = vld [vmem:[#allocation52_spill] sm:$0xff]  ;;  %v9287_v29 = vld [vmem:[#allocation54_spill] sm:$0xff] }
 0x2f8   :  { %2695 = vmatpush.bf16.msra.mxu0 %v9277_v5  ;;  %2721 = vmatpush.bf16.msra.mxu2 %v9278_v19  ;;  %v9288_v5 = vld [vmem:[#allocation56_spill] sm:$0xff]  ;;  %v9289_v19 = vld [vmem:[#allocation47_spill] sm:$0xff] }
 0x2fa   :  { %2707 = vmatpush.bf16.msra.mxu1 %v9279_v2  ;;  %2733 = vmatpush.bf16.msra.mxu3 %v9280_v36  ;;  %v9290_v2 = vld [vmem:[#allocation49_spill] sm:$0xff]  ;;  %v9291_v36 = vld [vmem:[#allocation58_spill] sm:$0xff] }
 0x2fc   :  { %2696 = vmatpush.bf16.msra.mxu0 %v9281_v25  ;;  %2722 = vmatpush.bf16.msra.mxu2 %v9282_v24  ;;  %v9292_v25 = vld [vmem:[#allocation60_spill] sm:$0xff]  ;;  %v9293_v24 = vld [vmem:[#allocation51_spill] sm:$0xff] }
 0x2fe   :  { %2708 = vmatpush.bf16.msra.mxu1 %v9283_v8  ;;  %2734 = vmatpush.bf16.msra.mxu3 %v9284_v4  ;;  %v9294_v8 = vld [vmem:[#allocation53_spill] sm:$0xff]  ;;  %v9295_v4 = vld [vmem:[#allocation55_spill] sm:$0xff] }
 0x300   :  { %2697 = vmatpush.bf16.msra.mxu0 %v9285_v20  ;;  %2723 = vmatpush.bf16.msra.mxu2 %v9286_v18  ;;  %v9296_v20 = vld [vmem:[#allocation57_spill] sm:$0xff]  ;;  %v9297_v18 = vld [vmem:[#allocation62_spill] sm:$0xff] }
 0x302   :  { %2709 = vmatpush.bf16.msra.mxu1 %v9289_v19  ;;  %2735 = vmatpush.bf16.msra.mxu3 %v9290_v2  ;;  %v9300_v19 = vld [vmem:[#allocation61_spill] sm:$0xff]  ;;  %v9301_v2 = vld [vmem:[#allocation66_spill] sm:$0xff] }
 0x304   :  { %2742 = vmatpush.bf16.msrb.mxu0 %v9287_v29  ;;  %2768 = vmatpush.bf16.msrb.mxu2 %v9288_v5  ;;  %v9298_v29 = vld [vmem:[#allocation64_spill] sm:$0xff]  ;;  %v9299_v5 = vld [vmem:[#allocation59_spill] sm:$0xff] }
 0x306   :  { %2710 = vmatpush.bf16.msra.mxu1 %v9293_v24  ;;  %2736 = vmatpush.bf16.msra.mxu3 %v9294_v8  ;;  %v9304_v24 = vld [vmem:[#allocation65_spill] sm:$0xff]  ;;  %v9305_v8 = vld [vmem:[#allocation70_spill] sm:$0xff] }
 0x308   :  { %2743 = vmatpush.bf16.msrb.mxu0 %v9291_v36  ;;  %2769 = vmatpush.bf16.msrb.mxu2 %v9292_v25  ;;  %v9302_v36 = vld [vmem:[#allocation68_spill] sm:$0xff]  ;;  %v9303_v25 = vld [vmem:[#allocation63_spill] sm:$0xff] }
 0x30a   :  { %2755 = vmatpush.bf16.msrb.mxu1 %v9295_v4  ;;  %2781 = vmatpush.bf16.msrb.mxu3 %v9296_v20  ;;  %v9306_v4 = vld [vmem:[#allocation72_spill] sm:$0xff]  ;;  %v9307_v20 = vld [vmem:[#allocation67_spill] sm:$0xff] }
 0x30c   :  { %2744 = vmatpush.bf16.msrb.mxu0 %v9297_v18  ;;  %2770 = vmatpush.bf16.msrb.mxu2 %v9298_v29  ;;  %v9308_v18 = vld [vmem:[#allocation69_spill] sm:$0xff]  ;;  %v9309_v29 = vld [vmem:[#allocation74_spill] sm:$0xff] }
 0x30e   :  { %2756 = vmatpush.bf16.msrb.mxu1 %v9299_v5  ;;  %2782 = vmatpush.bf16.msrb.mxu3 %v9300_v19  ;;  %v9310_v5 = vld [vmem:[#allocation76_spill] sm:$0xff]  ;;  %v9311_v19 = vld [vmem:[#allocation71_spill] sm:$0xff] }
 0x310   :  { %2745 = vmatpush.bf16.msrb.mxu0 %v9301_v2  ;;  %2771 = vmatpush.bf16.msrb.mxu2 %v9302_v36  ;;  %v9312_v2 = vld [vmem:[#allocation73_spill] sm:$0xff]  ;;  %v9313_v36 = vld [vmem:[#allocation78_spill] sm:$0xff] }
 0x312   :  { %2757 = vmatpush.bf16.msrb.mxu1 %v9303_v25  ;;  %2783 = vmatpush.bf16.msrb.mxu3 %v9304_v24  ;;  %v9314_v25 = vld [vmem:[#allocation80_spill] sm:$0xff]  ;;  %v9315_v24 = vld [vmem:[#allocation75_spill] sm:$0xff] }
 0x314   :  { %2746 = vmatpush.bf16.msrb.mxu0 %v9305_v8  ;;  %2772 = vmatpush.bf16.msrb.mxu2 %v9306_v4  ;;  %v9316_v8 = vld [vmem:[#allocation77_spill] sm:$0xff]  ;;  %v9317_v4 = vld [vmem:[#allocation82_spill] sm:$0xff] }
 0x316   :  { %2758 = vmatpush.bf16.msrb.mxu1 %v9307_v20  ;;  %2784 = vmatpush.bf16.msrb.mxu3 %v9308_v18  ;;  %v9318_v20 = vld [vmem:[#allocation84_spill] sm:$0xff]  ;;  %v9319_v18 = vld [vmem:[#allocation79_spill] sm:$0xff] }
 0x318   :  { %2747 = vmatpush.bf16.msrb.mxu0 %v9309_v29  ;;  %2773 = vmatpush.bf16.msrb.mxu2 %v9310_v5  ;;  %v9320_v29 = vld [vmem:[#allocation81_spill] sm:$0xff]  ;;  %v9321_v5 = vld [vmem:[#allocation83_spill] sm:$0xff] }
 0x31a   :  { %2759 = vmatpush.bf16.msrb.mxu1 %v9311_v19  ;;  %2785 = vmatpush.bf16.msrb.mxu3 %v9312_v2  ;;  %v9322_v19 = vld [vmem:[#allocation85_spill] sm:$0xff] }
 0x31c   :  { %2748 = vmatpush.bf16.msrb.mxu0 %v9313_v36  ;;  %2774 = vmatpush.bf16.msrb.mxu2 %v9314_v25 }
 0x31e   :  { %2760 = vmatpush.bf16.msrb.mxu1 %v9315_v24  ;;  %2786 = vmatpush.bf16.msrb.mxu3 %v9316_v8  ;;  %v9323_v24 = vld [vmem:[#allocation112_spill] sm:$0xff] }
 0x320   :  { %2749 = vmatpush.bf16.msrb.mxu0 %v9317_v4  ;;  %2775 = vmatpush.bf16.msrb.mxu2 %v9318_v20  ;;  %v2344_v2 = vpop.f32.mrf.mxu0 }
 0x322   :  { %2761 = vmatpush.bf16.msrb.mxu1 %v9319_v18  ;;  %2787 = vmatpush.bf16.msrb.mxu3 %v9320_v29  ;;  %v9324_v18 = vld [vmem:[#allocation114_spill] sm:$0xff] }
 0x326   :  { %2762 = vmatpush.bf16.msrb.mxu1 %v9321_v5  ;;  %2788 = vmatpush.bf16.msrb.mxu3 %v9322_v19  ;;  %v2357_v36 = vpop.f32.mrf.mxu1  ;;  %v2370_v33 = vpop.f32.mrf.mxu2 }
 0x327   :  { %v2358_v25 = vadd.f32 %v2357_v36, %v2344_v2 }
 0x328   :  { %v2346_v26 = vpop.f32.mrf.mxu0 }
 0x329   :  { %v2543_v30 = vadd.f32 %v2358_v25, %v9323_v24  ;;  %v9325_v24 = vld [vmem:[#allocation124_spill] sm:$0xff] }
 0x32b   :  { %v5510_v8 = vmul.f32 -1.442695, %v2543_v30 }
 0x32c   :  { %v2383_v40 = vpop.f32.mrf.mxu3 }
 0x32d   :  { %5938 = vpow2.f32 %v5510_v8  ;;  %v2384_v4 = vadd.f32 %v2383_v40, %v2370_v33 }
 0x32e   :  { %v2359_v20 = vpop.f32.mrf.mxu1  ;;  %v2372_v50 = vpop.f32.mrf.mxu2 }
 0x32f   :  { %v2544_v57 = vadd.f32 %v2384_v4, %v9324_v18  ;;  %v9326_v20 = vld [vmem:[#allocation126_spill] sm:$0xff] }
 0x330   :  { %v2396_v29 = vpop.f32.mrf.mxu0 }
 0x331   :  { %v5511_v56 = vmul.f32 -1.442695, %v2544_v57 }
 0x333   :  { %v5939_v5 = vpop.eup %5938  ;;  %5940 = vpow2.f32 %v5511_v56 }
 0x334   :  { %v2557_v19 = vadd.f32 1.0, %v5939_v5  ;;  %v2385_v55 = vpop.f32.mrf.mxu3 }
 0x336   :  { %v2409_v58 = vpop.f32.mrf.mxu1  ;;  %v2422_v47 = vpop.f32.mrf.mxu2  ;;  %5942 = vrcp.f32 %v2557_v19  ;;  %v2568_v12 = vand.u32 2147483647, %v2557_v19  ;;  %vm2564_vm1 = vweird.f32 %v2557_v19 }
 0x337   :  { %v2410_v36 = vadd.f32 %v2409_v58, %v2396_v29 }
 0x338   :  { %v2398_v2 = vpop.f32.mrf.mxu0  ;;  %vm7519_vm3 = vcmp.eq.f32.partialorder %v2568_v12, 8.507059e+37 }
 0x339   :  { %v5941_v25 = vpop.eup %5940  ;;  %v2545_v26 = vadd.f32 %v2410_v36, %v9325_v24 }
 0x33a   :  { %v7502_v8 = vadd.f32 1.0, %v5941_v25 }
 0x33b   :  { %v5512_v40 = vmul.f32 -1.442695, %v2545_v26 }
 0x33c   :  { %5944 = vrcp.f32 %v7502_v8  ;;  %v2435_v50 = vpop.f32.mrf.mxu3  ;;  %v5943_v33 = vpop.eup %5942  ;;  %vm2579_vm6 = vweird.f32 %v7502_v8  ;;  %v2583_v12 = vand.u32 2147483647, %v7502_v8 }
 0x33d   :  { %5946 = vpow2.f32 %v5512_v40  ;;  %v2436_v57 = vadd.f32 %v2435_v50, %v2422_v47  ;;  %v2560_v55 = vmul.f32 %v5943_v33, %v2557_v19  ;;  %vm2565_vm0 = vweird.f32 %v5943_v33 }
 0x33e   :  { %v2411_v56 = vpop.f32.mrf.mxu1  ;;  %v2424_v5 = vpop.f32.mrf.mxu2  ;;  %vm7515_vm2 = vmor %vm2564_vm1, %vm2565_vm0  ;;  %vm2584_vm11 = vcmp.eq.f32.partialorder %v2583_v12, 8.507059e+37 }
 0x33f   :  { %v2546_v4 = vadd.f32 %v2436_v57, %v9326_v20  ;;  %v2561_v36 = vsub.f32 1.0, %v2560_v55 }
 0x340   :  { %v2448_v30 = vpop.f32.mrf.mxu0 }
 0x341   :  { %v5513_v29 = vmul.f32 -1.442695, %v2546_v4  ;;  %v2562_v50 = vmul.f32 %v5943_v33, %v2561_v36  ;;  %v9327_v4 = vld [vmem:[#allocation192_spill] sm:$0xff] }
 0x342   :  { %v7506_v58 = vpop.eup %5944 }
 0x343   :  { %v5947_v18 = vpop.eup %5946  ;;  %5948 = vpow2.f32 %v5513_v29  ;;  %v2575_v24 = vmul.f32 %v7506_v58, %v7502_v8  ;;  %v2570_v29 = vand.u32 2147483648, %v2557_v19  ;;  %vm2580_vm4 = vweird.f32 %v7506_v58 }
 0x344   :  { %v2595_v2 = vadd.f32 1.0, %v5947_v18  ;;  %v2437_v25 = vpop.f32.mrf.mxu3  ;;  %v2563_v18 = vadd.f32 %v5943_v33, %v2562_v50  ;;  %vm7536_vm8 = vmor %vm2579_vm6, %vm2580_vm4 }
 0x345   :  { %v2576_v5 = vsub.f32 1.0, %v2575_v24 }
 0x346   :  { %5950 = vrcp.f32 %v2595_v2  ;;  %v2474_v26 = vpop.f32.mrf.mxu2  ;;  %v2461_v47 = vpop.f32.mrf.mxu1  ;;  %v2606_v19 = vand.u32 2147483647, %v2595_v2  ;;  %vm2602_vm7 = vweird.f32 %v2595_v2 }
 0x347   :  { %v2462_v40 = vadd.f32 %v2461_v47, %v2448_v30  ;;  %v2577_v30 = vmul.f32 %v7506_v58, %v2576_v5 }
 0x348   :  { %v2450_v56 = vpop.f32.mrf.mxu0  ;;  %vm2607_vm10 = vcmp.eq.f32.partialorder %v2606_v19, 8.507059e+37 }
 0x349   :  { %v5949_v57 = vpop.eup %5948  ;;  %v2547_v17 = vadd.f32 %v2462_v40, %v9327_v4  ;;  %v2608_v4 = vand.u32 2147483648, %v2595_v2 }
 0x34a   :  { %v7510_v20 = vadd.f32 1.0, %v5949_v57  ;;  %v2571_v57 = vor.u32 1.1754944e-38, %v2570_v29  ;;  %v2585_v29 = vand.u32 2147483648, %v7502_v8 }
 0x34c   :  { %v5951_v55 = vpop.eup %5950  ;;  %5952 = vrcp.f32 %v7510_v20  ;;  %v2487_v32 = vpop.f32.mrf.mxu3  ;;  %v2623_v40 = vand.u32 2147483648, %v7510_v20  ;;  %vm2617_vm13 = vweird.f32 %v7510_v20 }
 0x34d   :  { %v2598_v25 = vmul.f32 %v5951_v55, %v2595_v2  ;;  %5954 = vtanh.f32 %v2547_v17  ;;  %v2488_v36 = vadd.f32 %v2487_v32, %v2474_v26  ;;  %v2567_v17 = vsel %vm7515_vm2, %v5943_v33, %v2563_v18 }
 0x34e   :  { %v2476_v47 = vpop.f32.mrf.mxu2  ;;  %v2463_v50 = vpop.f32.mrf.mxu1  ;;  %vm2603_vm5 = vweird.f32 %v5951_v55  ;;  %v2578_v26 = vadd.f32 %v7506_v58, %v2577_v30 }
 0x34f   :  { %v2599_v24 = vsub.f32 1.0, %v2598_v25  ;;  %v2548_v5 = vadd.f32 %v2488_v36, %v9332_v27  ;;  %v2572_v27 = vsel %vm7519_vm3, %v2571_v57, %v2567_v17  ;;  %vm2604_vm9 = vmor %vm2602_vm7, %vm2603_vm5  ;;  %v2609_v36 = vor.u32 1.1754944e-38, %v2608_v4 }
 0x350   :  { %v2582_v2 = vsel %vm7536_vm8, %v7506_v58, %v2578_v26  ;;  %v2586_v17 = vor.u32 1.1754944e-38, %v2585_v29  ;;  %v2621_v4 = vand.u32 2147483647, %v7510_v20  ;;  %v2624_v26 = vor.u32 1.1754944e-38, %v2623_v40 }
 0x351   :  { %v2600_v32 = vmul.f32 %v5951_v55, %v2599_v24  ;;  %5956 = vtanh.f32 %v2548_v5 }
 0x352   :  { %v5953_v25 = vpop.eup %5952  ;;  %vm2622_vm15 = vcmp.eq.f32.partialorder %v2621_v4, 8.507059e+37 }
 0x353   :  { %v5955_v47 = vpop.eup %5954  ;;  %v2613_v33 = vmul.f32 %v5953_v25, %v7510_v20  ;;  %v2601_v18 = vadd.f32 %v5951_v55, %v2600_v32  ;;  %vm2618_vm12 = vweird.f32 %v5953_v25 }
 0x354   :  { %v2669_v24 = vmul.f32 %v5955_v47, %v2572_v27  ;;  %v2489_v50 = vpop.f32.mrf.mxu3  ;;  %vm2619_vm14 = vmor %vm2617_vm13, %vm2618_vm12 }
 0x355   :  { %v2614_v56 = vsub.f32 1.0, %v2613_v33  ;;  %v2605_v8 = vsel %vm2604_vm9, %v5951_v55, %v2601_v18  ;;  %v2587_v33 = vsel %vm2584_vm11, %v2586_v17, %v2582_v2  ;;  %v9335_v2 = vld [vmem:[#allocation196_spill] sm:$0xff] }
 0x356   :  { %v2610_v57 = vsel %vm2607_vm10, %v2609_v36, %v2605_v8 }
 0x357   :  { %v2615_v5 = vmul.f32 %v5953_v25, %v2614_v56  ;;  %v2667_v32 = vmul.f32 %v2610_v57, %v7340_v49  ;;  %v5957_v47 = vpop.eup %5956 }
 0x358   :  { %v2670_v58 = vmul.f32 %v5957_v47, %v2587_v33 }
 0x359   :  { %v7547_v55 = vadd.f32 %v2669_v24, %v2667_v32  ;;  %v2616_v19 = vadd.f32 %v5953_v25, %v2615_v5 }
 0x35b   :  { %v2620_v27 = vsel %vm2619_vm14, %v5953_v25, %v2616_v19  ;;  %v9336_v25 = vld [vmem:[#allocation198_spill] sm:$0xff] }
 0x35c   :  { %v2625_v12 = vsel %vm2622_vm15, %v2624_v26, %v2620_v27 }
 0x35d   :  { %v2668_v29 = vmul.f32 %v2625_v12, %v7343_v34 }
 0x35f   :  { %v7550_v30 = vadd.f32 %v2670_v58, %v2668_v29 }
 0x360   :  { %v2500_v18 = vpop.f32.mrf.mxu0 }
 0x366   :  { %v2513_v49 = vpop.f32.mrf.mxu1  ;;  %v2526_v36 = vpop.f32.mrf.mxu2 }
 0x367   :  { %v2514_v56 = vadd.f32 %v2513_v49, %v2500_v18 }
 0x368   :  { %v2502_v8 = vpop.f32.mrf.mxu0 }
 0x369   :  { %v2549_v20 = vadd.f32 %v2514_v56, %v9335_v2 }
 0x36b   :  { %v5514_v24 = vmul.f32 -1.442695, %v2549_v20 }
 0x36c   :  { %v2539_v50 = vpop.f32.mrf.mxu3 }
 0x36d   :  { %5958 = vpow2.f32 %v5514_v24  ;;  %v2540_v57 = vadd.f32 %v2539_v50, %v2526_v36 }
 0x36e   :  { %v2515_v17 = vpop.f32.mrf.mxu1  ;;  %v2528_v40 = vpop.f32.mrf.mxu2 }
 0x36f   :  { %v2550_v5 = vadd.f32 %v2540_v57, %v9336_v25 }
 0x371   :  { %v5515_v32 = vmul.f32 -1.442695, %v2550_v5 }
 0x373   :  { %v5959_v4 = vpop.eup %5958  ;;  %5960 = vpow2.f32 %v5515_v32 }
 0x374   :  { %v2635_v34 = vadd.f32 1.0, %v5959_v4  ;;  %v2541_v47 = vpop.f32.mrf.mxu3 }
 0x376   :  { %5962 = vrcp.f32 %v2635_v34  ;;  %v2648_v12 = vand.u32 2147483648, %v2635_v34  ;;  %v2646_v18 = vand.u32 2147483647, %v2635_v34  ;;  %vm2642_vm1 = vweird.f32 %v2635_v34 }
 0x378   :  { %v2649_v8 = vor.u32 1.1754944e-38, %v2648_v12  ;;  %vm2647_vm3 = vcmp.eq.f32.partialorder %v2646_v18, 8.507059e+37  ;;  %v9339_v12 = vld [vmem:[#allocation152_spill] sm:$0xff]  ;;  %v9341_v18 = vld [vmem:[#allocation147_spill] sm:$0xff] }
 0x379   :  { %v5961_v33 = vpop.eup %5960 }
 0x37a   :  { %v2636_v19 = vadd.f32 1.0, %v5961_v33 }
 0x37c   :  { %v5963_v58 = vpop.eup %5962  ;;  %5964 = vrcp.f32 %v2636_v19  ;;  %v2663_v57 = vand.u32 2147483648, %v2636_v19  ;;  %v2661_v25 = vand.u32 2147483647, %v2636_v19  ;;  %vm2657_vm5 = vweird.f32 %v2636_v19 }
 0x37d   :  { %v2638_v26 = vmul.f32 %v5963_v58, %v2635_v34  ;;  %5966 = vtanh.f32 %v7547_v55  ;;  %vm2643_vm0 = vweird.f32 %v5963_v58 }
 0x37e   :  { %vm2644_vm2 = vmor %vm2642_vm1, %vm2643_vm0  ;;  %5968 = vtanh.f32 %v7550_v30  ;;  %v2664_v4 = vor.u32 1.1754944e-38, %v2663_v57  ;;  %vm2662_vm7 = vcmp.eq.f32.partialorder %v2661_v25, 8.507059e+37  ;;  %v9350_v57 = vld [vmem:[#allocation168_spill] sm:$0xff]  ;;  %v9353_v25 = vld [vmem:[#allocation166_spill] sm:$0xff] }
 0x37f   :  { %v2639_v27 = vsub.f32 1.0, %v2638_v26 }
 0x381   :  { %v2640_v29 = vmul.f32 %v5963_v58, %v2639_v27  ;;  %v9338_v27 = vld [vmem:[#allocation148_spill] sm:$0xff] }
 0x382   :  { %v5965_v49 = vpop.eup %5964 }
 0x383   :  { %v2641_v36 = vadd.f32 %v5963_v58, %v2640_v29  ;;  %v2653_v56 = vmul.f32 %v5965_v49, %v2636_v19  ;;  %v5967_v24 = vpop.eup %5966  ;;  %vm2658_vm4 = vweird.f32 %v5965_v49  ;;  %v9337_v19 = vld [vmem:[#allocation142_spill] sm:$0xff]  ;;  %v9340_v29 = vld [vmem:[#allocation145_spill] sm:$0xff] }
 0x384   :  { %vm2659_vm6 = vmor %vm2657_vm5, %vm2658_vm4  ;;  %v5969_v47 = vpop.eup %5968 }
 0x385   :  { %v2645_v2 = vsel %vm2644_vm2, %v5963_v58, %v2641_v36  ;;  %v2654_v20 = vsub.f32 1.0, %v2653_v56  ;;  %v9343_v36 = vld [vmem:[#allocation158_spill] sm:$0xff]  ;;  %v9344_v56 = vld [vmem:[#allocation151_spill] sm:$0xff] }
 0x386   :  { %v2650_v50 = vsel %vm2647_vm3, %v2649_v8, %v2645_v2  ;;  %v9345_v8 = vld [vmem:[#allocation155_spill] sm:$0xff]  ;;  %v9346_v2 = vld [vmem:[#allocation161_spill] sm:$0xff] }
 0x387   :  { %v2675_v17 = vmul.f32 %v5967_v24, %v2650_v50  ;;  %v2655_v40 = vmul.f32 %v5965_v49, %v2654_v20  ;;  %v9347_v20 = vld [vmem:[#allocation164_spill] sm:$0xff]  ;;  %v9348_v24 = vld [vmem:[#allocation157_spill] sm:$0xff]  ;;  %v9349_v50 = vld [vmem:[#allocation159_spill] sm:$0xff] }
 0x389   :  { %v7556_v5 = vpack.c.bf16 %v2675_v17, %v2675_v17  ;;  %v2656_v32 = vadd.f32 %v5965_v49, %v2655_v40  ;;  %v9351_v17 = vld [vmem:[#allocation170_spill] sm:$0xff]  ;;  %v9352_v40 = vld [vmem:[#allocation163_spill] sm:$0xff] }
 0x38b   :  { %v2660_v34 = vsel %vm2659_vm6, %v5965_v49, %v2656_v32  ;;  %2698 = vmatmul.bf16.vlgmr.msra.gmra.mxu0 %v7556_v5  ;;  %2724 = vmatmul.bf16.vlgmr.msra.gmra.mxu2 %v7556_v5  ;;  %v9342_v49 = vld [vmem:[#allocation156_spill] sm:$0xff] }
 0x38c   :  { %v2665_v33 = vsel %vm2662_vm7, %v2664_v4, %v2660_v34  ;;  %2794 = vmatpush.bf16.msra.mxu0 %v9112_v63  ;;  %2820 = vmatpush.bf16.msra.mxu2 %v9113_v11  ;;  %v9354_v32 = vld [vmem:[#allocation172_spill] sm:$0xff]  ;;  %v9356_v34 = vld [vmem:[#allocation169_spill] sm:$0xff] }
 0x38d   :  { %v2676_v58 = vmul.f32 %v5969_v47, %v2665_v33  ;;  %v9355_v4 = vld [vmem:[#allocation176_spill] sm:$0xff]  ;;  %v9357_v47 = vld [vmem:[#allocation171_spill] sm:$0xff] }
 0x38e   :  { %v9358_v33 = vld [vmem:[#allocation180_spill] sm:$0xff] }
 0x38f   :  { %v7562_v26 = vpack.c.bf16 %v2676_v58, %v2676_v58  ;;  %v9359_v58 = vld [vmem:[#allocation182_spill] sm:$0xff] }
 0x390   :  { %2795 = vmatpush.bf16.msra.mxu0 %v9114_v46  ;;  %2821 = vmatpush.bf16.msra.mxu2 %v9115_v38 }
 0x391   :  { %2711 = vmatmul.bf16.vlgmr.msra.gmra.mxu1 %v7562_v26  ;;  %2737 = vmatmul.bf16.vlgmr.msra.gmra.mxu3 %v7562_v26 }
 0x392   :  { %2807 = vmatpush.bf16.msra.mxu1 %v9116_v60  ;;  %2833 = vmatpush.bf16.msra.mxu3 %v9117_v1 }
 0x394   :  { %2796 = vmatpush.bf16.msra.mxu0 %v9118_v42  ;;  %2822 = vmatpush.bf16.msra.mxu2 %v9119_v22 }
 0x396   :  { %2808 = vmatpush.bf16.msra.mxu1 %v9120_v14  ;;  %2834 = vmatpush.bf16.msra.mxu3 %v9121_v6 }
 0x398   :  { %2797 = vmatpush.bf16.msra.mxu0 %v9122_v62  ;;  %2823 = vmatpush.bf16.msra.mxu2 %v9123_v52 }
 0x39a   :  { %2809 = vmatpush.bf16.msra.mxu1 %v9124_v61  ;;  %2835 = vmatpush.bf16.msra.mxu3 %v9125_v16 }
 0x39b   :  { %2750 = vmatmul.bf16.vlgmr.msrb.gmra.mxu0 %v7556_v5  ;;  %2776 = vmatmul.bf16.vlgmr.msrb.gmra.mxu2 %v7556_v5 }
 0x39c   :  { %2798 = vmatpush.bf16.msra.mxu0 %v9126_v44  ;;  %2824 = vmatpush.bf16.msra.mxu2 %v9127_v53 }
 0x39e   :  { %2810 = vmatpush.bf16.msra.mxu1 %v9128_v10  ;;  %2836 = vmatpush.bf16.msra.mxu3 %v9129_v15 }
 0x3a0   :  { %2799 = vmatpush.bf16.msra.mxu0 %v9130_v41  ;;  %2825 = vmatpush.bf16.msra.mxu2 %v9131_v31 }
 0x3a1   :  { %2763 = vmatmul.bf16.vlgmr.msrb.gmra.mxu1 %v7562_v26  ;;  %2789 = vmatmul.bf16.vlgmr.msrb.gmra.mxu3 %v7562_v26 }
 0x3a2   :  { %2811 = vmatpush.bf16.msra.mxu1 %v9229_v35  ;;  %2837 = vmatpush.bf16.msra.mxu3 %v9230_v48 }
 0x3a4   :  { %2800 = vmatpush.bf16.msra.mxu0 %v9231_v9  ;;  %2826 = vmatpush.bf16.msra.mxu2 %v9232_v45 }
 0x3a6   :  { %2812 = vmatpush.bf16.msra.mxu1 %v9233_v13  ;;  %2838 = vmatpush.bf16.msra.mxu3 %v9234_v7 }
 0x3a8   :  { %2801 = vmatpush.bf16.msra.mxu0 %v9235_v54  ;;  %2827 = vmatpush.bf16.msra.mxu2 %v9236_v59 }
 0x3aa   :  { %2813 = vmatpush.bf16.msra.mxu1 %v9239_v28  ;;  %2839 = vmatpush.bf16.msra.mxu3 %v9240_v23 }
 0x3ab   :  { %2802 = vmatmul.bf16.vlgmr.msra.gmra.mxu0 %v7556_v5  ;;  %2828 = vmatmul.bf16.vlgmr.msra.gmra.mxu2 %v7556_v5 }
 0x3ac   :  { %2846 = vmatpush.bf16.msrb.mxu0 %v9237_v51  ;;  %2872 = vmatpush.bf16.msrb.mxu2 %v9238_v3 }
 0x3ae   :  { %2814 = vmatpush.bf16.msra.mxu1 %v9243_v37  ;;  %2840 = vmatpush.bf16.msra.mxu3 %v9244_v39 }
 0x3b0   :  { %2847 = vmatpush.bf16.msrb.mxu0 %v9241_v21  ;;  %2873 = vmatpush.bf16.msrb.mxu2 %v9242_v43 }
 0x3b1   :  { %2815 = vmatmul.bf16.vlgmr.msra.gmra.mxu1 %v7562_v26  ;;  %2841 = vmatmul.bf16.vlgmr.msra.gmra.mxu3 %v7562_v26 }
 0x3b2   :  { %2859 = vmatpush.bf16.msrb.mxu1 %v9245_v0  ;;  %2885 = vmatpush.bf16.msrb.mxu3 %v9337_v19 }
 0x3b4   :  { %2848 = vmatpush.bf16.msrb.mxu0 %v9338_v27  ;;  %2874 = vmatpush.bf16.msrb.mxu2 %v9339_v12 }
 0x3b6   :  { %2860 = vmatpush.bf16.msrb.mxu1 %v9340_v29  ;;  %2886 = vmatpush.bf16.msrb.mxu3 %v9341_v18 }
 0x3b8   :  { %2849 = vmatpush.bf16.msrb.mxu0 %v9342_v49  ;;  %2875 = vmatpush.bf16.msrb.mxu2 %v9343_v36 }
 0x3ba   :  { %2861 = vmatpush.bf16.msrb.mxu1 %v9344_v56  ;;  %2887 = vmatpush.bf16.msrb.mxu3 %v9345_v8  ;;  %v9431_v8 = vld [vmem:[#allocation127_spill] sm:$0xff] }
 0x3bc   :  { %2850 = vmatpush.bf16.msrb.mxu0 %v9346_v2  ;;  %2876 = vmatpush.bf16.msrb.mxu2 %v9347_v20 }
 0x3be   :  { %2862 = vmatpush.bf16.msrb.mxu1 %v9348_v24  ;;  %2888 = vmatpush.bf16.msrb.mxu3 %v9349_v50  ;;  %v9360_v50 = vld [vmem:[#allocation22_spill] sm:$0xff] }
 0x3c0   :  { %2851 = vmatpush.bf16.msrb.mxu0 %v9350_v57  ;;  %2877 = vmatpush.bf16.msrb.mxu2 %v9351_v17  ;;  %v9361_v57 = vld [vmem:[#allocation24_spill] sm:$0xff]  ;;  %v9362_v17 = vld [vmem:[#allocation175_spill] sm:$0xff] }
 0x3c2   :  { %2863 = vmatpush.bf16.msrb.mxu1 %v9352_v40  ;;  %2889 = vmatpush.bf16.msrb.mxu3 %v9353_v25  ;;  %v9363_v40 = vld [vmem:[#allocation179_spill] sm:$0xff]  ;;  %v9429_v25 = vld [vmem:[#allocation125_spill] sm:$0xff] }
 0x3c4   :  { %2852 = vmatpush.bf16.msrb.mxu0 %v9354_v32  ;;  %2878 = vmatpush.bf16.msrb.mxu2 %v9355_v4  ;;  %v9364_v4 = vld [vmem:[#allocation26_spill] sm:$0xff] }
 0x3c6   :  { %2864 = vmatpush.bf16.msrb.mxu1 %v9356_v34  ;;  %2890 = vmatpush.bf16.msrb.mxu3 %v9357_v47  ;;  %v9365_v34 = vld [vmem:[#allocation28_spill] sm:$0xff]  ;;  %v9366_v47 = vld [vmem:[#allocation181_spill] sm:$0xff] }
 0x3c8   :  { %2853 = vmatpush.bf16.msrb.mxu0 %v9358_v33  ;;  %2879 = vmatpush.bf16.msrb.mxu2 %v9359_v58  ;;  %v9367_v33 = vld [vmem:[#allocation183_spill] sm:$0xff] }
 0x3c9   :  { %v9368_v58 = vld [vmem:[#allocation23_spill] sm:$0xff] }
 0x3ca   :  { %2865 = vmatpush.bf16.msrb.mxu1 %v9362_v17  ;;  %2891 = vmatpush.bf16.msrb.mxu3 %v9363_v40  ;;  %v9370_v40 = vld [vmem:[#allocation30_spill] sm:$0xff]  ;;  %v9371_v17 = vld [vmem:[#allocation32_spill] sm:$0xff] }
 0x3cb   :  { %2854 = vmatmul.bf16.vlgmr.msrb.gmra.mxu0 %v7556_v5  ;;  %2880 = vmatmul.bf16.vlgmr.msrb.gmra.mxu2 %v7556_v5  ;;  %v9372_v5 = vld [vmem:[#allocation27_spill] sm:$0xff] }
 0x3cc   :  { %3045 = vmatpush.bf16.msra.mxu0 %v9360_v50  ;;  %3071 = vmatpush.bf16.msra.mxu2 %v9361_v57  ;;  %v9369_v50 = vld [vmem:[#allocation25_spill] sm:$0xff]  ;;  %v9379_v57 = vld [vmem:[#allocation40_spill] sm:$0xff] }
 0x3ce   :  { %2866 = vmatpush.bf16.msrb.mxu1 %v9366_v47  ;;  %2892 = vmatpush.bf16.msrb.mxu3 %v9367_v33  ;;  %v9375_v47 = vld [vmem:[#allocation36_spill] sm:$0xff]  ;;  %v9376_v33 = vld [vmem:[#allocation31_spill] sm:$0xff] }
 0x3d0   :  { %3046 = vmatpush.bf16.msra.mxu0 %v9364_v4  ;;  %3072 = vmatpush.bf16.msra.mxu2 %v9365_v34  ;;  %v9373_v4 = vld [vmem:[#allocation29_spill] sm:$0xff]  ;;  %v9374_v34 = vld [vmem:[#allocation34_spill] sm:$0xff] }
 0x3d1   :  { %2867 = vmatmul.bf16.vlgmr.msrb.gmra.mxu1 %v7562_v26  ;;  %2893 = vmatmul.bf16.vlgmr.msrb.gmra.mxu3 %v7562_v26  ;;  %v9380_v26 = vld [vmem:[#allocation35_spill] sm:$0xff] }
 0x3d2   :  { %3058 = vmatpush.bf16.msra.mxu1 %v9368_v58  ;;  %3084 = vmatpush.bf16.msra.mxu3 %v9369_v50  ;;  %v9377_v58 = vld [vmem:[#allocation33_spill] sm:$0xff]  ;;  %v9378_v50 = vld [vmem:[#allocation38_spill] sm:$0xff] }
 0x3d4   :  { %3047 = vmatpush.bf16.msra.mxu0 %v9370_v40  ;;  %3073 = vmatpush.bf16.msra.mxu2 %v9371_v17  ;;  %v9381_v40 = vld [vmem:[#allocation37_spill] sm:$0xff]  ;;  %v9382_v17 = vld [vmem:[#allocation42_spill] sm:$0xff] }
 0x3d6   :  { %3059 = vmatpush.bf16.msra.mxu1 %v9372_v5  ;;  %3085 = vmatpush.bf16.msra.mxu3 %v9373_v4  ;;  %v9383_v5 = vld [vmem:[#allocation44_spill] sm:$0xff]  ;;  %v9384_v4 = vld [vmem:[#allocation39_spill] sm:$0xff] }
 0x3d8   :  { %3048 = vmatpush.bf16.msra.mxu0 %v9374_v34  ;;  %3074 = vmatpush.bf16.msra.mxu2 %v9375_v47  ;;  %v9385_v34 = vld [vmem:[#allocation41_spill] sm:$0xff]  ;;  %v9386_v47 = vld [vmem:[#allocation46_spill] sm:$0xff] }
 0x3da   :  { %3060 = vmatpush.bf16.msra.mxu1 %v9376_v33  ;;  %3086 = vmatpush.bf16.msra.mxu3 %v9377_v58  ;;  %v9387_v33 = vld [vmem:[#allocation48_spill] sm:$0xff]  ;;  %v9388_v58 = vld [vmem:[#allocation43_spill] sm:$0xff] }
 0x3dc   :  { %3049 = vmatpush.bf16.msra.mxu0 %v9378_v50  ;;  %3075 = vmatpush.bf16.msra.mxu2 %v9379_v57  ;;  %v9389_v50 = vld [vmem:[#allocation45_spill] sm:$0xff]  ;;  %v9390_v57 = vld [vmem:[#allocation50_spill] sm:$0xff] }
 0x3de   :  { %3061 = vmatpush.bf16.msra.mxu1 %v9380_v26  ;;  %3087 = vmatpush.bf16.msra.mxu3 %v9381_v40  ;;  %v9391_v26 = vld [vmem:[#allocation52_spill] sm:$0xff]  ;;  %v9392_v40 = vld [vmem:[#allocation54_spill] sm:$0xff] }
 0x3e0   :  { %3050 = vmatpush.bf16.msra.mxu0 %v9382_v17  ;;  %3076 = vmatpush.bf16.msra.mxu2 %v9383_v5  ;;  %v9393_v17 = vld [vmem:[#allocation56_spill] sm:$0xff]  ;;  %v9394_v5 = vld [vmem:[#allocation47_spill] sm:$0xff] }
 0x3e2   :  { %3062 = vmatpush.bf16.msra.mxu1 %v9384_v4  ;;  %3088 = vmatpush.bf16.msra.mxu3 %v9385_v34  ;;  %v9395_v4 = vld [vmem:[#allocation49_spill] sm:$0xff]  ;;  %v9396_v34 = vld [vmem:[#allocation58_spill] sm:$0xff] }
 0x3e4   :  { %3051 = vmatpush.bf16.msra.mxu0 %v9386_v47  ;;  %3077 = vmatpush.bf16.msra.mxu2 %v9387_v33  ;;  %v9397_v47 = vld [vmem:[#allocation60_spill] sm:$0xff]  ;;  %v9398_v33 = vld [vmem:[#allocation51_spill] sm:$0xff] }
 0x3e6   :  { %3063 = vmatpush.bf16.msra.mxu1 %v9388_v58  ;;  %3089 = vmatpush.bf16.msra.mxu3 %v9389_v50  ;;  %v9399_v58 = vld [vmem:[#allocation53_spill] sm:$0xff]  ;;  %v9400_v50 = vld [vmem:[#allocation55_spill] sm:$0xff] }
 0x3e8   :  { %3052 = vmatpush.bf16.msra.mxu0 %v9390_v57  ;;  %3078 = vmatpush.bf16.msra.mxu2 %v9391_v26  ;;  %v9401_v57 = vld [vmem:[#allocation57_spill] sm:$0xff]  ;;  %v9402_v26 = vld [vmem:[#allocation62_spill] sm:$0xff] }
 0x3ea   :  { %3064 = vmatpush.bf16.msra.mxu1 %v9394_v5  ;;  %3090 = vmatpush.bf16.msra.mxu3 %v9395_v4  ;;  %v9405_v5 = vld [vmem:[#allocation61_spill] sm:$0xff]  ;;  %v9406_v4 = vld [vmem:[#allocation66_spill] sm:$0xff] }
 0x3ec   :  { %3097 = vmatpush.bf16.msrb.mxu0 %v9392_v40  ;;  %3123 = vmatpush.bf16.msrb.mxu2 %v9393_v17  ;;  %v9403_v40 = vld [vmem:[#allocation64_spill] sm:$0xff]  ;;  %v9404_v17 = vld [vmem:[#allocation59_spill] sm:$0xff] }
 0x3ee   :  { %3065 = vmatpush.bf16.msra.mxu1 %v9398_v33  ;;  %3091 = vmatpush.bf16.msra.mxu3 %v9399_v58  ;;  %v9409_v33 = vld [vmem:[#allocation65_spill] sm:$0xff]  ;;  %v9410_v58 = vld [vmem:[#allocation70_spill] sm:$0xff] }
 0x3f0   :  { %3098 = vmatpush.bf16.msrb.mxu0 %v9396_v34  ;;  %3124 = vmatpush.bf16.msrb.mxu2 %v9397_v47  ;;  %v9407_v34 = vld [vmem:[#allocation68_spill] sm:$0xff]  ;;  %v9408_v47 = vld [vmem:[#allocation63_spill] sm:$0xff] }
 0x3f2   :  { %3110 = vmatpush.bf16.msrb.mxu1 %v9400_v50  ;;  %3136 = vmatpush.bf16.msrb.mxu3 %v9401_v57  ;;  %v9411_v50 = vld [vmem:[#allocation72_spill] sm:$0xff]  ;;  %v9412_v57 = vld [vmem:[#allocation67_spill] sm:$0xff] }
 0x3f4   :  { %3099 = vmatpush.bf16.msrb.mxu0 %v9402_v26  ;;  %3125 = vmatpush.bf16.msrb.mxu2 %v9403_v40  ;;  %v9413_v26 = vld [vmem:[#allocation69_spill] sm:$0xff]  ;;  %v9414_v40 = vld [vmem:[#allocation74_spill] sm:$0xff] }
 0x3f6   :  { %3111 = vmatpush.bf16.msrb.mxu1 %v9404_v17  ;;  %3137 = vmatpush.bf16.msrb.mxu3 %v9405_v5  ;;  %v9415_v17 = vld [vmem:[#allocation76_spill] sm:$0xff]  ;;  %v9416_v5 = vld [vmem:[#allocation71_spill] sm:$0xff] }
 0x3f8   :  { %3100 = vmatpush.bf16.msrb.mxu0 %v9406_v4  ;;  %3126 = vmatpush.bf16.msrb.mxu2 %v9407_v34  ;;  %v9417_v4 = vld [vmem:[#allocation73_spill] sm:$0xff]  ;;  %v9418_v34 = vld [vmem:[#allocation78_spill] sm:$0xff] }
 0x3fa   :  { %3112 = vmatpush.bf16.msrb.mxu1 %v9408_v47  ;;  %3138 = vmatpush.bf16.msrb.mxu3 %v9409_v33  ;;  %v9419_v47 = vld [vmem:[#allocation80_spill] sm:$0xff]  ;;  %v9420_v33 = vld [vmem:[#allocation75_spill] sm:$0xff] }
 0x3fc   :  { %3101 = vmatpush.bf16.msrb.mxu0 %v9410_v58  ;;  %3127 = vmatpush.bf16.msrb.mxu2 %v9411_v50  ;;  %v9421_v58 = vld [vmem:[#allocation77_spill] sm:$0xff]  ;;  %v9422_v50 = vld [vmem:[#allocation82_spill] sm:$0xff] }
 0x3fe   :  { %3113 = vmatpush.bf16.msrb.mxu1 %v9412_v57  ;;  %3139 = vmatpush.bf16.msrb.mxu3 %v9413_v26  ;;  %v9423_v57 = vld [vmem:[#allocation84_spill] sm:$0xff]  ;;  %v9424_v26 = vld [vmem:[#allocation79_spill] sm:$0xff] }
 0x400   :  { %3102 = vmatpush.bf16.msrb.mxu0 %v9414_v40  ;;  %3128 = vmatpush.bf16.msrb.mxu2 %v9415_v17  ;;  %v9425_v40 = vld [vmem:[#allocation81_spill] sm:$0xff]  ;;  %v9426_v17 = vld [vmem:[#allocation83_spill] sm:$0xff] }
 0x402   :  { %3114 = vmatpush.bf16.msrb.mxu1 %v9416_v5  ;;  %3140 = vmatpush.bf16.msrb.mxu3 %v9417_v4  ;;  %v9427_v5 = vld [vmem:[#allocation85_spill] sm:$0xff] }
 0x404   :  { %3103 = vmatpush.bf16.msrb.mxu0 %v9418_v34  ;;  %3129 = vmatpush.bf16.msrb.mxu2 %v9419_v47  ;;  %v9428_v47 = vld [vmem:[#allocation104_spill] sm:$0xff] }
 0x406   :  { %3115 = vmatpush.bf16.msrb.mxu1 %v9420_v33  ;;  %3141 = vmatpush.bf16.msrb.mxu3 %v9421_v58  ;;  %v561_v33 = vadd.f32 %v9429_v25, %v9428_v47 }
 0x408   :  { %3104 = vmatpush.bf16.msrb.mxu0 %v9422_v50  ;;  %3130 = vmatpush.bf16.msrb.mxu2 %v9423_v57  ;;  %v2699_v4 = vpop.f32.mrf.mxu0  ;;  %v9430_v57 = vld [vmem:[#allocation110_spill] sm:$0xff] }
 0x40a   :  { %3116 = vmatpush.bf16.msrb.mxu1 %v9424_v26  ;;  %3142 = vmatpush.bf16.msrb.mxu3 %v9425_v40  ;;  %v590_v26 = vadd.f32 %v9431_v8, %v9430_v57 }
 0x40e   :  { %3117 = vmatpush.bf16.msrb.mxu1 %v9426_v17  ;;  %3143 = vmatpush.bf16.msrb.mxu3 %v9427_v5  ;;  %v2712_v34 = vpop.f32.mrf.mxu1  ;;  %v2725_v32 = vpop.f32.mrf.mxu2 }
 0x40f   :  { %v2713_v24 = vadd.f32 %v2712_v34, %v2699_v4  ;;  %v9432_v34 = vld [vmem:[#allocation118_spill] sm:$0xff] }
 0x410   :  { %v2701_v58 = vpop.f32.mrf.mxu0 }
 0x411   :  { %v2898_v20 = vadd.f32 %v2713_v24, %v561_v33  ;;  %v9433_v24 = vld [vmem:[#allocation135_spill] sm:$0xff] }
 0x413   :  { %v5516_v50 = vmul.f32 -1.442695, %v2898_v20  ;;  %v619_v20 = vadd.f32 %v9433_v24, %v9432_v34 }
 0x414   :  { %v2738_v2 = vpop.f32.mrf.mxu3 }
 0x415   :  { %5970 = vpow2.f32 %v5516_v50  ;;  %v2739_v40 = vadd.f32 %v2738_v2, %v2725_v32 }
 0x416   :  { %v2714_v56 = vpop.f32.mrf.mxu1  ;;  %v2727_v17 = vpop.f32.mrf.mxu2 }
 0x417   :  { %v2899_v36 = vadd.f32 %v2739_v40, %v590_v26 }
 0x418   :  { %v2751_v5 = vpop.f32.mrf.mxu0 }
 0x419   :  { %v5517_v49 = vmul.f32 -1.442695, %v2899_v36 }
 0x41b   :  { %v5971_v18 = vpop.eup %5970  ;;  %5972 = vpow2.f32 %v5517_v49 }
 0x41c   :  { %v2912_v29 = vadd.f32 1.0, %v5971_v18  ;;  %v2740_v12 = vpop.f32.mrf.mxu3  ;;  %v9434_v18 = vld [vmem:[#allocation119_spill] sm:$0xff] }
 0x41d   :  { %v9435_v12 = vld [vmem:[#allocation138_spill] sm:$0xff] }
 0x41e   :  { %v2764_v25 = vpop.f32.mrf.mxu1  ;;  %v2777_v4 = vpop.f32.mrf.mxu2  ;;  %5974 = vrcp.f32 %v2912_v29  ;;  %v648_v49 = vadd.f32 %v9435_v12, %v9434_v18  ;;  %v9437_v12 = vld [vmem:[#allocation197_spill] sm:$0xff]  ;;  %vm2919_vm9 = vweird.f32 %v2912_v29 }
 0x41f   :  { %v2765_v33 = vadd.f32 %v2764_v25, %v2751_v5 }
 0x420   :  { %v2753_v58 = vpop.f32.mrf.mxu0 }
 0x421   :  { %v5973_v8 = vpop.eup %5972  ;;  %v2900_v50 = vadd.f32 %v2765_v33, %v619_v20 }
 0x422   :  { %v7710_v2 = vadd.f32 1.0, %v5973_v8 }
 0x423   :  { %v5518_v56 = vmul.f32 -1.442695, %v2900_v50 }
 0x424   :  { %5976 = vrcp.f32 %v7710_v2  ;;  %v2790_v36 = vpop.f32.mrf.mxu3  ;;  %v7713_v17 = vpop.eup %5974  ;;  %vm2934_vm14 = vweird.f32 %v7710_v2 }
 0x425   :  { %5978 = vpow2.f32 %v5518_v56  ;;  %v2791_v40 = vadd.f32 %v2790_v36, %v2777_v4  ;;  %v2915_v5 = vmul.f32 %v7713_v17, %v2912_v29  ;;  %v9436_v36 = vld [vmem:[#allocation188_spill] sm:$0xff]  ;;  %vm2920_vm8 = vweird.f32 %v7713_v17 }
 0x426   :  { %v2766_v32 = vpop.f32.mrf.mxu1  ;;  %v2779_v26 = vpop.f32.mrf.mxu2  ;;  %vm7733_vm10 = vmor %vm2919_vm9, %vm2920_vm8 }
 0x427   :  { %v2901_v24 = vadd.f32 %v2791_v40, %v648_v49  ;;  %v2916_v8 = vsub.f32 1.0, %v2915_v5  ;;  %v677_v49 = vadd.f32 %v9437_v12, %v9436_v36  ;;  %v9439_v12 = vld [vmem:[#allocation199_spill] sm:$0xff] }
 0x428   :  { %v2803_v25 = vpop.f32.mrf.mxu0 }
 0x429   :  { %v5519_v20 = vmul.f32 -1.442695, %v2901_v24  ;;  %v2917_v32 = vmul.f32 %v7713_v17, %v2916_v8 }
 0x42a   :  { %v7718_v33 = vpop.eup %5976 }
 0x42b   :  { %v5979_v58 = vpop.eup %5978  ;;  %5980 = vpow2.f32 %v5519_v20  ;;  %v2930_v57 = vmul.f32 %v7718_v33, %v7710_v2  ;;  %v2923_v20 = vand.u32 2147483647, %v2912_v29  ;;  %v2918_v27 = vadd.f32 %v7713_v17, %v2917_v32 }
 0x42c   :  { %v2950_v50 = vadd.f32 1.0, %v5979_v58  ;;  %v2792_v34 = vpop.f32.mrf.mxu3  ;;  %vm2935_vm12 = vweird.f32 %v7718_v33 }
 0x42d   :  { %v2931_v18 = vsub.f32 1.0, %v2930_v57  ;;  %v2925_v34 = vand.u32 2147483648, %v2912_v29  ;;  %vm7737_vm11 = vcmp.eq.f32.partialorder %v2923_v20, 8.507059e+37  ;;  %v2938_v20 = vand.u32 2147483647, %v7710_v2  ;;  %vm7754_vm0 = vmor %vm2934_vm14, %vm2935_vm12 }
 0x42e   :  { %5982 = vrcp.f32 %v2950_v50  ;;  %v2829_v56 = vpop.f32.mrf.mxu2  ;;  %v2816_v4 = vpop.f32.mrf.mxu1  ;;  %v2963_v0 = vand.u32 2147483648, %v2950_v50  ;;  %vm2957_vm15 = vweird.f32 %v2950_v50 }
 0x42f   :  { %v2817_v40 = vadd.f32 %v2816_v4, %v2803_v25  ;;  %v2932_v8 = vmul.f32 %v7718_v33, %v2931_v18  ;;  %v9438_v4 = vld [vmem:[#allocation190_spill] sm:$0xff]  ;;  %v2926_v36 = vor.u32 1.1754944e-38, %v2925_v34  ;;  %v2922_v18 = vsel %vm7733_vm10, %v7713_v17, %v2918_v27 }
 0x430   :  { %v2805_v26 = vpop.f32.mrf.mxu0  ;;  %v706_v57 = vadd.f32 %v9439_v12, %v9438_v4  ;;  %v2940_v34 = vand.u32 2147483648, %v7710_v2  ;;  %vm2939_vm3 = vcmp.eq.f32.partialorder %v2938_v20, 8.507059e+37  ;;  %v9473_v4 = vld [vmem:[#allocation182_spill] sm:$0xff] }
 0x431   :  { %v5981_v24 = vpop.eup %5980  ;;  %v2902_v5 = vadd.f32 %v2817_v40, %v677_v49  ;;  %v2927_v17 = vsel %vm7737_vm11, %v2926_v36, %v2922_v18 }
 0x432   :  { %v7725_v47 = vadd.f32 1.0, %v5981_v24  ;;  %v2941_v18 = vor.u32 1.1754944e-38, %v2940_v34 }
 0x434   :  { %v5983_v58 = vpop.eup %5982  ;;  %5984 = vrcp.f32 %v7725_v47  ;;  %v2842_v25 = vpop.f32.mrf.mxu3  ;;  %v2978_v36 = vand.u32 2147483648, %v7725_v47  ;;  %vm2972_vm5 = vweird.f32 %v7725_v47 }
 0x435   :  { %v2953_v19 = vmul.f32 %v5983_v58, %v2950_v50  ;;  %5986 = vtanh.f32 %v2902_v5  ;;  %v2843_v26 = vadd.f32 %v2842_v25, %v2829_v56  ;;  %vm2958_vm13 = vweird.f32 %v5983_v58 }
 0x436   :  { %v2831_v49 = vpop.f32.mrf.mxu2  ;;  %v2818_v5 = vpop.f32.mrf.mxu1  ;;  %v2933_v56 = vadd.f32 %v7718_v33, %v2932_v8  ;;  %vm2959_vm1 = vmor %vm2957_vm15, %vm2958_vm13 }
 0x437   :  { %v2954_v40 = vsub.f32 1.0, %v2953_v19  ;;  %v2903_v12 = vadd.f32 %v2843_v26, %v706_v57  ;;  %v2961_v19 = vand.u32 2147483647, %v2950_v50  ;;  %v2964_v26 = vor.u32 1.1754944e-38, %v2963_v0 }
 0x438   :  { %v2937_v50 = vsel %vm7754_vm0, %v7718_v33, %v2933_v56  ;;  %v2976_v0 = vand.u32 2147483647, %v7725_v47  ;;  %v2979_v56 = vor.u32 1.1754944e-38, %v2978_v36  ;;  %v9449_v36 = vld [vmem:[#allocation201_spill] sm:$0xff] }
 0x439   :  { %v2955_v29 = vmul.f32 %v5983_v58, %v2954_v40  ;;  %5988 = vtanh.f32 %v2903_v12  ;;  %vm2962_vm2 = vcmp.eq.f32.partialorder %v2961_v19, 8.507059e+37 }
 0x43a   :  { %v5985_v25 = vpop.eup %5984  ;;  %vm2977_vm7 = vcmp.eq.f32.partialorder %v2976_v0, 8.507059e+37 }
 0x43b   :  { %v5987_v49 = vpop.eup %5986  ;;  %v2968_v27 = vmul.f32 %v5985_v25, %v7725_v47  ;;  %v2956_v57 = vadd.f32 %v5983_v58, %v2955_v29  ;;  %vm2973_vm4 = vweird.f32 %v5985_v25 }
 0x43c   :  { %v3024_v40 = vmul.f32 %v5987_v49, %v2927_v17  ;;  %v2844_v5 = vpop.f32.mrf.mxu3  ;;  %vm2974_vm6 = vmor %vm2972_vm5, %vm2973_vm4 }
 0x43d   :  { %v2969_v24 = vsub.f32 1.0, %v2968_v27  ;;  %v2960_v2 = vsel %vm2959_vm1, %v5983_v58, %v2956_v57  ;;  %v2942_v27 = vsel %vm2939_vm3, %v2941_v18, %v2937_v50 }
 0x43e   :  { %v2965_v32 = vsel %vm2962_vm2, %v2964_v26, %v2960_v2  ;;  %v9447_v2 = vld [vmem:[#allocation200_spill] sm:$0xff] }
 0x43f   :  { %v2970_v12 = vmul.f32 %v5985_v25, %v2969_v24  ;;  %v3022_v29 = vmul.f32 %v2965_v32, %v7547_v55  ;;  %v5989_v49 = vpop.eup %5988  ;;  %v9446_v24 = vld [vmem:[#allocation194_spill] sm:$0xff] }
 0x440   :  { %v3025_v33 = vmul.f32 %v5989_v49, %v2942_v27  ;;  %v735_v50 = vadd.f32 %v9447_v2, %v9446_v24  ;;  %v9472_v24 = vld [vmem:[#allocation180_spill] sm:$0xff] }
 0x441   :  { %v7765_v58 = vadd.f32 %v3024_v40, %v3022_v29  ;;  %v2971_v19 = vadd.f32 %v5985_v25, %v2970_v12  ;;  %v9448_v12 = vld [vmem:[#allocation195_spill] sm:$0xff] }
 0x443   :  { %v2975_v17 = vsel %vm2974_vm6, %v5985_v25, %v2971_v19  ;;  %v764_v25 = vadd.f32 %v9449_v36, %v9448_v12  ;;  %v9471_v12 = vld [vmem:[#allocation171_spill] sm:$0xff] }
 0x444   :  { %v2980_v20 = vsel %vm2977_vm7, %v2979_v56, %v2975_v17 }
 0x445   :  { %v3023_v34 = vmul.f32 %v2980_v20, %v7550_v30 }
 0x447   :  { %v7768_v8 = vadd.f32 %v3025_v33, %v3023_v34 }
 0x448   :  { %v2855_v57 = vpop.f32.mrf.mxu0 }
 0x44e   :  { %v2868_v55 = vpop.f32.mrf.mxu1  ;;  %v2881_v26 = vpop.f32.mrf.mxu2 }
 0x44f   :  { %v2869_v47 = vadd.f32 %v2868_v55, %v2855_v57 }
 0x450   :  { %v2857_v40 = vpop.f32.mrf.mxu0 }
 0x451   :  { %v2904_v5 = vadd.f32 %v2869_v47, %v735_v50 }
 0x453   :  { %v5520_v32 = vmul.f32 -1.442695, %v2904_v5 }
 0x454   :  { %v2894_v18 = vpop.f32.mrf.mxu3 }
 0x455   :  { %5990 = vpow2.f32 %v5520_v32  ;;  %v2895_v29 = vadd.f32 %v2894_v18, %v2881_v26 }
 0x456   :  { %v2870_v0 = vpop.f32.mrf.mxu1  ;;  %v2883_v30 = vpop.f32.mrf.mxu2 }
 0x457   :  { %v2905_v49 = vadd.f32 %v2895_v29, %v764_v25 }
 0x459   :  { %v5521_v27 = vmul.f32 -1.442695, %v2905_v49 }
 0x45b   :  { %v5991_v19 = vpop.eup %5990  ;;  %5992 = vpow2.f32 %v5521_v27 }
 0x45c   :  { %v2990_v33 = vadd.f32 1.0, %v5991_v19  ;;  %v2896_v56 = vpop.f32.mrf.mxu3 }
 0x45e   :  { %5994 = vrcp.f32 %v2990_v33  ;;  %v3003_v2 = vand.u32 2147483648, %v2990_v33  ;;  %v3001_v26 = vand.u32 2147483647, %v2990_v33  ;;  %vm2997_vm9 = vweird.f32 %v2990_v33 }
 0x460   :  { %v3004_v32 = vor.u32 1.1754944e-38, %v3003_v2  ;;  %vm3002_vm11 = vcmp.eq.f32.partialorder %v3001_v26, 8.507059e+37  ;;  %v9452_v26 = vld [vmem:[#allocation148_spill] sm:$0xff] }
 0x461   :  { %v5993_v17 = vpop.eup %5992 }
 0x462   :  { %v2991_v20 = vadd.f32 1.0, %v5993_v17 }
 0x464   :  { %v5995_v34 = vpop.eup %5994  ;;  %5996 = vrcp.f32 %v2991_v20  ;;  %v3018_v0 = vand.u32 2147483648, %v2991_v20  ;;  %v3016_v27 = vand.u32 2147483647, %v2991_v20  ;;  %vm3012_vm13 = vweird.f32 %v2991_v20 }
 0x465   :  { %v2993_v57 = vmul.f32 %v5995_v34, %v2990_v33  ;;  %5998 = vtanh.f32 %v7765_v58  ;;  %vm2998_vm8 = vweird.f32 %v5995_v34 }
 0x466   :  { %vm2999_vm10 = vmor %vm2997_vm9, %vm2998_vm8  ;;  %6000 = vtanh.f32 %v7768_v8  ;;  %v3019_v33 = vor.u32 1.1754944e-38, %v3018_v0  ;;  %vm3017_vm15 = vcmp.eq.f32.partialorder %v3016_v27, 8.507059e+37  ;;  %v9461_v0 = vld [vmem:[#allocation164_spill] sm:$0xff] }
 0x467   :  { %v2994_v55 = vsub.f32 1.0, %v2993_v57  ;;  %v9464_v27 = vld [vmem:[#allocation168_spill] sm:$0xff] }
 0x469   :  { %v2995_v50 = vmul.f32 %v5995_v34, %v2994_v55 }
 0x46a   :  { %v5997_v47 = vpop.eup %5996 }
 0x46b   :  { %v2996_v40 = vadd.f32 %v5995_v34, %v2995_v50  ;;  %v3008_v5 = vmul.f32 %v5997_v47, %v2991_v20  ;;  %v5999_v25 = vpop.eup %5998  ;;  %vm3013_vm12 = vweird.f32 %v5997_v47  ;;  %v9450_v20 = vld [vmem:[#allocation139_spill] sm:$0xff]  ;;  %v9451_v50 = vld [vmem:[#allocation142_spill] sm:$0xff] }
 0x46c   :  { %vm3014_vm14 = vmor %vm3012_vm13, %vm3013_vm12 }
 0x46d   :  { %v3000_v18 = vsel %vm2999_vm10, %v5995_v34, %v2996_v40  ;;  %v3009_v36 = vsub.f32 1.0, %v3008_v5  ;;  %v6001_v34 = vpop.eup %6000  ;;  %v9454_v40 = vld [vmem:[#allocation145_spill] sm:$0xff]  ;;  %v9455_v5 = vld [vmem:[#allocation147_spill] sm:$0xff] }
 0x46e   :  { %v3005_v29 = vsel %vm3002_vm11, %v3004_v32, %v3000_v18  ;;  %v9456_v32 = vld [vmem:[#allocation156_spill] sm:$0xff]  ;;  %v9457_v18 = vld [vmem:[#allocation158_spill] sm:$0xff] }
 0x46f   :  { %v3030_v30 = vmul.f32 %v5999_v25, %v3005_v29  ;;  %v3010_v49 = vmul.f32 %v5997_v47, %v3009_v36  ;;  %v9458_v36 = vld [vmem:[#allocation151_spill] sm:$0xff]  ;;  %v9460_v29 = vld [vmem:[#allocation161_spill] sm:$0xff] }
 0x470   :  { %v9459_v25 = vld [vmem:[#allocation155_spill] sm:$0xff] }
 0x471   :  { %v7776_v19 = vpack.c.bf16 %v3030_v30, %v3030_v30  ;;  %v3011_v56 = vadd.f32 %v5997_v47, %v3010_v49  ;;  %v9462_v30 = vld [vmem:[#allocation157_spill] sm:$0xff]  ;;  %v9463_v49 = vld [vmem:[#allocation159_spill] sm:$0xff] }
 0x473   :  { %v3015_v17 = vsel %vm3014_vm14, %v5997_v47, %v3011_v56  ;;  %3053 = vmatmul.bf16.vlgmr.msra.gmra.mxu0 %v7776_v19  ;;  %3079 = vmatmul.bf16.vlgmr.msra.gmra.mxu2 %v7776_v19  ;;  %v9453_v47 = vld [vmem:[#allocation152_spill] sm:$0xff]  ;;  %v9465_v56 = vld [vmem:[#allocation170_spill] sm:$0xff] }
 0x474   :  { %v3020_v57 = vsel %vm3017_vm15, %v3019_v33, %v3015_v17  ;;  %3149 = vmatpush.bf16.msra.mxu0 %v9112_v63  ;;  %3175 = vmatpush.bf16.msra.mxu2 %v9113_v11  ;;  %v9466_v33 = vld [vmem:[#allocation163_spill] sm:$0xff]  ;;  %v9467_v17 = vld [vmem:[#allocation166_spill] sm:$0xff] }
 0x475   :  { %v3031_v55 = vmul.f32 %v6001_v34, %v3020_v57  ;;  %v9468_v34 = vld [vmem:[#allocation172_spill] sm:$0xff] }
 0x476   :  { %v9469_v57 = vld [vmem:[#allocation176_spill] sm:$0xff] }
 0x477   :  { %v7782_v2 = vpack.c.bf16 %v3031_v55, %v3031_v55  ;;  %v9470_v55 = vld [vmem:[#allocation169_spill] sm:$0xff] }
 0x478   :  { %3150 = vmatpush.bf16.msra.mxu0 %v9114_v46  ;;  %3176 = vmatpush.bf16.msra.mxu2 %v9115_v38 }
 0x479   :  { %3066 = vmatmul.bf16.vlgmr.msra.gmra.mxu1 %v7782_v2  ;;  %3092 = vmatmul.bf16.vlgmr.msra.gmra.mxu3 %v7782_v2 }
 0x47a   :  { %3162 = vmatpush.bf16.msra.mxu1 %v9116_v60  ;;  %3188 = vmatpush.bf16.msra.mxu3 %v9117_v1 }
 0x47c   :  { %3151 = vmatpush.bf16.msra.mxu0 %v9118_v42  ;;  %3177 = vmatpush.bf16.msra.mxu2 %v9119_v22 }
 0x47e   :  { %3163 = vmatpush.bf16.msra.mxu1 %v9120_v14  ;;  %3189 = vmatpush.bf16.msra.mxu3 %v9121_v6 }
 0x480   :  { %3152 = vmatpush.bf16.msra.mxu0 %v9122_v62  ;;  %3178 = vmatpush.bf16.msra.mxu2 %v9123_v52 }
 0x482   :  { %3164 = vmatpush.bf16.msra.mxu1 %v9124_v61  ;;  %3190 = vmatpush.bf16.msra.mxu3 %v9125_v16 }
 0x483   :  { %3105 = vmatmul.bf16.vlgmr.msrb.gmra.mxu0 %v7776_v19  ;;  %3131 = vmatmul.bf16.vlgmr.msrb.gmra.mxu2 %v7776_v19 }
 0x484   :  { %3153 = vmatpush.bf16.msra.mxu0 %v9126_v44  ;;  %3179 = vmatpush.bf16.msra.mxu2 %v9127_v53 }
 0x486   :  { %3165 = vmatpush.bf16.msra.mxu1 %v9128_v10  ;;  %3191 = vmatpush.bf16.msra.mxu3 %v9129_v15 }
 0x488   :  { %3154 = vmatpush.bf16.msra.mxu0 %v9130_v41  ;;  %3180 = vmatpush.bf16.msra.mxu2 %v9131_v31 }
 0x489   :  { %3118 = vmatmul.bf16.vlgmr.msrb.gmra.mxu1 %v7782_v2  ;;  %3144 = vmatmul.bf16.vlgmr.msrb.gmra.mxu3 %v7782_v2 }
 0x48a   :  { %3166 = vmatpush.bf16.msra.mxu1 %v9229_v35  ;;  %3192 = vmatpush.bf16.msra.mxu3 %v9230_v48 }
 0x48c   :  { %3155 = vmatpush.bf16.msra.mxu0 %v9231_v9  ;;  %3181 = vmatpush.bf16.msra.mxu2 %v9232_v45 }
 0x48e   :  { %3167 = vmatpush.bf16.msra.mxu1 %v9233_v13  ;;  %3193 = vmatpush.bf16.msra.mxu3 %v9234_v7 }
 0x490   :  { %3156 = vmatpush.bf16.msra.mxu0 %v9235_v54  ;;  %3182 = vmatpush.bf16.msra.mxu2 %v9236_v59 }
 0x492   :  { %3168 = vmatpush.bf16.msra.mxu1 %v9239_v28  ;;  %3194 = vmatpush.bf16.msra.mxu3 %v9240_v23 }
 0x493   :  { %3157 = vmatmul.bf16.vlgmr.msra.gmra.mxu0 %v7776_v19  ;;  %3183 = vmatmul.bf16.vlgmr.msra.gmra.mxu2 %v7776_v19 }
 0x494   :  { %3201 = vmatpush.bf16.msrb.mxu0 %v9237_v51  ;;  %3227 = vmatpush.bf16.msrb.mxu2 %v9238_v3 }
 0x496   :  { %3169 = vmatpush.bf16.msra.mxu1 %v9243_v37  ;;  %3195 = vmatpush.bf16.msra.mxu3 %v9244_v39 }
 0x498   :  { %3202 = vmatpush.bf16.msrb.mxu0 %v9241_v21  ;;  %3228 = vmatpush.bf16.msrb.mxu2 %v9242_v43 }
 0x499   :  { %3170 = vmatmul.bf16.vlgmr.msra.gmra.mxu1 %v7782_v2  ;;  %3196 = vmatmul.bf16.vlgmr.msra.gmra.mxu3 %v7782_v2 }
 0x49a   :  { %3214 = vmatpush.bf16.msrb.mxu1 %v9450_v20  ;;  %3240 = vmatpush.bf16.msrb.mxu3 %v9451_v50  ;;  %v9551_v50 = vld [vmem:[#allocation203_spill] sm:$0xff] }
 0x49c   :  { %3203 = vmatpush.bf16.msrb.mxu0 %v9452_v26  ;;  %3229 = vmatpush.bf16.msrb.mxu2 %v9453_v47 }
 0x49e   :  { %3215 = vmatpush.bf16.msrb.mxu1 %v9454_v40  ;;  %3241 = vmatpush.bf16.msrb.mxu3 %v9455_v5 }
 0x4a0   :  { %3204 = vmatpush.bf16.msrb.mxu0 %v9456_v32  ;;  %3230 = vmatpush.bf16.msrb.mxu2 %v9457_v18 }
 0x4a2   :  { %3216 = vmatpush.bf16.msrb.mxu1 %v9458_v36  ;;  %3242 = vmatpush.bf16.msrb.mxu3 %v9459_v25 }
 0x4a4   :  { %3205 = vmatpush.bf16.msrb.mxu0 %v9460_v29  ;;  %3231 = vmatpush.bf16.msrb.mxu2 %v9461_v0 }
 0x4a6   :  { %3217 = vmatpush.bf16.msrb.mxu1 %v9462_v30  ;;  %3243 = vmatpush.bf16.msrb.mxu3 %v9463_v49  ;;  %v9474_v49 = vld [vmem:[#allocation22_spill] sm:$0xff] }
 0x4a8   :  { %3206 = vmatpush.bf16.msrb.mxu0 %v9464_v27  ;;  %3232 = vmatpush.bf16.msrb.mxu2 %v9465_v56  ;;  %v9475_v27 = vld [vmem:[#allocation24_spill] sm:$0xff]  ;;  %v9476_v56 = vld [vmem:[#allocation175_spill] sm:$0xff] }
 0x4aa   :  { %3218 = vmatpush.bf16.msrb.mxu1 %v9466_v33  ;;  %3244 = vmatpush.bf16.msrb.mxu3 %v9467_v17  ;;  %v9477_v33 = vld [vmem:[#allocation179_spill] sm:$0xff] }
 0x4ac   :  { %3207 = vmatpush.bf16.msrb.mxu0 %v9468_v34  ;;  %3233 = vmatpush.bf16.msrb.mxu2 %v9469_v57  ;;  %v9478_v57 = vld [vmem:[#allocation26_spill] sm:$0xff] }
 0x4ae   :  { %3219 = vmatpush.bf16.msrb.mxu1 %v9470_v55  ;;  %3245 = vmatpush.bf16.msrb.mxu3 %v9471_v12  ;;  %v9479_v55 = vld [vmem:[#allocation28_spill] sm:$0xff]  ;;  %v9480_v12 = vld [vmem:[#allocation181_spill] sm:$0xff] }
 0x4b0   :  { %3208 = vmatpush.bf16.msrb.mxu0 %v9472_v24  ;;  %3234 = vmatpush.bf16.msrb.mxu2 %v9473_v4  ;;  %v9481_v24 = vld [vmem:[#allocation183_spill] sm:$0xff] }
 0x4b1   :  { %v9482_v4 = vld [vmem:[#allocation23_spill] sm:$0xff] }
 0x4b2   :  { %3220 = vmatpush.bf16.msrb.mxu1 %v9476_v56  ;;  %3246 = vmatpush.bf16.msrb.mxu3 %v9477_v33  ;;  %v9484_v33 = vld [vmem:[#allocation30_spill] sm:$0xff]  ;;  %v9485_v56 = vld [vmem:[#allocation32_spill] sm:$0xff] }
 0x4b3   :  { %3209 = vmatmul.bf16.vlgmr.msrb.gmra.mxu0 %v7776_v19  ;;  %3235 = vmatmul.bf16.vlgmr.msrb.gmra.mxu2 %v7776_v19  ;;  %v9486_v19 = vld [vmem:[#allocation27_spill] sm:$0xff] }
 0x4b4   :  { %3400 = vmatpush.bf16.msra.mxu0 %v9474_v49  ;;  %3426 = vmatpush.bf16.msra.mxu2 %v9475_v27  ;;  %v9483_v49 = vld [vmem:[#allocation25_spill] sm:$0xff]  ;;  %v9493_v27 = vld [vmem:[#allocation40_spill] sm:$0xff] }
 0x4b6   :  { %3221 = vmatpush.bf16.msrb.mxu1 %v9480_v12  ;;  %3247 = vmatpush.bf16.msrb.mxu3 %v9481_v24  ;;  %v9489_v12 = vld [vmem:[#allocation36_spill] sm:$0xff]  ;;  %v9490_v24 = vld [vmem:[#allocation31_spill] sm:$0xff] }
 0x4b8   :  { %3401 = vmatpush.bf16.msra.mxu0 %v9478_v57  ;;  %3427 = vmatpush.bf16.msra.mxu2 %v9479_v55  ;;  %v9487_v57 = vld [vmem:[#allocation29_spill] sm:$0xff]  ;;  %v9488_v55 = vld [vmem:[#allocation34_spill] sm:$0xff] }
 0x4b9   :  { %3222 = vmatmul.bf16.vlgmr.msrb.gmra.mxu1 %v7782_v2  ;;  %3248 = vmatmul.bf16.vlgmr.msrb.gmra.mxu3 %v7782_v2  ;;  %v9494_v2 = vld [vmem:[#allocation35_spill] sm:$0xff] }
 0x4ba   :  { %3413 = vmatpush.bf16.msra.mxu1 %v9482_v4  ;;  %3439 = vmatpush.bf16.msra.mxu3 %v9483_v49  ;;  %v9491_v4 = vld [vmem:[#allocation33_spill] sm:$0xff]  ;;  %v9492_v49 = vld [vmem:[#allocation38_spill] sm:$0xff] }
 0x4bc   :  { %3402 = vmatpush.bf16.msra.mxu0 %v9484_v33  ;;  %3428 = vmatpush.bf16.msra.mxu2 %v9485_v56  ;;  %v9495_v33 = vld [vmem:[#allocation37_spill] sm:$0xff]  ;;  %v9496_v56 = vld [vmem:[#allocation42_spill] sm:$0xff] }
 0x4be   :  { %3414 = vmatpush.bf16.msra.mxu1 %v9486_v19  ;;  %3440 = vmatpush.bf16.msra.mxu3 %v9487_v57  ;;  %v9497_v19 = vld [vmem:[#allocation44_spill] sm:$0xff]  ;;  %v9498_v57 = vld [vmem:[#allocation39_spill] sm:$0xff] }
 0x4c0   :  { %3403 = vmatpush.bf16.msra.mxu0 %v9488_v55  ;;  %3429 = vmatpush.bf16.msra.mxu2 %v9489_v12  ;;  %v9499_v55 = vld [vmem:[#allocation41_spill] sm:$0xff]  ;;  %v9500_v12 = vld [vmem:[#allocation46_spill] sm:$0xff] }
 0x4c2   :  { %3415 = vmatpush.bf16.msra.mxu1 %v9490_v24  ;;  %3441 = vmatpush.bf16.msra.mxu3 %v9491_v4  ;;  %v9501_v24 = vld [vmem:[#allocation48_spill] sm:$0xff]  ;;  %v9502_v4 = vld [vmem:[#allocation43_spill] sm:$0xff] }
 0x4c4   :  { %3404 = vmatpush.bf16.msra.mxu0 %v9492_v49  ;;  %3430 = vmatpush.bf16.msra.mxu2 %v9493_v27  ;;  %v9503_v49 = vld [vmem:[#allocation45_spill] sm:$0xff]  ;;  %v9504_v27 = vld [vmem:[#allocation50_spill] sm:$0xff] }
 0x4c6   :  { %3416 = vmatpush.bf16.msra.mxu1 %v9494_v2  ;;  %3442 = vmatpush.bf16.msra.mxu3 %v9495_v33  ;;  %v9505_v2 = vld [vmem:[#allocation52_spill] sm:$0xff]  ;;  %v9506_v33 = vld [vmem:[#allocation54_spill] sm:$0xff] }
 0x4c8   :  { %3405 = vmatpush.bf16.msra.mxu0 %v9496_v56  ;;  %3431 = vmatpush.bf16.msra.mxu2 %v9497_v19  ;;  %v9507_v56 = vld [vmem:[#allocation56_spill] sm:$0xff]  ;;  %v9508_v19 = vld [vmem:[#allocation47_spill] sm:$0xff] }
 0x4ca   :  { %3417 = vmatpush.bf16.msra.mxu1 %v9498_v57  ;;  %3443 = vmatpush.bf16.msra.mxu3 %v9499_v55  ;;  %v9509_v57 = vld [vmem:[#allocation49_spill] sm:$0xff]  ;;  %v9510_v55 = vld [vmem:[#allocation58_spill] sm:$0xff] }
 0x4cc   :  { %3406 = vmatpush.bf16.msra.mxu0 %v9500_v12  ;;  %3432 = vmatpush.bf16.msra.mxu2 %v9501_v24  ;;  %v9511_v12 = vld [vmem:[#allocation60_spill] sm:$0xff]  ;;  %v9512_v24 = vld [vmem:[#allocation51_spill] sm:$0xff] }
 0x4ce   :  { %3418 = vmatpush.bf16.msra.mxu1 %v9502_v4  ;;  %3444 = vmatpush.bf16.msra.mxu3 %v9503_v49  ;;  %v9513_v4 = vld [vmem:[#allocation53_spill] sm:$0xff]  ;;  %v9514_v49 = vld [vmem:[#allocation55_spill] sm:$0xff] }
 0x4d0   :  { %3407 = vmatpush.bf16.msra.mxu0 %v9504_v27  ;;  %3433 = vmatpush.bf16.msra.mxu2 %v9505_v2  ;;  %v9515_v27 = vld [vmem:[#allocation57_spill] sm:$0xff]  ;;  %v9516_v2 = vld [vmem:[#allocation62_spill] sm:$0xff] }
 0x4d2   :  { %3419 = vmatpush.bf16.msra.mxu1 %v9508_v19  ;;  %3445 = vmatpush.bf16.msra.mxu3 %v9509_v57  ;;  %v9519_v19 = vld [vmem:[#allocation61_spill] sm:$0xff]  ;;  %v9520_v57 = vld [vmem:[#allocation66_spill] sm:$0xff] }
 0x4d4   :  { %3452 = vmatpush.bf16.msrb.mxu0 %v9506_v33  ;;  %3478 = vmatpush.bf16.msrb.mxu2 %v9507_v56  ;;  %v9517_v33 = vld [vmem:[#allocation64_spill] sm:$0xff]  ;;  %v9518_v56 = vld [vmem:[#allocation59_spill] sm:$0xff] }
 0x4d6   :  { %3420 = vmatpush.bf16.msra.mxu1 %v9512_v24  ;;  %3446 = vmatpush.bf16.msra.mxu3 %v9513_v4  ;;  %v9523_v24 = vld [vmem:[#allocation65_spill] sm:$0xff]  ;;  %v9524_v4 = vld [vmem:[#allocation70_spill] sm:$0xff] }
 0x4d8   :  { %3453 = vmatpush.bf16.msrb.mxu0 %v9510_v55  ;;  %3479 = vmatpush.bf16.msrb.mxu2 %v9511_v12  ;;  %v9521_v55 = vld [vmem:[#allocation68_spill] sm:$0xff]  ;;  %v9522_v12 = vld [vmem:[#allocation63_spill] sm:$0xff] }
 0x4da   :  { %3465 = vmatpush.bf16.msrb.mxu1 %v9514_v49  ;;  %3491 = vmatpush.bf16.msrb.mxu3 %v9515_v27  ;;  %v9525_v49 = vld [vmem:[#allocation72_spill] sm:$0xff]  ;;  %v9526_v27 = vld [vmem:[#allocation67_spill] sm:$0xff] }
 0x4dc   :  { %3454 = vmatpush.bf16.msrb.mxu0 %v9516_v2  ;;  %3480 = vmatpush.bf16.msrb.mxu2 %v9517_v33  ;;  %v9527_v2 = vld [vmem:[#allocation69_spill] sm:$0xff]  ;;  %v9528_v33 = vld [vmem:[#allocation74_spill] sm:$0xff] }
 0x4de   :  { %3466 = vmatpush.bf16.msrb.mxu1 %v9518_v56  ;;  %3492 = vmatpush.bf16.msrb.mxu3 %v9519_v19  ;;  %v9529_v56 = vld [vmem:[#allocation76_spill] sm:$0xff]  ;;  %v9530_v19 = vld [vmem:[#allocation71_spill] sm:$0xff] }
 0x4e0   :  { %3455 = vmatpush.bf16.msrb.mxu0 %v9520_v57  ;;  %3481 = vmatpush.bf16.msrb.mxu2 %v9521_v55  ;;  %v9531_v57 = vld [vmem:[#allocation73_spill] sm:$0xff]  ;;  %v9532_v55 = vld [vmem:[#allocation78_spill] sm:$0xff] }
 0x4e2   :  { %3467 = vmatpush.bf16.msrb.mxu1 %v9522_v12  ;;  %3493 = vmatpush.bf16.msrb.mxu3 %v9523_v24  ;;  %v9533_v12 = vld [vmem:[#allocation80_spill] sm:$0xff]  ;;  %v9534_v24 = vld [vmem:[#allocation75_spill] sm:$0xff] }
 0x4e4   :  { %3456 = vmatpush.bf16.msrb.mxu0 %v9524_v4  ;;  %3482 = vmatpush.bf16.msrb.mxu2 %v9525_v49  ;;  %v9535_v4 = vld [vmem:[#allocation77_spill] sm:$0xff]  ;;  %v9536_v49 = vld [vmem:[#allocation82_spill] sm:$0xff] }
 0x4e6   :  { %3468 = vmatpush.bf16.msrb.mxu1 %v9526_v27  ;;  %3494 = vmatpush.bf16.msrb.mxu3 %v9527_v2  ;;  %v9537_v27 = vld [vmem:[#allocation84_spill] sm:$0xff]  ;;  %v9538_v2 = vld [vmem:[#allocation79_spill] sm:$0xff] }
 0x4e8   :  { %3457 = vmatpush.bf16.msrb.mxu0 %v9528_v33  ;;  %3483 = vmatpush.bf16.msrb.mxu2 %v9529_v56  ;;  %v9539_v33 = vld [vmem:[#allocation81_spill] sm:$0xff]  ;;  %v9540_v56 = vld [vmem:[#allocation83_spill] sm:$0xff] }
 0x4ea   :  { %3469 = vmatpush.bf16.msrb.mxu1 %v9530_v19  ;;  %3495 = vmatpush.bf16.msrb.mxu3 %v9531_v57  ;;  %v9541_v19 = vld [vmem:[#allocation85_spill] sm:$0xff] }
 0x4ec   :  { %3458 = vmatpush.bf16.msrb.mxu0 %v9532_v55  ;;  %3484 = vmatpush.bf16.msrb.mxu2 %v9533_v12 }
 0x4ee   :  { %3470 = vmatpush.bf16.msrb.mxu1 %v9534_v24  ;;  %3496 = vmatpush.bf16.msrb.mxu3 %v9535_v4  ;;  %v9542_v24 = vld [vmem:[#allocation141_spill] sm:$0xff] }
 0x4f0   :  { %3459 = vmatpush.bf16.msrb.mxu0 %v9536_v49  ;;  %3485 = vmatpush.bf16.msrb.mxu2 %v9537_v27  ;;  %v3054_v57 = vpop.f32.mrf.mxu0 }
 0x4f2   :  { %3471 = vmatpush.bf16.msrb.mxu1 %v9538_v2  ;;  %3497 = vmatpush.bf16.msrb.mxu3 %v9539_v33  ;;  %v9543_v2 = vld [vmem:[#allocation143_spill] sm:$0xff] }
 0x4f6   :  { %3472 = vmatpush.bf16.msrb.mxu1 %v9540_v56  ;;  %3498 = vmatpush.bf16.msrb.mxu3 %v9541_v19  ;;  %v3067_v55 = vpop.f32.mrf.mxu1  ;;  %v3080_v34 = vpop.f32.mrf.mxu2 }
 0x4f7   :  { %v3068_v12 = vadd.f32 %v3067_v55, %v3054_v57 }
 0x4f8   :  { %v3056_v17 = vpop.f32.mrf.mxu0 }
 0x4f9   :  { %v3253_v30 = vadd.f32 %v3068_v12, %v9542_v24  ;;  %v9544_v12 = vld [vmem:[#allocation149_spill] sm:$0xff] }
 0x4fb   :  { %v5522_v4 = vmul.f32 -1.442695, %v3253_v30 }
 0x4fc   :  { %v3093_v0 = vpop.f32.mrf.mxu3 }
 0x4fd   :  { %6002 = vpow2.f32 %v5522_v4  ;;  %v3094_v49 = vadd.f32 %v3093_v0, %v3080_v34 }
 0x4fe   :  { %v3069_v27 = vpop.f32.mrf.mxu1  ;;  %v3082_v29 = vpop.f32.mrf.mxu2 }
 0x4ff   :  { %v3254_v25 = vadd.f32 %v3094_v49, %v9543_v2 }
 0x500   :  { %v3106_v33 = vpop.f32.mrf.mxu0 }
 0x501   :  { %v5523_v36 = vmul.f32 -1.442695, %v3254_v25 }
 0x503   :  { %v6003_v56 = vpop.eup %6002  ;;  %6004 = vpow2.f32 %v5523_v36 }
 0x504   :  { %v3267_v19 = vadd.f32 1.0, %v6003_v56  ;;  %v3095_v18 = vpop.f32.mrf.mxu3 }
 0x505   :  { %v9545_v18 = vld [vmem:[#allocation153_spill] sm:$0xff] }
 0x506   :  { %v3119_v32 = vpop.f32.mrf.mxu1  ;;  %v3132_v5 = vpop.f32.mrf.mxu2  ;;  %6006 = vrcp.f32 %v3267_v19  ;;  %v3278_v47 = vand.u32 2147483647, %v3267_v19  ;;  %vm3274_vm1 = vweird.f32 %v3267_v19 }
 0x507   :  { %v3120_v17 = vadd.f32 %v3119_v32, %v3106_v33 }
 0x508   :  { %v3108_v57 = vpop.f32.mrf.mxu0  ;;  %vm7944_vm3 = vcmp.eq.f32.partialorder %v3278_v47, 8.507059e+37 }
 0x509   :  { %v6005_v24 = vpop.eup %6004  ;;  %v3255_v30 = vadd.f32 %v3120_v17, %v9544_v12 }
 0x50a   :  { %v7927_v4 = vadd.f32 1.0, %v6005_v24 }
 0x50b   :  { %v5524_v0 = vmul.f32 -1.442695, %v3255_v30 }
 0x50c   :  { %6008 = vrcp.f32 %v7927_v4  ;;  %v3145_v29 = vpop.f32.mrf.mxu3  ;;  %v6007_v49 = vpop.eup %6006  ;;  %vm3289_vm6 = vweird.f32 %v7927_v4  ;;  %v3293_v47 = vand.u32 2147483647, %v7927_v4 }
 0x50d   :  { %6010 = vpow2.f32 %v5524_v0  ;;  %v3146_v25 = vadd.f32 %v3145_v29, %v3132_v5  ;;  %v3270_v34 = vmul.f32 %v6007_v49, %v3267_v19  ;;  %vm3275_vm0 = vweird.f32 %v6007_v49 }
 0x50e   :  { %v3121_v36 = vpop.f32.mrf.mxu1  ;;  %v3134_v27 = vpop.f32.mrf.mxu2  ;;  %vm7940_vm2 = vmor %vm3274_vm1, %vm3275_vm0  ;;  %vm3294_vm11 = vcmp.eq.f32.partialorder %v3293_v47, 8.507059e+37 }
 0x50f   :  { %v3256_v56 = vadd.f32 %v3146_v25, %v9545_v18  ;;  %v3271_v17 = vsub.f32 1.0, %v3270_v34 }
 0x510   :  { %v3158_v55 = vpop.f32.mrf.mxu0 }
 0x511   :  { %v5525_v32 = vmul.f32 -1.442695, %v3256_v56  ;;  %v3272_v29 = vmul.f32 %v6007_v49, %v3271_v17  ;;  %v9546_v56 = vld [vmem:[#allocation202_spill] sm:$0xff] }
 0x512   :  { %v7931_v33 = vpop.eup %6008 }
 0x513   :  { %v6011_v2 = vpop.eup %6010  ;;  %6012 = vpow2.f32 %v5525_v32  ;;  %v3285_v12 = vmul.f32 %v7931_v33, %v7927_v4  ;;  %v3280_v32 = vand.u32 2147483648, %v3267_v19  ;;  %vm3290_vm4 = vweird.f32 %v7931_v33 }
 0x514   :  { %v3305_v57 = vadd.f32 1.0, %v6011_v2  ;;  %v3147_v24 = vpop.f32.mrf.mxu3  ;;  %v3273_v2 = vadd.f32 %v6007_v49, %v3272_v29  ;;  %vm7961_vm8 = vmor %vm3289_vm6, %vm3290_vm4 }
 0x515   :  { %v3286_v27 = vsub.f32 1.0, %v3285_v12 }
 0x516   :  { %6014 = vrcp.f32 %v3305_v57  ;;  %v3184_v30 = vpop.f32.mrf.mxu2  ;;  %v3171_v5 = vpop.f32.mrf.mxu1  ;;  %v3316_v19 = vand.u32 2147483647, %v3305_v57  ;;  %vm3312_vm7 = vweird.f32 %v3305_v57 }
 0x517   :  { %v3172_v0 = vadd.f32 %v3171_v5, %v3158_v55  ;;  %v3287_v55 = vmul.f32 %v7931_v33, %v3286_v27 }
 0x518   :  { %v3160_v36 = vpop.f32.mrf.mxu0  ;;  %vm3317_vm10 = vcmp.eq.f32.partialorder %v3316_v19, 8.507059e+37 }
 0x519   :  { %v6013_v25 = vpop.eup %6012  ;;  %v3257_v40 = vadd.f32 %v3172_v0, %v9546_v56  ;;  %v3318_v56 = vand.u32 2147483648, %v3305_v57 }
 0x51a   :  { %v7935_v18 = vadd.f32 1.0, %v6013_v25  ;;  %v3281_v25 = vor.u32 1.1754944e-38, %v3280_v32  ;;  %v3295_v32 = vand.u32 2147483648, %v7927_v4 }
 0x51c   :  { %v6015_v34 = vpop.eup %6014  ;;  %6016 = vrcp.f32 %v7935_v18  ;;  %v3197_v26 = vpop.f32.mrf.mxu3  ;;  %v3333_v0 = vand.u32 2147483648, %v7935_v18  ;;  %vm3327_vm13 = vweird.f32 %v7935_v18 }
 0x51d   :  { %v3308_v24 = vmul.f32 %v6015_v34, %v3305_v57  ;;  %6018 = vtanh.f32 %v3257_v40  ;;  %v3198_v17 = vadd.f32 %v3197_v26, %v3184_v30  ;;  %v3277_v40 = vsel %vm7940_vm2, %v6007_v49, %v3273_v2 }
 0x51e   :  { %v3186_v5 = vpop.f32.mrf.mxu2  ;;  %v3173_v29 = vpop.f32.mrf.mxu1  ;;  %vm3313_vm5 = vweird.f32 %v6015_v34  ;;  %v3288_v30 = vadd.f32 %v7931_v33, %v3287_v55 }
 0x51f   :  { %v3309_v12 = vsub.f32 1.0, %v3308_v24  ;;  %v3258_v27 = vadd.f32 %v3198_v17, %v9551_v50  ;;  %v3282_v50 = vsel %vm7944_vm3, %v3281_v25, %v3277_v40  ;;  %vm3314_vm9 = vmor %vm3312_vm7, %vm3313_vm5  ;;  %v3319_v17 = vor.u32 1.1754944e-38, %v3318_v56 }
 0x520   :  { %v3292_v57 = vsel %vm7961_vm8, %v7931_v33, %v3288_v30  ;;  %v3296_v40 = vor.u32 1.1754944e-38, %v3295_v32  ;;  %v3331_v56 = vand.u32 2147483647, %v7935_v18  ;;  %v3334_v30 = vor.u32 1.1754944e-38, %v3333_v0 }
 0x521   :  { %v3310_v26 = vmul.f32 %v6015_v34, %v3309_v12  ;;  %6020 = vtanh.f32 %v3258_v27 }
 0x522   :  { %v6017_v24 = vpop.eup %6016  ;;  %vm3332_vm15 = vcmp.eq.f32.partialorder %v3331_v56, 8.507059e+37 }
 0x523   :  { %v6019_v5 = vpop.eup %6018  ;;  %v3323_v49 = vmul.f32 %v6017_v24, %v7935_v18  ;;  %v3311_v2 = vadd.f32 %v6015_v34, %v3310_v26  ;;  %vm3328_vm12 = vweird.f32 %v6017_v24 }
 0x524   :  { %v3379_v12 = vmul.f32 %v6019_v5, %v3282_v50  ;;  %v3199_v29 = vpop.f32.mrf.mxu3  ;;  %vm3329_vm14 = vmor %vm3327_vm13, %vm3328_vm12 }
 0x525   :  { %v3324_v36 = vsub.f32 1.0, %v3323_v49  ;;  %v3315_v4 = vsel %vm3314_vm9, %v6015_v34, %v3311_v2  ;;  %v3297_v49 = vsel %vm3294_vm11, %v3296_v40, %v3292_v57  ;;  %v9554_v57 = vld [vmem:[#allocation204_spill] sm:$0xff] }
 0x526   :  { %v3320_v25 = vsel %vm3317_vm10, %v3319_v17, %v3315_v4 }
 0x527   :  { %v3325_v27 = vmul.f32 %v6017_v24, %v3324_v36  ;;  %v3377_v26 = vmul.f32 %v3320_v25, %v7765_v58  ;;  %v6021_v5 = vpop.eup %6020 }
 0x528   :  { %v3380_v33 = vmul.f32 %v6021_v5, %v3297_v49 }
 0x529   :  { %v7972_v34 = vadd.f32 %v3379_v12, %v3377_v26  ;;  %v3326_v19 = vadd.f32 %v6017_v24, %v3325_v27 }
 0x52b   :  { %v3330_v50 = vsel %vm3329_vm14, %v6017_v24, %v3326_v19  ;;  %v9555_v24 = vld [vmem:[#allocation206_spill] sm:$0xff] }
 0x52c   :  { %v3335_v47 = vsel %vm3332_vm15, %v3334_v30, %v3330_v50 }
 0x52d   :  { %v3378_v32 = vmul.f32 %v3335_v47, %v7768_v8 }
 0x52f   :  { %v7975_v55 = vadd.f32 %v3380_v33, %v3378_v32 }
 0x530   :  { %v3210_v2 = vpop.f32.mrf.mxu0 }
 0x536   :  { %v3223_v58 = vpop.f32.mrf.mxu1  ;;  %v3236_v17 = vpop.f32.mrf.mxu2 }
 0x537   :  { %v3224_v36 = vadd.f32 %v3223_v58, %v3210_v2 }
 0x538   :  { %v3212_v4 = vpop.f32.mrf.mxu0 }
 0x539   :  { %v3259_v18 = vadd.f32 %v3224_v36, %v9554_v57 }
 0x53b   :  { %v5526_v12 = vmul.f32 -1.442695, %v3259_v18 }
 0x53c   :  { %v3249_v29 = vpop.f32.mrf.mxu3 }
 0x53d   :  { %6022 = vpow2.f32 %v5526_v12  ;;  %v3250_v25 = vadd.f32 %v3249_v29, %v3236_v17 }
 0x53e   :  { %v3225_v40 = vpop.f32.mrf.mxu1  ;;  %v3238_v0 = vpop.f32.mrf.mxu2 }
 0x53f   :  { %v3260_v27 = vadd.f32 %v3250_v25, %v9555_v24 }
 0x541   :  { %v5527_v26 = vmul.f32 -1.442695, %v3260_v27 }
 0x543   :  { %v6023_v56 = vpop.eup %6022  ;;  %6024 = vpow2.f32 %v5527_v26 }
 0x544   :  { %v3345_v8 = vadd.f32 1.0, %v6023_v56  ;;  %v3251_v5 = vpop.f32.mrf.mxu3 }
 0x546   :  { %6026 = vrcp.f32 %v3345_v8  ;;  %v3358_v47 = vand.u32 2147483648, %v3345_v8  ;;  %v3356_v2 = vand.u32 2147483647, %v3345_v8  ;;  %vm3352_vm1 = vweird.f32 %v3345_v8 }
 0x548   :  { %v3359_v4 = vor.u32 1.1754944e-38, %v3358_v47  ;;  %vm3357_vm3 = vcmp.eq.f32.partialorder %v3356_v2, 8.507059e+37  ;;  %v9558_v47 = vld [vmem:[#allocation152_spill] sm:$0xff]  ;;  %v9560_v2 = vld [vmem:[#allocation147_spill] sm:$0xff] }
 0x549   :  { %v6025_v49 = vpop.eup %6024 }
 0x54a   :  { %v3346_v19 = vadd.f32 1.0, %v6025_v49 }
 0x54c   :  { %v6027_v33 = vpop.eup %6026  ;;  %6028 = vrcp.f32 %v3346_v19  ;;  %v3373_v25 = vand.u32 2147483648, %v3346_v19  ;;  %v3371_v24 = vand.u32 2147483647, %v3346_v19  ;;  %vm3367_vm5 = vweird.f32 %v3346_v19 }
 0x54d   :  { %v3348_v30 = vmul.f32 %v6027_v33, %v3345_v8  ;;  %6030 = vtanh.f32 %v7972_v34  ;;  %vm3353_vm0 = vweird.f32 %v6027_v33 }
 0x54e   :  { %vm3354_vm2 = vmor %vm3352_vm1, %vm3353_vm0  ;;  %6032 = vtanh.f32 %v7975_v55  ;;  %v3374_v56 = vor.u32 1.1754944e-38, %v3373_v25  ;;  %vm3372_vm7 = vcmp.eq.f32.partialorder %v3371_v24, 8.507059e+37  ;;  %v9569_v25 = vld [vmem:[#allocation168_spill] sm:$0xff]  ;;  %v9572_v24 = vld [vmem:[#allocation166_spill] sm:$0xff] }
 0x54f   :  { %v3349_v50 = vsub.f32 1.0, %v3348_v30 }
 0x551   :  { %v3350_v32 = vmul.f32 %v6027_v33, %v3349_v50  ;;  %v9557_v50 = vld [vmem:[#allocation148_spill] sm:$0xff] }
 0x552   :  { %v6029_v58 = vpop.eup %6028 }
 0x553   :  { %v3351_v17 = vadd.f32 %v6027_v33, %v3350_v32  ;;  %v3363_v36 = vmul.f32 %v6029_v58, %v3346_v19  ;;  %v6031_v12 = vpop.eup %6030  ;;  %vm3368_vm4 = vweird.f32 %v6029_v58  ;;  %v9556_v19 = vld [vmem:[#allocation142_spill] sm:$0xff]  ;;  %v9559_v32 = vld [vmem:[#allocation145_spill] sm:$0xff] }
 0x554   :  { %vm3369_vm6 = vmor %vm3367_vm5, %vm3368_vm4  ;;  %v6033_v5 = vpop.eup %6032 }
 0x555   :  { %v3355_v57 = vsel %vm3354_vm2, %v6027_v33, %v3351_v17  ;;  %v3364_v18 = vsub.f32 1.0, %v3363_v36  ;;  %v9562_v17 = vld [vmem:[#allocation158_spill] sm:$0xff]  ;;  %v9563_v36 = vld [vmem:[#allocation151_spill] sm:$0xff] }
 0x556   :  { %v3360_v29 = vsel %vm3357_vm3, %v3359_v4, %v3355_v57  ;;  %v9564_v4 = vld [vmem:[#allocation155_spill] sm:$0xff]  ;;  %v9565_v57 = vld [vmem:[#allocation161_spill] sm:$0xff] }
 0x557   :  { %v3385_v40 = vmul.f32 %v6031_v12, %v3360_v29  ;;  %v3365_v0 = vmul.f32 %v6029_v58, %v3364_v18  ;;  %v9566_v18 = vld [vmem:[#allocation164_spill] sm:$0xff]  ;;  %v9567_v12 = vld [vmem:[#allocation157_spill] sm:$0xff]  ;;  %v9568_v29 = vld [vmem:[#allocation159_spill] sm:$0xff] }
 0x559   :  { %v7981_v27 = vpack.c.bf16 %v3385_v40, %v3385_v40  ;;  %v3366_v26 = vadd.f32 %v6029_v58, %v3365_v0  ;;  %v9570_v40 = vld [vmem:[#allocation170_spill] sm:$0xff]  ;;  %v9571_v0 = vld [vmem:[#allocation163_spill] sm:$0xff] }
 0x55b   :  { %v3370_v8 = vsel %vm3369_vm6, %v6029_v58, %v3366_v26  ;;  %3408 = vmatmul.bf16.vlgmr.msra.gmra.mxu0 %v7981_v27  ;;  %3434 = vmatmul.bf16.vlgmr.msra.gmra.mxu2 %v7981_v27  ;;  %v9561_v58 = vld [vmem:[#allocation156_spill] sm:$0xff] }
 0x55c   :  { %v3375_v49 = vsel %vm3372_vm7, %v3374_v56, %v3370_v8  ;;  %3504 = vmatpush.bf16.msra.mxu0 %v9112_v63  ;;  %3530 = vmatpush.bf16.msra.mxu2 %v9113_v11  ;;  %v9573_v26 = vld [vmem:[#allocation172_spill] sm:$0xff]  ;;  %v9575_v8 = vld [vmem:[#allocation169_spill] sm:$0xff] }
 0x55d   :  { %v3386_v33 = vmul.f32 %v6033_v5, %v3375_v49  ;;  %v9574_v56 = vld [vmem:[#allocation176_spill] sm:$0xff]  ;;  %v9576_v5 = vld [vmem:[#allocation171_spill] sm:$0xff] }
 0x55e   :  { %v9577_v49 = vld [vmem:[#allocation180_spill] sm:$0xff] }
 0x55f   :  { %v7987_v30 = vpack.c.bf16 %v3386_v33, %v3386_v33  ;;  %v9578_v33 = vld [vmem:[#allocation182_spill] sm:$0xff] }
 0x560   :  { %3505 = vmatpush.bf16.msra.mxu0 %v9114_v46  ;;  %3531 = vmatpush.bf16.msra.mxu2 %v9115_v38 }
 0x561   :  { %3421 = vmatmul.bf16.vlgmr.msra.gmra.mxu1 %v7987_v30  ;;  %3447 = vmatmul.bf16.vlgmr.msra.gmra.mxu3 %v7987_v30 }
 0x562   :  { %3517 = vmatpush.bf16.msra.mxu1 %v9116_v60  ;;  %3543 = vmatpush.bf16.msra.mxu3 %v9117_v1 }
 0x564   :  { %3506 = vmatpush.bf16.msra.mxu0 %v9118_v42  ;;  %3532 = vmatpush.bf16.msra.mxu2 %v9119_v22 }
 0x566   :  { %3518 = vmatpush.bf16.msra.mxu1 %v9120_v14  ;;  %3544 = vmatpush.bf16.msra.mxu3 %v9121_v6 }
 0x568   :  { %3507 = vmatpush.bf16.msra.mxu0 %v9122_v62  ;;  %3533 = vmatpush.bf16.msra.mxu2 %v9123_v52 }
 0x56a   :  { %3519 = vmatpush.bf16.msra.mxu1 %v9124_v61  ;;  %3545 = vmatpush.bf16.msra.mxu3 %v9125_v16 }
 0x56b   :  { %3460 = vmatmul.bf16.vlgmr.msrb.gmra.mxu0 %v7981_v27  ;;  %3486 = vmatmul.bf16.vlgmr.msrb.gmra.mxu2 %v7981_v27 }
 0x56c   :  { %3508 = vmatpush.bf16.msra.mxu0 %v9126_v44  ;;  %3534 = vmatpush.bf16.msra.mxu2 %v9127_v53 }
 0x56e   :  { %3520 = vmatpush.bf16.msra.mxu1 %v9128_v10  ;;  %3546 = vmatpush.bf16.msra.mxu3 %v9129_v15 }
 0x570   :  { %3509 = vmatpush.bf16.msra.mxu0 %v9130_v41  ;;  %3535 = vmatpush.bf16.msra.mxu2 %v9131_v31 }
 0x571   :  { %3473 = vmatmul.bf16.vlgmr.msrb.gmra.mxu1 %v7987_v30  ;;  %3499 = vmatmul.bf16.vlgmr.msrb.gmra.mxu3 %v7987_v30 }
 0x572   :  { %3521 = vmatpush.bf16.msra.mxu1 %v9229_v35  ;;  %3547 = vmatpush.bf16.msra.mxu3 %v9230_v48 }
 0x574   :  { %3510 = vmatpush.bf16.msra.mxu0 %v9231_v9  ;;  %3536 = vmatpush.bf16.msra.mxu2 %v9232_v45 }
 0x576   :  { %3522 = vmatpush.bf16.msra.mxu1 %v9233_v13  ;;  %3548 = vmatpush.bf16.msra.mxu3 %v9234_v7 }
 0x578   :  { %3511 = vmatpush.bf16.msra.mxu0 %v9235_v54  ;;  %3537 = vmatpush.bf16.msra.mxu2 %v9236_v59 }
 0x57a   :  { %3523 = vmatpush.bf16.msra.mxu1 %v9239_v28  ;;  %3549 = vmatpush.bf16.msra.mxu3 %v9240_v23 }
 0x57b   :  { %3512 = vmatmul.bf16.vlgmr.msra.gmra.mxu0 %v7981_v27  ;;  %3538 = vmatmul.bf16.vlgmr.msra.gmra.mxu2 %v7981_v27 }
 0x57c   :  { %3556 = vmatpush.bf16.msrb.mxu0 %v9237_v51  ;;  %3582 = vmatpush.bf16.msrb.mxu2 %v9238_v3 }
 0x57e   :  { %3524 = vmatpush.bf16.msra.mxu1 %v9243_v37  ;;  %3550 = vmatpush.bf16.msra.mxu3 %v9244_v39 }
 0x580   :  { %3557 = vmatpush.bf16.msrb.mxu0 %v9241_v21  ;;  %3583 = vmatpush.bf16.msrb.mxu2 %v9242_v43 }
 0x581   :  { %3525 = vmatmul.bf16.vlgmr.msra.gmra.mxu1 %v7987_v30  ;;  %3551 = vmatmul.bf16.vlgmr.msra.gmra.mxu3 %v7987_v30 }
 0x582   :  { %3569 = vmatpush.bf16.msrb.mxu1 %v9450_v20  ;;  %3595 = vmatpush.bf16.msrb.mxu3 %v9556_v19 }
 0x584   :  { %3558 = vmatpush.bf16.msrb.mxu0 %v9557_v50  ;;  %3584 = vmatpush.bf16.msrb.mxu2 %v9558_v47 }
 0x586   :  { %3570 = vmatpush.bf16.msrb.mxu1 %v9559_v32  ;;  %3596 = vmatpush.bf16.msrb.mxu3 %v9560_v2 }
 0x588   :  { %3559 = vmatpush.bf16.msrb.mxu0 %v9561_v58  ;;  %3585 = vmatpush.bf16.msrb.mxu2 %v9562_v17 }
 0x58a   :  { %3571 = vmatpush.bf16.msrb.mxu1 %v9563_v36  ;;  %3597 = vmatpush.bf16.msrb.mxu3 %v9564_v4  ;;  %v9650_v4 = vld [vmem:[#allocation154_spill] sm:$0xff] }
 0x58c   :  { %3560 = vmatpush.bf16.msrb.mxu0 %v9565_v57  ;;  %3586 = vmatpush.bf16.msrb.mxu2 %v9566_v18 }
 0x58e   :  { %3572 = vmatpush.bf16.msrb.mxu1 %v9567_v12  ;;  %3598 = vmatpush.bf16.msrb.mxu3 %v9568_v29  ;;  %v9579_v29 = vld [vmem:[#allocation22_spill] sm:$0xff] }
 0x590   :  { %3561 = vmatpush.bf16.msrb.mxu0 %v9569_v25  ;;  %3587 = vmatpush.bf16.msrb.mxu2 %v9570_v40  ;;  %v9580_v25 = vld [vmem:[#allocation24_spill] sm:$0xff]  ;;  %v9581_v40 = vld [vmem:[#allocation175_spill] sm:$0xff] }
 0x592   :  { %3573 = vmatpush.bf16.msrb.mxu1 %v9571_v0  ;;  %3599 = vmatpush.bf16.msrb.mxu3 %v9572_v24  ;;  %v9582_v0 = vld [vmem:[#allocation179_spill] sm:$0xff]  ;;  %v9648_v24 = vld [vmem:[#allocation150_spill] sm:$0xff] }
 0x594   :  { %3562 = vmatpush.bf16.msrb.mxu0 %v9573_v26  ;;  %3588 = vmatpush.bf16.msrb.mxu2 %v9574_v56  ;;  %v9583_v56 = vld [vmem:[#allocation26_spill] sm:$0xff] }
 0x596   :  { %3574 = vmatpush.bf16.msrb.mxu1 %v9575_v8  ;;  %3600 = vmatpush.bf16.msrb.mxu3 %v9576_v5  ;;  %v9584_v8 = vld [vmem:[#allocation28_spill] sm:$0xff]  ;;  %v9585_v5 = vld [vmem:[#allocation181_spill] sm:$0xff] }
 0x598   :  { %3563 = vmatpush.bf16.msrb.mxu0 %v9577_v49  ;;  %3589 = vmatpush.bf16.msrb.mxu2 %v9578_v33  ;;  %v9586_v49 = vld [vmem:[#allocation183_spill] sm:$0xff] }
 0x599   :  { %v9587_v33 = vld [vmem:[#allocation23_spill] sm:$0xff] }
 0x59a   :  { %3575 = vmatpush.bf16.msrb.mxu1 %v9581_v40  ;;  %3601 = vmatpush.bf16.msrb.mxu3 %v9582_v0  ;;  %v9589_v0 = vld [vmem:[#allocation30_spill] sm:$0xff]  ;;  %v9590_v40 = vld [vmem:[#allocation32_spill] sm:$0xff] }
 0x59b   :  { %3564 = vmatmul.bf16.vlgmr.msrb.gmra.mxu0 %v7981_v27  ;;  %3590 = vmatmul.bf16.vlgmr.msrb.gmra.mxu2 %v7981_v27  ;;  %v9591_v27 = vld [vmem:[#allocation27_spill] sm:$0xff] }
 0x59c   :  { %3755 = vmatpush.bf16.msra.mxu0 %v9579_v29  ;;  %3781 = vmatpush.bf16.msra.mxu2 %v9580_v25  ;;  %v9588_v29 = vld [vmem:[#allocation25_spill] sm:$0xff]  ;;  %v9598_v25 = vld [vmem:[#allocation40_spill] sm:$0xff] }
 0x59e   :  { %3576 = vmatpush.bf16.msrb.mxu1 %v9585_v5  ;;  %3602 = vmatpush.bf16.msrb.mxu3 %v9586_v49  ;;  %v9594_v5 = vld [vmem:[#allocation36_spill] sm:$0xff]  ;;  %v9595_v49 = vld [vmem:[#allocation31_spill] sm:$0xff] }
 0x5a0   :  { %3756 = vmatpush.bf16.msra.mxu0 %v9583_v56  ;;  %3782 = vmatpush.bf16.msra.mxu2 %v9584_v8  ;;  %v9592_v56 = vld [vmem:[#allocation29_spill] sm:$0xff]  ;;  %v9593_v8 = vld [vmem:[#allocation34_spill] sm:$0xff] }
 0x5a1   :  { %3577 = vmatmul.bf16.vlgmr.msrb.gmra.mxu1 %v7987_v30  ;;  %3603 = vmatmul.bf16.vlgmr.msrb.gmra.mxu3 %v7987_v30  ;;  %v9599_v30 = vld [vmem:[#allocation35_spill] sm:$0xff] }
 0x5a2   :  { %3768 = vmatpush.bf16.msra.mxu1 %v9587_v33  ;;  %3794 = vmatpush.bf16.msra.mxu3 %v9588_v29  ;;  %v9596_v33 = vld [vmem:[#allocation33_spill] sm:$0xff]  ;;  %v9597_v29 = vld [vmem:[#allocation38_spill] sm:$0xff] }
 0x5a4   :  { %3757 = vmatpush.bf16.msra.mxu0 %v9589_v0  ;;  %3783 = vmatpush.bf16.msra.mxu2 %v9590_v40  ;;  %v9600_v0 = vld [vmem:[#allocation37_spill] sm:$0xff]  ;;  %v9601_v40 = vld [vmem:[#allocation42_spill] sm:$0xff] }
 0x5a6   :  { %3769 = vmatpush.bf16.msra.mxu1 %v9591_v27  ;;  %3795 = vmatpush.bf16.msra.mxu3 %v9592_v56  ;;  %v9602_v27 = vld [vmem:[#allocation44_spill] sm:$0xff]  ;;  %v9603_v56 = vld [vmem:[#allocation39_spill] sm:$0xff] }
 0x5a8   :  { %3758 = vmatpush.bf16.msra.mxu0 %v9593_v8  ;;  %3784 = vmatpush.bf16.msra.mxu2 %v9594_v5  ;;  %v9604_v8 = vld [vmem:[#allocation41_spill] sm:$0xff]  ;;  %v9605_v5 = vld [vmem:[#allocation46_spill] sm:$0xff] }
 0x5aa   :  { %3770 = vmatpush.bf16.msra.mxu1 %v9595_v49  ;;  %3796 = vmatpush.bf16.msra.mxu3 %v9596_v33  ;;  %v9606_v49 = vld [vmem:[#allocation48_spill] sm:$0xff]  ;;  %v9607_v33 = vld [vmem:[#allocation43_spill] sm:$0xff] }
 0x5ac   :  { %3759 = vmatpush.bf16.msra.mxu0 %v9597_v29  ;;  %3785 = vmatpush.bf16.msra.mxu2 %v9598_v25  ;;  %v9608_v29 = vld [vmem:[#allocation45_spill] sm:$0xff]  ;;  %v9609_v25 = vld [vmem:[#allocation50_spill] sm:$0xff] }
 0x5ae   :  { %3771 = vmatpush.bf16.msra.mxu1 %v9599_v30  ;;  %3797 = vmatpush.bf16.msra.mxu3 %v9600_v0  ;;  %v9610_v30 = vld [vmem:[#allocation52_spill] sm:$0xff]  ;;  %v9611_v0 = vld [vmem:[#allocation54_spill] sm:$0xff] }
 0x5b0   :  { %3760 = vmatpush.bf16.msra.mxu0 %v9601_v40  ;;  %3786 = vmatpush.bf16.msra.mxu2 %v9602_v27  ;;  %v9612_v40 = vld [vmem:[#allocation56_spill] sm:$0xff]  ;;  %v9613_v27 = vld [vmem:[#allocation47_spill] sm:$0xff] }
 0x5b2   :  { %3772 = vmatpush.bf16.msra.mxu1 %v9603_v56  ;;  %3798 = vmatpush.bf16.msra.mxu3 %v9604_v8  ;;  %v9614_v56 = vld [vmem:[#allocation49_spill] sm:$0xff]  ;;  %v9615_v8 = vld [vmem:[#allocation58_spill] sm:$0xff] }
 0x5b4   :  { %3761 = vmatpush.bf16.msra.mxu0 %v9605_v5  ;;  %3787 = vmatpush.bf16.msra.mxu2 %v9606_v49  ;;  %v9616_v5 = vld [vmem:[#allocation60_spill] sm:$0xff]  ;;  %v9617_v49 = vld [vmem:[#allocation51_spill] sm:$0xff] }
 0x5b6   :  { %3773 = vmatpush.bf16.msra.mxu1 %v9607_v33  ;;  %3799 = vmatpush.bf16.msra.mxu3 %v9608_v29  ;;  %v9618_v33 = vld [vmem:[#allocation53_spill] sm:$0xff]  ;;  %v9619_v29 = vld [vmem:[#allocation55_spill] sm:$0xff] }
 0x5b8   :  { %3762 = vmatpush.bf16.msra.mxu0 %v9609_v25  ;;  %3788 = vmatpush.bf16.msra.mxu2 %v9610_v30  ;;  %v9620_v25 = vld [vmem:[#allocation57_spill] sm:$0xff]  ;;  %v9621_v30 = vld [vmem:[#allocation62_spill] sm:$0xff] }
 0x5ba   :  { %3774 = vmatpush.bf16.msra.mxu1 %v9613_v27  ;;  %3800 = vmatpush.bf16.msra.mxu3 %v9614_v56  ;;  %v9624_v27 = vld [vmem:[#allocation61_spill] sm:$0xff]  ;;  %v9625_v56 = vld [vmem:[#allocation66_spill] sm:$0xff] }
 0x5bc   :  { %3807 = vmatpush.bf16.msrb.mxu0 %v9611_v0  ;;  %3833 = vmatpush.bf16.msrb.mxu2 %v9612_v40  ;;  %v9622_v0 = vld [vmem:[#allocation64_spill] sm:$0xff]  ;;  %v9623_v40 = vld [vmem:[#allocation59_spill] sm:$0xff] }
 0x5be   :  { %3775 = vmatpush.bf16.msra.mxu1 %v9617_v49  ;;  %3801 = vmatpush.bf16.msra.mxu3 %v9618_v33  ;;  %v9628_v49 = vld [vmem:[#allocation65_spill] sm:$0xff]  ;;  %v9629_v33 = vld [vmem:[#allocation70_spill] sm:$0xff] }
 0x5c0   :  { %3808 = vmatpush.bf16.msrb.mxu0 %v9615_v8  ;;  %3834 = vmatpush.bf16.msrb.mxu2 %v9616_v5  ;;  %v9626_v8 = vld [vmem:[#allocation68_spill] sm:$0xff]  ;;  %v9627_v5 = vld [vmem:[#allocation63_spill] sm:$0xff] }
 0x5c2   :  { %3820 = vmatpush.bf16.msrb.mxu1 %v9619_v29  ;;  %3846 = vmatpush.bf16.msrb.mxu3 %v9620_v25  ;;  %v9630_v29 = vld [vmem:[#allocation72_spill] sm:$0xff]  ;;  %v9631_v25 = vld [vmem:[#allocation67_spill] sm:$0xff] }
 0x5c4   :  { %3809 = vmatpush.bf16.msrb.mxu0 %v9621_v30  ;;  %3835 = vmatpush.bf16.msrb.mxu2 %v9622_v0  ;;  %v9632_v30 = vld [vmem:[#allocation69_spill] sm:$0xff]  ;;  %v9633_v0 = vld [vmem:[#allocation74_spill] sm:$0xff] }
 0x5c6   :  { %3821 = vmatpush.bf16.msrb.mxu1 %v9623_v40  ;;  %3847 = vmatpush.bf16.msrb.mxu3 %v9624_v27  ;;  %v9634_v40 = vld [vmem:[#allocation76_spill] sm:$0xff]  ;;  %v9635_v27 = vld [vmem:[#allocation71_spill] sm:$0xff] }
 0x5c8   :  { %3810 = vmatpush.bf16.msrb.mxu0 %v9625_v56  ;;  %3836 = vmatpush.bf16.msrb.mxu2 %v9626_v8  ;;  %v9636_v56 = vld [vmem:[#allocation73_spill] sm:$0xff]  ;;  %v9637_v8 = vld [vmem:[#allocation78_spill] sm:$0xff] }
 0x5ca   :  { %3822 = vmatpush.bf16.msrb.mxu1 %v9627_v5  ;;  %3848 = vmatpush.bf16.msrb.mxu3 %v9628_v49  ;;  %v9638_v5 = vld [vmem:[#allocation80_spill] sm:$0xff]  ;;  %v9639_v49 = vld [vmem:[#allocation75_spill] sm:$0xff] }
 0x5cc   :  { %3811 = vmatpush.bf16.msrb.mxu0 %v9629_v33  ;;  %3837 = vmatpush.bf16.msrb.mxu2 %v9630_v29  ;;  %v9640_v33 = vld [vmem:[#allocation77_spill] sm:$0xff]  ;;  %v9641_v29 = vld [vmem:[#allocation82_spill] sm:$0xff] }
 0x5ce   :  { %3823 = vmatpush.bf16.msrb.mxu1 %v9631_v25  ;;  %3849 = vmatpush.bf16.msrb.mxu3 %v9632_v30  ;;  %v9642_v25 = vld [vmem:[#allocation84_spill] sm:$0xff]  ;;  %v9643_v30 = vld [vmem:[#allocation79_spill] sm:$0xff] }
 0x5d0   :  { %3812 = vmatpush.bf16.msrb.mxu0 %v9633_v0  ;;  %3838 = vmatpush.bf16.msrb.mxu2 %v9634_v40  ;;  %v9644_v0 = vld [vmem:[#allocation81_spill] sm:$0xff]  ;;  %v9645_v40 = vld [vmem:[#allocation83_spill] sm:$0xff] }
 0x5d2   :  { %3824 = vmatpush.bf16.msrb.mxu1 %v9635_v27  ;;  %3850 = vmatpush.bf16.msrb.mxu3 %v9636_v56  ;;  %v9646_v27 = vld [vmem:[#allocation85_spill] sm:$0xff] }
 0x5d4   :  { %3813 = vmatpush.bf16.msrb.mxu0 %v9637_v8  ;;  %3839 = vmatpush.bf16.msrb.mxu2 %v9638_v5  ;;  %v9647_v5 = vld [vmem:[#allocation104_spill] sm:$0xff] }
 0x5d6   :  { %3825 = vmatpush.bf16.msrb.mxu1 %v9639_v49  ;;  %3851 = vmatpush.bf16.msrb.mxu3 %v9640_v33  ;;  %v566_v49 = vadd.f32 %v9648_v24, %v9647_v5 }
 0x5d8   :  { %3814 = vmatpush.bf16.msrb.mxu0 %v9641_v29  ;;  %3840 = vmatpush.bf16.msrb.mxu2 %v9642_v25  ;;  %v3409_v56 = vpop.f32.mrf.mxu0  ;;  %v9649_v25 = vld [vmem:[#allocation110_spill] sm:$0xff] }
 0x5da   :  { %3826 = vmatpush.bf16.msrb.mxu1 %v9643_v30  ;;  %3852 = vmatpush.bf16.msrb.mxu3 %v9644_v0  ;;  %v595_v30 = vadd.f32 %v9650_v4, %v9649_v25 }
 0x5de   :  { %3827 = vmatpush.bf16.msrb.mxu1 %v9645_v40  ;;  %3853 = vmatpush.bf16.msrb.mxu3 %v9646_v27  ;;  %v3422_v8 = vpop.f32.mrf.mxu1  ;;  %v3435_v26 = vpop.f32.mrf.mxu2 }
 0x5df   :  { %v3423_v12 = vadd.f32 %v3422_v8, %v3409_v56  ;;  %v9651_v8 = vld [vmem:[#allocation118_spill] sm:$0xff] }
 0x5e0   :  { %v3411_v33 = vpop.f32.mrf.mxu0 }
 0x5e1   :  { %v3608_v18 = vadd.f32 %v3423_v12, %v566_v49  ;;  %v9652_v12 = vld [vmem:[#allocation160_spill] sm:$0xff] }
 0x5e3   :  { %v5528_v29 = vmul.f32 -1.442695, %v3608_v18  ;;  %v624_v18 = vadd.f32 %v9652_v12, %v9651_v8 }
 0x5e4   :  { %v3448_v57 = vpop.f32.mrf.mxu3 }
 0x5e5   :  { %6034 = vpow2.f32 %v5528_v29  ;;  %v3449_v0 = vadd.f32 %v3448_v57, %v3435_v26 }
 0x5e6   :  { %v3424_v36 = vpop.f32.mrf.mxu1  ;;  %v3437_v40 = vpop.f32.mrf.mxu2 }
 0x5e7   :  { %v3609_v17 = vadd.f32 %v3449_v0, %v595_v30 }
 0x5e8   :  { %v3461_v27 = vpop.f32.mrf.mxu0 }
 0x5e9   :  { %v5529_v58 = vmul.f32 -1.442695, %v3609_v17 }
 0x5eb   :  { %v6035_v2 = vpop.eup %6034  ;;  %6036 = vpow2.f32 %v5529_v58 }
 0x5ec   :  { %v3622_v32 = vadd.f32 1.0, %v6035_v2  ;;  %v3450_v47 = vpop.f32.mrf.mxu3  ;;  %v9653_v2 = vld [vmem:[#allocation119_spill] sm:$0xff] }
 0x5ed   :  { %v9654_v47 = vld [vmem:[#allocation162_spill] sm:$0xff] }
 0x5ee   :  { %v3474_v24 = vpop.f32.mrf.mxu1  ;;  %v3487_v56 = vpop.f32.mrf.mxu2  ;;  %6038 = vrcp.f32 %v3622_v32  ;;  %v653_v58 = vadd.f32 %v9654_v47, %v9653_v2  ;;  %v9656_v47 = vld [vmem:[#allocation205_spill] sm:$0xff]  ;;  %vm3629_vm9 = vweird.f32 %v3622_v32 }
 0x5ef   :  { %v3475_v49 = vadd.f32 %v3474_v24, %v3461_v27 }
 0x5f0   :  { %v3463_v33 = vpop.f32.mrf.mxu0 }
 0x5f1   :  { %v6037_v4 = vpop.eup %6036  ;;  %v3610_v29 = vadd.f32 %v3475_v49, %v624_v18 }
 0x5f2   :  { %v8135_v57 = vadd.f32 1.0, %v6037_v4 }
 0x5f3   :  { %v5530_v36 = vmul.f32 -1.442695, %v3610_v29 }
 0x5f4   :  { %6040 = vrcp.f32 %v8135_v57  ;;  %v3500_v17 = vpop.f32.mrf.mxu3  ;;  %v8138_v40 = vpop.eup %6038  ;;  %vm3644_vm14 = vweird.f32 %v8135_v57 }
 0x5f5   :  { %6042 = vpow2.f32 %v5530_v36  ;;  %v3501_v0 = vadd.f32 %v3500_v17, %v3487_v56  ;;  %v3625_v27 = vmul.f32 %v8138_v40, %v3622_v32  ;;  %v9655_v17 = vld [vmem:[#allocation188_spill] sm:$0xff]  ;;  %vm3630_vm8 = vweird.f32 %v8138_v40 }
 0x5f6   :  { %v3476_v26 = vpop.f32.mrf.mxu1  ;;  %v3489_v30 = vpop.f32.mrf.mxu2  ;;  %vm8158_vm10 = vmor %vm3629_vm9, %vm3630_vm8 }
 0x5f7   :  { %v3611_v12 = vadd.f32 %v3501_v0, %v653_v58  ;;  %v3626_v4 = vsub.f32 1.0, %v3625_v27  ;;  %v682_v58 = vadd.f32 %v9656_v47, %v9655_v17  ;;  %v9658_v47 = vld [vmem:[#allocation207_spill] sm:$0xff] }
 0x5f8   :  { %v3513_v24 = vpop.f32.mrf.mxu0 }
 0x5f9   :  { %v5531_v18 = vmul.f32 -1.442695, %v3611_v12  ;;  %v3627_v26 = vmul.f32 %v8138_v40, %v3626_v4 }
 0x5fa   :  { %v8143_v49 = vpop.eup %6040 }
 0x5fb   :  { %v6043_v33 = vpop.eup %6042  ;;  %6044 = vpow2.f32 %v5531_v18  ;;  %v3640_v25 = vmul.f32 %v8143_v49, %v8135_v57  ;;  %v3633_v18 = vand.u32 2147483647, %v3622_v32  ;;  %v3628_v50 = vadd.f32 %v8138_v40, %v3627_v26 }
 0x5fc   :  { %v3660_v29 = vadd.f32 1.0, %v6043_v33  ;;  %v3502_v8 = vpop.f32.mrf.mxu3  ;;  %vm3645_vm12 = vweird.f32 %v8143_v49 }
 0x5fd   :  { %v3641_v2 = vsub.f32 1.0, %v3640_v25  ;;  %v3635_v8 = vand.u32 2147483648, %v3622_v32  ;;  %vm8162_vm11 = vcmp.eq.f32.partialorder %v3633_v18, 8.507059e+37  ;;  %v3648_v18 = vand.u32 2147483647, %v8135_v57  ;;  %vm8179_vm0 = vmor %vm3644_vm14, %vm3645_vm12 }
 0x5fe   :  { %6046 = vrcp.f32 %v3660_v29  ;;  %v3539_v36 = vpop.f32.mrf.mxu2  ;;  %v3526_v56 = vpop.f32.mrf.mxu1  ;;  %v3673_v20 = vand.u32 2147483648, %v3660_v29  ;;  %vm3667_vm15 = vweird.f32 %v3660_v29 }
 0x5ff   :  { %v3527_v0 = vadd.f32 %v3526_v56, %v3513_v24  ;;  %v3642_v4 = vmul.f32 %v8143_v49, %v3641_v2  ;;  %v9657_v56 = vld [vmem:[#allocation190_spill] sm:$0xff]  ;;  %v3636_v17 = vor.u32 1.1754944e-38, %v3635_v8  ;;  %v3632_v2 = vsel %vm8158_vm10, %v8138_v40, %v3628_v50 }
 0x600   :  { %v3515_v30 = vpop.f32.mrf.mxu0  ;;  %v711_v25 = vadd.f32 %v9658_v47, %v9657_v56  ;;  %v3650_v8 = vand.u32 2147483648, %v8135_v57  ;;  %vm3649_vm3 = vcmp.eq.f32.partialorder %v3648_v18, 8.507059e+37  ;;  %v9692_v56 = vld [vmem:[#allocation182_spill] sm:$0xff] }
 0x601   :  { %v6045_v12 = vpop.eup %6044  ;;  %v3612_v27 = vadd.f32 %v3527_v0, %v682_v58  ;;  %v3637_v40 = vsel %vm8162_vm11, %v3636_v17, %v3632_v2 }
 0x602   :  { %v8150_v5 = vadd.f32 1.0, %v6045_v12  ;;  %v3651_v2 = vor.u32 1.1754944e-38, %v3650_v8 }
 0x604   :  { %v6047_v33 = vpop.eup %6046  ;;  %6048 = vrcp.f32 %v8150_v5  ;;  %v3552_v24 = vpop.f32.mrf.mxu3  ;;  %v3688_v17 = vand.u32 2147483648, %v8150_v5  ;;  %vm3682_vm5 = vweird.f32 %v8150_v5 }
 0x605   :  { %v3663_v19 = vmul.f32 %v6047_v33, %v3660_v29  ;;  %6050 = vtanh.f32 %v3612_v27  ;;  %v3553_v30 = vadd.f32 %v3552_v24, %v3539_v36  ;;  %vm3668_vm13 = vweird.f32 %v6047_v33 }
 0x606   :  { %v3541_v58 = vpop.f32.mrf.mxu2  ;;  %v3528_v27 = vpop.f32.mrf.mxu1  ;;  %v3643_v36 = vadd.f32 %v8143_v49, %v3642_v4  ;;  %vm3669_vm1 = vmor %vm3667_vm15, %vm3668_vm13 }
 0x607   :  { %v3664_v0 = vsub.f32 1.0, %v3663_v19  ;;  %v3613_v47 = vadd.f32 %v3553_v30, %v711_v25  ;;  %v3671_v19 = vand.u32 2147483647, %v3660_v29  ;;  %v3674_v30 = vor.u32 1.1754944e-38, %v3673_v20 }
 0x608   :  { %v3647_v29 = vsel %vm8179_vm0, %v8143_v49, %v3643_v36  ;;  %v3686_v20 = vand.u32 2147483647, %v8150_v5  ;;  %v3689_v36 = vor.u32 1.1754944e-38, %v3688_v17  ;;  %v9668_v17 = vld [vmem:[#allocation209_spill] sm:$0xff] }
 0x609   :  { %v3665_v32 = vmul.f32 %v6047_v33, %v3664_v0  ;;  %6052 = vtanh.f32 %v3613_v47  ;;  %vm3672_vm2 = vcmp.eq.f32.partialorder %v3671_v19, 8.507059e+37 }
 0x60a   :  { %v6049_v24 = vpop.eup %6048  ;;  %vm3687_vm7 = vcmp.eq.f32.partialorder %v3686_v20, 8.507059e+37 }
 0x60b   :  { %v6051_v58 = vpop.eup %6050  ;;  %v3678_v50 = vmul.f32 %v6049_v24, %v8150_v5  ;;  %v3666_v25 = vadd.f32 %v6047_v33, %v3665_v32  ;;  %vm3683_vm4 = vweird.f32 %v6049_v24 }
 0x60c   :  { %v3734_v0 = vmul.f32 %v6051_v58, %v3637_v40  ;;  %v3554_v27 = vpop.f32.mrf.mxu3  ;;  %vm3684_vm6 = vmor %vm3682_vm5, %vm3683_vm4 }
 0x60d   :  { %v3679_v12 = vsub.f32 1.0, %v3678_v50  ;;  %v3670_v57 = vsel %vm3669_vm1, %v6047_v33, %v3666_v25  ;;  %v3652_v50 = vsel %vm3649_vm3, %v3651_v2, %v3647_v29 }
 0x60e   :  { %v3675_v26 = vsel %vm3672_vm2, %v3674_v30, %v3670_v57  ;;  %v9666_v57 = vld [vmem:[#allocation208_spill] sm:$0xff] }
 0x60f   :  { %v3680_v47 = vmul.f32 %v6049_v24, %v3679_v12  ;;  %v3732_v32 = vmul.f32 %v3675_v26, %v7972_v34  ;;  %v6053_v58 = vpop.eup %6052  ;;  %v9665_v12 = vld [vmem:[#allocation194_spill] sm:$0xff] }
 0x610   :  { %v3735_v49 = vmul.f32 %v6053_v58, %v3652_v50  ;;  %v740_v29 = vadd.f32 %v9666_v57, %v9665_v12  ;;  %v9691_v12 = vld [vmem:[#allocation180_spill] sm:$0xff] }
 0x611   :  { %v8190_v33 = vadd.f32 %v3734_v0, %v3732_v32  ;;  %v3681_v19 = vadd.f32 %v6049_v24, %v3680_v47  ;;  %v9667_v47 = vld [vmem:[#allocation195_spill] sm:$0xff] }
 0x613   :  { %v3685_v40 = vsel %vm3684_vm6, %v6049_v24, %v3681_v19  ;;  %v769_v24 = vadd.f32 %v9668_v17, %v9667_v47  ;;  %v9690_v47 = vld [vmem:[#allocation171_spill] sm:$0xff] }
 0x614   :  { %v3690_v18 = vsel %vm3687_vm7, %v3689_v36, %v3685_v40 }
 0x615   :  { %v3733_v8 = vmul.f32 %v3690_v18, %v7975_v55 }
 0x617   :  { %v8193_v4 = vadd.f32 %v3735_v49, %v3733_v8 }
 0x618   :  { %v3565_v25 = vpop.f32.mrf.mxu0 }
 0x61e   :  { %v3578_v34 = vpop.f32.mrf.mxu1  ;;  %v3591_v30 = vpop.f32.mrf.mxu2 }
 0x61f   :  { %v3579_v5 = vadd.f32 %v3578_v34, %v3565_v25 }
 0x620   :  { %v3567_v0 = vpop.f32.mrf.mxu0 }
 0x621   :  { %v3614_v27 = vadd.f32 %v3579_v5, %v740_v29 }
 0x623   :  { %v5532_v26 = vmul.f32 -1.442695, %v3614_v27 }
 0x624   :  { %v3604_v2 = vpop.f32.mrf.mxu3 }
 0x625   :  { %6054 = vpow2.f32 %v5532_v26  ;;  %v3605_v32 = vadd.f32 %v3604_v2, %v3591_v30 }
 0x626   :  { %v3580_v20 = vpop.f32.mrf.mxu1  ;;  %v3593_v55 = vpop.f32.mrf.mxu2 }
 0x627   :  { %v3615_v58 = vadd.f32 %v3605_v32, %v769_v24 }
 0x629   :  { %v5533_v50 = vmul.f32 -1.442695, %v3615_v58 }
 0x62b   :  { %v6055_v19 = vpop.eup %6054  ;;  %6056 = vpow2.f32 %v5533_v50 }
 0x62c   :  { %v3700_v49 = vadd.f32 1.0, %v6055_v19  ;;  %v3606_v36 = vpop.f32.mrf.mxu3 }
 0x62e   :  { %6058 = vrcp.f32 %v3700_v49  ;;  %v3713_v57 = vand.u32 2147483648, %v3700_v49  ;;  %v3711_v30 = vand.u32 2147483647, %v3700_v49  ;;  %vm3707_vm9 = vweird.f32 %v3700_v49 }
 0x630   :  { %v3714_v26 = vor.u32 1.1754944e-38, %v3713_v57  ;;  %vm3712_vm11 = vcmp.eq.f32.partialorder %v3711_v30, 8.507059e+37  ;;  %v9671_v30 = vld [vmem:[#allocation148_spill] sm:$0xff] }
 0x631   :  { %v6057_v40 = vpop.eup %6056 }
 0x632   :  { %v3701_v18 = vadd.f32 1.0, %v6057_v40 }
 0x634   :  { %v6059_v8 = vpop.eup %6058  ;;  %6060 = vrcp.f32 %v3701_v18  ;;  %v3728_v20 = vand.u32 2147483648, %v3701_v18  ;;  %v3726_v50 = vand.u32 2147483647, %v3701_v18  ;;  %vm3722_vm13 = vweird.f32 %v3701_v18 }
 0x635   :  { %v3703_v25 = vmul.f32 %v6059_v8, %v3700_v49  ;;  %6062 = vtanh.f32 %v8190_v33  ;;  %vm3708_vm8 = vweird.f32 %v6059_v8 }
 0x636   :  { %vm3709_vm10 = vmor %vm3707_vm9, %vm3708_vm8  ;;  %6064 = vtanh.f32 %v8193_v4  ;;  %v3729_v49 = vor.u32 1.1754944e-38, %v3728_v20  ;;  %vm3727_vm15 = vcmp.eq.f32.partialorder %v3726_v50, 8.507059e+37  ;;  %v9680_v20 = vld [vmem:[#allocation164_spill] sm:$0xff] }
 0x637   :  { %v3704_v34 = vsub.f32 1.0, %v3703_v25  ;;  %v9683_v50 = vld [vmem:[#allocation168_spill] sm:$0xff] }
 0x639   :  { %v3705_v29 = vmul.f32 %v6059_v8, %v3704_v34 }
 0x63a   :  { %v6061_v5 = vpop.eup %6060 }
 0x63b   :  { %v3706_v0 = vadd.f32 %v6059_v8, %v3705_v29  ;;  %v3718_v27 = vmul.f32 %v6061_v5, %v3701_v18  ;;  %v6063_v24 = vpop.eup %6062  ;;  %vm3723_vm12 = vweird.f32 %v6061_v5  ;;  %v9669_v18 = vld [vmem:[#allocation139_spill] sm:$0xff]  ;;  %v9670_v29 = vld [vmem:[#allocation142_spill] sm:$0xff] }
 0x63c   :  { %vm3724_vm14 = vmor %vm3722_vm13, %vm3723_vm12 }
 0x63d   :  { %v3710_v2 = vsel %vm3709_vm10, %v6059_v8, %v3706_v0  ;;  %v3719_v17 = vsub.f32 1.0, %v3718_v27  ;;  %v6065_v8 = vpop.eup %6064  ;;  %v9673_v0 = vld [vmem:[#allocation145_spill] sm:$0xff]  ;;  %v9674_v27 = vld [vmem:[#allocation147_spill] sm:$0xff] }
 0x63e   :  { %v3715_v32 = vsel %vm3712_vm11, %v3714_v26, %v3710_v2  ;;  %v9675_v26 = vld [vmem:[#allocation156_spill] sm:$0xff]  ;;  %v9676_v2 = vld [vmem:[#allocation158_spill] sm:$0xff] }
 0x63f   :  { %v3740_v55 = vmul.f32 %v6063_v24, %v3715_v32  ;;  %v3720_v58 = vmul.f32 %v6061_v5, %v3719_v17  ;;  %v9677_v17 = vld [vmem:[#allocation151_spill] sm:$0xff]  ;;  %v9679_v32 = vld [vmem:[#allocation161_spill] sm:$0xff] }
 0x640   :  { %v9678_v24 = vld [vmem:[#allocation155_spill] sm:$0xff] }
 0x641   :  { %v8201_v19 = vpack.c.bf16 %v3740_v55, %v3740_v55  ;;  %v3721_v36 = vadd.f32 %v6061_v5, %v3720_v58  ;;  %v9681_v55 = vld [vmem:[#allocation157_spill] sm:$0xff]  ;;  %v9682_v58 = vld [vmem:[#allocation159_spill] sm:$0xff] }
 0x643   :  { %v3725_v40 = vsel %vm3724_vm14, %v6061_v5, %v3721_v36  ;;  %3763 = vmatmul.bf16.vlgmr.msra.gmra.mxu0 %v8201_v19  ;;  %3789 = vmatmul.bf16.vlgmr.msra.gmra.mxu2 %v8201_v19  ;;  %v9672_v5 = vld [vmem:[#allocation152_spill] sm:$0xff]  ;;  %v9684_v36 = vld [vmem:[#allocation170_spill] sm:$0xff] }
 0x644   :  { %v3730_v25 = vsel %vm3727_vm15, %v3729_v49, %v3725_v40  ;;  %3859 = vmatpush.bf16.msra.mxu0 %v9112_v63  ;;  %3885 = vmatpush.bf16.msra.mxu2 %v9113_v11  ;;  %v9685_v49 = vld [vmem:[#allocation163_spill] sm:$0xff]  ;;  %v9686_v40 = vld [vmem:[#allocation166_spill] sm:$0xff] }
 0x645   :  { %v3741_v34 = vmul.f32 %v6065_v8, %v3730_v25  ;;  %v9687_v8 = vld [vmem:[#allocation172_spill] sm:$0xff] }
 0x646   :  { %v9688_v25 = vld [vmem:[#allocation176_spill] sm:$0xff] }
 0x647   :  { %v8207_v57 = vpack.c.bf16 %v3741_v34, %v3741_v34  ;;  %v9689_v34 = vld [vmem:[#allocation169_spill] sm:$0xff] }
 0x648   :  { %3860 = vmatpush.bf16.msra.mxu0 %v9114_v46  ;;  %3886 = vmatpush.bf16.msra.mxu2 %v9115_v38 }
 0x649   :  { %3776 = vmatmul.bf16.vlgmr.msra.gmra.mxu1 %v8207_v57  ;;  %3802 = vmatmul.bf16.vlgmr.msra.gmra.mxu3 %v8207_v57 }
 0x64a   :  { %3872 = vmatpush.bf16.msra.mxu1 %v9116_v60  ;;  %3898 = vmatpush.bf16.msra.mxu3 %v9117_v1 }
 0x64c   :  { %3861 = vmatpush.bf16.msra.mxu0 %v9118_v42  ;;  %3887 = vmatpush.bf16.msra.mxu2 %v9119_v22 }
 0x64e   :  { %3873 = vmatpush.bf16.msra.mxu1 %v9120_v14  ;;  %3899 = vmatpush.bf16.msra.mxu3 %v9121_v6 }
 0x650   :  { %3862 = vmatpush.bf16.msra.mxu0 %v9122_v62  ;;  %3888 = vmatpush.bf16.msra.mxu2 %v9123_v52 }
 0x652   :  { %3874 = vmatpush.bf16.msra.mxu1 %v9124_v61  ;;  %3900 = vmatpush.bf16.msra.mxu3 %v9125_v16 }
 0x653   :  { %3815 = vmatmul.bf16.vlgmr.msrb.gmra.mxu0 %v8201_v19  ;;  %3841 = vmatmul.bf16.vlgmr.msrb.gmra.mxu2 %v8201_v19 }
 0x654   :  { %3863 = vmatpush.bf16.msra.mxu0 %v9126_v44  ;;  %3889 = vmatpush.bf16.msra.mxu2 %v9127_v53 }
 0x656   :  { %3875 = vmatpush.bf16.msra.mxu1 %v9128_v10  ;;  %3901 = vmatpush.bf16.msra.mxu3 %v9129_v15 }
 0x658   :  { %3864 = vmatpush.bf16.msra.mxu0 %v9130_v41  ;;  %3890 = vmatpush.bf16.msra.mxu2 %v9131_v31 }
 0x659   :  { %3828 = vmatmul.bf16.vlgmr.msrb.gmra.mxu1 %v8207_v57  ;;  %3854 = vmatmul.bf16.vlgmr.msrb.gmra.mxu3 %v8207_v57 }
 0x65a   :  { %3876 = vmatpush.bf16.msra.mxu1 %v9229_v35  ;;  %3902 = vmatpush.bf16.msra.mxu3 %v9230_v48 }
 0x65c   :  { %3865 = vmatpush.bf16.msra.mxu0 %v9231_v9  ;;  %3891 = vmatpush.bf16.msra.mxu2 %v9232_v45 }
 0x65e   :  { %3877 = vmatpush.bf16.msra.mxu1 %v9233_v13  ;;  %3903 = vmatpush.bf16.msra.mxu3 %v9234_v7 }
 0x660   :  { %3866 = vmatpush.bf16.msra.mxu0 %v9235_v54  ;;  %3892 = vmatpush.bf16.msra.mxu2 %v9236_v59 }
 0x662   :  { %3878 = vmatpush.bf16.msra.mxu1 %v9239_v28  ;;  %3904 = vmatpush.bf16.msra.mxu3 %v9240_v23 }
 0x663   :  { %3867 = vmatmul.bf16.vlgmr.msra.gmra.mxu0 %v8201_v19  ;;  %3893 = vmatmul.bf16.vlgmr.msra.gmra.mxu2 %v8201_v19 }
 0x664   :  { %3911 = vmatpush.bf16.msrb.mxu0 %v9237_v51  ;;  %3937 = vmatpush.bf16.msrb.mxu2 %v9238_v3 }
 0x666   :  { %3879 = vmatpush.bf16.msra.mxu1 %v9243_v37  ;;  %3905 = vmatpush.bf16.msra.mxu3 %v9244_v39 }
 0x668   :  { %3912 = vmatpush.bf16.msrb.mxu0 %v9241_v21  ;;  %3938 = vmatpush.bf16.msrb.mxu2 %v9242_v43 }
 0x669   :  { %3880 = vmatmul.bf16.vlgmr.msra.gmra.mxu1 %v8207_v57  ;;  %3906 = vmatmul.bf16.vlgmr.msra.gmra.mxu3 %v8207_v57 }
 0x66a   :  { %3924 = vmatpush.bf16.msrb.mxu1 %v9669_v18  ;;  %3950 = vmatpush.bf16.msrb.mxu3 %v9670_v29  ;;  %v9770_v29 = vld [vmem:[#allocation211_spill] sm:$0xff] }
 0x66c   :  { %3913 = vmatpush.bf16.msrb.mxu0 %v9671_v30  ;;  %3939 = vmatpush.bf16.msrb.mxu2 %v9672_v5 }
 0x66e   :  { %3925 = vmatpush.bf16.msrb.mxu1 %v9673_v0  ;;  %3951 = vmatpush.bf16.msrb.mxu3 %v9674_v27 }
 0x670   :  { %3914 = vmatpush.bf16.msrb.mxu0 %v9675_v26  ;;  %3940 = vmatpush.bf16.msrb.mxu2 %v9676_v2 }
 0x672   :  { %3926 = vmatpush.bf16.msrb.mxu1 %v9677_v17  ;;  %3952 = vmatpush.bf16.msrb.mxu3 %v9678_v24 }
 0x674   :  { %3915 = vmatpush.bf16.msrb.mxu0 %v9679_v32  ;;  %3941 = vmatpush.bf16.msrb.mxu2 %v9680_v20 }
 0x676   :  { %3927 = vmatpush.bf16.msrb.mxu1 %v9681_v55  ;;  %3953 = vmatpush.bf16.msrb.mxu3 %v9682_v58  ;;  %v9693_v58 = vld [vmem:[#allocation22_spill] sm:$0xff] }
 0x678   :  { %3916 = vmatpush.bf16.msrb.mxu0 %v9683_v50  ;;  %3942 = vmatpush.bf16.msrb.mxu2 %v9684_v36  ;;  %v9694_v50 = vld [vmem:[#allocation24_spill] sm:$0xff]  ;;  %v9695_v36 = vld [vmem:[#allocation175_spill] sm:$0xff] }
 0x67a   :  { %3928 = vmatpush.bf16.msrb.mxu1 %v9685_v49  ;;  %3954 = vmatpush.bf16.msrb.mxu3 %v9686_v40  ;;  %v9696_v49 = vld [vmem:[#allocation179_spill] sm:$0xff] }
 0x67c   :  { %3917 = vmatpush.bf16.msrb.mxu0 %v9687_v8  ;;  %3943 = vmatpush.bf16.msrb.mxu2 %v9688_v25  ;;  %v9697_v25 = vld [vmem:[#allocation26_spill] sm:$0xff] }
 0x67e   :  { %3929 = vmatpush.bf16.msrb.mxu1 %v9689_v34  ;;  %3955 = vmatpush.bf16.msrb.mxu3 %v9690_v47  ;;  %v9698_v34 = vld [vmem:[#allocation28_spill] sm:$0xff]  ;;  %v9699_v47 = vld [vmem:[#allocation181_spill] sm:$0xff] }
 0x680   :  { %3918 = vmatpush.bf16.msrb.mxu0 %v9691_v12  ;;  %3944 = vmatpush.bf16.msrb.mxu2 %v9692_v56  ;;  %v9700_v12 = vld [vmem:[#allocation183_spill] sm:$0xff] }
 0x681   :  { %v9701_v56 = vld [vmem:[#allocation23_spill] sm:$0xff] }
 0x682   :  { %3930 = vmatpush.bf16.msrb.mxu1 %v9695_v36  ;;  %3956 = vmatpush.bf16.msrb.mxu3 %v9696_v49  ;;  %v9704_v49 = vld [vmem:[#allocation32_spill] sm:$0xff] }
 0x683   :  { %3919 = vmatmul.bf16.vlgmr.msrb.gmra.mxu0 %v8201_v19  ;;  %3945 = vmatmul.bf16.vlgmr.msrb.gmra.mxu2 %v8201_v19  ;;  %v9705_v19 = vld [vmem:[#allocation27_spill] sm:$0xff]  ;;  %v9712_v36 = vld [vmem:[#allocation40_spill] sm:$0xff] }
 0x684   :  { %4110 = vmatpush.bf16.msra.mxu0 %v9693_v58  ;;  %4136 = vmatpush.bf16.msra.mxu2 %v9694_v50  ;;  %v9702_v58 = vld [vmem:[#allocation25_spill] sm:$0xff]  ;;  %v9703_v50 = vld [vmem:[#allocation30_spill] sm:$0xff] }
 0x686   :  { %3931 = vmatpush.bf16.msrb.mxu1 %v9699_v47  ;;  %3957 = vmatpush.bf16.msrb.mxu3 %v9700_v12  ;;  %v9708_v47 = vld [vmem:[#allocation36_spill] sm:$0xff]  ;;  %v9709_v12 = vld [vmem:[#allocation31_spill] sm:$0xff] }
 0x688   :  { %4111 = vmatpush.bf16.msra.mxu0 %v9697_v25  ;;  %4137 = vmatpush.bf16.msra.mxu2 %v9698_v34  ;;  %v9706_v25 = vld [vmem:[#allocation29_spill] sm:$0xff]  ;;  %v9707_v34 = vld [vmem:[#allocation34_spill] sm:$0xff] }
 0x689   :  { %3932 = vmatmul.bf16.vlgmr.msrb.gmra.mxu1 %v8207_v57  ;;  %3958 = vmatmul.bf16.vlgmr.msrb.gmra.mxu3 %v8207_v57  ;;  %v9713_v57 = vld [vmem:[#allocation35_spill] sm:$0xff] }
 0x68a   :  { %4123 = vmatpush.bf16.msra.mxu1 %v9701_v56  ;;  %4149 = vmatpush.bf16.msra.mxu3 %v9702_v58  ;;  %v9710_v56 = vld [vmem:[#allocation33_spill] sm:$0xff]  ;;  %v9711_v58 = vld [vmem:[#allocation38_spill] sm:$0xff] }
 0x68c   :  { %4112 = vmatpush.bf16.msra.mxu0 %v9703_v50  ;;  %4138 = vmatpush.bf16.msra.mxu2 %v9704_v49  ;;  %v9714_v50 = vld [vmem:[#allocation37_spill] sm:$0xff]  ;;  %v9715_v49 = vld [vmem:[#allocation42_spill] sm:$0xff] }
 0x68e   :  { %4124 = vmatpush.bf16.msra.mxu1 %v9705_v19  ;;  %4150 = vmatpush.bf16.msra.mxu3 %v9706_v25  ;;  %v9716_v19 = vld [vmem:[#allocation44_spill] sm:$0xff]  ;;  %v9717_v25 = vld [vmem:[#allocation39_spill] sm:$0xff] }
 0x690   :  { %4113 = vmatpush.bf16.msra.mxu0 %v9707_v34  ;;  %4139 = vmatpush.bf16.msra.mxu2 %v9708_v47  ;;  %v9718_v34 = vld [vmem:[#allocation41_spill] sm:$0xff]  ;;  %v9719_v47 = vld [vmem:[#allocation46_spill] sm:$0xff] }
 0x692   :  { %4125 = vmatpush.bf16.msra.mxu1 %v9709_v12  ;;  %4151 = vmatpush.bf16.msra.mxu3 %v9710_v56  ;;  %v9720_v12 = vld [vmem:[#allocation48_spill] sm:$0xff]  ;;  %v9721_v56 = vld [vmem:[#allocation43_spill] sm:$0xff] }
 0x694   :  { %4114 = vmatpush.bf16.msra.mxu0 %v9711_v58  ;;  %4140 = vmatpush.bf16.msra.mxu2 %v9712_v36  ;;  %v9722_v58 = vld [vmem:[#allocation45_spill] sm:$0xff]  ;;  %v9723_v36 = vld [vmem:[#allocation50_spill] sm:$0xff] }
 0x696   :  { %4126 = vmatpush.bf16.msra.mxu1 %v9713_v57  ;;  %4152 = vmatpush.bf16.msra.mxu3 %v9714_v50  ;;  %v9724_v57 = vld [vmem:[#allocation52_spill] sm:$0xff]  ;;  %v9725_v50 = vld [vmem:[#allocation54_spill] sm:$0xff] }
 0x698   :  { %4115 = vmatpush.bf16.msra.mxu0 %v9715_v49  ;;  %4141 = vmatpush.bf16.msra.mxu2 %v9716_v19  ;;  %v9726_v49 = vld [vmem:[#allocation56_spill] sm:$0xff]  ;;  %v9727_v19 = vld [vmem:[#allocation47_spill] sm:$0xff] }
 0x69a   :  { %4127 = vmatpush.bf16.msra.mxu1 %v9717_v25  ;;  %4153 = vmatpush.bf16.msra.mxu3 %v9718_v34  ;;  %v9728_v25 = vld [vmem:[#allocation49_spill] sm:$0xff]  ;;  %v9729_v34 = vld [vmem:[#allocation58_spill] sm:$0xff] }
 0x69c   :  { %4116 = vmatpush.bf16.msra.mxu0 %v9719_v47  ;;  %4142 = vmatpush.bf16.msra.mxu2 %v9720_v12  ;;  %v9730_v47 = vld [vmem:[#allocation60_spill] sm:$0xff]  ;;  %v9731_v12 = vld [vmem:[#allocation51_spill] sm:$0xff] }
 0x69e   :  { %4128 = vmatpush.bf16.msra.mxu1 %v9721_v56  ;;  %4154 = vmatpush.bf16.msra.mxu3 %v9722_v58  ;;  %v9732_v56 = vld [vmem:[#allocation53_spill] sm:$0xff]  ;;  %v9733_v58 = vld [vmem:[#allocation55_spill] sm:$0xff] }
 0x6a0   :  { %4117 = vmatpush.bf16.msra.mxu0 %v9723_v36  ;;  %4143 = vmatpush.bf16.msra.mxu2 %v9724_v57  ;;  %v9734_v36 = vld [vmem:[#allocation57_spill] sm:$0xff]  ;;  %v9735_v57 = vld [vmem:[#allocation62_spill] sm:$0xff] }
 0x6a2   :  { %4129 = vmatpush.bf16.msra.mxu1 %v9727_v19  ;;  %4155 = vmatpush.bf16.msra.mxu3 %v9728_v25  ;;  %v9738_v19 = vld [vmem:[#allocation61_spill] sm:$0xff]  ;;  %v9739_v25 = vld [vmem:[#allocation66_spill] sm:$0xff] }
 0x6a4   :  { %4162 = vmatpush.bf16.msrb.mxu0 %v9725_v50  ;;  %4188 = vmatpush.bf16.msrb.mxu2 %v9726_v49  ;;  %v9736_v50 = vld [vmem:[#allocation64_spill] sm:$0xff]  ;;  %v9737_v49 = vld [vmem:[#allocation59_spill] sm:$0xff] }
 0x6a6   :  { %4130 = vmatpush.bf16.msra.mxu1 %v9731_v12  ;;  %4156 = vmatpush.bf16.msra.mxu3 %v9732_v56  ;;  %v9742_v12 = vld [vmem:[#allocation65_spill] sm:$0xff]  ;;  %v9743_v56 = vld [vmem:[#allocation70_spill] sm:$0xff] }
 0x6a8   :  { %4163 = vmatpush.bf16.msrb.mxu0 %v9729_v34  ;;  %4189 = vmatpush.bf16.msrb.mxu2 %v9730_v47  ;;  %v9740_v34 = vld [vmem:[#allocation68_spill] sm:$0xff]  ;;  %v9741_v47 = vld [vmem:[#allocation63_spill] sm:$0xff] }
 0x6aa   :  { %4175 = vmatpush.bf16.msrb.mxu1 %v9733_v58  ;;  %4201 = vmatpush.bf16.msrb.mxu3 %v9734_v36  ;;  %v9744_v58 = vld [vmem:[#allocation72_spill] sm:$0xff]  ;;  %v9745_v36 = vld [vmem:[#allocation67_spill] sm:$0xff] }
 0x6ac   :  { %4164 = vmatpush.bf16.msrb.mxu0 %v9735_v57  ;;  %4190 = vmatpush.bf16.msrb.mxu2 %v9736_v50  ;;  %v9746_v57 = vld [vmem:[#allocation69_spill] sm:$0xff]  ;;  %v9747_v50 = vld [vmem:[#allocation74_spill] sm:$0xff] }
 0x6ae   :  { %4176 = vmatpush.bf16.msrb.mxu1 %v9737_v49  ;;  %4202 = vmatpush.bf16.msrb.mxu3 %v9738_v19  ;;  %v9748_v49 = vld [vmem:[#allocation76_spill] sm:$0xff]  ;;  %v9749_v19 = vld [vmem:[#allocation71_spill] sm:$0xff] }
 0x6b0   :  { %4165 = vmatpush.bf16.msrb.mxu0 %v9739_v25  ;;  %4191 = vmatpush.bf16.msrb.mxu2 %v9740_v34  ;;  %v9750_v25 = vld [vmem:[#allocation73_spill] sm:$0xff]  ;;  %v9751_v34 = vld [vmem:[#allocation78_spill] sm:$0xff] }
 0x6b2   :  { %4177 = vmatpush.bf16.msrb.mxu1 %v9741_v47  ;;  %4203 = vmatpush.bf16.msrb.mxu3 %v9742_v12  ;;  %v9752_v47 = vld [vmem:[#allocation80_spill] sm:$0xff]  ;;  %v9753_v12 = vld [vmem:[#allocation75_spill] sm:$0xff] }
 0x6b4   :  { %4166 = vmatpush.bf16.msrb.mxu0 %v9743_v56  ;;  %4192 = vmatpush.bf16.msrb.mxu2 %v9744_v58  ;;  %v9754_v56 = vld [vmem:[#allocation77_spill] sm:$0xff]  ;;  %v9755_v58 = vld [vmem:[#allocation82_spill] sm:$0xff] }
 0x6b6   :  { %4178 = vmatpush.bf16.msrb.mxu1 %v9745_v36  ;;  %4204 = vmatpush.bf16.msrb.mxu3 %v9746_v57  ;;  %v9756_v36 = vld [vmem:[#allocation84_spill] sm:$0xff]  ;;  %v9757_v57 = vld [vmem:[#allocation79_spill] sm:$0xff] }
 0x6b8   :  { %4167 = vmatpush.bf16.msrb.mxu0 %v9747_v50  ;;  %4193 = vmatpush.bf16.msrb.mxu2 %v9748_v49  ;;  %v9758_v50 = vld [vmem:[#allocation81_spill] sm:$0xff]  ;;  %v9759_v49 = vld [vmem:[#allocation83_spill] sm:$0xff] }
 0x6ba   :  { %4179 = vmatpush.bf16.msrb.mxu1 %v9749_v19  ;;  %4205 = vmatpush.bf16.msrb.mxu3 %v9750_v25  ;;  %v9760_v19 = vld [vmem:[#allocation85_spill] sm:$0xff] }
 0x6bc   :  { %4168 = vmatpush.bf16.msrb.mxu0 %v9751_v34  ;;  %4194 = vmatpush.bf16.msrb.mxu2 %v9752_v47 }
 0x6be   :  { %4180 = vmatpush.bf16.msrb.mxu1 %v9753_v12  ;;  %4206 = vmatpush.bf16.msrb.mxu3 %v9754_v56  ;;  %v9761_v12 = vld [vmem:[#allocation165_spill] sm:$0xff] }
 0x6c0   :  { %4169 = vmatpush.bf16.msrb.mxu0 %v9755_v58  ;;  %4195 = vmatpush.bf16.msrb.mxu2 %v9756_v36  ;;  %v3764_v25 = vpop.f32.mrf.mxu0 }
 0x6c2   :  { %4181 = vmatpush.bf16.msrb.mxu1 %v9757_v57  ;;  %4207 = vmatpush.bf16.msrb.mxu3 %v9758_v50  ;;  %v9762_v57 = vld [vmem:[#allocation167_spill] sm:$0xff] }
 0x6c6   :  { %4182 = vmatpush.bf16.msrb.mxu1 %v9759_v49  ;;  %4208 = vmatpush.bf16.msrb.mxu3 %v9760_v19  ;;  %v3777_v34 = vpop.f32.mrf.mxu1  ;;  %v3790_v8 = vpop.f32.mrf.mxu2 }
 0x6c7   :  { %v3778_v47 = vadd.f32 %v3777_v34, %v3764_v25 }
 0x6c8   :  { %v3766_v40 = vpop.f32.mrf.mxu0 }
 0x6c9   :  { %v3963_v55 = vadd.f32 %v3778_v47, %v9761_v12 }
 0x6cb   :  { %v5534_v56 = vmul.f32 -1.442695, %v3963_v55  ;;  %v9763_v55 = vld [vmem:[#allocation173_spill] sm:$0xff] }
 0x6cc   :  { %v3803_v20 = vpop.f32.mrf.mxu3 }
 0x6cd   :  { %6066 = vpow2.f32 %v5534_v56  ;;  %v3804_v58 = vadd.f32 %v3803_v20, %v3790_v8 }
 0x6ce   :  { %v3779_v36 = vpop.f32.mrf.mxu1  ;;  %v3792_v32 = vpop.f32.mrf.mxu2 }
 0x6cf   :  { %v3964_v24 = vadd.f32 %v3804_v58, %v9762_v57 }
 0x6d0   :  { %v3816_v50 = vpop.f32.mrf.mxu0 }
 0x6d1   :  { %v5535_v17 = vmul.f32 -1.442695, %v3964_v24 }
 0x6d3   :  { %v6067_v49 = vpop.eup %6066  ;;  %6068 = vpow2.f32 %v5535_v17 }
 0x6d4   :  { %v3977_v19 = vadd.f32 1.0, %v6067_v49  ;;  %v3805_v2 = vpop.f32.mrf.mxu3 }
 0x6d5   :  { %v9764_v2 = vld [vmem:[#allocation177_spill] sm:$0xff] }
 0x6d6   :  { %v3829_v26 = vpop.f32.mrf.mxu1  ;;  %v3842_v27 = vpop.f32.mrf.mxu2  ;;  %6070 = vrcp.f32 %v3977_v19  ;;  %v3988_v5 = vand.u32 2147483647, %v3977_v19  ;;  %vm3984_vm1 = vweird.f32 %v3977_v19 }
 0x6d7   :  { %v3830_v40 = vadd.f32 %v3829_v26, %v3816_v50 }
 0x6d8   :  { %v3818_v25 = vpop.f32.mrf.mxu0  ;;  %vm8369_vm3 = vcmp.eq.f32.partialorder %v3988_v5, 8.507059e+37 }
 0x6d9   :  { %v6069_v34 = vpop.eup %6068  ;;  %v3965_v47 = vadd.f32 %v3830_v40, %v9763_v55 }
 0x6da   :  { %v8352_v12 = vadd.f32 1.0, %v6069_v34 }
 0x6db   :  { %v5536_v20 = vmul.f32 -1.442695, %v3965_v47 }
 0x6dc   :  { %6072 = vrcp.f32 %v8352_v12  ;;  %v3855_v32 = vpop.f32.mrf.mxu3  ;;  %v6071_v8 = vpop.eup %6070  ;;  %vm3999_vm6 = vweird.f32 %v8352_v12  ;;  %v4003_v5 = vand.u32 2147483647, %v8352_v12 }
 0x6dd   :  { %6074 = vpow2.f32 %v5536_v20  ;;  %v3856_v24 = vadd.f32 %v3855_v32, %v3842_v27  ;;  %v3980_v36 = vmul.f32 %v6071_v8, %v3977_v19  ;;  %vm3985_vm0 = vweird.f32 %v6071_v8 }
 0x6de   :  { %v3831_v17 = vpop.f32.mrf.mxu1  ;;  %v3844_v56 = vpop.f32.mrf.mxu2  ;;  %vm8365_vm2 = vmor %vm3984_vm1, %vm3985_vm0  ;;  %vm4004_vm11 = vcmp.eq.f32.partialorder %v4003_v5, 8.507059e+37 }
 0x6df   :  { %v3966_v58 = vadd.f32 %v3856_v24, %v9764_v2  ;;  %v3981_v40 = vsub.f32 1.0, %v3980_v36 }
 0x6e0   :  { %v3868_v57 = vpop.f32.mrf.mxu0 }
 0x6e1   :  { %v5537_v26 = vmul.f32 -1.442695, %v3966_v58  ;;  %v3982_v32 = vmul.f32 %v6071_v8, %v3981_v40  ;;  %v9765_v58 = vld [vmem:[#allocation210_spill] sm:$0xff] }
 0x6e2   :  { %v8356_v50 = vpop.eup %6072 }
 0x6e3   :  { %v6075_v49 = vpop.eup %6074  ;;  %6076 = vpow2.f32 %v5537_v26  ;;  %v3995_v55 = vmul.f32 %v8356_v50, %v8352_v12  ;;  %v3990_v26 = vand.u32 2147483648, %v3977_v19  ;;  %vm4000_vm4 = vweird.f32 %v8356_v50 }
 0x6e4   :  { %v4015_v25 = vadd.f32 1.0, %v6075_v49  ;;  %v3857_v34 = vpop.f32.mrf.mxu3  ;;  %v3983_v49 = vadd.f32 %v6071_v8, %v3982_v32  ;;  %vm8386_vm8 = vmor %vm3999_vm6, %vm4000_vm4 }
 0x6e5   :  { %v3996_v56 = vsub.f32 1.0, %v3995_v55 }
 0x6e6   :  { %6078 = vrcp.f32 %v4015_v25  ;;  %v3894_v47 = vpop.f32.mrf.mxu2  ;;  %v3881_v27 = vpop.f32.mrf.mxu1  ;;  %v4026_v19 = vand.u32 2147483647, %v4015_v25  ;;  %vm4022_vm7 = vweird.f32 %v4015_v25 }
 0x6e7   :  { %v3882_v20 = vadd.f32 %v3881_v27, %v3868_v57  ;;  %v3997_v57 = vmul.f32 %v8356_v50, %v3996_v56 }
 0x6e8   :  { %v3870_v17 = vpop.f32.mrf.mxu0  ;;  %vm4027_vm10 = vcmp.eq.f32.partialorder %v4026_v19, 8.507059e+37 }
 0x6e9   :  { %v6077_v24 = vpop.eup %6076  ;;  %v3967_v0 = vadd.f32 %v3882_v20, %v9765_v58  ;;  %v4028_v58 = vand.u32 2147483648, %v4015_v25 }
 0x6ea   :  { %v8360_v2 = vadd.f32 1.0, %v6077_v24  ;;  %v3991_v24 = vor.u32 1.1754944e-38, %v3990_v26  ;;  %v4005_v26 = vand.u32 2147483648, %v8352_v12 }
 0x6ec   :  { %v6079_v36 = vpop.eup %6078  ;;  %6080 = vrcp.f32 %v8360_v2  ;;  %v3907_v30 = vpop.f32.mrf.mxu3  ;;  %v4043_v20 = vand.u32 2147483648, %v8360_v2  ;;  %vm4037_vm13 = vweird.f32 %v8360_v2 }
 0x6ed   :  { %v4018_v34 = vmul.f32 %v6079_v36, %v4015_v25  ;;  %6082 = vtanh.f32 %v3967_v0  ;;  %v3908_v40 = vadd.f32 %v3907_v30, %v3894_v47  ;;  %v3987_v0 = vsel %vm8365_vm2, %v6071_v8, %v3983_v49 }
 0x6ee   :  { %v3896_v27 = vpop.f32.mrf.mxu2  ;;  %v3883_v32 = vpop.f32.mrf.mxu1  ;;  %vm4023_vm5 = vweird.f32 %v6079_v36  ;;  %v3998_v47 = vadd.f32 %v8356_v50, %v3997_v57 }
 0x6ef   :  { %v4019_v55 = vsub.f32 1.0, %v4018_v34  ;;  %v3968_v56 = vadd.f32 %v3908_v40, %v9770_v29  ;;  %v3992_v29 = vsel %vm8369_vm3, %v3991_v24, %v3987_v0  ;;  %vm4024_vm9 = vmor %vm4022_vm7, %vm4023_vm5  ;;  %v4029_v40 = vor.u32 1.1754944e-38, %v4028_v58 }
 0x6f0   :  { %v4002_v25 = vsel %vm8386_vm8, %v8356_v50, %v3998_v47  ;;  %v4006_v0 = vor.u32 1.1754944e-38, %v4005_v26  ;;  %v4041_v58 = vand.u32 2147483647, %v8360_v2  ;;  %v4044_v47 = vor.u32 1.1754944e-38, %v4043_v20 }
 0x6f1   :  { %v4020_v30 = vmul.f32 %v6079_v36, %v4019_v55  ;;  %6084 = vtanh.f32 %v3968_v56 }
 0x6f2   :  { %v6081_v34 = vpop.eup %6080  ;;  %vm4042_vm15 = vcmp.eq.f32.partialorder %v4041_v58, 8.507059e+37 }
 0x6f3   :  { %v6083_v27 = vpop.eup %6082  ;;  %v4033_v8 = vmul.f32 %v6081_v34, %v8360_v2  ;;  %v4021_v49 = vadd.f32 %v6079_v36, %v4020_v30  ;;  %vm4038_vm12 = vweird.f32 %v6081_v34 }
 0x6f4   :  { %v4089_v55 = vmul.f32 %v6083_v27, %v3992_v29  ;;  %v3909_v32 = vpop.f32.mrf.mxu3  ;;  %vm4039_vm14 = vmor %vm4037_vm13, %vm4038_vm12 }
 0x6f5   :  { %v4034_v17 = vsub.f32 1.0, %v4033_v8  ;;  %v4025_v12 = vsel %vm4024_vm9, %v6079_v36, %v4021_v49  ;;  %v4007_v8 = vsel %vm4004_vm11, %v4006_v0, %v4002_v25  ;;  %v9773_v25 = vld [vmem:[#allocation212_spill] sm:$0xff] }
 0x6f6   :  { %v4030_v24 = vsel %vm4027_vm10, %v4029_v40, %v4025_v12 }
 0x6f7   :  { %v4035_v56 = vmul.f32 %v6081_v34, %v4034_v17  ;;  %v4087_v30 = vmul.f32 %v4030_v24, %v8190_v33  ;;  %v6085_v27 = vpop.eup %6084 }
 0x6f8   :  { %v4090_v50 = vmul.f32 %v6085_v27, %v4007_v8 }
 0x6f9   :  { %v8397_v36 = vadd.f32 %v4089_v55, %v4087_v30  ;;  %v4036_v19 = vadd.f32 %v6081_v34, %v4035_v56 }
 0x6fb   :  { %v4040_v29 = vsel %vm4039_vm14, %v6081_v34, %v4036_v19  ;;  %v9774_v34 = vld [vmem:[#allocation214_spill] sm:$0xff] }
 0x6fc   :  { %v4045_v5 = vsel %vm4042_vm15, %v4044_v47, %v4040_v29 }
 0x6fd   :  { %v4088_v26 = vmul.f32 %v4045_v5, %v8193_v4 }
 0x6ff   :  { %v8400_v57 = vadd.f32 %v4090_v50, %v4088_v26 }
 0x700   :  { %v3920_v49 = vpop.f32.mrf.mxu0 }
 0x706   :  { %v3933_v33 = vpop.f32.mrf.mxu1  ;;  %v3946_v40 = vpop.f32.mrf.mxu2 }
 0x707   :  { %v3934_v17 = vadd.f32 %v3933_v33, %v3920_v49 }
 0x708   :  { %v3922_v12 = vpop.f32.mrf.mxu0 }
 0x709   :  { %v3969_v2 = vadd.f32 %v3934_v17, %v9773_v25 }
 0x70b   :  { %v5538_v55 = vmul.f32 -1.442695, %v3969_v2 }
 0x70c   :  { %v3959_v32 = vpop.f32.mrf.mxu3 }
 0x70d   :  { %6086 = vpow2.f32 %v5538_v55  ;;  %v3960_v24 = vadd.f32 %v3959_v32, %v3946_v40 }
 0x70e   :  { %v3935_v0 = vpop.f32.mrf.mxu1  ;;  %v3948_v20 = vpop.f32.mrf.mxu2 }
 0x70f   :  { %v3970_v56 = vadd.f32 %v3960_v24, %v9774_v34 }
 0x711   :  { %v5539_v30 = vmul.f32 -1.442695, %v3970_v56 }
 0x713   :  { %v6087_v58 = vpop.eup %6086  ;;  %6088 = vpow2.f32 %v5539_v30 }
 0x714   :  { %v4055_v4 = vadd.f32 1.0, %v6087_v58  ;;  %v3961_v27 = vpop.f32.mrf.mxu3 }
 0x716   :  { %6090 = vrcp.f32 %v4055_v4  ;;  %v4068_v5 = vand.u32 2147483648, %v4055_v4  ;;  %v4066_v49 = vand.u32 2147483647, %v4055_v4  ;;  %vm4062_vm1 = vweird.f32 %v4055_v4 }
 0x718   :  { %v4069_v12 = vor.u32 1.1754944e-38, %v4068_v5  ;;  %vm4067_vm3 = vcmp.eq.f32.partialorder %v4066_v49, 8.507059e+37  ;;  %v9805_v5 = vld [vmem:[#allocation178_spill] sm:$0xff] }
 0x719   :  { %v6089_v8 = vpop.eup %6088 }
 0x71a   :  { %v4056_v19 = vadd.f32 1.0, %v6089_v8 }
 0x71c   :  { %v6091_v50 = vpop.eup %6090  ;;  %6092 = vrcp.f32 %v4056_v19  ;;  %v4083_v24 = vand.u32 2147483648, %v4056_v19  ;;  %v4081_v34 = vand.u32 2147483647, %v4056_v19  ;;  %vm4077_vm5 = vweird.f32 %v4056_v19 }
 0x71d   :  { %v4058_v47 = vmul.f32 %v6091_v50, %v4055_v4  ;;  %6094 = vtanh.f32 %v8397_v36  ;;  %vm4063_vm0 = vweird.f32 %v6091_v50 }
 0x71e   :  { %vm4064_vm2 = vmor %vm4062_vm1, %vm4063_vm0  ;;  %6096 = vtanh.f32 %v8400_v57  ;;  %v4084_v58 = vor.u32 1.1754944e-38, %v4083_v24  ;;  %vm4082_vm7 = vcmp.eq.f32.partialorder %v4081_v34, 8.507059e+37  ;;  %v9807_v34 = vld [vmem:[#allocation184_spill] sm:$0xff] }
 0x71f   :  { %v4059_v29 = vsub.f32 1.0, %v4058_v47 }
 0x721   :  { %v4060_v26 = vmul.f32 %v6091_v50, %v4059_v29  ;;  %v9804_v29 = vld [vmem:[#allocation110_spill] sm:$0xff] }
 0x722   :  { %v6093_v33 = vpop.eup %6092 }
 0x723   :  { %v4061_v40 = vadd.f32 %v6091_v50, %v4060_v26  ;;  %v4073_v17 = vmul.f32 %v6093_v33, %v4056_v19  ;;  %v6095_v55 = vpop.eup %6094  ;;  %vm4078_vm4 = vweird.f32 %v6093_v33  ;;  %v600_v26 = vadd.f32 %v9805_v5, %v9804_v29  ;;  %v9812_v29 = vld [vmem:[#allocation190_spill] sm:$0xff]  ;;  %v9813_v5 = vld [vmem:[#allocation215_spill] sm:$0xff] }
 0x724   :  { %vm4079_vm6 = vmor %vm4077_vm5, %vm4078_vm4  ;;  %v6097_v27 = vpop.eup %6096 }
 0x725   :  { %v4065_v25 = vsel %vm4064_vm2, %v6091_v50, %v4061_v40  ;;  %v4074_v2 = vsub.f32 1.0, %v4073_v17 }
 0x726   :  { %v4070_v32 = vsel %vm4067_vm3, %v4069_v12, %v4065_v25 }
 0x727   :  { %v4095_v0 = vmul.f32 %v6095_v55, %v4070_v32  ;;  %v4075_v20 = vmul.f32 %v6093_v33, %v4074_v2 }
 0x729   :  { %v8406_v56 = vpack.c.bf16 %v4095_v0, %v4095_v0  ;;  %v4076_v30 = vadd.f32 %v6093_v33, %v4075_v20  ;;  %v9806_v20 = vld [vmem:[#allocation118_spill] sm:$0xff] }
 0x72b   :  { %v4080_v4 = vsel %vm4079_vm6, %v6093_v33, %v4076_v30  ;;  %4118 = vmatmul.bf16.vlgmr.msra.gmra.mxu0 %v8406_v56  ;;  %4144 = vmatmul.bf16.vlgmr.msra.gmra.mxu2 %v8406_v56 }
 0x72c   :  { %v4085_v8 = vsel %vm4082_vm7, %v4084_v58, %v4080_v4  ;;  %4214 = vmatpush.bf16.msra.mxu0 %v9112_v63  ;;  %4240 = vmatpush.bf16.msra.mxu2 %v9113_v11  ;;  %v9775_v63 = vld [vmem:[#allocation142_spill] sm:$0xff]  ;;  %v9776_v11 = vld [vmem:[#allocation148_spill] sm:$0xff] }
 0x72d   :  { %v4096_v50 = vmul.f32 %v6097_v27, %v4085_v8 }
 0x72f   :  { %v8412_v47 = vpack.c.bf16 %v4096_v50, %v4096_v50 }
 0x730   :  { %4215 = vmatpush.bf16.msra.mxu0 %v9114_v46  ;;  %4241 = vmatpush.bf16.msra.mxu2 %v9115_v38  ;;  %v9777_v46 = vld [vmem:[#allocation152_spill] sm:$0xff]  ;;  %v9778_v38 = vld [vmem:[#allocation145_spill] sm:$0xff] }
 0x731   :  { %4131 = vmatmul.bf16.vlgmr.msra.gmra.mxu1 %v8412_v47  ;;  %4157 = vmatmul.bf16.vlgmr.msra.gmra.mxu3 %v8412_v47 }
 0x732   :  { %4227 = vmatpush.bf16.msra.mxu1 %v9116_v60  ;;  %4253 = vmatpush.bf16.msra.mxu3 %v9117_v1  ;;  %v9779_v60 = vld [vmem:[#allocation147_spill] sm:$0xff]  ;;  %v9780_v1 = vld [vmem:[#allocation156_spill] sm:$0xff] }
 0x734   :  { %4216 = vmatpush.bf16.msra.mxu0 %v9118_v42  ;;  %4242 = vmatpush.bf16.msra.mxu2 %v9119_v22  ;;  %v9781_v42 = vld [vmem:[#allocation158_spill] sm:$0xff]  ;;  %v9782_v22 = vld [vmem:[#allocation151_spill] sm:$0xff] }
 0x736   :  { %4228 = vmatpush.bf16.msra.mxu1 %v9120_v14  ;;  %4254 = vmatpush.bf16.msra.mxu3 %v9121_v6  ;;  %v9783_v14 = vld [vmem:[#allocation155_spill] sm:$0xff]  ;;  %v9784_v6 = vld [vmem:[#allocation161_spill] sm:$0xff] }
 0x738   :  { %4217 = vmatpush.bf16.msra.mxu0 %v9122_v62  ;;  %4243 = vmatpush.bf16.msra.mxu2 %v9123_v52  ;;  %v9785_v62 = vld [vmem:[#allocation164_spill] sm:$0xff]  ;;  %v9786_v52 = vld [vmem:[#allocation157_spill] sm:$0xff] }
 0x73a   :  { %4229 = vmatpush.bf16.msra.mxu1 %v9124_v61  ;;  %4255 = vmatpush.bf16.msra.mxu3 %v9125_v16  ;;  %v9787_v61 = vld [vmem:[#allocation159_spill] sm:$0xff]  ;;  %v9788_v16 = vld [vmem:[#allocation168_spill] sm:$0xff] }
 0x73b   :  { %4170 = vmatmul.bf16.vlgmr.msrb.gmra.mxu0 %v8406_v56  ;;  %4196 = vmatmul.bf16.vlgmr.msrb.gmra.mxu2 %v8406_v56 }
 0x73c   :  { %4218 = vmatpush.bf16.msra.mxu0 %v9126_v44  ;;  %4244 = vmatpush.bf16.msra.mxu2 %v9127_v53  ;;  %v9789_v44 = vld [vmem:[#allocation170_spill] sm:$0xff]  ;;  %v9790_v53 = vld [vmem:[#allocation163_spill] sm:$0xff] }
 0x73e   :  { %4230 = vmatpush.bf16.msra.mxu1 %v9128_v10  ;;  %4256 = vmatpush.bf16.msra.mxu3 %v9129_v15  ;;  %v9791_v10 = vld [vmem:[#allocation166_spill] sm:$0xff]  ;;  %v9792_v15 = vld [vmem:[#allocation172_spill] sm:$0xff] }
 0x740   :  { %4219 = vmatpush.bf16.msra.mxu0 %v9130_v41  ;;  %4245 = vmatpush.bf16.msra.mxu2 %v9131_v31  ;;  %v9793_v41 = vld [vmem:[#allocation176_spill] sm:$0xff]  ;;  %v9794_v31 = vld [vmem:[#allocation169_spill] sm:$0xff] }
 0x741   :  { %4183 = vmatmul.bf16.vlgmr.msrb.gmra.mxu1 %v8412_v47  ;;  %4209 = vmatmul.bf16.vlgmr.msrb.gmra.mxu3 %v8412_v47 }
 0x742   :  { %4231 = vmatpush.bf16.msra.mxu1 %v9229_v35  ;;  %4257 = vmatpush.bf16.msra.mxu3 %v9230_v48  ;;  %v9795_v35 = vld [vmem:[#allocation171_spill] sm:$0xff]  ;;  %v9796_v48 = vld [vmem:[#allocation180_spill] sm:$0xff] }
 0x744   :  { %4220 = vmatpush.bf16.msra.mxu0 %v9231_v9  ;;  %4246 = vmatpush.bf16.msra.mxu2 %v9232_v45  ;;  %v9797_v9 = vld [vmem:[#allocation182_spill] sm:$0xff]  ;;  %v9798_v45 = vld [vmem:[#allocation175_spill] sm:$0xff] }
 0x746   :  { %4232 = vmatpush.bf16.msra.mxu1 %v9233_v13  ;;  %4258 = vmatpush.bf16.msra.mxu3 %v9234_v7  ;;  %v9799_v13 = vld [vmem:[#allocation179_spill] sm:$0xff]  ;;  %v9800_v7 = vld [vmem:[#allocation181_spill] sm:$0xff] }
 0x748   :  { %4221 = vmatpush.bf16.msra.mxu0 %v9235_v54  ;;  %4247 = vmatpush.bf16.msra.mxu2 %v9236_v59  ;;  %v9801_v54 = vld [vmem:[#allocation183_spill] sm:$0xff] }
 0x74a   :  { %4233 = vmatpush.bf16.msra.mxu1 %v9239_v28  ;;  %4259 = vmatpush.bf16.msra.mxu3 %v9240_v23  ;;  %v9802_v28 = vld [vmem:[#allocation104_spill] sm:$0xff]  ;;  %v9803_v23 = vld [vmem:[#allocation174_spill] sm:$0xff] }
 0x74b   :  { %4222 = vmatmul.bf16.vlgmr.msra.gmra.mxu0 %v8406_v56  ;;  %4248 = vmatmul.bf16.vlgmr.msra.gmra.mxu2 %v8406_v56 }
 0x74c   :  { %4266 = vmatpush.bf16.msrb.mxu0 %v9237_v51  ;;  %4292 = vmatpush.bf16.msrb.mxu2 %v9238_v3 }
 0x74e   :  { %4234 = vmatpush.bf16.msra.mxu1 %v9243_v37  ;;  %4260 = vmatpush.bf16.msra.mxu3 %v9244_v39 }
 0x750   :  { %4267 = vmatpush.bf16.msrb.mxu0 %v9241_v21  ;;  %4293 = vmatpush.bf16.msrb.mxu2 %v9242_v43  ;;  %v571_v21 = vadd.f32 %v9803_v23, %v9802_v28 }
 0x751   :  { %4235 = vmatmul.bf16.vlgmr.msra.gmra.mxu1 %v8412_v47  ;;  %4261 = vmatmul.bf16.vlgmr.msra.gmra.mxu3 %v8412_v47 }
 0x752   :  { %4279 = vmatpush.bf16.msrb.mxu1 %v9669_v18  ;;  %4305 = vmatpush.bf16.msrb.mxu3 %v9775_v63 }
 0x754   :  { %4268 = vmatpush.bf16.msrb.mxu0 %v9776_v11  ;;  %4294 = vmatpush.bf16.msrb.mxu2 %v9777_v46  ;;  %v9808_v11 = vld [vmem:[#allocation119_spill] sm:$0xff]  ;;  %v9809_v46 = vld [vmem:[#allocation185_spill] sm:$0xff] }
 0x756   :  { %4280 = vmatpush.bf16.msrb.mxu1 %v9778_v38  ;;  %4306 = vmatpush.bf16.msrb.mxu3 %v9779_v60  ;;  %v658_v38 = vadd.f32 %v9809_v46, %v9808_v11 }
 0x758   :  { %4269 = vmatpush.bf16.msrb.mxu0 %v9780_v1  ;;  %4295 = vmatpush.bf16.msrb.mxu2 %v9781_v42 }
 0x75a   :  { %4281 = vmatpush.bf16.msrb.mxu1 %v9782_v22  ;;  %4307 = vmatpush.bf16.msrb.mxu3 %v9783_v14 }
 0x75c   :  { %4270 = vmatpush.bf16.msrb.mxu0 %v9784_v6  ;;  %4296 = vmatpush.bf16.msrb.mxu2 %v9785_v62 }
 0x75e   :  { %4282 = vmatpush.bf16.msrb.mxu1 %v9786_v52  ;;  %4308 = vmatpush.bf16.msrb.mxu3 %v9787_v61 }
 0x760   :  { %4271 = vmatpush.bf16.msrb.mxu0 %v9788_v16  ;;  %4297 = vmatpush.bf16.msrb.mxu2 %v9789_v44 }
 0x762   :  { %4283 = vmatpush.bf16.msrb.mxu1 %v9790_v53  ;;  %4309 = vmatpush.bf16.msrb.mxu3 %v9791_v10 }
 0x764   :  { %4272 = vmatpush.bf16.msrb.mxu0 %v9792_v15  ;;  %4298 = vmatpush.bf16.msrb.mxu2 %v9793_v41 }
 0x766   :  { %4284 = vmatpush.bf16.msrb.mxu1 %v9794_v31  ;;  %4310 = vmatpush.bf16.msrb.mxu3 %v9795_v35  ;;  %v9810_v31 = vld [vmem:[#allocation188_spill] sm:$0xff]  ;;  %v9811_v35 = vld [vmem:[#allocation213_spill] sm:$0xff] }
 0x768   :  { %4273 = vmatpush.bf16.msrb.mxu0 %v9796_v48  ;;  %4299 = vmatpush.bf16.msrb.mxu2 %v9797_v9  ;;  %v687_v48 = vadd.f32 %v9811_v35, %v9810_v31  ;;  %v5837_v35 = vld [vmem:[#allocation13 + $0x18] sm:$0xff] }
 0x76a   :  { %4285 = vmatpush.bf16.msrb.mxu1 %v9798_v45  ;;  %4311 = vmatpush.bf16.msrb.mxu3 %v9799_v13 }
 0x76b   :  { %4274 = vmatmul.bf16.vlgmr.msrb.gmra.mxu0 %v8406_v56  ;;  %4300 = vmatmul.bf16.vlgmr.msrb.gmra.mxu2 %v8406_v56  ;;  %v629_v56 = vadd.f32 %v9807_v34, %v9806_v20  ;;  %v5839_v20 = vld [vmem:[#allocation13 + $0x28] sm:$0xff] }
 0x76e   :  { %4286 = vmatpush.bf16.msrb.mxu1 %v9800_v7  ;;  %4312 = vmatpush.bf16.msrb.mxu3 %v9801_v54  ;;  %v5841_v7 = vld [vmem:[#allocation13 + $0x38] sm:$0xff] }
 0x76f   :  { %4593 = vmatpush.bf16.msra.mxu0 %v5841_v7 }
 0x771   :  { %4287 = vmatmul.bf16.vlgmr.msrb.gmra.mxu1 %v8412_v47  ;;  %4313 = vmatmul.bf16.vlgmr.msrb.gmra.mxu3 %v8412_v47 }
 0x7a8   :  { %v4119_v59 = vpop.f32.mrf.mxu0 }
 0x7ae   :  { %v4132_v51 = vpop.f32.mrf.mxu1  ;;  %v4145_v3 = vpop.f32.mrf.mxu2 }
 0x7af   :  { %v4133_v43 = vadd.f32 %v4132_v51, %v4119_v59 }
 0x7b0   :  { %v4121_v37 = vpop.f32.mrf.mxu0 }
 0x7b1   :  { %v4318_v39 = vadd.f32 %v4133_v43, %v571_v21  ;;  %v5840_v37 = vld [vmem:[#allocation13 + $0x30] sm:$0xff] }
 0x7b2   :  { %4594 = vmatpush.bf16.msra.mxu0 %v5840_v37 }
 0x7b3   :  { %v5540_v18 = vmul.f32 -1.442695, %v4318_v39 }
 0x7b4   :  { %v4158_v19 = vpop.f32.mrf.mxu3 }
 0x7b5   :  { %6098 = vpow2.f32 %v5540_v18  ;;  %v4159_v49 = vadd.f32 %v4158_v19, %v4145_v3 }
 0x7b6   :  { %v4134_v33 = vpop.f32.mrf.mxu1  ;;  %v4147_v40 = vpop.f32.mrf.mxu2  ;;  %4595 = vmatpush.bf16.msra.mxu0 %v5839_v20 }
 0x7b7   :  { %v4319_v17 = vadd.f32 %v4159_v49, %v600_v26  ;;  %v716_v26 = vadd.f32 %v9813_v5, %v9812_v29  ;;  %v5849_v40 = vld [vmem:[#allocation13 + $0x78] sm:$0xff]  ;;  %v5834_v5 = vld [vmem:[#allocation13] sm:$0xff] }
 0x7b8   :  { %v4171_v12 = vpop.f32.mrf.mxu0  ;;  %4606 = vmatpush.bf16.msra.mxu1 %v5849_v40  ;;  %v5842_v40 = vld [vmem:[#allocation13 + $0x40] sm:$0xff] }
 0x7b9   :  { %v5541_v25 = vmul.f32 -1.442695, %v4319_v17 }
 0x7bb   :  { %v6099_v2 = vpop.eup %6098  ;;  %6100 = vpow2.f32 %v5541_v25  ;;  %v9823_v25 = vld [vmem:[#allocation217_spill] sm:$0xff] }
 0x7bc   :  { %v8494_v55 = vadd.f32 1.0, %v6099_v2  ;;  %v4160_v32 = vpop.f32.mrf.mxu3 }
 0x7be   :  { %v4184_v24 = vpop.f32.mrf.mxu1  ;;  %v4197_v0 = vpop.f32.mrf.mxu2  ;;  %6102 = vrcp.f32 %v8494_v55  ;;  %v4343_v28 = vand.u32 2147483647, %v8494_v55  ;;  %v4345_v23 = vand.u32 2147483648, %v8494_v55  ;;  %vm4339_vm9 = vweird.f32 %v8494_v55 }
 0x7bf   :  { %v4185_v30 = vadd.f32 %v4184_v24, %v4171_v12  ;;  %v9822_v12 = vld [vmem:[#allocation195_spill] sm:$0xff] }
 0x7c0   :  { %v4173_v58 = vpop.f32.mrf.mxu0  ;;  %vm8534_vm11 = vcmp.eq.f32.partialorder %v4343_v28, 8.507059e+37  ;;  %v4346_v2 = vor.u32 1.1754944e-38, %v4345_v23  ;;  %v5845_v28 = vld [vmem:[#allocation13 + $0x58] sm:$0xff] }
 0x7c1   :  { %v6101_v4 = vpop.eup %6100  ;;  %v4320_v27 = vadd.f32 %v4185_v30, %v629_v56 }
 0x7c2   :  { %v8499_v8 = vadd.f32 1.0, %v6101_v4 }
 0x7c3   :  { %v5542_v50 = vmul.f32 -1.442695, %v4320_v27 }
 0x7c4   :  { %6104 = vrcp.f32 %v8499_v8  ;;  %v4210_v47 = vpop.f32.mrf.mxu3  ;;  %v8502_v63 = vpop.eup %6102  ;;  %vm4354_vm14 = vweird.f32 %v8499_v8  ;;  %v4358_v4 = vand.u32 2147483647, %v8499_v8  ;;  %v4360_v27 = vand.u32 2147483648, %v8499_v8 }
 0x7c5   :  { %6106 = vpow2.f32 %v5542_v50  ;;  %v4211_v60 = vadd.f32 %v4210_v47, %v4197_v0  ;;  %v4335_v14 = vmul.f32 %v8502_v63, %v8494_v55  ;;  %vm4340_vm8 = vweird.f32 %v8502_v63  ;;  %v5848_v50 = vld [vmem:[#allocation13 + $0x70] sm:$0xff] }
 0x7c6   :  { %v4186_v1 = vpop.f32.mrf.mxu1  ;;  %v4199_v42 = vpop.f32.mrf.mxu2  ;;  %vm8530_vm10 = vmor %vm4339_vm9, %vm4340_vm8  ;;  %4607 = vmatpush.bf16.msra.mxu1 %v5848_v50  ;;  %vm4359_vm3 = vcmp.eq.f32.partialorder %v4358_v4, 8.507059e+37 }
 0x7c7   :  { %v4321_v22 = vadd.f32 %v4211_v60, %v658_v38  ;;  %v4336_v16 = vsub.f32 1.0, %v4335_v14  ;;  %v5838_v1 = vld [vmem:[#allocation13 + $0x20] sm:$0xff] }
 0x7c8   :  { %v4223_v6 = vpop.f32.mrf.mxu0  ;;  %4596 = vmatpush.bf16.msra.mxu0 %v5838_v1 }
 0x7c9   :  { %v5543_v62 = vmul.f32 -1.442695, %v4321_v22  ;;  %v4337_v45 = vmul.f32 %v8502_v63, %v4336_v16  ;;  %v4361_v16 = vor.u32 1.1754944e-38, %v4360_v27  ;;  %v5855_v27 = vld [vmem:[#allocation14 + $0x28] sm:$0xff] }
 0x7ca   :  { %v8508_v52 = vpop.eup %6104 }
 0x7cb   :  { %v6107_v61 = vpop.eup %6106  ;;  %6108 = vpow2.f32 %v5543_v62  ;;  %v4350_v10 = vmul.f32 %v8508_v52, %v8499_v8  ;;  %v4338_v43 = vadd.f32 %v8502_v63, %v4337_v45  ;;  %vm4355_vm12 = vweird.f32 %v8508_v52 }
 0x7cc   :  { %v8510_v44 = vadd.f32 1.0, %v6107_v61  ;;  %v4212_v53 = vpop.f32.mrf.mxu3  ;;  %vm8554_vm0 = vmor %vm4354_vm14, %vm4355_vm12  ;;  %4597 = vmatpush.bf16.msra.mxu0 %v5837_v35 }
 0x7cd   :  { %v4351_v59 = vsub.f32 1.0, %v4350_v10  ;;  %v4342_v55 = vsel %vm8530_vm10, %v8502_v63, %v4338_v43 }
 0x7ce   :  { %6110 = vrcp.f32 %v8510_v44  ;;  %v4249_v15 = vpop.f32.mrf.mxu2  ;;  %v4236_v41 = vpop.f32.mrf.mxu1  ;;  %v4383_v24 = vand.u32 2147483648, %v8510_v44  ;;  %v4381_v56 = vand.u32 2147483647, %v8510_v44  ;;  %vm4377_vm15 = vweird.f32 %v8510_v44 }
 0x7cf   :  { %v4237_v9 = vadd.f32 %v4236_v41, %v4223_v6  ;;  %v4352_v19 = vmul.f32 %v8508_v52, %v4351_v59  ;;  %v4347_v11 = vsel %vm8534_vm11, %v4346_v2, %v4342_v55  ;;  %v774_v2 = vadd.f32 %v9823_v25, %v9822_v12 }
 0x7d0   :  { %v4225_v13 = vpop.f32.mrf.mxu0  ;;  %v4384_v8 = vor.u32 1.1754944e-38, %v4383_v24  ;;  %vm4382_vm2 = vcmp.eq.f32.partialorder %v4381_v56, 8.507059e+37 }
 0x7d1   :  { %v6109_v54 = vpop.eup %6108  ;;  %v4322_v3 = vadd.f32 %v4237_v9, %v687_v48  ;;  %v4353_v30 = vadd.f32 %v8508_v52, %v4352_v19  ;;  %v5846_v13 = vld [vmem:[#allocation13 + $0x60] sm:$0xff] }
 0x7d2   :  { %v8518_v51 = vadd.f32 1.0, %v6109_v54 }
 0x7d3   :  { %v4357_v14 = vsel %vm8554_vm0, %v8508_v52, %v4353_v30  ;;  %v5856_v30 = vld [vmem:[#allocation14 + $0x30] sm:$0xff] }
 0x7d4   :  { %v6111_v21 = vpop.eup %6110  ;;  %6112 = vrcp.f32 %v8518_v51  ;;  %v4262_v18 = vpop.f32.mrf.mxu3  ;;  %v4398_v62 = vand.u32 2147483648, %v8518_v51  ;;  %v4362_v31 = vsel %vm4359_vm3, %v4361_v16, %v4357_v14  ;;  %vm4392_vm5 = vweird.f32 %v8518_v51 }
 0x7d5   :  { %v4373_v39 = vmul.f32 %v6111_v21, %v8510_v44  ;;  %6114 = vtanh.f32 %v4322_v3  ;;  %v4263_v49 = vadd.f32 %v4262_v18, %v4249_v15  ;;  %vm4378_vm13 = vweird.f32 %v6111_v21  ;;  %v5847_v44 = vld [vmem:[#allocation13 + $0x68] sm:$0xff]  ;;  %v9821_v18 = vld [vmem:[#allocation216_spill] sm:$0xff] }
 0x7d6   :  { %v4251_v33 = vpop.f32.mrf.mxu2  ;;  %v4238_v32 = vpop.f32.mrf.mxu1  ;;  %vm4379_vm1 = vmor %vm4377_vm15, %vm4378_vm13  ;;  %v4396_v15 = vand.u32 2147483647, %v8518_v51  ;;  %4608 = vmatpush.bf16.msra.mxu1 %v5847_v44  ;;  %v4399_v45 = vor.u32 1.1754944e-38, %v4398_v62 }
 0x7d7   :  { %v4374_v17 = vsub.f32 1.0, %v4373_v39  ;;  %v4323_v0 = vadd.f32 %v4263_v49, %v716_v26  ;;  %v9820_v39 = vld [vmem:[#allocation194_spill] sm:$0xff] }
 0x7d8   :  { %vm4397_vm7 = vcmp.eq.f32.partialorder %v4396_v15, 8.507059e+37  ;;  %v745_v19 = vadd.f32 %v9821_v18, %v9820_v39  ;;  %v5843_v26 = vld [vmem:[#allocation13 + $0x48] sm:$0xff] }
 0x7d9   :  { %v4375_v34 = vmul.f32 %v6111_v21, %v4374_v17  ;;  %6116 = vtanh.f32 %v4323_v0 }
 0x7da   :  { %v6113_v58 = vpop.eup %6112  ;;  %4609 = vmatpush.bf16.msra.mxu1 %v5846_v13 }
 0x7db   :  { %v6115_v47 = vpop.eup %6114  ;;  %v4388_v63 = vmul.f32 %v6113_v58, %v8518_v51  ;;  %v4376_v46 = vadd.f32 %v6111_v21, %v4375_v34  ;;  %vm4393_vm4 = vweird.f32 %v6113_v58  ;;  %v5835_v51 = vld [vmem:[#allocation13 + $0x8] sm:$0xff]  ;;  %v5857_v34 = vld [vmem:[#allocation14 + $0x38] sm:$0xff] }
 0x7dc   :  { %v4444_v60 = vmul.f32 %v6115_v47, %v4347_v11  ;;  %v4264_v6 = vpop.f32.mrf.mxu3  ;;  %vm4394_vm6 = vmor %vm4392_vm5, %vm4393_vm4  ;;  %4689 = vmatpush.bf16.msra.mxu2 %v5857_v34 }
 0x7dd   :  { %v4389_v42 = vsub.f32 1.0, %v4388_v63  ;;  %v4380_v22 = vsel %vm4379_vm1, %v6111_v21, %v4376_v46  ;;  %v5844_v21 = vld [vmem:[#allocation13 + $0x50] sm:$0xff]  ;;  %v5854_v63 = vld [vmem:[#allocation14 + $0x20] sm:$0xff] }
 0x7de   :  { %v4385_v61 = vsel %vm4382_vm2, %v4384_v8, %v4380_v22  ;;  %4610 = vmatpush.bf16.msra.mxu1 %v5845_v28  ;;  %v5853_v8 = vld [vmem:[#allocation14 + $0x18] sm:$0xff] }
 0x7df   :  { %v4390_v53 = vmul.f32 %v6113_v58, %v4389_v42  ;;  %v4442_v10 = vmul.f32 %v4385_v61, %v8397_v36  ;;  %v6117_v41 = vpop.eup %6116  ;;  %v5836_v36 = vld [vmem:[#allocation13 + $0x10] sm:$0xff] }
 0x7e0   :  { %v4445_v9 = vmul.f32 %v6117_v41, %v4362_v31  ;;  %4598 = vmatpush.bf16.msra.mxu0 %v5836_v36  ;;  %4690 = vmatpush.bf16.msra.mxu2 %v5856_v30  ;;  %v5852_v36 = vld [vmem:[#allocation14 + $0x10] sm:$0xff] }
 0x7e1   :  { %v4446_v52 = vadd.f32 %v4444_v60, %v4442_v10  ;;  %v4391_v48 = vadd.f32 %v6113_v58, %v4390_v53 }
 0x7e2   :  { %4611 = vmatpush.bf16.msra.mxu1 %v5844_v21 }
 0x7e3   :  { %v4395_v7 = vsel %vm4394_vm6, %v6113_v58, %v4391_v48 }
 0x7e4   :  { %v4400_v54 = vsel %vm4397_vm7, %v4399_v45, %v4395_v7  ;;  %4599 = vmatpush.bf16.msra.mxu0 %v5835_v51  ;;  %4691 = vmatpush.bf16.msra.mxu2 %v5855_v27 }
 0x7e5   :  { %v4443_v59 = vmul.f32 %v4400_v54, %v8400_v57 }
 0x7e6   :  { %4612 = vmatpush.bf16.msra.mxu1 %v5843_v26 }
 0x7e7   :  { %v4447_v23 = vadd.f32 %v4445_v9, %v4443_v59  ;;  %v5851_v59 = vld [vmem:[#allocation14 + $0x8] sm:$0xff] }
 0x7e8   :  { %v4275_v3 = vpop.f32.mrf.mxu0  ;;  %4600 = vmatpush.bf16.msra.mxu0 %v5834_v5  ;;  %4692 = vmatpush.bf16.msra.mxu2 %v5854_v63 }
 0x7ea   :  { %4613 = vmatpush.bf16.msra.mxu1 %v5842_v40 }
 0x7ec   :  { %4693 = vmatpush.bf16.msra.mxu2 %v5853_v8 }
 0x7ee   :  { %v4288_v43 = vpop.f32.mrf.mxu1  ;;  %v4301_v37 = vpop.f32.mrf.mxu2 }
 0x7ef   :  { %v4289_v29 = vadd.f32 %v4288_v43, %v4275_v3  ;;  %v5850_v3 = vld [vmem:[#allocation14] sm:$0xff] }
 0x7f0   :  { %v4277_v49 = vpop.f32.mrf.mxu0  ;;  %4694 = vmatpush.bf16.msra.mxu2 %v5852_v36 }
 0x7f1   :  { %v4324_v33 = vadd.f32 %v4289_v29, %v745_v19  ;;  %v5873_v29 = vld [vmem:[%s8587_s7] ss:$0 sm:$0xff] }
 0x7f3   :  { %v5544_v57 = vmul.f32 -1.442695, %v4324_v33 }
 0x7f4   :  { %v4314_v17 = vpop.f32.mrf.mxu3  ;;  %4695 = vmatpush.bf16.msra.mxu2 %v5851_v59 }
 0x7f5   :  { %6118 = vpow2.f32 %v5544_v57  ;;  %v4315_v32 = vadd.f32 %v4314_v17, %v4301_v37 }
 0x7f6   :  { %v4290_v24 = vpop.f32.mrf.mxu1  ;;  %v4303_v55 = vpop.f32.mrf.mxu2 }
 0x7f7   :  { %v4325_v0 = vadd.f32 %v4315_v32, %v774_v2 }
 0x7f8   :  { %4696 = vmatpush.bf16.msra.mxu2 %v5850_v3 }
 0x7f9   :  { %v5545_v20 = vmul.f32 -1.442695, %v4325_v0 }
 0x7fb   :  { %v6119_v56 = vpop.eup %6118  ;;  %6120 = vpow2.f32 %v5545_v20 }
 0x7fc   :  { %v4410_v58 = vadd.f32 1.0, %v6119_v56  ;;  %v4316_v4 = vpop.f32.mrf.mxu3 }
 0x7fe   :  { %6122 = vrcp.f32 %v4410_v58  ;;  %v4423_v60 = vand.u32 2147483648, %v4410_v58  ;;  %v4421_v42 = vand.u32 2147483647, %v4410_v58  ;;  %vm4417_vm9 = vweird.f32 %v4410_v58 }
 0x800   :  { %v4424_v62 = vor.u32 1.1754944e-38, %v4423_v60  ;;  %vm4422_vm11 = vcmp.eq.f32.partialorder %v4421_v42, 8.507059e+37 }
 0x801   :  { %v6121_v50 = vpop.eup %6120 }
 0x802   :  { %v4411_v47 = vadd.f32 1.0, %v6121_v50 }
 0x804   :  { %v6123_v11 = vpop.eup %6122  ;;  %6124 = vrcp.f32 %v4411_v47  ;;  %v4438_v53 = vand.u32 2147483648, %v4411_v47  ;;  %v4436_v31 = vand.u32 2147483647, %v4411_v47  ;;  %vm4432_vm13 = vweird.f32 %v4411_v47 }
 0x805   :  { %v4413_v46 = vmul.f32 %v6123_v11, %v4410_v58  ;;  %6126 = vtanh.f32 %v4446_v52  ;;  %vm4418_vm8 = vweird.f32 %v6123_v11 }
 0x806   :  { %vm4419_vm10 = vmor %vm4417_vm9, %vm4418_vm8  ;;  %6128 = vtanh.f32 %v4447_v23  ;;  %v4439_v48 = vor.u32 1.1754944e-38, %v4438_v53  ;;  %vm4437_vm15 = vcmp.eq.f32.partialorder %v4436_v31, 8.507059e+37  ;;  %v5872_v23 = vld [vmem:[%s8585_s5] ss:$0 sm:$0xff] }
 0x807   :  { %v4414_v38 = vsub.f32 1.0, %v4413_v46 }
 0x809   :  { %v4415_v1 = vmul.f32 %v6123_v11, %v4414_v38 }
 0x80a   :  { %v6125_v22 = vpop.eup %6124 }
 0x80b   :  { %v4428_v14 = vmul.f32 %v6125_v22, %v4411_v47  ;;  %v4416_v6 = vadd.f32 %v6123_v11, %v4415_v1  ;;  %v6127_v44 = vpop.eup %6126  ;;  %vm4433_vm12 = vweird.f32 %v6125_v22 }
 0x80c   :  { %vm4434_vm14 = vmor %vm4432_vm13, %vm4433_vm12  ;;  %v6129_v45 = vpop.eup %6128 }
 0x80d   :  { %v4429_v61 = vsub.f32 1.0, %v4428_v14  ;;  %v4420_v16 = vsel %vm4419_vm10, %v6123_v11, %v4416_v6 }
 0x80e   :  { %v4425_v10 = vsel %vm4422_vm11, %v4424_v62, %v4420_v16 }
 0x80f   :  { %v4430_v15 = vmul.f32 %v6125_v22, %v4429_v61  ;;  %v4450_v41 = vmul.f32 %v6127_v44, %v4425_v10 }
 0x811   :  { %v4459_v35 = vpack.c.bf16 %v4450_v41, %v4450_v41  ;;  %v4431_v52 = vadd.f32 %v6125_v22, %v4430_v15 }
 0x813   :  { %4601 = vmatmul.bf16.vlgmr.msra.gmra.mxu0 %v4459_v35  ;;  %v4435_v9 = vsel %vm4434_vm14, %v6125_v22, %v4431_v52 }
 0x814   :  { %v4440_v13 = vsel %vm4437_vm15, %v4439_v48, %v4435_v9 }
 0x815   :  { %v4451_v7 = vmul.f32 %v6129_v45, %v4440_v13 }
 0x817   :  { %v4460_v54 = vpack.c.bf16 %v4451_v7, %v4451_v7 }
 0x819   :  { %4614 = vmatmul.bf16.vlgmr.msra.gmra.mxu1 %v4460_v54 }
 0x890   :  { %v4602_v28 = vpop.f32.mrf.mxu0 }
 0x891   :  { %v4603_v51 = vadd.f32 %v5872_v23, %v4602_v28 }
 0x896   :  { %v4615_v21 = vpop.f32.mrf.mxu1 }
 0x897   :  { %v4616_v43 = vadd.f32 %v4615_v21, %v4603_v51 }
 0x898   :  { %v4604_v37 = vpop.f32.mrf.mxu0 }
 0x899   :  { %v4619_v39 = vmax.f32 %v4616_v43, 0.0 }
 0x89b   :  { %v4620_v18 = vpack.c.bf16 %v4619_v39, %v4619_v39 }
 0x89d   :  { %4697 = vmatmul.bf16.vlgmr.msra.gmra.mxu2 %v4620_v18 }
 0x89e   :  { %v4617_v19 = vpop.f32.mrf.mxu1 }
 0x920   :  { %v4698_v5 = vpop.f32.mrf.mxu2 }
 0x921   :  { %v4699_v26 = vadd.f32 %v5873_v29, %v4698_v5 }
 0x923   :  { %4702 = vst [vmem:[#allocation16] sm:$0xff] %v4699_v26 }
 0x924   :  { %4713 = dma.vmem_to_hbm [thread:$0]  %s4709_s18, 128, %s4711_s20, [#allocation7]  }
 0x928   :  { %v4700_v49 = vpop.f32.mrf.mxu2 }
 0x929   :  { %6306 = dma.done.wait [#allocation7], 128  }
 0x92a   :  { %6307 = vsyncadd [#allocation7], 4294967168 }
 0x92b   :  { %4718 = vsyncpa [#allocation6], 1 }
 0x92c   :  { %4719 = vsyncpa [#allocation9], 1 }
 0x92d   :  { %4720 = vsyncpa [#allocation12], 1 }
 0x92e   :  { %4721 = vsyncpa [#allocation15], 1 }
 0x92f   :  { %4722 = vsyncpa [#allocation7], 1 }

</bundles_post_ra>
